<compile_context>
chip_gen: v5e
topology: v5e:2x2
jax: 0.10.0
libtpu: 0.0.40
codegen_flags: <defaults>
</compile_context>

<pallas_src>
import functools

import jax
import jax.numpy as jnp
from jax import lax
from jax.experimental import pallas as pl
from jax.experimental.pallas import tpu as pltpu


# ------------------------------ Pallas kernel -------------------------------

def _conv_bn_relu_kernel(x_ref, w_ref, b_ref, o_ref, *,
                         ksize, out_h, out_w, big_k):
    """Fused conv(k,k,stride=1,'same') + folded-BN + ReLU for one batch block.

    x_ref: (nb, H+k-1, W+k-1, Cin)   zero-padded NHWC input block (bf16, VMEM).
    w_ref: (k*k, Cin, Cout_pad)      conv weight, tap-major, BN scale folded (bf16).
    b_ref: (1, Cout_pad)             folded BN bias (f32).
    o_ref: (nb*H*W, Cout_pad)        lane-dense output slab (f32).
    """
    nb = x_ref.shape[0]
    cin = x_ref.shape[-1]
    cout = w_ref.shape[-1]
    m = nb * out_h * out_w

    def tap(dy, dx):
        # Static slice of the zero-padded block -> (nb, H, W, Cin) window,
        # flattened into the matmul M dimension.  Stays in VMEM/vregs.
        t = x_ref[:, dy:dy + out_h, dx:dx + out_w, :]
        return t.reshape(m, cin)

    if big_k:
        # Cin is 128-aligned: fold all k*k taps into one big-K MXU matmul.
        if ksize == 1:
            im2col = tap(0, 0)
        else:
            im2col = jnp.concatenate(
                [tap(dy, dx) for dy in range(ksize) for dx in range(ksize)],
                axis=-1)                                   # (M, k*k*Cin)
        w2 = w_ref[...].reshape(ksize * ksize * cin, cout)
        y = jnp.dot(im2col, w2, preferred_element_type=jnp.float32)
    else:
        # Cin not lane-aligned: k*k accumulating dots (no lane-shift concat,
        # no (M, k*k*Cin) VMEM intermediate); MXU work is identical.
        y = jnp.zeros((m, cout), jnp.float32)
        for dy in range(ksize):
            for dx in range(ksize):
                y = y + jnp.dot(tap(dy, dx), w_ref[dy * ksize + dx],
                                preferred_element_type=jnp.float32)

    y = y + b_ref[...]                         # BN scale already in weights
    o_ref[...] = jnp.maximum(y, 0.0)           # f32 epilogue, unmasked store


# ------------------------------ host wrapper ---------------------------------

def _pick_batch_block(n, hw, per_image_vmem_bytes,
                      target_m=512, vmem_cap=8 * 1024 * 1024):
    """Largest divisor of n whose block fits a VMEM budget; stop growing once
    the matmul M dimension (nb*H*W) is comfortably filled."""
    nb = 1
    for cand in range(1, n + 1):
        if n % cand:
            continue
        if cand * per_image_vmem_bytes > vmem_cap:
            break
        nb = cand
        if cand * hw >= target_m:
            break
    return nb


@functools.partial(jax.jit, static_argnames="ksize")
def basic_conv2d(x_nchw, params, ksize):
    """BasicConv2d forward. NCHW in / NCHW out, matching the PyTorch module."""
    pad = ksize // 2
    x = jnp.transpose(x_nchw, (0, 2, 3, 1)).astype(jnp.float32)   # NCHW -> NHWC
    n, h, w_sp, cin = x.shape
    cout = params["w_hwio"].shape[-1]
    cout_pad = ((cout + 127) // 128) * 128
    hw = h * w_sp

    # Single zero-padded copy (halo only); cast MXU operand to bf16.
    xp = jnp.pad(x, ((0, 0), (pad, pad), (pad, pad), (0, 0))).astype(jnp.bfloat16)
    hp, wp = h + 2 * pad, w_sp + 2 * pad

    # Fold BN scale into the conv weight, pad Cout to a lane-dense multiple of
    # 128, lay out tap-major, and cast to bf16.
    w = params["w_hwio"] * params["scale"].reshape(1, 1, 1, cout)
    w = jnp.pad(w, ((0, 0), (0, 0), (0, 0), (0, cout_pad - cout)))
    w = w.reshape(ksize * ksize, cin, cout_pad).astype(jnp.bfloat16)
    bias = jnp.pad(params["bias"], (0, cout_pad - cout)).reshape(1, cout_pad)
    bias = bias.astype(jnp.float32)

    # Pack several images per grid step (rough VMEM estimate, double-buffered).
    per_img = 2 * (hp * wp * max(cin, 128) * 2 + hw * cout_pad * 4)
    nb = _pick_batch_block(n, hw, per_img)

    kernel = functools.partial(
        _conv_bn_relu_kernel, ksize=ksize, out_h=h, out_w=w_sp,
        big_k=(cin % 128 == 0))

    out = pl.pallas_call(
        kernel,
        out_shape=jax.ShapeDtypeStruct((n * hw, cout_pad), jnp.float32),
        grid=(n // nb,),
        in_specs=[
            pl.BlockSpec((nb, hp, wp, cin), lambda i: (i, 0, 0, 0)),
            pl.BlockSpec((ksize * ksize, cin, cout_pad), lambda i: (0, 0, 0)),
            pl.BlockSpec((1, cout_pad), lambda i: (0, 0)),
        ],
        out_specs=pl.BlockSpec((nb * hw, cout_pad), lambda i: (i, 0)),
        compiler_params=pltpu.CompilerParams(
            dimension_semantics=("parallel",)),
    )(xp, w, bias)

    out = out[:, :cout].reshape(n, h, w_sp, cout)
    return jnp.transpose(out, (0, 3, 1, 2))                       # NHWC -> NCHW


# ------------------------------ parameter init -------------------------------

def init_basic_conv(key, cin, cout, ksize):
    """Deterministic BasicConv2d params: conv weight + folded eval-mode BN."""
    k1, k2, k3, k4, k5 = jax.random.split(key, 5)
    w = jax.random.normal(k1, (ksize, ksize, cin, cout), jnp.float32) * 0.1
    gamma = 1.0 + 0.1 * jax.random.normal(k2, (cout,), jnp.float32)
    beta = 0.1 * jax.random.normal(k3, (cout,), jnp.float32)
    r_mean = 0.1 * jax.random.normal(k4, (cout,), jnp.float32)
    r_var = jax.random.uniform(k5, (cout,), jnp.float32, minval=0.5, maxval=1.5)
    scale = gamma / jnp.sqrt(r_var + 1e-3)            # BN eps = 0.001
    bias = beta - r_mean * scale
    return {"w_hwio": w, "scale": scale, "bias": bias}


# --------------------------- pure-JAX reference ------------------------------

def basic_conv2d_reference(x_nchw, params, ksize):
    pad = ksize // 2
    y = lax.conv_general_dilated(
        x_nchw.astype(jnp.float32), params["w_hwio"],
        window_strides=(1, 1), padding=[(pad, pad), (pad, pad)],
        dimension_numbers=("NCHW", "HWIO", "NCHW"))
    s = params["scale"].reshape(1, -1, 1, 1)
    b = params["bias"].reshape(1, -1, 1, 1)
    return jnp.maximum(y * s + b, 0.0)


# ----------------------------------- main ------------------------------------

if __name__ == "__main__":
    key = jax.random.PRNGKey(0)
    k_x, k_p3, k_p1 = jax.random.split(key, 3)

    N, C, H, W = 2, 4, 16, 16
    x = jax.random.normal(k_x, (N, C, H, W), jnp.float32)

    # Tolerances account for bf16 MXU operands vs. the f32 reference conv.
    ATOL = RTOL = 3e-2

    # 3x3, padding=1 BasicConv2d (the common GoogLeNet form).
    p3 = init_basic_conv(k_p3, C, 8, 3)
    out3 = jax.block_until_ready(basic_conv2d(x, p3, 3))
    assert out3.shape == (N, 8, H, W), out3.shape
    ref3 = jax.block_until_ready(basic_conv2d_reference(x, p3, 3))
    assert jnp.allclose(out3, ref3, atol=ATOL, rtol=RTOL), float(
        jnp.max(jnp.abs(out3 - ref3)))

    # 1x1 BasicConv2d (the Inception reduce convs).
    p1 = init_basic_conv(k_p1, C, 16, 1)
    out1 = jax.block_until_ready(basic_conv2d(x, p1, 1))
    assert out1.shape == (N, 16, H, W), out1.shape
    ref1 = jax.block_until_ready(basic_conv2d_reference(x, p1, 1))
    assert jnp.allclose(out1, ref1, atol=ATOL, rtol=RTOL), float(
        jnp.max(jnp.abs(out1 - ref1)))

    print("KERNEL_OK")
</pallas_src>

<mosaic_0001>
module attributes {stable_mosaic.version = 11 : i64} {
  func.func @_conv_bn_relu_kernel(%arg0: i32, %arg1: memref<2x18x18x4xbf16, #tpu.memory_space<vmem>>, %arg2: memref<9x4x128xbf16, #tpu.memory_space<vmem>>, %arg3: memref<1x128xf32, #tpu.memory_space<vmem>>, %arg4: memref<512x128xf32, #tpu.memory_space<vmem>>) attributes {dimension_semantics = [#tpu.dimension_semantics<parallel>], iteration_bounds = array<i64: 1>, scalar_prefetch = 0 : i64, scratch_operands = 0 : i64, tpu.core_type = #tpu.core_type<tc>, window_params = [{transform_indices = @transform_0, window_bounds = array<i64: 2, 18, 18, 4>}, {pipeline_mode = #tpu.pipeline_mode<synchronous>, transform_indices = @transform_1, window_bounds = array<i64: 9, 4, 128>}, {pipeline_mode = #tpu.pipeline_mode<synchronous>, transform_indices = @transform_2, window_bounds = array<i64: 1, 128>}, {transform_indices = @transform_3, window_bounds = array<i64: 512, 128>}]} {
    %cst = arith.constant 0.000000e+00 : f32
    %0 = vector.broadcast %cst : f32 to vector<512x128xf32>
    %c0 = arith.constant 0 : index
    %c0_0 = arith.constant 0 : index
    %c0_1 = arith.constant 0 : index
    %c0_2 = arith.constant 0 : index
    %1 = vector.load %arg1[%c0, %c0_0, %c0_1, %c0_2] : memref<2x18x18x4xbf16, #tpu.memory_space<vmem>>, vector<2x16x16x4xbf16>
    %2 = vector.shape_cast %1 : vector<2x16x16x4xbf16> to vector<512x4xbf16>
    %c0_3 = arith.constant 0 : index
    %c0_4 = arith.constant 0 : index
    %c0_5 = arith.constant 0 : index
    %3 = vector.load %arg2[%c0_3, %c0_4, %c0_5] : memref<9x4x128xbf16, #tpu.memory_space<vmem>>, vector<1x4x128xbf16>
    %4 = vector.shape_cast %3 : vector<1x4x128xbf16> to vector<4x128xbf16>
    %cst_6 = arith.constant dense<0.000000e+00> : vector<512x128xf32>
    %5 = tpu.matmul %2, %4, %cst_6 {dimension_numbers = #tpu.dot_dimension_numbers<[1], [0], [0], [1], [0, 0, 1, 1], [], []>} : vector<512x4xbf16>, vector<4x128xbf16>, vector<512x128xf32> -> vector<512x128xf32>
    %6 = arith.addf %0, %5 : vector<512x128xf32>
    %c0_7 = arith.constant 0 : index
    %c0_8 = arith.constant 0 : index
    %c1 = arith.constant 1 : index
    %c0_9 = arith.constant 0 : index
    %7 = vector.load %arg1[%c0_7, %c0_8, %c1, %c0_9] : memref<2x18x18x4xbf16, #tpu.memory_space<vmem>>, vector<2x16x16x4xbf16>
    %8 = vector.shape_cast %7 : vector<2x16x16x4xbf16> to vector<512x4xbf16>
    %c1_10 = arith.constant 1 : index
    %c0_11 = arith.constant 0 : index
    %c0_12 = arith.constant 0 : index
    %9 = vector.load %arg2[%c1_10, %c0_11, %c0_12] : memref<9x4x128xbf16, #tpu.memory_space<vmem>>, vector<1x4x128xbf16>
    %10 = vector.shape_cast %9 : vector<1x4x128xbf16> to vector<4x128xbf16>
    %cst_13 = arith.constant dense<0.000000e+00> : vector<512x128xf32>
    %11 = tpu.matmul %8, %10, %cst_13 {dimension_numbers = #tpu.dot_dimension_numbers<[1], [0], [0], [1], [0, 0, 1, 1], [], []>} : vector<512x4xbf16>, vector<4x128xbf16>, vector<512x128xf32> -> vector<512x128xf32>
    %12 = arith.addf %6, %11 : vector<512x128xf32>
    %c0_14 = arith.constant 0 : index
    %c0_15 = arith.constant 0 : index
    %c2 = arith.constant 2 : index
    %c0_16 = arith.constant 0 : index
    %13 = vector.load %arg1[%c0_14, %c0_15, %c2, %c0_16] : memref<2x18x18x4xbf16, #tpu.memory_space<vmem>>, vector<2x16x16x4xbf16>
    %14 = vector.shape_cast %13 : vector<2x16x16x4xbf16> to vector<512x4xbf16>
    %c2_17 = arith.constant 2 : index
    %c0_18 = arith.constant 0 : index
    %c0_19 = arith.constant 0 : index
    %15 = vector.load %arg2[%c2_17, %c0_18, %c0_19] : memref<9x4x128xbf16, #tpu.memory_space<vmem>>, vector<1x4x128xbf16>
    %16 = vector.shape_cast %15 : vector<1x4x128xbf16> to vector<4x128xbf16>
    %cst_20 = arith.constant dense<0.000000e+00> : vector<512x128xf32>
    %17 = tpu.matmul %14, %16, %cst_20 {dimension_numbers = #tpu.dot_dimension_numbers<[1], [0], [0], [1], [0, 0, 1, 1], [], []>} : vector<512x4xbf16>, vector<4x128xbf16>, vector<512x128xf32> -> vector<512x128xf32>
    %18 = arith.addf %12, %17 : vector<512x128xf32>
    %c0_21 = arith.constant 0 : index
    %c1_22 = arith.constant 1 : index
    %c0_23 = arith.constant 0 : index
    %c0_24 = arith.constant 0 : index
    %19 = vector.load %arg1[%c0_21, %c1_22, %c0_23, %c0_24] : memref<2x18x18x4xbf16, #tpu.memory_space<vmem>>, vector<2x16x16x4xbf16>
    %20 = vector.shape_cast %19 : vector<2x16x16x4xbf16> to vector<512x4xbf16>
    %c3 = arith.constant 3 : index
    %c0_25 = arith.constant 0 : index
    %c0_26 = arith.constant 0 : index
    %21 = vector.load %arg2[%c3, %c0_25, %c0_26] : memref<9x4x128xbf16, #tpu.memory_space<vmem>>, vector<1x4x128xbf16>
    %22 = vector.shape_cast %21 : vector<1x4x128xbf16> to vector<4x128xbf16>
    %cst_27 = arith.constant dense<0.000000e+00> : vector<512x128xf32>
    %23 = tpu.matmul %20, %22, %cst_27 {dimension_numbers = #tpu.dot_dimension_numbers<[1], [0], [0], [1], [0, 0, 1, 1], [], []>} : vector<512x4xbf16>, vector<4x128xbf16>, vector<512x128xf32> -> vector<512x128xf32>
    %24 = arith.addf %18, %23 : vector<512x128xf32>
    %c0_28 = arith.constant 0 : index
    %c1_29 = arith.constant 1 : index
    %c1_30 = arith.constant 1 : index
    %c0_31 = arith.constant 0 : index
    %25 = vector.load %arg1[%c0_28, %c1_29, %c1_30, %c0_31] : memref<2x18x18x4xbf16, #tpu.memory_space<vmem>>, vector<2x16x16x4xbf16>
    %26 = vector.shape_cast %25 : vector<2x16x16x4xbf16> to vector<512x4xbf16>
    %c4 = arith.constant 4 : index
    %c0_32 = arith.constant 0 : index
    %c0_33 = arith.constant 0 : index
    %27 = vector.load %arg2[%c4, %c0_32, %c0_33] : memref<9x4x128xbf16, #tpu.memory_space<vmem>>, vector<1x4x128xbf16>
    %28 = vector.shape_cast %27 : vector<1x4x128xbf16> to vector<4x128xbf16>
    %cst_34 = arith.constant dense<0.000000e+00> : vector<512x128xf32>
    %29 = tpu.matmul %26, %28, %cst_34 {dimension_numbers = #tpu.dot_dimension_numbers<[1], [0], [0], [1], [0, 0, 1, 1], [], []>} : vector<512x4xbf16>, vector<4x128xbf16>, vector<512x128xf32> -> vector<512x128xf32>
    %30 = arith.addf %24, %29 : vector<512x128xf32>
    %c0_35 = arith.constant 0 : index
    %c1_36 = arith.constant 1 : index
    %c2_37 = arith.constant 2 : index
    %c0_38 = arith.constant 0 : index
    %31 = vector.load %arg1[%c0_35, %c1_36, %c2_37, %c0_38] : memref<2x18x18x4xbf16, #tpu.memory_space<vmem>>, vector<2x16x16x4xbf16>
    %32 = vector.shape_cast %31 : vector<2x16x16x4xbf16> to vector<512x4xbf16>
    %c5 = arith.constant 5 : index
    %c0_39 = arith.constant 0 : index
    %c0_40 = arith.constant 0 : index
    %33 = vector.load %arg2[%c5, %c0_39, %c0_40] : memref<9x4x128xbf16, #tpu.memory_space<vmem>>, vector<1x4x128xbf16>
    %34 = vector.shape_cast %33 : vector<1x4x128xbf16> to vector<4x128xbf16>
    %cst_41 = arith.constant dense<0.000000e+00> : vector<512x128xf32>
    %35 = tpu.matmul %32, %34, %cst_41 {dimension_numbers = #tpu.dot_dimension_numbers<[1], [0], [0], [1], [0, 0, 1, 1], [], []>} : vector<512x4xbf16>, vector<4x128xbf16>, vector<512x128xf32> -> vector<512x128xf32>
    %36 = arith.addf %30, %35 : vector<512x128xf32>
    %c0_42 = arith.constant 0 : index
    %c2_43 = arith.constant 2 : index
    %c0_44 = arith.constant 0 : index
    %c0_45 = arith.constant 0 : index
    %37 = vector.load %arg1[%c0_42, %c2_43, %c0_44, %c0_45] : memref<2x18x18x4xbf16, #tpu.memory_space<vmem>>, vector<2x16x16x4xbf16>
    %38 = vector.shape_cast %37 : vector<2x16x16x4xbf16> to vector<512x4xbf16>
    %c6 = arith.constant 6 : index
    %c0_46 = arith.constant 0 : index
    %c0_47 = arith.constant 0 : index
    %39 = vector.load %arg2[%c6, %c0_46, %c0_47] : memref<9x4x128xbf16, #tpu.memory_space<vmem>>, vector<1x4x128xbf16>
    %40 = vector.shape_cast %39 : vector<1x4x128xbf16> to vector<4x128xbf16>
    %cst_48 = arith.constant dense<0.000000e+00> : vector<512x128xf32>
    %41 = tpu.matmul %38, %40, %cst_48 {dimension_numbers = #tpu.dot_dimension_numbers<[1], [0], [0], [1], [0, 0, 1, 1], [], []>} : vector<512x4xbf16>, vector<4x128xbf16>, vector<512x128xf32> -> vector<512x128xf32>
    %42 = arith.addf %36, %41 : vector<512x128xf32>
    %c0_49 = arith.constant 0 : index
    %c2_50 = arith.constant 2 : index
    %c1_51 = arith.constant 1 : index
    %c0_52 = arith.constant 0 : index
    %43 = vector.load %arg1[%c0_49, %c2_50, %c1_51, %c0_52] : memref<2x18x18x4xbf16, #tpu.memory_space<vmem>>, vector<2x16x16x4xbf16>
    %44 = vector.shape_cast %43 : vector<2x16x16x4xbf16> to vector<512x4xbf16>
    %c7 = arith.constant 7 : index
    %c0_53 = arith.constant 0 : index
    %c0_54 = arith.constant 0 : index
    %45 = vector.load %arg2[%c7, %c0_53, %c0_54] : memref<9x4x128xbf16, #tpu.memory_space<vmem>>, vector<1x4x128xbf16>
    %46 = vector.shape_cast %45 : vector<1x4x128xbf16> to vector<4x128xbf16>
    %cst_55 = arith.constant dense<0.000000e+00> : vector<512x128xf32>
    %47 = tpu.matmul %44, %46, %cst_55 {dimension_numbers = #tpu.dot_dimension_numbers<[1], [0], [0], [1], [0, 0, 1, 1], [], []>} : vector<512x4xbf16>, vector<4x128xbf16>, vector<512x128xf32> -> vector<512x128xf32>
    %48 = arith.addf %42, %47 : vector<512x128xf32>
    %c0_56 = arith.constant 0 : index
    %c2_57 = arith.constant 2 : index
    %c2_58 = arith.constant 2 : index
    %c0_59 = arith.constant 0 : index
    %49 = vector.load %arg1[%c0_56, %c2_57, %c2_58, %c0_59] : memref<2x18x18x4xbf16, #tpu.memory_space<vmem>>, vector<2x16x16x4xbf16>
    %50 = vector.shape_cast %49 : vector<2x16x16x4xbf16> to vector<512x4xbf16>
    %c8 = arith.constant 8 : index
    %c0_60 = arith.constant 0 : index
    %c0_61 = arith.constant 0 : index
    %51 = vector.load %arg2[%c8, %c0_60, %c0_61] : memref<9x4x128xbf16, #tpu.memory_space<vmem>>, vector<1x4x128xbf16>
    %52 = vector.shape_cast %51 : vector<1x4x128xbf16> to vector<4x128xbf16>
    %cst_62 = arith.constant dense<0.000000e+00> : vector<512x128xf32>
    %53 = tpu.matmul %50, %52, %cst_62 {dimension_numbers = #tpu.dot_dimension_numbers<[1], [0], [0], [1], [0, 0, 1, 1], [], []>} : vector<512x4xbf16>, vector<4x128xbf16>, vector<512x128xf32> -> vector<512x128xf32>
    %54 = arith.addf %48, %53 : vector<512x128xf32>
    %c0_63 = arith.constant 0 : index
    %c0_64 = arith.constant 0 : index
    %55 = vector.load %arg3[%c0_63, %c0_64] : memref<1x128xf32, #tpu.memory_space<vmem>>, vector<1x128xf32>
    %56 = vector.broadcast %55 : vector<1x128xf32> to vector<512x128xf32>
    %57 = arith.addf %54, %56 : vector<512x128xf32>
    %cst_65 = arith.constant 0.000000e+00 : f32
    %58 = vector.broadcast %cst_65 : f32 to vector<512x128xf32>
    %59 = arith.maximumf %57, %58 : vector<512x128xf32>
    %c0_66 = arith.constant 0 : index
    %c0_67 = arith.constant 0 : index
    %60 = vector.load %arg4[%c0_66, %c0_67] : memref<512x128xf32, #tpu.memory_space<vmem>>, vector<512x128xf32>
    tpu.vector_store %arg4[%c0_66, %c0_67], %59 {strides = array<i32>} : memref<512x128xf32, #tpu.memory_space<vmem>>, vector<512x128xf32>,
    return
  }
  func.func @transform_0(%arg0: i32) -> (i32, i32, i32, i32) {
    %c0_i32 = arith.constant 0 : i32
    %c0_i32_0 = arith.constant 0 : i32
    %c0_i32_1 = arith.constant 0 : i32
    %c0_i32_2 = arith.constant 0 : i32
    return %arg0, %c0_i32, %c0_i32_0, %c0_i32_1 : i32, i32, i32, i32
  }
  func.func @transform_1(%arg0: i32) -> (i32, i32, i32) {
    %c0_i32 = arith.constant 0 : i32
    %c0_i32_0 = arith.constant 0 : i32
    %c0_i32_1 = arith.constant 0 : i32
    %c0_i32_2 = arith.constant 0 : i32
    return %c0_i32, %c0_i32_0, %c0_i32_1 : i32, i32, i32
  }
  func.func @transform_2(%arg0: i32) -> (i32, i32) {
    %c0_i32 = arith.constant 0 : i32
    %c0_i32_0 = arith.constant 0 : i32
    %c0_i32_1 = arith.constant 0 : i32
    return %c0_i32, %c0_i32_0 : i32, i32
  }
  func.func @transform_3(%arg0: i32) -> (i32, i32) {
    %c0_i32 = arith.constant 0 : i32
    %c0_i32_0 = arith.constant 0 : i32
    return %arg0, %c0_i32 : i32, i32
  }
}

</mosaic_0001>

<bundles_post_ra>
// kernel: basic_conv2d.1
= control target key start
LH: loop header
LB: loop body
LE: loop exit
PB: predicated region body
PF: predicated region fallthrough
CT: control target
= control target key end

     0   :  { %vm1078_vm0 = vcmask 1041408   ;;  %vm112_vm1 = vsmask.f32 3328  ;;  %vm113_vm2 = vsmask.f32 7440  ;;  %vm981_vm4 = vcmask 31744   ;;  %s13275_s1 = inlined_call_operand.vmem [shape: bf16[9,4,128], index: 1, kind: input, shape index: {}]   ;;  %s13276_s0 = inlined_call_operand.vmem [shape: bf16[2,18,18,4], index: 0, kind: input, shape index: {}]   ;;  %s13277_s2 = inlined_call_operand.vmem [shape: f32[1,128], index: 2, kind: input, shape index: {}]   ;;  %s13278_s3 = inlined_call_operand.vmem [shape: f32[512,128], index: 3, kind: output, shape index: {}]  }
   0x1   :  { %v7902_v0 = vld [vmem:[%s13275_s1 + $0x2] sm:$0x3]  ;;  %v32_v2 = vld [vmem:[%s13276_s0 + $0x64] sm:$0xf]  ;;  %v88_v4 = vld [vmem:[%s13276_s0 + $0x68] sm:$0x1] }
   0x2   :  { %v31_v1 = vld [vmem:[%s13276_s0 + $0x60] sm:$0xf]  ;;  %v1080_v3 = vsel %vm1078_vm0, %v7902_v0, 0  ;;  %v317_v7 = vshll.u32 %v32_v2, 16  ;;  %v321_v8 = vshrl.u32 %v32_v2, 16  ;;  %v327_v9 = vshll.u32 %v88_v4, 16  ;;  %vm9333_vm3 = vmor %vm112_vm1, %vm113_vm2 }
   0x3   :  { %v308_v5 = vshrl.u32 %v31_v1, 16  ;;  %v311_v6 = vshll.u32 %v31_v1, 16  ;;  %9158 = vmatpush.bf16.msra.mxu1 %v1080_v3  ;;  %9159 = vmatpush.bf16.msra.mxu2 %v1080_v3  ;;  %v47_v10 = vld [vmem:[%s13276_s0 + $0xd8] sm:$0xf]  ;;  %v48_v14 = vld [vmem:[%s13276_s0 + $0xdc] sm:$0xf] }
   0x4   :  { %9160 = vmatpush.bf16.msra.mxu3 %v1080_v3  ;;  %1089 = vmatpush.bf16.msra.mxu0 %v1080_v3  ;;  %v319_v13 = vrot.slane %v317_v7, 5  ;;  %v500_v15 = vshrl.u32 %v47_v10, 16  ;;  %v323_v16 = vrot.slane %v321_v8, 4  ;;  %v96_v17 = vld [vmem:[%s13276_s0 + $0xe0] sm:$0x1]  ;;  %v503_v18 = vshll.u32 %v47_v10, 16 }
   0x5   :  { %v310_v11 = vrot.slane %v308_v5, 4  ;;  %v313_v12 = vrot.slane %v311_v6, 5  ;;  %v509_v19 = vshll.u32 %v48_v14, 16  ;;  %v513_v22 = vshrl.u32 %v48_v14, 16  ;;  %v63_v24 = vld [vmem:[%s13276_s0 + $0x138] sm:$0xf] }
   0x6   :  { %v502_v21 = vrot.slane %v500_v15, 4  ;;  %v519_v23 = vshll.u32 %v96_v17, 16  ;;  %v324_v26 = vor.u32 %v323_v16, %v319_v13  ;;  %v329_v27 = vrot.slane %v327_v9, 5  ;;  %v64_v30 = vld [vmem:[%s13276_s0 + $0x13c] sm:$0xf] }
   0x7   :  { %v314_v20 = vor.u32 %v313_v12, %v310_v11  ;;  %v505_v28 = vrot.slane %v503_v18, 5  ;;  %v511_v29 = vrot.slane %v509_v19, 5  ;;  %v515_v32 = vrot.slane %v513_v22, 4  ;;  %v104_v41 = vld [vmem:[%s13276_s0 + $0x140] sm:$0x1] }
   0x8   :  { %v521_v33 = vrot.slane %v519_v23, 5  ;;  %v692_v34 = vshrl.u32 %v63_v24, 16  ;;  %v325_v35 = vrot.slane %v324_v26, 4  ;;  %v695_v37 = vshll.u32 %v63_v24, 16  ;;  %v8127_v52 = vld [vmem:[%s13275_s1 + $0x4] sm:$0x3] }
   0x9   :  { %v315_v31 = vrot.slane %v314_v20, 4  ;;  %v506_v36 = vor.u32 %v505_v28, %v502_v21  ;;  %v701_v38 = vshll.u32 %v64_v30, 16  ;;  %v516_v40 = vor.u32 %v515_v32, %v511_v29  ;;  %v15_v56 = vld [vmem:[%s13276_s0] sm:$0xf]  ;;  %v16_v57 = vld [vmem:[%s13276_s0 + $0x4] sm:$0xf] }
   0xa   :  { %v694_v42 = vrot.slane %v692_v34, 4  ;;  %v705_v43 = vshrl.u32 %v64_v30, 16  ;;  %v330_v44 = vsel %vm9333_vm3, %v325_v35, %v329_v27  ;;  %v697_v47 = vrot.slane %v695_v37, 5  ;;  %v80_v62 = vld [vmem:[%s13276_s0 + $0x8] sm:$0x1] }
   0xb   :  { %v320_v39 = vsel %vm9333_vm3, %v315_v31, %v319_v13  ;;  %v507_v46 = vrot.slane %v506_v36, 4  ;;  %v902_v48 = vunpack.c.l.b16 %v330_v44  ;;  %v517_v49 = vrot.slane %v516_v40, 4  ;;  %v8224_v11 = vld [vmem:[%s13275_s1 + $0x6] sm:$0x3]  ;;  %v79_v12 = vld [vmem:[%s13275_s1] sm:$0x3] }
   0xc   :  { %v901_v45 = vunpack.c.l.b16 %v320_v39  ;;  %v703_v50 = vrot.slane %v701_v38, 5  ;;  %v707_v51 = vrot.slane %v705_v43, 4  ;;  %v698_v54 = vor.u32 %v697_v47, %v694_v42  ;;  %v8481_v17 = vld [vmem:[%s13275_s1 + $0x8] sm:$0x3]  ;;  %v33_v18 = vld [vmem:[%s13276_s0 + $0x6c] sm:$0xf] }
   0xd   :  { %v512_v53 = vsel %vm9333_vm3, %v507_v46, %v511_v29  ;;  %v711_v55 = vshll.u32 %v104_v41, 16  ;;  %v522_v59 = vsel %vm9333_vm3, %v517_v49, %v521_v33  ;;  %v2197_v2 = vsel %vm1078_vm0, %v8127_v52, 0  ;;  %v34_v22 = vld [vmem:[%s13276_s0 + $0x70] sm:$0xf]  ;;  %v89_v28 = vld [vmem:[%s13276_s0 + $0x74] sm:$0x1] }
   0xe   :  { %v957_v58 = vpack.c.b16 %v902_v48, %v901_v45  ;;  %v917_v60 = vunpack.c.l.b16 %v512_v53  ;;  %v708_v61 = vor.u32 %v707_v51, %v703_v50  ;;  %v918_v63 = vunpack.c.l.b16 %v522_v59  ;;  %2206 = vmatpush.bf16.msrb.mxu2 %v2197_v2  ;;  %v49_v37 = vld [vmem:[%s13276_s0 + $0xe4] sm:$0xf]  ;;  %v50_v41 = vld [vmem:[%s13276_s0 + $0xe8] sm:$0xf]  ;;  %v97_v46 = vld [vmem:[%s13276_s0 + $0xec] sm:$0x1] }
   0xf   :  { %v699_v0 = vrot.slane %v698_v54, 4  ;;  %v713_v1 = vrot.slane %v711_v55, 5  ;;  %v116_v4 = vshrl.u32 %v15_v56, 16  ;;  %v119_v5 = vshll.u32 %v15_v56, 16  ;;  %v65_v59 = vld [vmem:[%s13276_s0 + $0x144] sm:$0xf] }
  0x10   :  { %7911 = vmatmul.msk.bf16.vlgmr.msra.gmra.mxu1 %vm981_vm4, %v957_v58  ;;  %v709_v3 = vrot.slane %v708_v61, 4  ;;  %v125_v6 = vshll.u32 %v16_v57, 16  ;;  %v965_v7 = vpack.c.b16 %v918_v63, %v917_v60  ;;  %v129_v9 = vshrl.u32 %v16_v57, 16 }
  0x11   :  { %v704_v8 = vsel %vm9333_vm3, %v699_v0, %v703_v50  ;;  %v135_v10 = vshll.u32 %v80_v62, 16  ;;  %v118_v15 = vrot.slane %v116_v4, 4  ;;  %v121_v16 = vrot.slane %v119_v5, 5 }
  0x12   :  { %v714_v13 = vsel %vm9333_vm3, %v709_v3, %v713_v1  ;;  %v933_v14 = vunpack.c.l.b16 %v704_v8  ;;  %7919 = vmatmul.msk.bf16.vlgmr.msra.gmra.mxu2 %vm981_vm4, %v965_v7  ;;  %v127_v20 = vrot.slane %v125_v6, 5  ;;  %v131_v21 = vrot.slane %v129_v9, 4  ;;  %v66_v3 = vld [vmem:[%s13276_s0 + $0x148] sm:$0xf]  ;;  %v105_v7 = vld [vmem:[%s13276_s0 + $0x14c] sm:$0x1] }
  0x13   :  { %v934_v19 = vunpack.c.l.b16 %v714_v13  ;;  %v122_v23 = vor.u32 %v121_v16, %v118_v15  ;;  %v137_v24 = vrot.slane %v135_v10, 5  ;;  %v2756_v26 = vsel %vm1078_vm0, %v8224_v11, 0 }
  0x14   :  { %v1508_v27 = vsel %vm1078_vm0, %v79_v12, 0  ;;  %v132_v30 = vor.u32 %v131_v21, %v127_v20  ;;  %2765 = vmatpush.bf16.msrb.mxu3 %v2756_v26  ;;  %v4050_v31 = vsel %vm1078_vm0, %v8481_v17, 0  ;;  %v332_v32 = vshrl.u32 %v33_v18, 16  ;;  %v17_v21 = vld [vmem:[%s13276_s0 + $0xc] sm:$0xf] }
  0x15   :  { %v973_v29 = vpack.c.b16 %v934_v19, %v933_v14  ;;  %1517 = vmatpush.bf16.msrb.mxu1 %v1508_v27  ;;  %v123_v33 = vrot.slane %v122_v23, 4  ;;  %4059 = vmatpush.bf16.msrb.mxu0 %v4050_v31  ;;  %v335_v34 = vshll.u32 %v33_v18, 16  ;;  %v341_v35 = vshll.u32 %v34_v22, 16  ;;  %v18_v26 = vld [vmem:[%s13276_s0 + $0x10] sm:$0xf] }
  0x16   :  { %v345_v36 = vshrl.u32 %v34_v22, 16  ;;  %v133_v38 = vrot.slane %v132_v30, 4  ;;  %v334_v39 = vrot.slane %v332_v32, 4  ;;  %v351_v40 = vshll.u32 %v89_v28, 16  ;;  %v81_v27 = vld [vmem:[%s13276_s0 + $0x14] sm:$0x1] }
  0x17   :  { %7927 = vmatmul.msk.bf16.vlgmr.msra.gmra.mxu3 %vm981_vm4, %v973_v29  ;;  %v128_v42 = vsel %vm9333_vm3, %v123_v33, %v127_v20  ;;  %v337_v43 = vrot.slane %v335_v34, 5  ;;  %v343_v44 = vrot.slane %v341_v35, 5  ;;  %v524_v50 = vshrl.u32 %v49_v37, 16 }
  0x18   :  { %v347_v45 = vrot.slane %v345_v36, 4  ;;  %v138_v47 = vsel %vm9333_vm3, %v133_v38, %v137_v24  ;;  %v885_v48 = vunpack.c.l.b16 %v128_v42  ;;  %v353_v49 = vrot.slane %v351_v40, 5  ;;  %v35_v40 = vld [vmem:[%s13276_s0 + $0x78] sm:$0xf] }
  0x19   :  { %v886_v51 = vunpack.c.l.b16 %v138_v47  ;;  %v338_v52 = vor.u32 %v337_v43, %v334_v39  ;;  %v527_v54 = vshll.u32 %v49_v37, 16  ;;  %v526_v55 = vrot.slane %v524_v50, 4  ;;  %v90_v50 = vld [vmem:[%s13276_s0 + $0x80] sm:$0x1] }
  0x1a   :  { %v348_v53 = vor.u32 %v347_v45, %v343_v44  ;;  %v533_v56 = vshll.u32 %v50_v41, 16  ;;  %v537_v57 = vshrl.u32 %v50_v41, 16  ;;  %v543_v58 = vshll.u32 %v97_v46, 16  ;;  %v36_v45 = vld [vmem:[%s13276_s0 + $0x7c] sm:$0xf] }
  0x1b   :  { %v949_v60 = vpack.c.b16 %v886_v51, %v885_v48  ;;  %v339_v61 = vrot.slane %v338_v52, 4  ;;  %v529_v63 = vrot.slane %v527_v54, 5  ;;  %v716_v8 = vshrl.u32 %v65_v59, 16 }
  0x1c   :  { %v349_v62 = vrot.slane %v348_v53, 4  ;;  %v535_v0 = vrot.slane %v533_v56, 5  ;;  %v539_v1 = vrot.slane %v537_v57, 4  ;;  %v545_v2 = vrot.slane %v543_v58, 5 }
  0x1d   :  { %7903 = vmatmul.msk.bf16.vlgmr.msra.gmra.mxu0 %vm981_vm4, %v949_v60  ;;  %v344_v4 = vsel %vm9333_vm3, %v339_v61, %v343_v44  ;;  %v530_v6 = vor.u32 %v529_v63, %v526_v55  ;;  %v719_v12 = vshll.u32 %v65_v59, 16  ;;  %v718_v14 = vrot.slane %v716_v8, 4  ;;  %v51_v63 = vld [vmem:[%s13276_s0 + $0xf0] sm:$0xf]  ;;  %v98_v8 = vld [vmem:[%s13276_s0 + $0xf8] sm:$0x1] }
  0x1e   :  { %v354_v5 = vsel %vm9333_vm3, %v349_v62, %v353_v49  ;;  %v903_v9 = vunpack.c.l.b16 %v344_v4  ;;  %v540_v11 = vor.u32 %v539_v1, %v535_v0  ;;  %v725_v15 = vshll.u32 %v66_v3, 16  ;;  %v52_v4 = vld [vmem:[%s13276_s0 + $0xf4] sm:$0xf] }
  0x1f   :  { %v904_v10 = vunpack.c.l.b16 %v354_v5  ;;  %v531_v13 = vrot.slane %v530_v6, 4  ;;  %v729_v16 = vshrl.u32 %v66_v3, 16  ;;  %v721_v19 = vrot.slane %v719_v12, 5 }
  0x20   :  { %v541_v18 = vrot.slane %v540_v11, 4  ;;  %v735_v20 = vshll.u32 %v105_v7, 16  ;;  %v727_v23 = vrot.slane %v725_v15, 5  ;;  %v140_v34 = vshrl.u32 %v17_v21, 16 }
  0x21   :  { %v958_v17 = vpack.c.b16 %v904_v10, %v903_v9  ;;  %v536_v22 = vsel %vm9333_vm3, %v531_v13, %v535_v0  ;;  %v731_v24 = vrot.slane %v729_v16, 4  ;;  %v722_v30 = vor.u32 %v721_v19, %v718_v14 }
  0x22   :  { %v546_v28 = vsel %vm9333_vm3, %v541_v18, %v545_v2  ;;  %v919_v29 = vunpack.c.l.b16 %v536_v22  ;;  %v737_v31 = vrot.slane %v735_v20, 5  ;;  %v143_v35 = vshll.u32 %v17_v21, 16  ;;  %v67_v21 = vld [vmem:[%s13276_s0 + $0x150] sm:$0xf] }
  0x23   :  { %7912 = vmatmul.msk.bf16.gmra.mxu1 %vm981_vm4, %v958_v17  ;;  %v920_v32 = vunpack.c.l.b16 %v546_v28  ;;  %v732_v33 = vor.u32 %v731_v24, %v727_v23  ;;  %v723_v36 = vrot.slane %v722_v30, 4  ;;  %v149_v37 = vshll.u32 %v18_v26, 16 }
  0x24   :  { %v153_v38 = vshrl.u32 %v18_v26, 16  ;;  %v159_v39 = vshll.u32 %v81_v27, 16  ;;  %v142_v43 = vrot.slane %v140_v34, 4  ;;  %v145_v44 = vrot.slane %v143_v35, 5  ;;  %v68_v27 = vld [vmem:[%s13276_s0 + $0x154] sm:$0xf] }
  0x25   :  { %v966_v41 = vpack.c.b16 %v920_v32, %v919_v29  ;;  %v733_v42 = vrot.slane %v732_v33, 4  ;;  %v728_v46 = vsel %vm9333_vm3, %v723_v36, %v727_v23  ;;  %v151_v47 = vrot.slane %v149_v37, 5 }
  0x26   :  { %v155_v48 = vrot.slane %v153_v38, 4  ;;  %v161_v49 = vrot.slane %v159_v39, 5  ;;  %v935_v52 = vunpack.c.l.b16 %v728_v46  ;;  %v146_v53 = vor.u32 %v145_v44, %v142_v43  ;;  %v19_v44 = vld [vmem:[%s13276_s0 + $0x18] sm:$0xf] }
  0x27   :  { %7920 = vmatmul.msk.bf16.gmra.mxu2 %vm981_vm4, %v966_v41  ;;  %v738_v51 = vsel %vm9333_vm3, %v733_v42, %v737_v31  ;;  %v356_v54 = vshrl.u32 %v35_v40, 16  ;;  %v359_v57 = vshll.u32 %v35_v40, 16  ;;  %v365_v58 = vshll.u32 %v36_v45, 16  ;;  %v106_v31 = vld [vmem:[%s13276_s0 + $0x158] sm:$0x1] }
  0x28   :  { %v936_v55 = vunpack.c.l.b16 %v738_v51  ;;  %v156_v56 = vor.u32 %v155_v48, %v151_v47  ;;  %v147_v59 = vrot.slane %v146_v53, 4  ;;  %v369_v61 = vshrl.u32 %v36_v45, 16  ;;  %v82_v53 = vld [vmem:[%s13276_s0 + $0x20] sm:$0x1] }
  0x29   :  { %v358_v60 = vrot.slane %v356_v54, 4  ;;  %v375_v62 = vshll.u32 %v90_v50, 16  ;;  %v361_v2 = vrot.slane %v359_v57, 5  ;;  %v367_v3 = vrot.slane %v365_v58, 5 }
  0x2a   :  { %v974_v0 = vpack.c.b16 %v936_v55, %v935_v52  ;;  %v157_v1 = vrot.slane %v156_v56, 4  ;;  %v152_v5 = vsel %vm9333_vm3, %v147_v59, %v151_v47  ;;  %v371_v6 = vrot.slane %v369_v61, 4 }
  0x2b   :  { %v377_v7 = vrot.slane %v375_v62, 5  ;;  %v887_v10 = vunpack.c.l.b16 %v152_v5  ;;  %v362_v11 = vor.u32 %v361_v2, %v358_v60  ;;  %v548_v12 = vshrl.u32 %v51_v63, 16  ;;  %v37_v62 = vld [vmem:[%s13276_s0 + $0x84] sm:$0xf] }
  0x2c   :  { %7928 = vmatmul.msk.bf16.gmra.mxu3 %vm981_vm4, %v974_v0  ;;  %v162_v9 = vsel %vm9333_vm3, %v157_v1, %v161_v49  ;;  %v372_v14 = vor.u32 %v371_v6, %v367_v3  ;;  %v551_v15 = vshll.u32 %v51_v63, 16  ;;  %v557_v16 = vshll.u32 %v52_v4, 16  ;;  %v20_v49 = vld [vmem:[%s13276_s0 + $0x1c] sm:$0xf] }
  0x2d   :  { %v888_v13 = vunpack.c.l.b16 %v162_v9  ;;  %v363_v17 = vrot.slane %v362_v11, 4  ;;  %v550_v18 = vrot.slane %v548_v12, 4  ;;  %v561_v19 = vshrl.u32 %v52_v4, 16  ;;  %v91_v11 = vld [vmem:[%s13276_s0 + $0x8c] sm:$0x1] }
  0x2e   :  { %v567_v20 = vshll.u32 %v98_v8, 16  ;;  %v373_v23 = vrot.slane %v372_v14, 4  ;;  %v553_v24 = vrot.slane %v551_v15, 5  ;;  %v559_v26 = vrot.slane %v557_v16, 5 }
  0x2f   :  { %v950_v22 = vpack.c.b16 %v888_v13, %v887_v10  ;;  %v368_v28 = vsel %vm9333_vm3, %v363_v17, %v367_v3  ;;  %v563_v29 = vrot.slane %v561_v19, 4  ;;  %v740_v35 = vshrl.u32 %v67_v21, 16 }
  0x30   :  { %v569_v30 = vrot.slane %v567_v20, 5  ;;  %v378_v32 = vsel %vm9333_vm3, %v373_v23, %v377_v7  ;;  %v905_v33 = vunpack.c.l.b16 %v368_v28  ;;  %v554_v34 = vor.u32 %v553_v24, %v550_v18  ;;  %v38_v7 = vld [vmem:[%s13276_s0 + $0x88] sm:$0xf] }
  0x31   :  { %7904 = vmatmul.msk.bf16.gmra.mxu0 %vm981_vm4, %v950_v22  ;;  %v906_v36 = vunpack.c.l.b16 %v378_v32  ;;  %v564_v37 = vor.u32 %v563_v29, %v559_v26  ;;  %v743_v38 = vshll.u32 %v67_v21, 16  ;;  %v749_v39 = vshll.u32 %v68_v27, 16 }
  0x32   :  { %v555_v40 = vrot.slane %v554_v34, 4  ;;  %v742_v41 = vrot.slane %v740_v35, 4  ;;  %v753_v42 = vshrl.u32 %v68_v27, 16  ;;  %v759_v43 = vshll.u32 %v106_v31, 16  ;;  %v99_v35 = vld [vmem:[%s13276_s0 + $0x104] sm:$0x1] }
  0x33   :  { %v959_v45 = vpack.c.b16 %v906_v36, %v905_v33  ;;  %v565_v46 = vrot.slane %v564_v37, 4  ;;  %v745_v47 = vrot.slane %v743_v38, 5  ;;  %v751_v48 = vrot.slane %v749_v39, 5 }
  0x34   :  { %v560_v50 = vsel %vm9333_vm3, %v555_v40, %v559_v26  ;;  %v755_v51 = vrot.slane %v753_v42, 4  ;;  %v761_v52 = vrot.slane %v759_v43, 5  ;;  %v164_v57 = vshrl.u32 %v19_v44, 16  ;;  %v53_v26 = vld [vmem:[%s13276_s0 + $0xfc] sm:$0xf] }
  0x35   :  { %7913 = vmatmul.msk.bf16.gmra.mxu1 %vm981_vm4, %v959_v45  ;;  %v570_v54 = vsel %vm9333_vm3, %v565_v46, %v569_v30  ;;  %v921_v55 = vunpack.c.l.b16 %v560_v50  ;;  %v746_v56 = vor.u32 %v745_v47, %v742_v41  ;;  %v167_v60 = vshll.u32 %v19_v44, 16  ;;  %v54_v30 = vld [vmem:[%s13276_s0 + $0x100] sm:$0xf] }
  0x36   :  { %v922_v58 = vunpack.c.l.b16 %v570_v54  ;;  %v756_v59 = vor.u32 %v755_v51, %v751_v48  ;;  %v173_v61 = vshll.u32 %v20_v49, 16  ;;  %v166_v0 = vrot.slane %v164_v57, 4  ;;  %v107_v57 = vld [vmem:[%s13276_s0 + $0x164] sm:$0x1] }
  0x37   :  { %v747_v63 = vrot.slane %v746_v56, 4  ;;  %v177_v1 = vshrl.u32 %v20_v49, 16  ;;  %v183_v2 = vshll.u32 %v82_v53, 16  ;;  %v169_v5 = vrot.slane %v167_v60, 5  ;;  %v70_v53 = vld [vmem:[%s13276_s0 + $0x160] sm:$0xf] }
  0x38   :  { %v967_v3 = vpack.c.b16 %v922_v58, %v921_v55  ;;  %v757_v4 = vrot.slane %v756_v59, 4  ;;  %v175_v6 = vrot.slane %v173_v61, 5  ;;  %v380_v12 = vshrl.u32 %v37_v62, 16 }
  0x39   :  { %v752_v8 = vsel %vm9333_vm3, %v747_v63, %v751_v48  ;;  %v179_v9 = vrot.slane %v177_v1, 4  ;;  %v185_v10 = vrot.slane %v183_v2, 5  ;;  %v170_v15 = vor.u32 %v169_v5, %v166_v0  ;;  %v69_v48 = vld [vmem:[%s13276_s0 + $0x15c] sm:$0xf] }
  0x3a   :  { %7921 = vmatmul.msk.bf16.gmra.mxu2 %vm981_vm4, %v967_v3  ;;  %v762_v13 = vsel %vm9333_vm3, %v757_v4, %v761_v52  ;;  %v937_v14 = vunpack.c.l.b16 %v752_v8  ;;  %v383_v16 = vshll.u32 %v37_v62, 16  ;;  %v382_v19 = vrot.slane %v380_v12, 4 }
  0x3b   :  { %v938_v17 = vunpack.c.l.b16 %v762_v13  ;;  %v180_v18 = vor.u32 %v179_v9, %v175_v6  ;;  %v389_v20 = vshll.u32 %v38_v7, 16  ;;  %v171_v21 = vrot.slane %v170_v15, 4  ;;  %v83_v15 = vld [vmem:[%s13276_s0 + $0x2c] sm:$0x1] }
  0x3c   :  { %v385_v22 = vrot.slane %v383_v16, 5  ;;  %v393_v23 = vshrl.u32 %v38_v7, 16  ;;  %v399_v24 = vshll.u32 %v91_v11, 16  ;;  %v572_v38 = vshrl.u32 %v53_v26, 16  ;;  %v22_v11 = vld [vmem:[%s13276_s0 + $0x28] sm:$0xf] }
  0x3d   :  { %v975_v27 = vpack.c.b16 %v938_v17, %v937_v14  ;;  %v181_v28 = vrot.slane %v180_v18, 4  ;;  %v391_v29 = vrot.slane %v389_v20, 5  ;;  %v176_v31 = vsel %vm9333_vm3, %v171_v21, %v175_v6  ;;  %v21_v6 = vld [vmem:[%s13276_s0 + $0x24] sm:$0xf] }
  0x3e   :  { %v386_v32 = vor.u32 %v385_v22, %v382_v19  ;;  %v395_v33 = vrot.slane %v393_v23, 4  ;;  %v401_v34 = vrot.slane %v399_v24, 5  ;;  %v889_v37 = vunpack.c.l.b16 %v176_v31  ;;  %v39_v24 = vld [vmem:[%s13276_s0 + $0x90] sm:$0xf] }
  0x3f   :  { %7929 = vmatmul.msk.bf16.gmra.mxu3 %vm981_vm4, %v975_v27  ;;  %v186_v36 = vsel %vm9333_vm3, %v181_v28, %v185_v10  ;;  %v575_v39 = vshll.u32 %v53_v26, 16  ;;  %v581_v43 = vshll.u32 %v54_v30, 16  ;;  %v574_v44 = vrot.slane %v572_v38, 4 }
  0x40   :  { %v890_v40 = vunpack.c.l.b16 %v186_v36  ;;  %v387_v41 = vrot.slane %v386_v32, 4  ;;  %v396_v42 = vor.u32 %v395_v33, %v391_v29  ;;  %v585_v46 = vshrl.u32 %v54_v30, 16  ;;  %v40_v30 = vld [vmem:[%s13276_s0 + $0x94] sm:$0xf] }
  0x41   :  { %v577_v45 = vrot.slane %v575_v39, 5  ;;  %v591_v47 = vshll.u32 %v99_v35, 16  ;;  %v583_v52 = vrot.slane %v581_v43, 5  ;;  %v764_v60 = vshrl.u32 %v69_v48, 16  ;;  %v92_v39 = vld [vmem:[%s13276_s0 + $0x98] sm:$0x1] }
  0x42   :  { %v951_v49 = vpack.c.b16 %v890_v40, %v889_v37  ;;  %v392_v50 = vsel %vm9333_vm3, %v387_v41, %v391_v29  ;;  %v397_v51 = vrot.slane %v396_v42, 4  ;;  %v587_v56 = vrot.slane %v585_v46, 4 }
  0x43   :  { %v907_v54 = vunpack.c.l.b16 %v392_v50  ;;  %v578_v55 = vor.u32 %v577_v45, %v574_v44  ;;  %v593_v59 = vrot.slane %v591_v47, 5  ;;  %v767_v61 = vshll.u32 %v69_v48, 16 }
  0x44   :  { %7905 = vmatmul.msk.bf16.gmra.mxu0 %vm981_vm4, %v951_v49  ;;  %v402_v58 = vsel %vm9333_vm3, %v397_v51, %v401_v34  ;;  %v588_v0 = vor.u32 %v587_v56, %v583_v52  ;;  %v773_v1 = vshll.u32 %v70_v53, 16  ;;  %v766_v2 = vrot.slane %v764_v60, 4 }
  0x45   :  { %v908_v62 = vunpack.c.l.b16 %v402_v58  ;;  %v579_v63 = vrot.slane %v578_v55, 4  ;;  %v769_v3 = vrot.slane %v767_v61, 5  ;;  %v777_v4 = vshrl.u32 %v70_v53, 16  ;;  %v100_v61 = vld [vmem:[%s13276_s0 + $0x110] sm:$0x1] }
  0x46   :  { %v783_v5 = vshll.u32 %v107_v57, 16  ;;  %v589_v9 = vrot.slane %v588_v0, 4  ;;  %v775_v10 = vrot.slane %v773_v1, 5  ;;  %v188_v18 = vshrl.u32 %v21_v6, 16  ;;  %v56_v57 = vld [vmem:[%s13276_s0 + $0x10c] sm:$0xf] }
  0x47   :  { %v960_v7 = vpack.c.b16 %v908_v62, %v907_v54  ;;  %v584_v8 = vsel %vm9333_vm3, %v579_v63, %v583_v52  ;;  %v770_v13 = vor.u32 %v769_v3, %v766_v2  ;;  %v779_v14 = vrot.slane %v777_v4, 4  ;;  %v55_v52 = vld [vmem:[%s13276_s0 + $0x108] sm:$0xf] }
  0x48   :  { %v923_v12 = vunpack.c.l.b16 %v584_v8  ;;  %v594_v16 = vsel %vm9333_vm3, %v589_v9, %v593_v59  ;;  %v785_v17 = vrot.slane %v783_v5, 5  ;;  %v191_v19 = vshll.u32 %v21_v6, 16 }
  0x49   :  { %7914 = vmatmul.msk.bf16.gmra.mxu1 %vm981_vm4, %v960_v7  ;;  %v924_v20 = vunpack.c.l.b16 %v594_v16  ;;  %v771_v21 = vrot.slane %v770_v13, 4  ;;  %v780_v22 = vor.u32 %v779_v14, %v775_v10  ;;  %v197_v23 = vshll.u32 %v22_v11, 16 }
  0x4a   :  { %v190_v26 = vrot.slane %v188_v18, 4  ;;  %v193_v27 = vrot.slane %v191_v19, 5  ;;  %v201_v28 = vshrl.u32 %v22_v11, 16  ;;  %v207_v29 = vshll.u32 %v83_v15, 16  ;;  %v72_v15 = vld [vmem:[%s13276_s0 + $0x16c] sm:$0xf] }
  0x4b   :  { %v968_v31 = vpack.c.b16 %v924_v20, %v923_v12  ;;  %v776_v32 = vsel %vm9333_vm3, %v771_v21, %v775_v10  ;;  %v781_v33 = vrot.slane %v780_v22, 4  ;;  %v199_v34 = vrot.slane %v197_v23, 5  ;;  %v71_v10 = vld [vmem:[%s13276_s0 + $0x168] sm:$0xf]  ;;  %v108_v19 = vld [vmem:[%s13276_s0 + $0x170] sm:$0x1] }
  0x4c   :  { %v939_v35 = vunpack.c.l.b16 %v776_v32  ;;  %v194_v36 = vor.u32 %v193_v27, %v190_v26  ;;  %v203_v37 = vrot.slane %v201_v28, 4  ;;  %v209_v38 = vrot.slane %v207_v29, 5  ;;  %v23_v29 = vld [vmem:[%s13276_s0 + $0x30] sm:$0xf] }
  0x4d   :  { %7922 = vmatmul.msk.bf16.gmra.mxu2 %vm981_vm4, %v968_v31  ;;  %v786_v40 = vsel %vm9333_vm3, %v781_v33, %v785_v17  ;;  %v404_v41 = vshrl.u32 %v39_v24, 16  ;;  %v407_v42 = vshll.u32 %v39_v24, 16  ;;  %v413_v43 = vshll.u32 %v40_v30, 16 }
  0x4e   :  { %v940_v44 = vunpack.c.l.b16 %v786_v40  ;;  %v195_v45 = vrot.slane %v194_v36, 4  ;;  %v204_v46 = vor.u32 %v203_v37, %v199_v34  ;;  %v417_v47 = vshrl.u32 %v40_v30, 16 }
  0x4f   :  { %v406_v48 = vrot.slane %v404_v41, 4  ;;  %v409_v49 = vrot.slane %v407_v42, 5  ;;  %v415_v50 = vrot.slane %v413_v43, 5  ;;  %v423_v51 = vshll.u32 %v92_v39, 16  ;;  %v84_v39 = vld [vmem:[%s13276_s0 + $0x38] sm:$0x1] }
  0x50   :  { %v976_v53 = vpack.c.b16 %v940_v44, %v939_v35  ;;  %v200_v54 = vsel %vm9333_vm3, %v195_v45, %v199_v34  ;;  %v205_v55 = vrot.slane %v204_v46, 4  ;;  %v419_v56 = vrot.slane %v417_v47, 4  ;;  %v9593_v34 = vld [vmem:[%s13276_s0 + $0x34] sm:$0xf] }
  0x51   :  { %v891_v58 = vunpack.c.l.b16 %v200_v54  ;;  %v410_v59 = vor.u32 %v409_v49, %v406_v48  ;;  %v425_v60 = vrot.slane %v423_v51, 5  ;;  %v596_v0 = vshrl.u32 %v55_v52, 16  ;;  %v41_v51 = vld [vmem:[%s13276_s0 + $0x9c] sm:$0xf] }
  0x52   :  { %7930 = vmatmul.msk.bf16.gmra.mxu3 %vm981_vm4, %v976_v53  ;;  %v210_v62 = vsel %vm9333_vm3, %v205_v55, %v209_v38  ;;  %v420_v63 = vor.u32 %v419_v56, %v415_v50  ;;  %v599_v1 = vshll.u32 %v55_v52, 16  ;;  %v605_v4 = vshll.u32 %v56_v57, 16 }
  0x53   :  { %v892_v2 = vunpack.c.l.b16 %v210_v62  ;;  %v411_v3 = vrot.slane %v410_v59, 4  ;;  %v609_v5 = vshrl.u32 %v56_v57, 16  ;;  %v598_v7 = vrot.slane %v596_v0, 4  ;;  %v42_v59 = vld [vmem:[%s13276_s0 + $0xa0] sm:$0xf] }
  0x54   :  { %v421_v6 = vrot.slane %v420_v63, 4  ;;  %v601_v8 = vrot.slane %v599_v1, 5  ;;  %v615_v9 = vshll.u32 %v100_v61, 16  ;;  %v607_v13 = vrot.slane %v605_v4, 5  ;;  %v93_v63 = vld [vmem:[%s13276_s0 + $0xa4] sm:$0x1] }
  0x55   :  { %v952_v11 = vpack.c.b16 %v892_v2, %v891_v58  ;;  %v416_v12 = vsel %vm9333_vm3, %v411_v3, %v415_v50  ;;  %v611_v14 = vrot.slane %v609_v5, 4  ;;  %v788_v23 = vshrl.u32 %v71_v10, 16 }
  0x56   :  { %v426_v16 = vsel %vm9333_vm3, %v421_v6, %v425_v60  ;;  %v909_v17 = vunpack.c.l.b16 %v416_v12  ;;  %v602_v18 = vor.u32 %v601_v8, %v598_v7  ;;  %v617_v22 = vrot.slane %v615_v9, 5  ;;  %v57_v9 = vld [vmem:[%s13276_s0 + $0x114] sm:$0xf] }
  0x57   :  { %7906 = vmatmul.msk.bf16.gmra.mxu0 %vm981_vm4, %v952_v11  ;;  %v910_v20 = vunpack.c.l.b16 %v426_v16  ;;  %v612_v21 = vor.u32 %v611_v14, %v607_v13  ;;  %v791_v26 = vshll.u32 %v71_v10, 16  ;;  %v797_v27 = vshll.u32 %v72_v15, 16 }
  0x58   :  { %v603_v24 = vrot.slane %v602_v18, 4  ;;  %v801_v28 = vshrl.u32 %v72_v15, 16  ;;  %v790_v32 = vrot.slane %v788_v23, 4  ;;  %v807_v33 = vshll.u32 %v108_v19, 16 }
  0x59   :  { %v961_v30 = vpack.c.b16 %v910_v20, %v909_v17  ;;  %v613_v31 = vrot.slane %v612_v21, 4  ;;  %v793_v36 = vrot.slane %v791_v26, 5  ;;  %v799_v37 = vrot.slane %v797_v27, 5  ;;  %v58_v17 = vld [vmem:[%s13276_s0 + $0x118] sm:$0xf] }
  0x5a   :  { %v608_v35 = vsel %vm9333_vm3, %v603_v24, %v607_v13  ;;  %v803_v38 = vrot.slane %v801_v28, 4  ;;  %v809_v42 = vrot.slane %v807_v33, 5  ;;  %v212_v46 = vshrl.u32 %v23_v29, 16  ;;  %v101_v21 = vld [vmem:[%s13276_s0 + $0x11c] sm:$0x1] }
  0x5b   :  { %7915 = vmatmul.msk.bf16.gmra.mxu1 %vm981_vm4, %v961_v30  ;;  %v618_v40 = vsel %vm9333_vm3, %v613_v31, %v617_v22  ;;  %v925_v41 = vunpack.c.l.b16 %v608_v35  ;;  %v794_v44 = vor.u32 %v793_v36, %v790_v32  ;;  %v215_v47 = vshll.u32 %v23_v29, 16  ;;  %v73_v32 = vld [vmem:[%s13276_s0 + $0x174] sm:$0xf] }
  0x5c   :  { %v926_v43 = vunpack.c.l.b16 %v618_v40  ;;  %v804_v45 = vor.u32 %v803_v38, %v799_v37  ;;  %v221_v48 = vshll.u32 %v9593_v34, 16  ;;  %v225_v49 = vshrl.u32 %v9593_v34, 16 }
  0x5d   :  { %v231_v50 = vshll.u32 %v84_v39, 16  ;;  %v795_v53 = vrot.slane %v794_v44, 4  ;;  %v214_v55 = vrot.slane %v212_v46, 4  ;;  %v217_v56 = vrot.slane %v215_v47, 5 }
  0x5e   :  { %v969_v52 = vpack.c.b16 %v926_v43, %v925_v41  ;;  %v805_v54 = vrot.slane %v804_v45, 4  ;;  %v223_v57 = vrot.slane %v221_v48, 5  ;;  %v227_v58 = vrot.slane %v225_v49, 4  ;;  %v74_v41 = vld [vmem:[%s13276_s0 + $0x178] sm:$0xf] }
  0x5f   :  { %v800_v60 = vsel %vm9333_vm3, %v795_v53, %v799_v37  ;;  %v233_v62 = vrot.slane %v231_v50, 5  ;;  %v428_v0 = vshrl.u32 %v41_v51, 16  ;;  %v218_v3 = vor.u32 %v217_v56, %v214_v55  ;;  %v109_v45 = vld [vmem:[%s13276_s0 + $0x17c] sm:$0x1] }
  0x60   :  { %7923 = vmatmul.msk.bf16.gmra.mxu2 %vm981_vm4, %v969_v52  ;;  %v810_v61 = vsel %vm9333_vm3, %v805_v54, %v809_v42  ;;  %v941_v1 = vunpack.c.l.b16 %v800_v60  ;;  %v228_v4 = vor.u32 %v227_v58, %v223_v57  ;;  %v431_v6 = vshll.u32 %v41_v51, 16  ;;  %v25_v55 = vld [vmem:[%s13276_s0 + $0x3c] sm:$0xf] }
  0x61   :  { %v942_v2 = vunpack.c.l.b16 %v810_v61  ;;  %v430_v5 = vrot.slane %v428_v0, 4  ;;  %v437_v7 = vshll.u32 %v42_v59, 16  ;;  %v441_v8 = vshrl.u32 %v42_v59, 16 }
  0x62   :  { %v219_v11 = vrot.slane %v218_v3, 4  ;;  %v229_v12 = vrot.slane %v228_v4, 4  ;;  %v447_v13 = vshll.u32 %v93_v63, 16  ;;  %v433_v14 = vrot.slane %v431_v6, 5  ;;  %v9653_v63 = vld [vmem:[%s13276_s0 + $0x40] sm:$0xf] }
  0x63   :  { %v977_v10 = vpack.c.b16 %v942_v2, %v941_v1  ;;  %v439_v15 = vrot.slane %v437_v7, 5  ;;  %v443_v16 = vrot.slane %v441_v8, 4  ;;  %v620_v22 = vshrl.u32 %v57_v9, 16  ;;  %v9663_v3 = vld [vmem:[%s13276_s0 + $0x44] sm:$0x1] }
  0x64   :  { %v224_v18 = vsel %vm9333_vm3, %v219_v11, %v223_v57  ;;  %v234_v19 = vsel %vm9333_vm3, %v229_v12, %v233_v62  ;;  %v449_v20 = vrot.slane %v447_v13, 5  ;;  %v434_v26 = vor.u32 %v433_v14, %v430_v5  ;;  %v43_v13 = vld [vmem:[%s13276_s0 + $0xa8] sm:$0xf] }
  0x65   :  { %7931 = vmatmul.msk.bf16.gmra.mxu3 %vm981_vm4, %v977_v10  ;;  %v893_v23 = vunpack.c.l.b16 %v224_v18  ;;  %v894_v24 = vunpack.c.l.b16 %v234_v19  ;;  %v444_v27 = vor.u32 %v443_v16, %v439_v15  ;;  %v622_v28 = vrot.slane %v620_v22, 4 }
  0x66   :  { %v623_v29 = vshll.u32 %v57_v9, 16  ;;  %v629_v30 = vshll.u32 %v58_v17, 16  ;;  %v633_v31 = vshrl.u32 %v58_v17, 16  ;;  %v435_v35 = vrot.slane %v434_v26, 4  ;;  %v94_v26 = vld [vmem:[%s13276_s0 + $0xb0] sm:$0x1] }
  0x67   :  { %v953_v33 = vpack.c.b16 %v894_v24, %v893_v23  ;;  %v445_v36 = vrot.slane %v444_v27, 4  ;;  %v639_v37 = vshll.u32 %v101_v21, 16  ;;  %v812_v46 = vshrl.u32 %v73_v32, 16  ;;  %v44_v21 = vld [vmem:[%s13276_s0 + $0xac] sm:$0xf] }
  0x68   :  { %v625_v38 = vrot.slane %v623_v29, 5  ;;  %v631_v39 = vrot.slane %v629_v30, 5  ;;  %v635_v40 = vrot.slane %v633_v31, 4  ;;  %v440_v42 = vsel %vm9333_vm3, %v435_v35, %v439_v15 }
  0x69   :  { %7907 = vmatmul.msk.bf16.gmra.mxu0 %vm981_vm4, %v953_v33  ;;  %v450_v43 = vsel %vm9333_vm3, %v445_v36, %v449_v20  ;;  %v641_v44 = vrot.slane %v639_v37, 5  ;;  %v911_v47 = vunpack.c.l.b16 %v440_v42  ;;  %v814_v51 = vrot.slane %v812_v46, 4  ;;  %v59_v37 = vld [vmem:[%s13276_s0 + $0x120] sm:$0xf] }
  0x6a   :  { %v912_v48 = vunpack.c.l.b16 %v450_v43  ;;  %v626_v49 = vor.u32 %v625_v38, %v622_v28  ;;  %v636_v50 = vor.u32 %v635_v40, %v631_v39  ;;  %v815_v52 = vshll.u32 %v73_v32, 16 }
  0x6b   :  { %v821_v53 = vshll.u32 %v74_v41, 16  ;;  %v825_v54 = vshrl.u32 %v74_v41, 16  ;;  %v831_v59 = vshll.u32 %v109_v45, 16  ;;  %v236_v4 = vshrl.u32 %v25_v55, 16  ;;  %v60_v45 = vld [vmem:[%s13276_s0 + $0x124] sm:$0xf] }
  0x6c   :  { %v962_v56 = vpack.c.b16 %v912_v48, %v911_v47  ;;  %v627_v57 = vrot.slane %v626_v49, 4  ;;  %v637_v58 = vrot.slane %v636_v50, 4  ;;  %v817_v60 = vrot.slane %v815_v52, 5  ;;  %v102_v49 = vld [vmem:[%s13276_s0 + $0x128] sm:$0x1] }
  0x6d   :  { %v823_v61 = vrot.slane %v821_v53, 5  ;;  %v827_v62 = vrot.slane %v825_v54, 4  ;;  %v833_v2 = vrot.slane %v831_v59, 5  ;;  %v238_v9 = vrot.slane %v236_v4, 4  ;;  %v75_v59 = vld [vmem:[%s13276_s0 + $0x180] sm:$0xf] }
  0x6e   :  { %7916 = vmatmul.msk.bf16.gmra.mxu1 %vm981_vm4, %v962_v56  ;;  %v632_v0 = vsel %vm9333_vm3, %v627_v57, %v631_v39  ;;  %v642_v1 = vsel %vm9333_vm3, %v637_v58, %v641_v44  ;;  %v818_v7 = vor.u32 %v817_v60, %v814_v51  ;;  %v239_v10 = vshll.u32 %v25_v55, 16 }
  0x6f   :  { %v927_v5 = vunpack.c.l.b16 %v632_v0  ;;  %v928_v6 = vunpack.c.l.b16 %v642_v1  ;;  %v828_v8 = vor.u32 %v827_v62, %v823_v61  ;;  %v245_v11 = vshll.u32 %v9653_v63, 16 }
  0x70   :  { %v249_v12 = vshrl.u32 %v9653_v63, 16  ;;  %v819_v15 = vrot.slane %v818_v7, 4  ;;  %v255_v17 = vshll.u32 %v9663_v3, 16  ;;  %v241_v18 = vrot.slane %v239_v10, 5 }
  0x71   :  { %v970_v14 = vpack.c.b16 %v928_v6, %v927_v5  ;;  %v829_v16 = vrot.slane %v828_v8, 4  ;;  %v247_v19 = vrot.slane %v245_v11, 5  ;;  %v452_v27 = vshrl.u32 %v43_v13, 16  ;;  %v76_v5 = vld [vmem:[%s13276_s0 + $0x184] sm:$0xf] }
  0x72   :  { %v251_v20 = vrot.slane %v249_v12, 4  ;;  %v824_v22 = vsel %vm9333_vm3, %v819_v15, %v823_v61  ;;  %v257_v24 = vrot.slane %v255_v17, 5  ;;  %v242_v30 = vor.u32 %v241_v18, %v238_v9  ;;  %v110_v9 = vld [vmem:[%s13276_s0 + $0x188] sm:$0x1] }
  0x73   :  { %7924 = vmatmul.msk.bf16.gmra.mxu2 %vm981_vm4, %v970_v14  ;;  %v834_v23 = vsel %vm9333_vm3, %v829_v16, %v833_v2  ;;  %v943_v28 = vunpack.c.l.b16 %v824_v22  ;;  %v454_v32 = vrot.slane %v452_v27, 4  ;;  %v455_v33 = vshll.u32 %v43_v13, 16 }
  0x74   :  { %v944_v29 = vunpack.c.l.b16 %v834_v23  ;;  %v252_v31 = vor.u32 %v251_v20, %v247_v19  ;;  %v461_v35 = vshll.u32 %v44_v21, 16  ;;  %v465_v36 = vshrl.u32 %v44_v21, 16 }
  0x75   :  { %v243_v39 = vrot.slane %v242_v30, 4  ;;  %v471_v41 = vshll.u32 %v94_v26, 16  ;;  %v457_v42 = vrot.slane %v455_v33, 5  ;;  %v644_v50 = vshrl.u32 %v59_v37, 16 }
  0x76   :  { %v978_v38 = vpack.c.b16 %v944_v29, %v943_v28  ;;  %v253_v40 = vrot.slane %v252_v31, 4  ;;  %v463_v43 = vrot.slane %v461_v35, 5  ;;  %v467_v44 = vrot.slane %v465_v36, 4  ;;  %v9716_v28 = vld [vmem:[%s13276_s0 + $0x4c] sm:$0xf] }
  0x77   :  { %v248_v46 = vsel %vm9333_vm3, %v243_v39, %v247_v19  ;;  %v473_v48 = vrot.slane %v471_v41, 5  ;;  %v458_v53 = vor.u32 %v457_v42, %v454_v32  ;;  %v646_v55 = vrot.slane %v644_v50, 4  ;;  %v27_v19 = vld [vmem:[%s13276_s0 + $0x48] sm:$0xf]  ;;  %v9726_v32 = vld [vmem:[%s13276_s0 + $0x50] sm:$0x1] }
  0x78   :  { %7932 = vmatmul.msk.bf16.gmra.mxu3 %vm981_vm4, %v978_v38  ;;  %v258_v47 = vsel %vm9333_vm3, %v253_v40, %v257_v24  ;;  %v895_v51 = vunpack.c.l.b16 %v248_v46  ;;  %v468_v54 = vor.u32 %v467_v44, %v463_v43  ;;  %v647_v56 = vshll.u32 %v59_v37, 16 }
  0x79   :  { %v896_v52 = vunpack.c.l.b16 %v258_v47  ;;  %v653_v57 = vshll.u32 %v60_v45, 16  ;;  %v657_v58 = vshrl.u32 %v60_v45, 16  ;;  %v459_v61 = vrot.slane %v458_v53, 4 }
  0x7a   :  { %v469_v62 = vrot.slane %v468_v54, 4  ;;  %v663_v0 = vshll.u32 %v102_v49, 16  ;;  %v649_v1 = vrot.slane %v647_v56, 5  ;;  %v836_v10 = vshrl.u32 %v75_v59, 16 }
  0x7b   :  { %v954_v60 = vpack.c.b16 %v896_v52, %v895_v51  ;;  %v655_v2 = vrot.slane %v653_v57, 5  ;;  %v659_v4 = vrot.slane %v657_v58, 4  ;;  %v464_v6 = vsel %vm9333_vm3, %v459_v61, %v463_v43  ;;  %v45_v43 = vld [vmem:[%s13276_s0 + $0xb4] sm:$0xf]  ;;  %v46_v51 = vld [vmem:[%s13276_s0 + $0xb8] sm:$0xf] }
  0x7c   :  { %v474_v7 = vsel %vm9333_vm3, %v469_v62, %v473_v48  ;;  %v665_v8 = vrot.slane %v663_v0, 5  ;;  %v913_v11 = vunpack.c.l.b16 %v464_v6  ;;  %v650_v13 = vor.u32 %v649_v1, %v646_v55  ;;  %v95_v55 = vld [vmem:[%s13276_s0 + $0xbc] sm:$0x1] }
  0x7d   :  { %7908 = vmatmul.msk.bf16.gmra.mxu0 %vm981_vm4, %v954_v60  ;;  %v914_v12 = vunpack.c.l.b16 %v474_v7  ;;  %v660_v14 = vor.u32 %v659_v4, %v655_v2  ;;  %v838_v15 = vrot.slane %v836_v10, 4  ;;  %v839_v16 = vshll.u32 %v75_v59, 16 }
  0x7e   :  { %v845_v17 = vshll.u32 %v76_v5, 16  ;;  %v849_v18 = vshrl.u32 %v76_v5, 16  ;;  %v651_v21 = vrot.slane %v650_v13, 4  ;;  %v855_v23 = vshll.u32 %v110_v9, 16 }
  0x7f   :  { %v963_v20 = vpack.c.b16 %v914_v12, %v913_v11  ;;  %v661_v22 = vrot.slane %v660_v14, 4  ;;  %v841_v24 = vrot.slane %v839_v16, 5  ;;  %v260_v33 = vshrl.u32 %v27_v19, 16  ;;  %v62_v11 = vld [vmem:[%s13276_s0 + $0x130] sm:$0xf] }
  0x80   :  { %v847_v26 = vrot.slane %v845_v17, 5  ;;  %v851_v27 = vrot.slane %v849_v18, 4  ;;  %v656_v29 = vsel %vm9333_vm3, %v651_v21, %v655_v2  ;;  %v857_v31 = vrot.slane %v855_v23, 5  ;;  %v61_v2 = vld [vmem:[%s13276_s0 + $0x12c] sm:$0xf] }
  0x81   :  { %7917 = vmatmul.msk.bf16.gmra.mxu1 %vm981_vm4, %v963_v20  ;;  %v666_v30 = vsel %vm9333_vm3, %v661_v22, %v665_v8  ;;  %v929_v35 = vunpack.c.l.b16 %v656_v29  ;;  %v842_v37 = vor.u32 %v841_v24, %v838_v15  ;;  %v262_v39 = vrot.slane %v260_v33, 4  ;;  %v103_v16 = vld [vmem:[%s13276_s0 + $0x134] sm:$0x1] }
  0x82   :  { %v930_v36 = vunpack.c.l.b16 %v666_v30  ;;  %v852_v38 = vor.u32 %v851_v27, %v847_v26  ;;  %v263_v40 = vshll.u32 %v27_v19, 16  ;;  %v269_v41 = vshll.u32 %v9716_v28, 16  ;;  %v77_v27 = vld [vmem:[%s13276_s0 + $0x18c] sm:$0xf] }
  0x83   :  { %v273_v42 = vshrl.u32 %v9716_v28, 16  ;;  %v843_v45 = vrot.slane %v842_v37, 4  ;;  %v279_v47 = vshll.u32 %v9726_v32, 16  ;;  %v476_v56 = vshrl.u32 %v45_v43, 16 }
  0x84   :  { %v971_v44 = vpack.c.b16 %v930_v36, %v929_v35  ;;  %v853_v46 = vrot.slane %v852_v38, 4  ;;  %v265_v48 = vrot.slane %v263_v40, 5  ;;  %v271_v49 = vrot.slane %v269_v41, 5  ;;  %v78_v38 = vld [vmem:[%s13276_s0 + $0x190] sm:$0xf] }
  0x85   :  { %v275_v50 = vrot.slane %v273_v42, 4  ;;  %v848_v52 = vsel %vm9333_vm3, %v843_v45, %v847_v26  ;;  %v281_v54 = vrot.slane %v279_v47, 5  ;;  %v478_v61 = vrot.slane %v476_v56, 4  ;;  %v111_v42 = vld [vmem:[%s13276_s0 + $0x194] sm:$0x1] }
  0x86   :  { %7925 = vmatmul.msk.bf16.gmra.mxu2 %vm981_vm4, %v971_v44  ;;  %v858_v53 = vsel %vm9333_vm3, %v853_v46, %v857_v31  ;;  %v945_v57 = vunpack.c.l.b16 %v848_v52  ;;  %v266_v59 = vor.u32 %v265_v48, %v262_v39  ;;  %v479_v62 = vshll.u32 %v45_v43, 16  ;;  %v29_v52 = vld [vmem:[%s13276_s0 + $0x54] sm:$0xf] }
  0x87   :  { %v946_v58 = vunpack.c.l.b16 %v858_v53  ;;  %v276_v60 = vor.u32 %v275_v50, %v271_v49  ;;  %v485_v0 = vshll.u32 %v46_v51, 16  ;;  %v489_v1 = vshrl.u32 %v46_v51, 16 }
  0x88   :  { %v267_v5 = vrot.slane %v266_v59, 4  ;;  %v495_v7 = vshll.u32 %v95_v55, 16  ;;  %v481_v8 = vrot.slane %v479_v62, 5  ;;  %v668_v17 = vshrl.u32 %v61_v2, 16 }
  0x89   :  { %v979_v4 = vpack.c.b16 %v946_v58, %v945_v57  ;;  %v277_v6 = vrot.slane %v276_v60, 4  ;;  %v487_v9 = vrot.slane %v485_v0, 5  ;;  %v491_v10 = vrot.slane %v489_v1, 4  ;;  %v9781_v60 = vld [vmem:[%s13276_s0 + $0x58] sm:$0xf] }
  0x8a   :  { %v272_v13 = vsel %vm9333_vm3, %v267_v5, %v271_v49  ;;  %v497_v15 = vrot.slane %v495_v7, 5  ;;  %v482_v20 = vor.u32 %v481_v8, %v478_v61  ;;  %v670_v22 = vrot.slane %v668_v17, 4 }
  0x8b   :  { %7933 = vmatmul.msk.bf16.gmra.mxu3 %vm981_vm4, %v979_v4  ;;  %v282_v14 = vsel %vm9333_vm3, %v277_v6, %v281_v54  ;;  %v897_v18 = vunpack.c.l.b16 %v272_v13  ;;  %v492_v21 = vor.u32 %v491_v10, %v487_v9  ;;  %v671_v23 = vshll.u32 %v61_v2, 16  ;;  %v9795_v4 = vld [vmem:[%s13276_s0 + $0x5c] sm:$0x1] }
  0x8c   :  { %v898_v19 = vunpack.c.l.b16 %v282_v14  ;;  %v677_v24 = vshll.u32 %v62_v11, 16  ;;  %v681_v26 = vshrl.u32 %v62_v11, 16  ;;  %v483_v30 = vrot.slane %v482_v20, 4 }
  0x8d   :  { %v9751_v12 = vpop.f32.mrf.mxu1  ;;  %v493_v31 = vrot.slane %v492_v21, 4  ;;  %v687_v33 = vshll.u32 %v103_v16, 16  ;;  %v673_v35 = vrot.slane %v671_v23, 5  ;;  %v860_v43 = vshrl.u32 %v77_v27, 16  ;;  %v1679_v21 = vld [vmem:[%s13276_s0] sm:$0xe] }
  0x8e   :  { %v955_v29 = vpack.c.b16 %v898_v19, %v897_v18  ;;  %v679_v36 = vrot.slane %v677_v24, 5  ;;  %v683_v37 = vrot.slane %v681_v26, 4  ;;  %v488_v39 = vsel %vm9333_vm3, %v483_v30, %v487_v9 }
  0x8f   :  { %v498_v40 = vsel %vm9333_vm3, %v493_v31, %v497_v15  ;;  %v689_v41 = vrot.slane %v687_v33, 5  ;;  %v915_v44 = vunpack.c.l.b16 %v488_v39  ;;  %v674_v46 = vor.u32 %v673_v35, %v670_v22  ;;  %v9162_v22 = vld [vmem:[%s13276_s0 + $0x8] sm:$0x1]  ;;  %v8385_v35 = vld [vmem:[%s13276_s0 + $0xc] sm:$0xf] }
  0x90   :  { %7909 = vmatmul.msk.bf16.gmra.mxu0 %vm981_vm4, %v955_v29  ;;  %v916_v45 = vunpack.c.l.b16 %v498_v40  ;;  %v684_v47 = vor.u32 %v683_v37, %v679_v36  ;;  %v862_v48 = vrot.slane %v860_v43, 4  ;;  %v863_v49 = vshll.u32 %v77_v27, 16  ;;  %v8675_v29 = vld [vmem:[%s13275_s1 + $0xc] sm:$0x3]  ;;  %v8386_v40 = vld [vmem:[%s13276_s0 + $0x10] sm:$0xf] }
  0x91   :  { %v869_v50 = vshll.u32 %v78_v38, 16  ;;  %v873_v51 = vshrl.u32 %v78_v38, 16  ;;  %v675_v54 = vrot.slane %v674_v46, 4  ;;  %v879_v56 = vshll.u32 %v111_v42, 16  ;;  %v9163_v42 = vld [vmem:[%s13276_s0 + $0x4] sm:$0xf] }
  0x92   :  { %v964_v53 = vpack.c.b16 %v916_v45, %v915_v44  ;;  %v685_v55 = vrot.slane %v684_v47, 4  ;;  %v865_v57 = vrot.slane %v863_v49, 5  ;;  %v284_v5 = vshrl.u32 %v29_v52, 16 }
  0x93   :  { %v871_v58 = vrot.slane %v869_v50, 5  ;;  %v875_v59 = vrot.slane %v873_v51, 4  ;;  %v680_v0 = vsel %vm9333_vm3, %v675_v54, %v679_v36  ;;  %v881_v2 = vrot.slane %v879_v56, 5 }
  0x94   :  { %7918 = vmatmul.msk.bf16.gmra.mxu1 %vm981_vm4, %v964_v53  ;;  %v690_v1 = vsel %vm9333_vm3, %v685_v55, %v689_v41  ;;  %v931_v6 = vunpack.c.l.b16 %v680_v0  ;;  %v866_v8 = vor.u32 %v865_v57, %v862_v48  ;;  %v286_v11 = vrot.slane %v284_v5, 4  ;;  %v8387_v53 = vld [vmem:[%s13276_s0 + $0x14] sm:$0x1] }
  0x95   :  { %v9783_v61 = vpop.f32.mrf.mxu2  ;;  %v9785_v62 = vpop.f32.mrf.mxu1  ;;  %v932_v7 = vunpack.c.l.b16 %v690_v1  ;;  %v876_v9 = vor.u32 %v875_v59, %v871_v58  ;;  %v287_v13 = vshll.u32 %v29_v52, 16  ;;  %v293_v14 = vshll.u32 %v9781_v60, 16 }
  0x96   :  { %v297_v15 = vshrl.u32 %v9781_v60, 16  ;;  %v867_v18 = vrot.slane %v866_v8, 4  ;;  %v303_v20 = vshll.u32 %v9795_v4, 16  ;;  %v1783_v23 = vrot.slane %v9162_v22, 5 }
  0x97   :  { %v972_v17 = vpack.c.b16 %v932_v7, %v931_v6  ;;  %v877_v19 = vrot.slane %v876_v9, 4  ;;  %v289_v24 = vrot.slane %v287_v13, 5  ;;  %v295_v26 = vrot.slane %v293_v14, 5  ;;  %v8932_v6 = vld [vmem:[%s13275_s1 + $0xe] sm:$0x3]  ;;  %v9062_v9 = vld [vmem:[%s13276_s0] sm:$0xff] }
  0x98   :  { %v299_v27 = vrot.slane %v297_v15, 4  ;;  %v872_v30 = vsel %vm9333_vm3, %v867_v18, %v871_v58  ;;  %v305_v33 = vrot.slane %v303_v20, 5  ;;  %vm1775_vm5 = vcmask 1042432   ;;  %v8578_v7 = vld [vmem:[%s13275_s1 + $0xa] sm:$0x3] }
  0x99   :  { %7926 = vmatmul.msk.bf16.gmra.mxu2 %vm981_vm4, %v972_v17  ;;  %v882_v31 = vsel %vm9333_vm3, %v877_v19, %v881_v2  ;;  %v947_v36 = vunpack.c.l.b16 %v872_v30  ;;  %v290_v38 = vor.u32 %v289_v24, %v286_v11  ;;  %vm1776_vm6 = vcmask 1046532   ;;  %v9029_v15 = vld [vmem:[%s13275_s1 + $0x10] sm:$0x3] }
  0x9a   :  { %v9797_v10 = vpop.f32.mrf.mxu0  ;;  %v9801_v16 = vpop.f32.mrf.mxu3  ;;  %v948_v37 = vunpack.c.l.b16 %v882_v31  ;;  %v300_v39 = vor.u32 %v299_v27, %v295_v26  ;;  %v8095_v41 = vrot.slane %v1679_v21, 9  ;;  %v1780_v43 = vrot.slane %v9163_v42, 5  ;;  %vm9833_vm7 = vmor %vm1775_vm5, %vm1776_vm6  ;;  %v8388_v31 = vld [vmem:[%s13276_s0 + $0x18] sm:$0xf]  ;;  %v1680_v42 = vld [vmem:[%s13276_s0 + $0xc] sm:$0xe] }
  0x9b   :  { %13281 = vst [vmem:[#allocation2_spill] sm:$0xff] %v9801_v16  ;;  %v5391_v44 = vsel %vm1078_vm0, %v8675_v29, 0  ;;  %v291_v48 = vrot.slane %v290_v38, 4  ;;  %v3088_v51 = vshrl.u32 %v8385_v35, 16  ;;  %v3091_v54 = vshll.u32 %v8385_v35, 16 }
  0x9c   :  { %v980_v47 = vpack.c.b16 %v948_v37, %v947_v36  ;;  %v301_v49 = vrot.slane %v300_v39, 4  ;;  %5400 = vmatpush.bf16.msra.mxu2 %v5391_v44  ;;  %v1782_v52 = vrot.slane %v1780_v43, 4  ;;  %v3097_v55 = vshll.u32 %v8386_v40, 16  ;;  %v8389_v36 = vld [vmem:[%s13276_s0 + $0x1c] sm:$0xf] }
  0x9d   :  { %v9828_v45 = vpop.f32.mrf.mxu2  ;;  %v296_v56 = vsel %vm9333_vm3, %v291_v48, %v295_v26  ;;  %v1781_v58 = vsel %vm9833_vm7, %v8095_v41, %v1780_v43  ;;  %v3090_v59 = vrot.slane %v3088_v51, 4  ;;  %v3093_v5 = vrot.slane %v3091_v54, 5  ;;  %v9164_v39 = vld [vmem:[%s13276_s0 + $0x10] sm:$0xf] }
  0x9e   :  { %7934 = vmatmul.msk.bf16.gmra.mxu3 %vm981_vm4, %v980_v47  ;;  %v306_v57 = vsel %vm9333_vm3, %v301_v49, %v305_v33  ;;  %v899_v0 = vunpack.c.l.b16 %v296_v56  ;;  %v1784_v2 = vsel %vm9833_vm7, %v1782_v52, %v1783_v23  ;;  %v3099_v11 = vrot.slane %v3097_v55, 5  ;;  %v9094_v52 = vld [vmem:[%s13276_s0 + $0xc] sm:$0xff]  ;;  %v9165_v55 = vld [vmem:[%s13276_s0 + $0x14] sm:$0x1] }
  0x9f   :  { %v900_v1 = vunpack.c.l.b16 %v306_v57  ;;  %v3101_v13 = vshrl.u32 %v8386_v40, 16  ;;  %v3107_v14 = vshll.u32 %v8387_v53, 16  ;;  %v2004_v19 = vunpack.c.l.b16 %v1781_v58 }
  0xa0   :  { %v9830_v46 = vpop.f32.mrf.mxu1  ;;  %v2005_v20 = vunpack.c.l.b16 %v1784_v2  ;;  %v3094_v21 = vor.u32 %v3093_v5, %v3090_v59  ;;  %v6685_v23 = vsel %vm1078_vm0, %v8932_v6, 0  ;;  %v4832_v26 = vsel %vm1078_vm0, %v8578_v7, 0  ;;  %v8390_v6 = vld [vmem:[%s13276_s0 + $0x20] sm:$0x1] }
  0xa1   :  { %v956_v18 = vpack.c.b16 %v900_v1, %v899_v0  ;;  %v3103_v22 = vrot.slane %v3101_v13, 4  ;;  %6694 = vmatpush.bf16.msra.mxu3 %v6685_v23  ;;  %v7467_v27 = vsel %vm1078_vm0, %v9029_v15, 0  ;;  %v3109_v30 = vrot.slane %v3107_v14, 5  ;;  %4841 = vmatpush.bf16.msra.mxu1 %v4832_v26  ;;  %v9063_v15 = vld [vmem:[%s13276_s0 + $0xc] sm:$0xff] }
  0xa2   :  { %v9855_v8 = vpop.f32.mrf.mxu0  ;;  %v9863_v17 = vpop.f32.mrf.mxu3  ;;  %v3095_v24 = vrot.slane %v3094_v21, 4  ;;  %7476 = vmatpush.bf16.msra.mxu0 %v7467_v27  ;;  %v2068_v35 = vpack.c.b16 %v2005_v20, %v2004_v19  ;;  %v1787_v40 = vrot.slane %v9164_v39, 5  ;;  %v3112_v43 = vshrl.u32 %v8388_v31, 16 }
  0xa3   :  { %13284 = vst [vmem:[#allocation3_spill] sm:$0xff] %v9863_v17  ;;  %7910 = vmatmul.msk.bf16.gmra.mxu0 %vm981_vm4, %v956_v18  ;;  %v3104_v29 = vor.u32 %v3103_v22, %v3099_v11  ;;  %v3115_v47 = vshll.u32 %v8388_v31, 16  ;;  %v3121_v48 = vshll.u32 %v8389_v36, 16  ;;  %v3125_v49 = vshrl.u32 %v8389_v36, 16  ;;  %v8392_v31 = vld [vmem:[%s13276_s0 + $0x28] sm:$0xf] }
  0xa4   :  { %8063 = vmatmul.msk.bf16.vlgmr.msrb.gmra.mxu1 %vm981_vm4, %v9062_v9  ;;  %v3100_v41 = vsel %vm9333_vm3, %v3095_v24, %v3099_v11  ;;  %v8096_v53 = vrot.slane %v1680_v42, 9  ;;  %v1789_v54 = vrot.slane %v1787_v40, 4  ;;  %v1790_v56 = vrot.slane %v9165_v55, 5  ;;  %v8391_v24 = vld [vmem:[%s13276_s0 + $0x24] sm:$0xf] }
  0xa5   :  { %v3105_v38 = vrot.slane %v3104_v29, 4  ;;  %v3857_v58 = vunpack.c.l.b16 %v3100_v41  ;;  %v3114_v0 = vrot.slane %v3112_v43, 4  ;;  %v3117_v1 = vrot.slane %v3115_v47, 5  ;;  %v1681_v36 = vld [vmem:[%s13276_s0 + $0x18] sm:$0xe] }
  0xa6   :  { %v3123_v2 = vrot.slane %v3121_v48, 5  ;;  %v3127_v5 = vrot.slane %v3125_v49, 4  ;;  %v1788_v7 = vsel %vm9833_vm7, %v8096_v53, %v1787_v40  ;;  %v1791_v9 = vsel %vm9833_vm7, %v1789_v54, %v1790_v56  ;;  %v9095_v53 = vld [vmem:[%s13276_s0 + $0x18] sm:$0xff]  ;;  %v9167_v55 = vld [vmem:[%s13276_s0 + $0x20] sm:$0x1] }
  0xa7   :  { %v3110_v44 = vsel %vm9333_vm3, %v3105_v38, %v3109_v30  ;;  %v3118_v18 = vor.u32 %v3117_v1, %v3114_v0  ;;  %v3131_v20 = vshll.u32 %v8390_v6, 16  ;;  %v2006_v21 = vunpack.c.l.b16 %v1788_v7  ;;  %v9166_v38 = vld [vmem:[%s13276_s0 + $0x1c] sm:$0xf]  ;;  %v8393_v6 = vld [vmem:[%s13276_s0 + $0x2c] sm:$0x1] }
  0xa8   :  { %v9873_v33 = vpop.f32.mrf.mxu1  ;;  %v3858_v59 = vunpack.c.l.b16 %v3110_v44  ;;  %v3128_v19 = vor.u32 %v3127_v5, %v3123_v2  ;;  %v2007_v22 = vunpack.c.l.b16 %v1791_v9  ;;  %v1794_v39 = vrot.slane %v9166_v38, 5  ;;  %v8394_v38 = vld [vmem:[%s13276_s0 + $0x30] sm:$0xf] }
  0xa9   :  { %8128 = vmatmul.msk.bf16.vlgmr.msrb.gmra.mxu2 %vm981_vm4, %v2068_v35  ;;  %v3119_v26 = vrot.slane %v3118_v18, 4  ;;  %v3133_v29 = vrot.slane %v3131_v20, 5  ;;  %v3136_v40 = vshrl.u32 %v8391_v24, 16  ;;  %v3139_v41 = vshll.u32 %v8391_v24, 16 }
  0xaa   :  { %v9878_v37 = vpop.f32.mrf.mxu2  ;;  %v3921_v13 = vpack.c.b16 %v3858_v59, %v3857_v58  ;;  %v3129_v27 = vrot.slane %v3128_v19, 4  ;;  %v2069_v35 = vpack.c.b16 %v2007_v22, %v2006_v21  ;;  %v3145_v42 = vshll.u32 %v8392_v31, 16  ;;  %v9064_v22 = vld [vmem:[%s13276_s0 + $0x18] sm:$0xff] }
  0xab   :  { %v3149_v43 = vshrl.u32 %v8392_v31, 16  ;;  %v3124_v44 = vsel %vm9333_vm3, %v3119_v26, %v3123_v2  ;;  %v8097_v49 = vrot.slane %v1681_v36, 9  ;;  %v1796_v54 = vrot.slane %v1794_v39, 4 }
  0xac   :  { %v3134_v47 = vsel %vm9333_vm3, %v3129_v27, %v3133_v29  ;;  %v1797_v56 = vrot.slane %v9167_v55, 5  ;;  %v3138_v58 = vrot.slane %v3136_v40, 4  ;;  %v3141_v59 = vrot.slane %v3139_v41, 5 }
  0xad   :  { %v3859_v0 = vunpack.c.l.b16 %v3124_v44  ;;  %v3860_v1 = vunpack.c.l.b16 %v3134_v47  ;;  %v3147_v2 = vrot.slane %v3145_v42, 5  ;;  %v3151_v5 = vrot.slane %v3149_v43, 4  ;;  %v9168_v42 = vld [vmem:[%s13276_s0 + $0x28] sm:$0xf] }
  0xae   :  { %v9891_v51 = vpop.f32.mrf.mxu0  ;;  %8353 = vmatmul.msk.bf16.vlgmr.msrb.gmra.mxu3 %vm981_vm4, %v9094_v52  ;;  %v1795_v9 = vsel %vm9833_vm7, %v8097_v49, %v1794_v39  ;;  %v3155_v21 = vshll.u32 %v8393_v6, 16  ;;  %v8395_v39 = vld [vmem:[%s13276_s0 + $0x34] sm:$0xf]  ;;  %v1801_v43 = vrot.slane %v9168_v42, 5  ;;  %v3160_v44 = vshrl.u32 %v8394_v38, 16 }
  0xaf   :  { %v9899_v57 = vpop.f32.mrf.mxu3  ;;  %v3922_v19 = vpack.c.b16 %v3860_v1, %v3859_v0  ;;  %v3152_v20 = vor.u32 %v3151_v5, %v3147_v2  ;;  %v2008_v24 = vunpack.c.l.b16 %v1795_v9  ;;  %v3169_v55 = vshll.u32 %v8395_v39, 16  ;;  %v9096_v1 = vld [vmem:[%s13276_s0 + $0x24] sm:$0xff] }
  0xb0   :  { %13285 = vst [vmem:[#allocation4_spill] sm:$0xff] %v9899_v57  ;;  %v1803_v9 = vrot.slane %v1801_v43, 4 }
  0xb1   :  { %v3153_v31 = vrot.slane %v3152_v20, 4 }
  0xb2   :  { %v9909_v11 = vpop.f32.mrf.mxu1  ;;  %v9911_v14 = vpop.f32.mrf.mxu2 }
  0xb3   :  { %8482 = vmatmul.msk.bf16.vlgmr.msrb.gmra.mxu0 %vm981_vm4, %v3921_v13  ;;  %v1798_v13 = vsel %vm9833_vm7, %v1796_v54, %v1797_v56  ;;  %v3163_v54 = vshll.u32 %v8394_v38, 16  ;;  %v3173_v56 = vshrl.u32 %v8395_v39, 16 }
  0xb4   :  { %8064 = vmatmul.msk.bf16.gmra.mxu1 %vm981_vm4, %v9063_v15  ;;  %v3142_v15 = vor.u32 %v3141_v59, %v3138_v58  ;;  %v2009_v26 = vunpack.c.l.b16 %v1798_v13  ;;  %v9169_v59 = vld [vmem:[%s13276_s0 + $0x2c] sm:$0x1]  ;;  %v3162_v13 = vrot.slane %v3160_v44, 4 }
  0xb5   :  { %v1804_v0 = vrot.slane %v9169_v59, 5  ;;  %v3175_v20 = vrot.slane %v3173_v56, 4  ;;  %v8397_v59 = vld [vmem:[%s13276_s0 + $0x3c] sm:$0xf] }
  0xb6   :  { %v9917_v23 = vpop.f32.mrf.mxu0  ;;  %v3143_v27 = vrot.slane %v3142_v15, 4  ;;  %v2070_v40 = vpack.c.b16 %v2009_v26, %v2008_v24  ;;  %v3165_v15 = vrot.slane %v3163_v54, 5 }
  0xb7   :  { %v9923_v30 = vpop.f32.mrf.mxu3 }
  0xb8   :  { %13286 = vst [vmem:[#allocation5_spill] sm:$0xff] %v9923_v30  ;;  %v3148_v41 = vsel %vm9333_vm3, %v3143_v27, %v3147_v2  ;;  %v1805_v27 = vsel %vm9833_vm7, %v1803_v9, %v1804_v0  ;;  %v8398_v0 = vld [vmem:[%s13276_s0 + $0x40] sm:$0xf]  ;;  %v1683_v9 = vld [vmem:[%s13276_s0 + $0x30] sm:$0xe] }
  0xb9   :  { %8129 = vmatmul.msk.bf16.gmra.mxu2 %vm981_vm4, %v2069_v35  ;;  %v3157_v35 = vrot.slane %v3155_v21, 5  ;;  %v3861_v2 = vunpack.c.l.b16 %v3148_v41  ;;  %v2011_v44 = vunpack.c.l.b16 %v1805_v27 }
  0xba   :  { %v9938_v48 = vpop.f32.mrf.mxu1 }
  0xbb   :  { %v3158_v47 = vsel %vm9333_vm3, %v3153_v31, %v3157_v35  ;;  %v3166_v35 = vor.u32 %v3165_v15, %v3162_v13  ;;  %v3184_v13 = vshrl.u32 %v8397_v59, 16  ;;  %v3187_v15 = vshll.u32 %v8397_v59, 16 }
  0xbc   :  { %v3862_v5 = vunpack.c.l.b16 %v3158_v47 }
  0xbd   :  { %v9941_v52 = vpop.f32.mrf.mxu2 }
  0xbe   :  { %13287 = vst [vmem:[#allocation6_spill] sm:$0xff] %v9941_v52  ;;  %8354 = vmatmul.msk.bf16.gmra.mxu3 %vm981_vm4, %v9095_v53  ;;  %v1682_v53 = vld [vmem:[%s13276_s0 + $0x24] sm:$0xe]  ;;  %v3923_v31 = vpack.c.b16 %v3862_v5, %v3861_v2  ;;  %v1808_v2 = vrot.slane %v9593_v34, 5  ;;  %v9170_v34 = vld [vmem:[%s13276_s0 + $0x38] sm:$0x1] }
  0xbf   :  { %v8098_v6 = vrot.slane %v1682_v53, 9 }
  0xc1   :  { %v9952_v7 = vpop.f32.mrf.mxu0  ;;  %v1802_v26 = vsel %vm9833_vm7, %v8098_v6, %v1801_v43  ;;  %v3167_v43 = vrot.slane %v3166_v35, 4  ;;  %v1810_v35 = vrot.slane %v1808_v2, 4 }
  0xc2   :  { %v9959_v18 = vpop.f32.mrf.mxu3  ;;  %v2010_v42 = vunpack.c.l.b16 %v1802_v26  ;;  %v1811_v26 = vrot.slane %v9170_v34, 5 }
  0xc3   :  { %13288 = vst [vmem:[#allocation7_spill] sm:$0xff] %v9959_v18  ;;  %8483 = vmatmul.msk.bf16.gmra.mxu0 %vm981_vm4, %v3922_v19  ;;  %v3171_v19 = vrot.slane %v3169_v55, 5 }
  0xc4   :  { %8065 = vmatmul.msk.bf16.gmra.mxu1 %vm981_vm4, %v9064_v22  ;;  %v8396_v22 = vld [vmem:[%s13276_s0 + $0x38] sm:$0x1]  ;;  %v2071_v55 = vpack.c.b16 %v2011_v44, %v2010_v42  ;;  %v3186_v42 = vrot.slane %v3184_v13, 4  ;;  %v3189_v44 = vrot.slane %v3187_v15, 5  ;;  %v1812_v59 = vsel %vm9833_vm7, %v1810_v35, %v1811_v26  ;;  %v8401_v26 = vld [vmem:[%s13276_s0 + $0x4c] sm:$0xf] }
  0xc5   :  { %v9967_v36 = vpop.f32.mrf.mxu2  ;;  %v3176_v38 = vor.u32 %v3175_v20, %v3171_v19  ;;  %v3179_v39 = vshll.u32 %v8396_v22, 16  ;;  %v3172_v5 = vsel %vm9333_vm3, %v3167_v43, %v3171_v19  ;;  %v3193_v20 = vshll.u32 %v8398_v0, 16  ;;  %v9097_v19 = vld [vmem:[%s13276_s0 + $0x30] sm:$0xff] }
  0xc6   :  { %v9964_v29 = vpop.f32.mrf.mxu1  ;;  %13289 = vst [vmem:[#allocation8_spill] sm:$0xff] %v9967_v36  ;;  %v3197_v22 = vshrl.u32 %v8398_v0, 16  ;;  %v2013_v34 = vunpack.c.l.b16 %v1812_v59  ;;  %v3221_v59 = vshrl.u32 %v8401_v26, 16 }
  0xc7   :  { %v3177_v53 = vrot.slane %v3176_v38, 4  ;;  %v3181_v54 = vrot.slane %v3179_v39, 5  ;;  %v3863_v38 = vunpack.c.l.b16 %v3172_v5  ;;  %v3195_v43 = vrot.slane %v3193_v20, 5 }
  0xc9   :  { %v9983_v49 = vpop.f32.mrf.mxu0  ;;  %8130 = vmatmul.msk.bf16.gmra.mxu2 %vm981_vm4, %v2070_v40  ;;  %v9065_v40 = vld [vmem:[%s13276_s0 + $0x24] sm:$0xff]  ;;  %v3182_v6 = vsel %vm9333_vm3, %v3177_v53, %v3181_v54  ;;  %v3199_v53 = vrot.slane %v3197_v22, 4 }
  0xca   :  { %v9988_v58 = vpop.f32.mrf.mxu3  ;;  %v3864_v39 = vunpack.c.l.b16 %v3182_v6  ;;  %v8399_v54 = vld [vmem:[%s13276_s0 + $0x44] sm:$0x1]  ;;  %v9066_v6 = vld [vmem:[%s13276_s0 + $0x30] sm:$0xff] }
  0xcb   :  { %13290 = vst [vmem:[#allocation9_spill] sm:$0xff] %v9988_v58  ;;  %v3200_v13 = vor.u32 %v3199_v53, %v3195_v43  ;;  %v3203_v15 = vshll.u32 %v8399_v54, 16  ;;  %v1815_v54 = vrot.slane %v9653_v63, 5 }
  0xcc   :  { %v3924_v0 = vpack.c.b16 %v3864_v39, %v3863_v38 }
  0xcd   :  { %v3201_v35 = vrot.slane %v3200_v13, 4  ;;  %v3205_v38 = vrot.slane %v3203_v15, 5 }
  0xce   :  { %v9997_v21 = vpop.f32.mrf.mxu1  ;;  %8355 = vmatmul.msk.bf16.gmra.mxu3 %vm981_vm4, %v9096_v1 }
  0xd0   :  { %v10002_v24 = vpop.f32.mrf.mxu2 }
  0xd1   :  { %13291 = vst [vmem:[#allocation10_spill] sm:$0xff] %v10002_v24 }
  0xd3   :  { %8484 = vmatmul.msk.bf16.gmra.mxu0 %vm981_vm4, %v3923_v31  ;;  %v8099_v31 = vrot.slane %v1683_v9, 9  ;;  %v3190_v9 = vor.u32 %v3189_v44, %v3186_v42 }
  0xd4   :  { %v10012_v41 = vpop.f32.mrf.mxu0  ;;  %8066 = vmatmul.msk.bf16.gmra.mxu1 %vm981_vm4, %v9065_v40 }
  0xd5   :  { %v10014_v47 = vpop.f32.mrf.mxu3 }
  0xd6   :  { %13292 = vst [vmem:[#allocation11_spill] sm:$0xff] %v10014_v47 }
  0xd8   :  { %v10018_v56 = vpop.f32.mrf.mxu1  ;;  %v10026_v1 = vpop.f32.mrf.mxu2 }
  0xd9   :  { %13293 = vst [vmem:[#allocation12_spill] sm:$0xff] %v10026_v1  ;;  %8131 = vmatmul.msk.bf16.gmra.mxu2 %vm981_vm4, %v2071_v55  ;;  %v1809_v55 = vsel %vm9833_vm7, %v8099_v31, %v1808_v2  ;;  %v8400_v2 = vld [vmem:[%s13276_s0 + $0x48] sm:$0xf]  ;;  %v3191_v31 = vrot.slane %v3190_v9, 4  ;;  %v1818_v9 = vrot.slane %v9663_v3, 5 }
  0xda   :  { %v2012_v22 = vunpack.c.l.b16 %v1809_v55  ;;  %v3208_v44 = vshrl.u32 %v8400_v2, 16  ;;  %v3211_v53 = vshll.u32 %v8400_v2, 16  ;;  %v3217_v55 = vshll.u32 %v8401_v26, 16  ;;  %v8402_v3 = vld [vmem:[%s13276_s0 + $0x50] sm:$0x1] }
  0xdb   :  { %v1817_v26 = vrot.slane %v1815_v54, 4 }
  0xdc   :  { %v10043_v27 = vpop.f32.mrf.mxu0  ;;  %v2072_v39 = vpack.c.b16 %v2013_v34, %v2012_v22  ;;  %v3210_v15 = vrot.slane %v3208_v44, 4  ;;  %v3213_v63 = vrot.slane %v3211_v53, 5  ;;  %v9098_v22 = vld [vmem:[%s13276_s0 + $0x3c] sm:$0xff] }
  0xdd   :  { %v10045_v40 = vpop.f32.mrf.mxu3  ;;  %v1819_v53 = vsel %vm9833_vm7, %v1817_v26, %v1818_v9 }
  0xde   :  { %13294 = vst [vmem:[#allocation13_spill] sm:$0xff] %v10045_v40  ;;  %8356 = vmatmul.msk.bf16.gmra.mxu3 %vm981_vm4, %v9097_v19  ;;  %v3196_v40 = vsel %vm9333_vm3, %v3191_v31, %v3195_v43  ;;  %v3219_v43 = vrot.slane %v3217_v55, 5  ;;  %v3223_v31 = vrot.slane %v3221_v59, 4  ;;  %v3227_v55 = vshll.u32 %v8402_v3, 16 }
  0xdf   :  { %v1822_v3 = vrot.slane %v9716_v28, 5  ;;  %v9099_v28 = vld [vmem:[%s13276_s0 + $0x48] sm:$0xff] }
  0xe0   :  { %v10055_v5 = vpop.f32.mrf.mxu1  ;;  %v3229_v58 = vrot.slane %v3227_v55, 5 }
  0xe3   :  { %v10060_v20 = vpop.f32.mrf.mxu2  ;;  %8485 = vmatmul.msk.bf16.gmra.mxu0 %vm981_vm4, %v3924_v0  ;;  %v1684_v0 = vld [vmem:[%s13276_s0 + $0x3c] sm:$0xe] }
  0xe4   :  { %13295 = vst [vmem:[#allocation14_spill] sm:$0xff] %v10060_v20  ;;  %8067 = vmatmul.msk.bf16.gmra.mxu1 %vm981_vm4, %v9066_v6  ;;  %v3206_v6 = vsel %vm9333_vm3, %v3201_v35, %v3205_v38  ;;  %v8100_v2 = vrot.slane %v1684_v0, 9  ;;  %v3214_v38 = vor.u32 %v3213_v63, %v3210_v15  ;;  %v3224_v0 = vor.u32 %v3223_v31, %v3219_v43 }
  0xe5   :  { %v3866_v35 = vunpack.c.l.b16 %v3206_v6  ;;  %v9067_v6 = vld [vmem:[%s13276_s0 + $0x3c] sm:$0xff]  ;;  %v2015_v63 = vunpack.c.l.b16 %v1819_v53 }
  0xe6   :  { %v10069_v19 = vpop.f32.mrf.mxu0  ;;  %v1816_v44 = vsel %vm9833_vm7, %v8100_v2, %v1815_v54  ;;  %v3225_v47 = vrot.slane %v3224_v0, 4  ;;  %v8404_v2 = vld [vmem:[%s13276_s0 + $0x58] sm:$0xf] }
  0xe7   :  { %v2014_v15 = vunpack.c.l.b16 %v1816_v44  ;;  %v3241_v0 = vshll.u32 %v8404_v2, 16  ;;  %v3245_v55 = vshrl.u32 %v8404_v2, 16 }
  0xe8   :  { %v10072_v42 = vpop.f32.mrf.mxu3 }
  0xe9   :  { %13296 = vst [vmem:[#allocation15_spill] sm:$0xff] %v10072_v42  ;;  %8132 = vmatmul.msk.bf16.gmra.mxu2 %vm981_vm4, %v2072_v39  ;;  %v3865_v42 = vunpack.c.l.b16 %v3196_v40  ;;  %v2073_v26 = vpack.c.b16 %v2015_v63, %v2014_v15  ;;  %v1824_v63 = vrot.slane %v1822_v3, 4  ;;  %v3247_v2 = vrot.slane %v3245_v55, 4  ;;  %v9068_v55 = vld [vmem:[%s13276_s0 + $0x48] sm:$0xff] }
  0xeb   :  { %v10084_v13 = vpop.f32.mrf.mxu1  ;;  %v10089_v34 = vpop.f32.mrf.mxu2  ;;  %v3925_v59 = vpack.c.b16 %v3866_v35, %v3865_v42  ;;  %v8403_v42 = vld [vmem:[%s13276_s0 + $0x54] sm:$0xf]  ;;  %v3230_v35 = vsel %vm9333_vm3, %v3225_v47, %v3229_v58 }
  0xec   :  { %13297 = vst [vmem:[#allocation16_spill] sm:$0xff] %v10089_v34  ;;  %v3232_v44 = vshrl.u32 %v8403_v42, 16  ;;  %v3235_v53 = vshll.u32 %v8403_v42, 16  ;;  %v3868_v47 = vunpack.c.l.b16 %v3230_v35 }
  0xee   :  { %8357 = vmatmul.msk.bf16.gmra.mxu3 %vm981_vm4, %v9098_v22  ;;  %v10095_v39 = vpop.f32.mrf.mxu0  ;;  %v3215_v22 = vrot.slane %v3214_v38, 4  ;;  %v1685_v38 = vld [vmem:[%s13276_s0 + $0x48] sm:$0xe]  ;;  %v3237_v42 = vrot.slane %v3235_v53, 5 }
  0xef   :  { %v8101_v15 = vrot.slane %v1685_v38, 9 }
  0xf0   :  { %v10101_v40 = vpop.f32.mrf.mxu3  ;;  %v3220_v31 = vsel %vm9333_vm3, %v3215_v22, %v3219_v43  ;;  %v3234_v22 = vrot.slane %v3232_v44, 4 }
  0xf1   :  { %13298 = vst [vmem:[#allocation17_spill] sm:$0xff] %v10101_v40  ;;  %v3867_v58 = vunpack.c.l.b16 %v3220_v31  ;;  %v3243_v40 = vrot.slane %v3241_v0, 5  ;;  %v1823_v31 = vsel %vm9833_vm7, %v8101_v15, %v1822_v3 }
  0xf2   :  { %v3238_v44 = vor.u32 %v3237_v42, %v3234_v22 }
  0xf3   :  { %8486 = vmatmul.msk.bf16.gmra.mxu0 %vm981_vm4, %v3925_v59  ;;  %v10107_v54 = vpop.f32.mrf.mxu1  ;;  %v3926_v38 = vpack.c.b16 %v3868_v47, %v3867_v58  ;;  %v3248_v53 = vor.u32 %v3247_v2, %v3243_v40  ;;  %v8406_v58 = vld [vmem:[%s13276_s0 + $0x60] sm:$0xf]  ;;  %v8407_v47 = vld [vmem:[%s13276_s0 + $0x64] sm:$0xf] }
  0xf4   :  { %8068 = vmatmul.msk.bf16.gmra.mxu1 %vm981_vm4, %v9067_v6  ;;  %v1825_v6 = vrot.slane %v9726_v32, 5  ;;  %v8405_v32 = vld [vmem:[%s13276_s0 + $0x5c] sm:$0x1]  ;;  %v3239_v3 = vrot.slane %v3238_v44, 4 }
  0xf5   :  { %v3251_v0 = vshll.u32 %v8405_v32, 16  ;;  %v3249_v15 = vrot.slane %v3248_v53, 4  ;;  %v3256_v32 = vshrl.u32 %v8406_v58, 16 }
  0xf6   :  { %v10110_v9 = vpop.f32.mrf.mxu2  ;;  %v1826_v35 = vsel %vm9833_vm7, %v1824_v63, %v1825_v6  ;;  %v1829_v63 = vrot.slane %v9781_v60, 5  ;;  %v3244_v22 = vsel %vm9333_vm3, %v3239_v3, %v3243_v40  ;;  %v1832_v60 = vrot.slane %v9795_v4, 5  ;;  %v8408_v4 = vld [vmem:[%s13276_s0 + $0x68] sm:$0x1] }
  0xf7   :  { %13299 = vst [vmem:[#allocation18_spill] sm:$0xff] %v10110_v9  ;;  %v2017_v30 = vunpack.c.l.b16 %v1826_v35  ;;  %v3253_v17 = vrot.slane %v3251_v0, 5  ;;  %v3265_v35 = vshll.u32 %v8407_v47, 16  ;;  %v3869_v53 = vunpack.c.l.b16 %v3244_v22 }
  0xf8   :  { %v1831_v44 = vrot.slane %v1829_v63, 4  ;;  %v3258_v3 = vrot.slane %v3256_v32, 4 }
  0xf9   :  { %8133 = vmatmul.msk.bf16.gmra.mxu2 %vm981_vm4, %v2073_v26  ;;  %v3254_v42 = vsel %vm9333_vm3, %v3249_v15, %v3253_v17  ;;  %v9100_v17 = vld [vmem:[%s13276_s0 + $0x54] sm:$0xff] }
  0xfa   :  { %v10126_v59 = vpop.f32.mrf.mxu0  ;;  %v3870_v0 = vunpack.c.l.b16 %v3254_v42  ;;  %v9069_v42 = vld [vmem:[%s13276_s0 + $0x54] sm:$0xff] }
  0xfb   :  { %v10130_v43 = vpop.f32.mrf.mxu3 }
  0xfc   :  { %13300 = vst [vmem:[#allocation19_spill] sm:$0xff] %v10130_v43  ;;  %v2016_v43 = vunpack.c.l.b16 %v1823_v31  ;;  %v3259_v31 = vshll.u32 %v8406_v58, 16  ;;  %v3927_v22 = vpack.c.b16 %v3870_v0, %v3869_v53  ;;  %v8410_v53 = vld [vmem:[%s13276_s0 + $0x70] sm:$0xf] }
  0xfe   :  { %v10138_v18 = vpop.f32.mrf.mxu1  ;;  %8358 = vmatmul.msk.bf16.gmra.mxu3 %vm981_vm4, %v9099_v28  ;;  %v10141_v26 = vpop.f32.mrf.mxu2  ;;  %v2074_v6 = vpack.c.b16 %v2017_v30, %v2016_v43  ;;  %v1686_v30 = vld [vmem:[%s13276_s0 + $0x54] sm:$0xe]  ;;  %v3261_v15 = vrot.slane %v3259_v31, 5  ;;  %v3275_v31 = vshll.u32 %v8408_v4, 16  ;;  %v1687_v4 = vld [vmem:[%s13276_s0 + $0x60] sm:$0xe] }
  0xff   :  { %13301 = vst [vmem:[#allocation20_spill] sm:$0xff] %v10141_v26  ;;  %v8102_v40 = vrot.slane %v1686_v30, 9  ;;  %v8411_v26 = vld [vmem:[%s13276_s0 + $0x74] sm:$0x1] }
 0x100   :  { %v3262_v30 = vor.u32 %v3261_v15, %v3258_v3  ;;  %v9171_v3 = vld [vmem:[%s13276_s0 + $0x64] sm:$0xf] }
 0x101   :  { %v1836_v15 = vrot.slane %v9171_v3, 5  ;;  %v8103_v3 = vrot.slane %v1687_v4, 9 }
 0x102   :  { %v10150_v57 = vpop.f32.mrf.mxu0 }
 0x103   :  { %8487 = vmatmul.msk.bf16.gmra.mxu0 %vm981_vm4, %v3926_v38  ;;  %v10153_v28 = vpop.f32.mrf.mxu3  ;;  %v3269_v38 = vshrl.u32 %v8407_v47, 16  ;;  %v1833_v47 = vsel %vm9833_vm7, %v1831_v44, %v1832_v60 }
 0x104   :  { %13302 = vst [vmem:[#allocation21_spill] sm:$0xff] %v10153_v28  ;;  %8069 = vmatmul.msk.bf16.gmra.mxu1 %vm981_vm4, %v9068_v55  ;;  %v3267_v28 = vrot.slane %v3265_v35, 5 }
 0x105   :  { %v3271_v58 = vrot.slane %v3269_v38, 4 }
 0x106   :  { %v10167_v2 = vpop.f32.mrf.mxu1 }
 0x107   :  { %v3272_v32 = vor.u32 %v3271_v58, %v3267_v28 }
 0x109   :  { %v10172_v43 = vpop.f32.mrf.mxu2  ;;  %8134 = vmatmul.msk.bf16.gmra.mxu2 %vm981_vm4, %v2074_v6  ;;  %v1830_v6 = vsel %vm9833_vm7, %v8102_v40, %v1829_v63  ;;  %v3263_v63 = vrot.slane %v3262_v30, 4  ;;  %v3273_v60 = vrot.slane %v3272_v32, 4  ;;  %v8409_v40 = vld [vmem:[%s13276_s0 + $0x6c] sm:$0xf]  ;;  %v3293_v30 = vshrl.u32 %v8410_v53, 16 }
 0x10a   :  { %13303 = vst [vmem:[#allocation22_spill] sm:$0xff] %v10172_v43  ;;  %v2018_v38 = vunpack.c.l.b16 %v1830_v6  ;;  %v3280_v6 = vshrl.u32 %v8409_v40, 16 }
 0x10d   :  { %v10179_v55 = vpop.f32.mrf.mxu0 }
 0x10e   :  { %v10181_v16 = vpop.f32.mrf.mxu3  ;;  %8359 = vmatmul.msk.bf16.gmra.mxu3 %vm981_vm4, %v9100_v17  ;;  %v3277_v17 = vrot.slane %v3275_v31, 5  ;;  %v9172_v31 = vld [vmem:[%s13276_s0 + $0x68] sm:$0x1] }
 0x10f   :  { %13304 = vst [vmem:[#allocation23_spill] sm:$0xff] %v10181_v16  ;;  %v2019_v16 = vunpack.c.l.b16 %v1833_v47  ;;  %v3283_v47 = vshll.u32 %v8409_v40, 16  ;;  %v9101_v40 = vld [vmem:[%s13276_s0 + $0x60] sm:$0xff] }
 0x111   :  { %v10194_v35 = vpop.f32.mrf.mxu1  ;;  %v10196_v43 = vpop.f32.mrf.mxu2  ;;  %v2075_v44 = vpack.c.b16 %v2019_v16, %v2018_v38  ;;  %v3268_v16 = vsel %vm9333_vm3, %v3263_v63, %v3267_v28  ;;  %v1839_v38 = vrot.slane %v9172_v31, 5  ;;  %v1838_v28 = vrot.slane %v1836_v15, 4 }
 0x112   :  { %13305 = vst [vmem:[#allocation24_spill] sm:$0xff] %v10196_v43  ;;  %v3871_v63 = vunpack.c.l.b16 %v3268_v16  ;;  %v3295_v43 = vrot.slane %v3293_v30, 4  ;;  %v1837_v31 = vsel %vm9833_vm7, %v8103_v3, %v1836_v15  ;;  %v3299_v30 = vshll.u32 %v8411_v26, 16  ;;  %v8413_v26 = vld [vmem:[%s13276_s0 + $0x7c] sm:$0xf] }
 0x113   :  { %8488 = vmatmul.msk.bf16.gmra.mxu0 %vm981_vm4, %v3927_v22  ;;  %v3278_v22 = vsel %vm9333_vm3, %v3273_v60, %v3277_v17  ;;  %v3282_v60 = vrot.slane %v3280_v6, 4  ;;  %v3285_v17 = vrot.slane %v3283_v47, 5  ;;  %v1840_v4 = vsel %vm9833_vm7, %v1838_v28, %v1839_v38  ;;  %v9070_v47 = vld [vmem:[%s13276_s0 + $0x60] sm:$0xff]  ;;  %v8412_v28 = vld [vmem:[%s13276_s0 + $0x78] sm:$0xf] }
 0x114   :  { %8070 = vmatmul.msk.bf16.gmra.mxu1 %vm981_vm4, %v9069_v42  ;;  %v3289_v42 = vshll.u32 %v8410_v53, 16  ;;  %v2021_v34 = vunpack.c.l.b16 %v1840_v4  ;;  %v3301_v38 = vrot.slane %v3299_v30, 5  ;;  %v3304_v4 = vshrl.u32 %v8412_v28, 16 }
 0x115   :  { %v10206_v0 = vpop.f32.mrf.mxu0 }
 0x116   :  { %v10211_v58 = vpop.f32.mrf.mxu3 }
 0x117   :  { %13306 = vst [vmem:[#allocation25_spill] sm:$0xff] %v10211_v58  ;;  %v3872_v58 = vunpack.c.l.b16 %v3278_v22  ;;  %v3286_v22 = vor.u32 %v3285_v17, %v3282_v60 }
 0x119   :  { %8135 = vmatmul.msk.bf16.gmra.mxu2 %vm981_vm4, %v2075_v44  ;;  %v10221_v32 = vpop.f32.mrf.mxu1  ;;  %v3291_v44 = vrot.slane %v3289_v42, 5  ;;  %v3928_v16 = vpack.c.b16 %v3872_v58, %v3871_v63  ;;  %v3287_v15 = vrot.slane %v3286_v22, 4  ;;  %v9173_v63 = vld [vmem:[%s13276_s0 + $0x70] sm:$0xf] }
 0x11a   :  { %v1843_v60 = vrot.slane %v9173_v63, 5 }
 0x11b   :  { %v3296_v42 = vor.u32 %v3295_v43, %v3291_v44  ;;  %v3292_v17 = vsel %vm9333_vm3, %v3287_v15, %v3291_v44  ;;  %v9174_v44 = vld [vmem:[%s13276_s0 + $0x74] sm:$0x1] }
 0x11c   :  { %v10229_v53 = vpop.f32.mrf.mxu2  ;;  %v1846_v15 = vrot.slane %v9174_v44, 5  ;;  %v3873_v63 = vunpack.c.l.b16 %v3292_v17  ;;  %v8414_v44 = vld [vmem:[%s13276_s0 + $0x80] sm:$0x1] }
 0x11d   :  { %13307 = vst [vmem:[#allocation26_spill] sm:$0xff] %v10229_v53  ;;  %v3297_v58 = vrot.slane %v3296_v42, 4  ;;  %v3317_v42 = vshrl.u32 %v8413_v26, 16 }
 0x11e   :  { %8360 = vmatmul.msk.bf16.gmra.mxu3 %vm981_vm4, %v9101_v40  ;;  %v2020_v40 = vunpack.c.l.b16 %v1837_v31  ;;  %v1688_v31 = vld [vmem:[%s13276_s0 + $0x6c] sm:$0xe] }
 0x11f   :  { %v3319_v1 = vrot.slane %v3317_v42, 4 }
 0x120   :  { %v10239_v6 = vpop.f32.mrf.mxu0  ;;  %v2076_v43 = vpack.c.b16 %v2021_v34, %v2020_v40  ;;  %v3302_v34 = vsel %vm9333_vm3, %v3297_v58, %v3301_v38 }
 0x121   :  { %v10244_v53 = vpop.f32.mrf.mxu3  ;;  %v1519_v9 = vpop.f32.mrf.mxu1  ;;  %v3874_v38 = vunpack.c.l.b16 %v3302_v34  ;;  %v3323_v34 = vshll.u32 %v8414_v44, 16 }
 0x122   :  { %13308 = vst [vmem:[#allocation27_spill] sm:$0xff] %v10244_v53  ;;  %v8104_v53 = vrot.slane %v1688_v31, 9  ;;  %v1520_v58 = vadd.f32 %v1519_v9, %v9797_v10 }
 0x123   :  { %8489 = vmatmul.msk.bf16.gmra.mxu0 %vm981_vm4, %v3928_v16  ;;  %v3307_v16 = vshll.u32 %v8412_v28, 16  ;;  %v9102_v28 = vld [vmem:[%s13276_s0 + $0x6c] sm:$0xff]  ;;  %v3929_v10 = vpack.c.b16 %v3874_v38, %v3873_v63 }
 0x124   :  { %v10247_v3 = vpop.f32.mrf.mxu2  ;;  %8071 = vmatmul.msk.bf16.gmra.mxu1 %vm981_vm4, %v9070_v47  ;;  %v3313_v47 = vshll.u32 %v8413_v26, 16  ;;  %v3306_v26 = vrot.slane %v3304_v4, 4  ;;  %v1844_v17 = vsel %vm9833_vm7, %v8104_v53, %v1843_v60 }
 0x125   :  { %13309 = vst [vmem:[#allocation28_spill] sm:$0xff] %v10247_v3  ;;  %v1845_v3 = vrot.slane %v1843_v60, 4 }
 0x127   :  { %v1847_v31 = vsel %vm9833_vm7, %v1845_v3, %v1846_v15  ;;  %v3325_v15 = vrot.slane %v3323_v34, 5 }
 0x128   :  { %v10264_v22 = vpop.f32.mrf.mxu0  ;;  %v2023_v36 = vunpack.c.l.b16 %v1847_v31 }
 0x129   :  { %v10268_v30 = vpop.f32.mrf.mxu3  ;;  %8136 = vmatmul.msk.bf16.gmra.mxu2 %vm981_vm4, %v2076_v43  ;;  %v1521_v40 = vpop.f32.mrf.mxu1  ;;  %v3315_v43 = vrot.slane %v3313_v47, 5 }
 0x12a   :  { %13310 = vst [vmem:[#allocation29_spill] sm:$0xff] %v10268_v30  ;;  %v3309_v30 = vrot.slane %v3307_v16, 5  ;;  %v9071_v16 = vld [vmem:[%s13276_s0 + $0x6c] sm:$0xff]  ;;  %v1522_v53 = vadd.f32 %v1521_v40, %v9855_v8  ;;  %v9175_v8 = vld [vmem:[%s13276_s0 + $0x7c] sm:$0xf] }
 0x12b   :  { %v1850_v40 = vrot.slane %v9175_v8, 5 }
 0x12c   :  { %v2208_v20 = vpop.f32.mrf.mxu2  ;;  %v3310_v9 = vor.u32 %v3309_v30, %v3306_v26 }
 0x12d   :  { %v2368_v24 = vadd.f32 %v2208_v20, %v1520_v58  ;;  %v3320_v20 = vor.u32 %v3319_v1, %v3315_v43  ;;  %v2022_v58 = vunpack.c.l.b16 %v1844_v17  ;;  %v8415_v1 = vld [vmem:[%s13276_s0 + $0x84] sm:$0xf]  ;;  %v1689_v17 = vld [vmem:[%s13276_s0 + $0x78] sm:$0xe] }
 0x12e   :  { %8361 = vmatmul.msk.bf16.gmra.mxu3 %vm981_vm4, %v9102_v28  ;;  %v3311_v60 = vrot.slane %v3310_v9, 4  ;;  %v3328_v31 = vshrl.u32 %v8415_v1, 16 }
 0x12f   :  { %v3321_v30 = vrot.slane %v3320_v20, 4  ;;  %v2077_v26 = vpack.c.b16 %v2023_v36, %v2022_v58  ;;  %v9176_v20 = vld [vmem:[%s13276_s0 + $0x80] sm:$0x1] }
 0x130   :  { %v4061_v4 = vpop.f32.mrf.mxu0  ;;  %v3316_v44 = vsel %vm9333_vm3, %v3311_v60, %v3315_v43  ;;  %v1853_v34 = vrot.slane %v9176_v20, 5  ;;  %v8105_v60 = vrot.slane %v1689_v17, 9 }
 0x131   :  { %v2767_v47 = vpop.f32.mrf.mxu3  ;;  %v1524_v42 = vpop.f32.mrf.mxu1  ;;  %v3326_v36 = vsel %vm9333_vm3, %v3321_v30, %v3325_v15 }
 0x132   :  { %v2927_v28 = vadd.f32 %v2767_v47, %v2368_v24  ;;  %v8416_v24 = vld [vmem:[%s13276_s0 + $0x88] sm:$0xf]  ;;  %v1525_v30 = vadd.f32 %v1524_v42, %v9891_v51  ;;  %v3876_v15 = vunpack.c.l.b16 %v3326_v36 }
 0x133   :  { %8490 = vmatmul.msk.bf16.gmra.mxu0 %vm981_vm4, %v3929_v10  ;;  %v3331_v10 = vshll.u32 %v8415_v1, 16  ;;  %v3330_v1 = vrot.slane %v3328_v31, 4 }
 0x134   :  { %v2210_v3 = vpop.f32.mrf.mxu2  ;;  %8072 = vmatmul.msk.bf16.gmra.mxu1 %vm981_vm4, %v9071_v16  ;;  %v10295_v63 = vadd.f32 %v4061_v4, %v2927_v28  ;;  %v3337_v4 = vshll.u32 %v8416_v24, 16  ;;  %v3341_v16 = vshrl.u32 %v8416_v24, 16  ;;  %v9103_v28 = vld [vmem:[%s13276_s0 + $0x78] sm:$0xff] }
 0x135   :  { %v2369_v38 = vadd.f32 %v2210_v3, %v1522_v53  ;;  %v3875_v53 = vunpack.c.l.b16 %v3316_v44  ;;  %v1852_v3 = vrot.slane %v1850_v40, 4  ;;  %v3333_v24 = vrot.slane %v3331_v10, 5  ;;  %v9072_v10 = vld [vmem:[%s13276_s0 + $0x78] sm:$0xff] }
 0x136   :  { %13311 = vst [vmem:[#allocation30_spill] sm:$0xff] %v10295_v63  ;;  %v3339_v63 = vrot.slane %v3337_v4, 5  ;;  %v3343_v20 = vrot.slane %v3341_v16, 4  ;;  %v1851_v44 = vsel %vm9833_vm7, %v8105_v60, %v1850_v40 }
 0x137   :  { %v1854_v51 = vsel %vm9833_vm7, %v1852_v3, %v1853_v34  ;;  %v3930_v42 = vpack.c.b16 %v3876_v15, %v3875_v53  ;;  %v3334_v17 = vor.u32 %v3333_v24, %v3330_v1 }
 0x138   :  { %v4063_v9 = vpop.f32.mrf.mxu0 }
 0x139   :  { %v2769_v47 = vpop.f32.mrf.mxu3  ;;  %8137 = vmatmul.msk.bf16.gmra.mxu2 %vm981_vm4, %v2077_v26  ;;  %v1526_v43 = vpop.f32.mrf.mxu1  ;;  %v3335_v60 = vrot.slane %v3334_v17, 4 }
 0x13a   :  { %v2928_v58 = vadd.f32 %v2769_v47, %v2369_v38  ;;  %v8417_v38 = vld [vmem:[%s13276_s0 + $0x8c] sm:$0x1]  ;;  %v2024_v47 = vunpack.c.l.b16 %v1851_v44  ;;  %v1527_v40 = vadd.f32 %v1526_v43, %v9917_v23  ;;  %v9177_v23 = vld [vmem:[%s13276_s0 + $0x88] sm:$0xf] }
 0x13b   :  { %v3347_v36 = vshll.u32 %v8417_v38, 16  ;;  %v1857_v43 = vrot.slane %v9177_v23, 5 }
 0x13c   :  { %v2213_v8 = vpop.f32.mrf.mxu2  ;;  %v10318_v52 = vadd.f32 %v4063_v9, %v2928_v58  ;;  %v3344_v9 = vor.u32 %v3343_v20, %v3339_v63  ;;  %v2025_v58 = vunpack.c.l.b16 %v1854_v51  ;;  %v3340_v20 = vsel %vm9333_vm3, %v3335_v60, %v3339_v63 }
 0x13d   :  { %v2370_v26 = vadd.f32 %v2213_v8, %v1525_v30  ;;  %v3349_v3 = vrot.slane %v3347_v36, 5  ;;  %v8418_v30 = vld [vmem:[%s13276_s0 + $0x90] sm:$0xf]  ;;  %v8419_v8 = vld [vmem:[%s13276_s0 + $0x94] sm:$0xf] }
 0x13e   :  { %8362 = vmatmul.msk.bf16.gmra.mxu3 %vm981_vm4, %v9103_v28  ;;  %v3345_v53 = vrot.slane %v3344_v9, 4  ;;  %v2078_v24 = vpack.c.b16 %v2025_v58, %v2024_v47  ;;  %v3352_v38 = vshrl.u32 %v8418_v30, 16  ;;  %v3355_v44 = vshll.u32 %v8418_v30, 16  ;;  %v9104_v47 = vld [vmem:[%s13276_s0 + $0x84] sm:$0xff] }
 0x13f   :  { %v3361_v17 = vshll.u32 %v8419_v8, 16  ;;  %v3877_v58 = vunpack.c.l.b16 %v3340_v20 }
 0x140   :  { %v4066_v31 = vpop.f32.mrf.mxu0 }
 0x141   :  { %v2772_v4 = vpop.f32.mrf.mxu3  ;;  %v1529_v16 = vpop.f32.mrf.mxu1 }
 0x142   :  { %v2929_v28 = vadd.f32 %v2772_v4, %v2370_v26  ;;  %v1690_v26 = vld [vmem:[%s13276_s0 + $0x84] sm:$0xe]  ;;  %v1530_v60 = vadd.f32 %v1529_v16, %v9952_v7 }
 0x143   :  { %8491 = vmatmul.msk.bf16.gmra.mxu0 %vm981_vm4, %v3930_v42  ;;  %v3350_v42 = vsel %vm9333_vm3, %v3345_v53, %v3349_v3  ;;  %v3354_v53 = vrot.slane %v3352_v38, 4  ;;  %v3357_v3 = vrot.slane %v3355_v44, 5  ;;  %v9073_v44 = vld [vmem:[%s13276_s0 + $0x84] sm:$0xff] }
 0x144   :  { %v2215_v34 = vpop.f32.mrf.mxu2  ;;  %8073 = vmatmul.msk.bf16.gmra.mxu1 %vm981_vm4, %v9072_v10  ;;  %v10337_v15 = vadd.f32 %v4066_v31, %v2929_v28  ;;  %v3365_v31 = vshrl.u32 %v8419_v8, 16  ;;  %v9178_v10 = vld [vmem:[%s13276_s0 + $0x8c] sm:$0x1]  ;;  %v8106_v28 = vrot.slane %v1690_v26, 9  ;;  %v3363_v8 = vrot.slane %v3361_v17, 5 }
 0x145   :  { %v2371_v1 = vadd.f32 %v2215_v34, %v1527_v40  ;;  %v1860_v9 = vrot.slane %v9178_v10, 5  ;;  %v1859_v40 = vrot.slane %v1857_v43, 4  ;;  %v3878_v34 = vunpack.c.l.b16 %v3350_v42 }
 0x146   :  { %v3367_v23 = vrot.slane %v3365_v31, 4  ;;  %v1858_v20 = vsel %vm9833_vm7, %v8106_v28, %v1857_v43  ;;  %v3358_v26 = vor.u32 %v3357_v3, %v3354_v53 }
 0x147   :  { %v1861_v7 = vsel %vm9833_vm7, %v1859_v40, %v1860_v9  ;;  %v3931_v16 = vpack.c.b16 %v3878_v34, %v3877_v58 }
 0x148   :  { %v4068_v51 = vpop.f32.mrf.mxu0  ;;  %v3359_v28 = vrot.slane %v3358_v26, 4 }
 0x149   :  { %v2774_v36 = vpop.f32.mrf.mxu3  ;;  %8138 = vmatmul.msk.bf16.gmra.mxu2 %vm981_vm4, %v2078_v24  ;;  %v1531_v63 = vpop.f32.mrf.mxu1 }
 0x14a   :  { %v2930_v4 = vadd.f32 %v2774_v36, %v2371_v1  ;;  %v8420_v1 = vld [vmem:[%s13276_s0 + $0x98] sm:$0x1]  ;;  %v2026_v36 = vunpack.c.l.b16 %v1858_v20  ;;  %v1532_v43 = vadd.f32 %v1531_v63, %v9983_v49  ;;  %v9179_v49 = vld [vmem:[%s13276_s0 + $0x94] sm:$0xf] }
 0x14b   :  { %v3371_v42 = vshll.u32 %v8420_v1, 16  ;;  %v1864_v63 = vrot.slane %v9179_v49, 5 }
 0x14c   :  { %v2218_v30 = vpop.f32.mrf.mxu2  ;;  %v10360_v10 = vadd.f32 %v4068_v51, %v2930_v4  ;;  %v3368_v51 = vor.u32 %v3367_v23, %v3363_v8  ;;  %v2027_v4 = vunpack.c.l.b16 %v1861_v7  ;;  %v3364_v23 = vsel %vm9333_vm3, %v3359_v28, %v3363_v8 }
 0x14d   :  { %v2372_v24 = vadd.f32 %v2218_v30, %v1530_v60  ;;  %v3373_v40 = vrot.slane %v3371_v42, 5  ;;  %v8421_v60 = vld [vmem:[%s13276_s0 + $0x9c] sm:$0xf]  ;;  %v8422_v30 = vld [vmem:[%s13276_s0 + $0xa0] sm:$0xf] }
 0x14e   :  { %8363 = vmatmul.msk.bf16.gmra.mxu3 %vm981_vm4, %v9104_v47  ;;  %v3369_v58 = vrot.slane %v3368_v51, 4  ;;  %v2079_v3 = vpack.c.b16 %v2027_v4, %v2026_v36  ;;  %v3376_v1 = vshrl.u32 %v8421_v60, 16  ;;  %v3379_v20 = vshll.u32 %v8421_v60, 16  ;;  %v9105_v36 = vld [vmem:[%s13276_s0 + $0x90] sm:$0xff] }
 0x14f   :  { %v3385_v26 = vshll.u32 %v8422_v30, 16  ;;  %v3879_v4 = vunpack.c.l.b16 %v3364_v23 }
 0x150   :  { %v4071_v38 = vpop.f32.mrf.mxu0 }
 0x151   :  { %v2777_v17 = vpop.f32.mrf.mxu3  ;;  %v1534_v31 = vpop.f32.mrf.mxu1 }
 0x152   :  { %v2931_v47 = vadd.f32 %v2777_v17, %v2372_v24  ;;  %v1691_v24 = vld [vmem:[%s13276_s0 + $0x90] sm:$0xe]  ;;  %v1535_v28 = vadd.f32 %v1534_v31, %v10012_v41 }
 0x153   :  { %8492 = vmatmul.msk.bf16.gmra.mxu0 %vm981_vm4, %v3931_v16  ;;  %v3374_v16 = vsel %vm9333_vm3, %v3369_v58, %v3373_v40  ;;  %v3378_v58 = vrot.slane %v3376_v1, 4  ;;  %v3381_v40 = vrot.slane %v3379_v20, 5  ;;  %v9074_v20 = vld [vmem:[%s13276_s0 + $0x90] sm:$0xff] }
 0x154   :  { %v2220_v9 = vpop.f32.mrf.mxu2  ;;  %8074 = vmatmul.msk.bf16.gmra.mxu1 %vm981_vm4, %v9073_v44  ;;  %v10379_v34 = vadd.f32 %v4071_v38, %v2931_v47  ;;  %v3389_v38 = vshrl.u32 %v8422_v30, 16  ;;  %v9180_v44 = vld [vmem:[%s13276_s0 + $0x98] sm:$0x1]  ;;  %v8107_v47 = vrot.slane %v1691_v24, 9  ;;  %v3387_v30 = vrot.slane %v3385_v26, 5 }
 0x155   :  { %v2373_v53 = vadd.f32 %v2220_v9, %v1532_v43  ;;  %v1867_v51 = vrot.slane %v9180_v44, 5  ;;  %v1866_v43 = vrot.slane %v1864_v63, 4  ;;  %v3880_v9 = vunpack.c.l.b16 %v3374_v16 }
 0x156   :  { %v3391_v49 = vrot.slane %v3389_v38, 4  ;;  %v1865_v23 = vsel %vm9833_vm7, %v8107_v47, %v1864_v63  ;;  %v3382_v24 = vor.u32 %v3381_v40, %v3378_v58 }
 0x157   :  { %v1868_v41 = vsel %vm9833_vm7, %v1866_v43, %v1867_v51  ;;  %v3932_v31 = vpack.c.b16 %v3880_v9, %v3879_v4 }
 0x158   :  { %v4073_v7 = vpop.f32.mrf.mxu0  ;;  %v3383_v47 = vrot.slane %v3382_v24, 4 }
 0x159   :  { %v2779_v42 = vpop.f32.mrf.mxu3  ;;  %8139 = vmatmul.msk.bf16.gmra.mxu2 %vm981_vm4, %v2079_v3  ;;  %v1536_v8 = vpop.f32.mrf.mxu1 }
 0x15a   :  { %v2932_v17 = vadd.f32 %v2779_v42, %v2373_v53  ;;  %v8423_v53 = vld [vmem:[%s13276_s0 + $0xa4] sm:$0x1]  ;;  %v2028_v42 = vunpack.c.l.b16 %v1865_v23  ;;  %v1537_v63 = vadd.f32 %v1536_v8, %v10043_v27  ;;  %v9181_v27 = vld [vmem:[%s13276_s0 + $0xa0] sm:$0xf] }
 0x15b   :  { %v3395_v16 = vshll.u32 %v8423_v53, 16  ;;  %v1871_v8 = vrot.slane %v9181_v27, 5 }
 0x15c   :  { %v2223_v60 = vpop.f32.mrf.mxu2  ;;  %v10402_v44 = vadd.f32 %v4073_v7, %v2932_v17  ;;  %v3392_v7 = vor.u32 %v3391_v49, %v3387_v30  ;;  %v2029_v17 = vunpack.c.l.b16 %v1868_v41  ;;  %v3388_v49 = vsel %vm9333_vm3, %v3383_v47, %v3387_v30 }
 0x15d   :  { %v2374_v3 = vadd.f32 %v2223_v60, %v1535_v28  ;;  %v3397_v43 = vrot.slane %v3395_v16, 5  ;;  %v8424_v28 = vld [vmem:[%s13276_s0 + $0xa8] sm:$0xf]  ;;  %v8425_v60 = vld [vmem:[%s13276_s0 + $0xac] sm:$0xf] }
 0x15e   :  { %8364 = vmatmul.msk.bf16.gmra.mxu3 %vm981_vm4, %v9105_v36  ;;  %v3393_v4 = vrot.slane %v3392_v7, 4  ;;  %v2080_v40 = vpack.c.b16 %v2029_v17, %v2028_v42  ;;  %v3400_v53 = vshrl.u32 %v8424_v28, 16  ;;  %v3403_v23 = vshll.u32 %v8424_v28, 16  ;;  %v9106_v42 = vld [vmem:[%s13276_s0 + $0x9c] sm:$0xff] }
 0x15f   :  { %v3409_v24 = vshll.u32 %v8425_v60, 16  ;;  %v3881_v17 = vunpack.c.l.b16 %v3388_v49 }
 0x160   :  { %v4076_v1 = vpop.f32.mrf.mxu0 }
 0x161   :  { %v2782_v26 = vpop.f32.mrf.mxu3  ;;  %v1539_v38 = vpop.f32.mrf.mxu1 }
 0x162   :  { %v2933_v36 = vadd.f32 %v2782_v26, %v2374_v3  ;;  %v1692_v3 = vld [vmem:[%s13276_s0 + $0x9c] sm:$0xe]  ;;  %v1540_v47 = vadd.f32 %v1539_v38, %v10069_v19 }
 0x163   :  { %8493 = vmatmul.msk.bf16.gmra.mxu0 %vm981_vm4, %v3932_v31  ;;  %v3398_v31 = vsel %vm9333_vm3, %v3393_v4, %v3397_v43  ;;  %v3402_v4 = vrot.slane %v3400_v53, 4  ;;  %v3405_v43 = vrot.slane %v3403_v23, 5  ;;  %v9075_v23 = vld [vmem:[%s13276_s0 + $0x9c] sm:$0xff] }
 0x164   :  { %v2225_v51 = vpop.f32.mrf.mxu2  ;;  %8075 = vmatmul.msk.bf16.gmra.mxu1 %vm981_vm4, %v9074_v20  ;;  %v10421_v9 = vadd.f32 %v4076_v1, %v2933_v36  ;;  %v3413_v1 = vshrl.u32 %v8425_v60, 16  ;;  %v9182_v20 = vld [vmem:[%s13276_s0 + $0xa4] sm:$0x1]  ;;  %v8108_v36 = vrot.slane %v1692_v3, 9  ;;  %v3411_v60 = vrot.slane %v3409_v24, 5 }
 0x165   :  { %v2375_v58 = vadd.f32 %v2225_v51, %v1537_v63  ;;  %v1874_v7 = vrot.slane %v9182_v20, 5  ;;  %v1873_v63 = vrot.slane %v1871_v8, 4  ;;  %v3882_v51 = vunpack.c.l.b16 %v3398_v31 }
 0x166   :  { %v3415_v27 = vrot.slane %v3413_v1, 4  ;;  %v1872_v49 = vsel %vm9833_vm7, %v8108_v36, %v1871_v8  ;;  %v3406_v3 = vor.u32 %v3405_v43, %v3402_v4 }
 0x167   :  { %v1875_v19 = vsel %vm9833_vm7, %v1873_v63, %v1874_v7  ;;  %v3933_v38 = vpack.c.b16 %v3882_v51, %v3881_v17 }
 0x168   :  { %v4078_v41 = vpop.f32.mrf.mxu0  ;;  %v3407_v36 = vrot.slane %v3406_v3, 4 }
 0x169   :  { %v2784_v16 = vpop.f32.mrf.mxu3  ;;  %8140 = vmatmul.msk.bf16.gmra.mxu2 %vm981_vm4, %v2080_v40  ;;  %v1541_v30 = vpop.f32.mrf.mxu1 }
 0x16a   :  { %v2934_v26 = vadd.f32 %v2784_v16, %v2375_v58  ;;  %v8426_v58 = vld [vmem:[%s13276_s0 + $0xb0] sm:$0x1]  ;;  %v2030_v16 = vunpack.c.l.b16 %v1872_v49  ;;  %v1542_v8 = vadd.f32 %v1541_v30, %v10095_v39  ;;  %v9183_v39 = vld [vmem:[%s13276_s0 + $0xac] sm:$0xf] }
 0x16b   :  { %v3419_v31 = vshll.u32 %v8426_v58, 16  ;;  %v1878_v30 = vrot.slane %v9183_v39, 5 }
 0x16c   :  { %v2228_v28 = vpop.f32.mrf.mxu2  ;;  %v10444_v20 = vadd.f32 %v4078_v41, %v2934_v26  ;;  %v3416_v41 = vor.u32 %v3415_v27, %v3411_v60  ;;  %v2031_v26 = vunpack.c.l.b16 %v1875_v19  ;;  %v3412_v27 = vsel %vm9333_vm3, %v3407_v36, %v3411_v60 }
 0x16d   :  { %v2376_v40 = vadd.f32 %v2228_v28, %v1540_v47  ;;  %v3421_v63 = vrot.slane %v3419_v31, 5  ;;  %v8427_v47 = vld [vmem:[%s13276_s0 + $0xb4] sm:$0xf]  ;;  %v8428_v28 = vld [vmem:[%s13276_s0 + $0xb8] sm:$0xf] }
 0x16e   :  { %8365 = vmatmul.msk.bf16.gmra.mxu3 %vm981_vm4, %v9106_v42  ;;  %v3417_v17 = vrot.slane %v3416_v41, 4  ;;  %v2081_v43 = vpack.c.b16 %v2031_v26, %v2030_v16  ;;  %v3424_v58 = vshrl.u32 %v8427_v47, 16  ;;  %v3427_v49 = vshll.u32 %v8427_v47, 16  ;;  %v9107_v16 = vld [vmem:[%s13276_s0 + $0xa8] sm:$0xff] }
 0x16f   :  { %v3433_v3 = vshll.u32 %v8428_v28, 16  ;;  %v3883_v26 = vunpack.c.l.b16 %v3412_v27 }
 0x170   :  { %v4081_v53 = vpop.f32.mrf.mxu0 }
 0x171   :  { %v2787_v24 = vpop.f32.mrf.mxu3  ;;  %v1544_v1 = vpop.f32.mrf.mxu1 }
 0x172   :  { %v2935_v42 = vadd.f32 %v2787_v24, %v2376_v40  ;;  %v1693_v40 = vld [vmem:[%s13276_s0 + $0xa8] sm:$0xe]  ;;  %v1545_v36 = vadd.f32 %v1544_v1, %v10126_v59 }
 0x173   :  { %8494 = vmatmul.msk.bf16.gmra.mxu0 %vm981_vm4, %v3933_v38  ;;  %v3422_v38 = vsel %vm9333_vm3, %v3417_v17, %v3421_v63  ;;  %v3426_v17 = vrot.slane %v3424_v58, 4  ;;  %v3429_v63 = vrot.slane %v3427_v49, 5  ;;  %v9076_v49 = vld [vmem:[%s13276_s0 + $0xa8] sm:$0xff] }
 0x174   :  { %v2230_v7 = vpop.f32.mrf.mxu2  ;;  %8076 = vmatmul.msk.bf16.gmra.mxu1 %vm981_vm4, %v9075_v23  ;;  %v10463_v51 = vadd.f32 %v4081_v53, %v2935_v42  ;;  %v3437_v53 = vshrl.u32 %v8428_v28, 16  ;;  %v9184_v23 = vld [vmem:[%s13276_s0 + $0xb0] sm:$0x1]  ;;  %v8109_v42 = vrot.slane %v1693_v40, 9  ;;  %v3435_v28 = vrot.slane %v3433_v3, 5 }
 0x175   :  { %v2377_v4 = vadd.f32 %v2230_v7, %v1542_v8  ;;  %v1881_v41 = vrot.slane %v9184_v23, 5  ;;  %v1880_v8 = vrot.slane %v1878_v30, 4  ;;  %v3884_v7 = vunpack.c.l.b16 %v3422_v38 }
 0x176   :  { %v3439_v39 = vrot.slane %v3437_v53, 4  ;;  %v1879_v27 = vsel %vm9833_vm7, %v8109_v42, %v1878_v30  ;;  %v3430_v40 = vor.u32 %v3429_v63, %v3426_v17 }
 0x177   :  { %v1882_v59 = vsel %vm9833_vm7, %v1880_v8, %v1881_v41  ;;  %v3934_v1 = vpack.c.b16 %v3884_v7, %v3883_v26 }
 0x178   :  { %v4083_v19 = vpop.f32.mrf.mxu0  ;;  %v3431_v42 = vrot.slane %v3430_v40, 4 }
 0x179   :  { %v2789_v31 = vpop.f32.mrf.mxu3  ;;  %8141 = vmatmul.msk.bf16.gmra.mxu2 %vm981_vm4, %v2081_v43  ;;  %v1546_v60 = vpop.f32.mrf.mxu1 }
 0x17a   :  { %v2936_v24 = vadd.f32 %v2789_v31, %v2377_v4  ;;  %v8429_v4 = vld [vmem:[%s13276_s0 + $0xbc] sm:$0x1]  ;;  %v2032_v31 = vunpack.c.l.b16 %v1879_v27  ;;  %v1547_v30 = vadd.f32 %v1546_v60, %v10150_v57  ;;  %v9185_v57 = vld [vmem:[%s13276_s0 + $0xb8] sm:$0xf] }
 0x17b   :  { %v3443_v38 = vshll.u32 %v8429_v4, 16  ;;  %v1885_v60 = vrot.slane %v9185_v57, 5 }
 0x17c   :  { %v2233_v47 = vpop.f32.mrf.mxu2  ;;  %v10486_v23 = vadd.f32 %v4083_v19, %v2936_v24  ;;  %v3440_v19 = vor.u32 %v3439_v39, %v3435_v28  ;;  %v2033_v24 = vunpack.c.l.b16 %v1882_v59  ;;  %v3436_v39 = vsel %vm9333_vm3, %v3431_v42, %v3435_v28 }
 0x17d   :  { %v2378_v43 = vadd.f32 %v2233_v47, %v1545_v36  ;;  %v3445_v8 = vrot.slane %v3443_v38, 5  ;;  %v8430_v36 = vld [vmem:[%s13276_s0 + $0xc0] sm:$0xf]  ;;  %v8431_v47 = vld [vmem:[%s13276_s0 + $0xc4] sm:$0xf] }
 0x17e   :  { %8366 = vmatmul.msk.bf16.gmra.mxu3 %vm981_vm4, %v9107_v16  ;;  %v3441_v26 = vrot.slane %v3440_v19, 4  ;;  %v2082_v63 = vpack.c.b16 %v2033_v24, %v2032_v31  ;;  %v3448_v4 = vshrl.u32 %v8430_v36, 16  ;;  %v3451_v27 = vshll.u32 %v8430_v36, 16  ;;  %v9108_v31 = vld [vmem:[%s13276_s0 + $0xb4] sm:$0xff] }
 0x17f   :  { %v3457_v40 = vshll.u32 %v8431_v47, 16  ;;  %v3885_v24 = vunpack.c.l.b16 %v3436_v39 }
 0x180   :  { %v4086_v58 = vpop.f32.mrf.mxu0 }
 0x181   :  { %v2792_v3 = vpop.f32.mrf.mxu3  ;;  %v1549_v53 = vpop.f32.mrf.mxu1 }
 0x182   :  { %v2937_v16 = vadd.f32 %v2792_v3, %v2378_v43  ;;  %v1694_v43 = vld [vmem:[%s13276_s0 + $0xb4] sm:$0xe]  ;;  %v1550_v42 = vadd.f32 %v1549_v53, %v10179_v55 }
 0x183   :  { %8495 = vmatmul.msk.bf16.gmra.mxu0 %vm981_vm4, %v3934_v1  ;;  %v3446_v1 = vsel %vm9333_vm3, %v3441_v26, %v3445_v8  ;;  %v3450_v26 = vrot.slane %v3448_v4, 4  ;;  %v3453_v8 = vrot.slane %v3451_v27, 5  ;;  %v9077_v27 = vld [vmem:[%s13276_s0 + $0xb4] sm:$0xff] }
 0x184   :  { %v2235_v41 = vpop.f32.mrf.mxu2  ;;  %8077 = vmatmul.msk.bf16.gmra.mxu1 %vm981_vm4, %v9076_v49  ;;  %v10505_v7 = vadd.f32 %v4086_v58, %v2937_v16  ;;  %v3461_v58 = vshrl.u32 %v8431_v47, 16  ;;  %v9186_v49 = vld [vmem:[%s13276_s0 + $0xbc] sm:$0x1]  ;;  %v8110_v16 = vrot.slane %v1694_v43, 9  ;;  %v3459_v47 = vrot.slane %v3457_v40, 5 }
 0x185   :  { %v2379_v17 = vadd.f32 %v2235_v41, %v1547_v30  ;;  %v1888_v19 = vrot.slane %v9186_v49, 5  ;;  %v1887_v30 = vrot.slane %v1885_v60, 4  ;;  %v3886_v41 = vunpack.c.l.b16 %v3446_v1 }
 0x186   :  { %v3463_v57 = vrot.slane %v3461_v58, 4  ;;  %v1886_v39 = vsel %vm9833_vm7, %v8110_v16, %v1885_v60  ;;  %v3454_v43 = vor.u32 %v3453_v8, %v3450_v26 }
 0x187   :  { %v1889_v55 = vsel %vm9833_vm7, %v1887_v30, %v1888_v19  ;;  %v3935_v53 = vpack.c.b16 %v3886_v41, %v3885_v24 }
 0x188   :  { %v4088_v59 = vpop.f32.mrf.mxu0  ;;  %v3455_v16 = vrot.slane %v3454_v43, 4 }
 0x189   :  { %v2794_v38 = vpop.f32.mrf.mxu3  ;;  %8142 = vmatmul.msk.bf16.gmra.mxu2 %vm981_vm4, %v2082_v63  ;;  %v1551_v28 = vpop.f32.mrf.mxu1 }
 0x18a   :  { %v2938_v3 = vadd.f32 %v2794_v38, %v2379_v17  ;;  %v8432_v17 = vld [vmem:[%s13276_s0 + $0xc8] sm:$0x1]  ;;  %v2034_v38 = vunpack.c.l.b16 %v1886_v39  ;;  %v1552_v60 = vadd.f32 %v1551_v28, %v10206_v0  ;;  %v9187_v0 = vld [vmem:[%s13276_s0 + $0xdc] sm:$0xf] }
 0x18b   :  { %v3467_v1 = vshll.u32 %v8432_v17, 16  ;;  %v1892_v28 = vrot.slane %v9187_v0, 5 }
 0x18c   :  { %v2238_v36 = vpop.f32.mrf.mxu2  ;;  %v10528_v49 = vadd.f32 %v4088_v59, %v2938_v3  ;;  %v3464_v59 = vor.u32 %v3463_v57, %v3459_v47  ;;  %v2035_v3 = vunpack.c.l.b16 %v1889_v55  ;;  %v3460_v57 = vsel %vm9333_vm3, %v3455_v16, %v3459_v47 }
 0x18d   :  { %v2380_v63 = vadd.f32 %v2238_v36, %v1550_v42  ;;  %v3469_v30 = vrot.slane %v3467_v1, 5  ;;  %v8433_v42 = vld [vmem:[%s13276_s0 + $0xe4] sm:$0xf]  ;;  %v8434_v36 = vld [vmem:[%s13276_s0 + $0xe8] sm:$0xf] }
 0x18e   :  { %8367 = vmatmul.msk.bf16.gmra.mxu3 %vm981_vm4, %v9108_v31  ;;  %v3465_v24 = vrot.slane %v3464_v59, 4  ;;  %v2083_v8 = vpack.c.b16 %v2035_v3, %v2034_v38  ;;  %v3472_v17 = vshrl.u32 %v8433_v42, 16  ;;  %v3475_v39 = vshll.u32 %v8433_v42, 16  ;;  %v9109_v38 = vld [vmem:[%s13276_s0 + $0xc0] sm:$0xff] }
 0x18f   :  { %v3481_v43 = vshll.u32 %v8434_v36, 16  ;;  %v3887_v3 = vunpack.c.l.b16 %v3460_v57 }
 0x190   :  { %v4091_v4 = vpop.f32.mrf.mxu0 }
 0x191   :  { %v2797_v40 = vpop.f32.mrf.mxu3  ;;  %v1554_v58 = vpop.f32.mrf.mxu1 }
 0x192   :  { %v2939_v31 = vadd.f32 %v2797_v40, %v2380_v63  ;;  %v1695_v63 = vld [vmem:[%s13276_s0 + $0xd8] sm:$0xe]  ;;  %v1555_v16 = vadd.f32 %v1554_v58, %v10239_v6 }
 0x193   :  { %8496 = vmatmul.msk.bf16.gmra.mxu0 %vm981_vm4, %v3935_v53  ;;  %v3470_v53 = vsel %vm9333_vm3, %v3465_v24, %v3469_v30  ;;  %v3474_v24 = vrot.slane %v3472_v17, 4  ;;  %v3477_v30 = vrot.slane %v3475_v39, 5  ;;  %v9078_v39 = vld [vmem:[%s13276_s0 + $0xd8] sm:$0xff] }
 0x194   :  { %v2240_v19 = vpop.f32.mrf.mxu2  ;;  %8078 = vmatmul.msk.bf16.gmra.mxu1 %vm981_vm4, %v9077_v27  ;;  %v10547_v41 = vadd.f32 %v4091_v4, %v2939_v31  ;;  %v3485_v4 = vshrl.u32 %v8434_v36, 16  ;;  %v9188_v27 = vld [vmem:[%s13276_s0 + $0xe0] sm:$0x1]  ;;  %v8111_v31 = vrot.slane %v1695_v63, 9  ;;  %v3483_v36 = vrot.slane %v3481_v43, 5 }
 0x195   :  { %v2381_v26 = vadd.f32 %v2240_v19, %v1552_v60  ;;  %v1895_v59 = vrot.slane %v9188_v27, 5  ;;  %v1894_v60 = vrot.slane %v1892_v28, 4  ;;  %v3888_v19 = vunpack.c.l.b16 %v3470_v53 }
 0x196   :  { %v3487_v0 = vrot.slane %v3485_v4, 4  ;;  %v1893_v57 = vsel %vm9833_vm7, %v8111_v31, %v1892_v28  ;;  %v3478_v63 = vor.u32 %v3477_v30, %v3474_v24 }
 0x197   :  { %v1896_v6 = vsel %vm9833_vm7, %v1894_v60, %v1895_v59  ;;  %v3936_v58 = vpack.c.b16 %v3888_v19, %v3887_v3 }
 0x198   :  { %v4093_v55 = vpop.f32.mrf.mxu0  ;;  %v3479_v31 = vrot.slane %v3478_v63, 4 }
 0x199   :  { %v2799_v1 = vpop.f32.mrf.mxu3  ;;  %8143 = vmatmul.msk.bf16.gmra.mxu2 %vm981_vm4, %v2083_v8  ;;  %v1556_v47 = vpop.f32.mrf.mxu1 }
 0x19a   :  { %v2940_v40 = vadd.f32 %v2799_v1, %v2381_v26  ;;  %v8435_v26 = vld [vmem:[%s13276_s0 + $0xec] sm:$0x1]  ;;  %v2036_v1 = vunpack.c.l.b16 %v1893_v57  ;;  %v1557_v28 = vadd.f32 %v1556_v47, %v10264_v22  ;;  %v9189_v22 = vld [vmem:[%s13276_s0 + $0xe8] sm:$0xf] }
 0x19b   :  { %v3491_v53 = vshll.u32 %v8435_v26, 16  ;;  %v1899_v47 = vrot.slane %v9189_v22, 5 }
 0x19c   :  { %v2243_v42 = vpop.f32.mrf.mxu2  ;;  %v10570_v27 = vadd.f32 %v4093_v55, %v2940_v40  ;;  %v3488_v55 = vor.u32 %v3487_v0, %v3483_v36  ;;  %v2037_v40 = vunpack.c.l.b16 %v1896_v6  ;;  %v3484_v0 = vsel %vm9333_vm3, %v3479_v31, %v3483_v36 }
 0x19d   :  { %v2382_v8 = vadd.f32 %v2243_v42, %v1555_v16  ;;  %v3493_v60 = vrot.slane %v3491_v53, 5  ;;  %v8436_v16 = vld [vmem:[%s13276_s0 + $0xf0] sm:$0xf]  ;;  %v8437_v42 = vld [vmem:[%s13276_s0 + $0xf4] sm:$0xf] }
 0x19e   :  { %8368 = vmatmul.msk.bf16.gmra.mxu3 %vm981_vm4, %v9109_v38  ;;  %v3489_v3 = vrot.slane %v3488_v55, 4  ;;  %v2084_v30 = vpack.c.b16 %v2037_v40, %v2036_v1  ;;  %v3496_v26 = vshrl.u32 %v8436_v16, 16  ;;  %v3499_v57 = vshll.u32 %v8436_v16, 16  ;;  %v9110_v1 = vld [vmem:[%s13276_s0 + $0xe4] sm:$0xff] }
 0x19f   :  { %v3505_v63 = vshll.u32 %v8437_v42, 16  ;;  %v3889_v40 = vunpack.c.l.b16 %v3484_v0 }
 0x1a0   :  { %v4096_v17 = vpop.f32.mrf.mxu0 }
 0x1a1   :  { %v2802_v43 = vpop.f32.mrf.mxu3  ;;  %v1559_v4 = vpop.f32.mrf.mxu1 }
 0x1a2   :  { %v2941_v38 = vadd.f32 %v2802_v43, %v2382_v8  ;;  %v1696_v8 = vld [vmem:[%s13276_s0 + $0xe4] sm:$0xe]  ;;  %v1560_v31 = vadd.f32 %v1559_v4, %v9751_v12 }
 0x1a3   :  { %8497 = vmatmul.msk.bf16.gmra.mxu0 %vm981_vm4, %v3936_v58  ;;  %v3494_v58 = vsel %vm9333_vm3, %v3489_v3, %v3493_v60  ;;  %v3498_v3 = vrot.slane %v3496_v26, 4  ;;  %v3501_v60 = vrot.slane %v3499_v57, 5  ;;  %v9079_v57 = vld [vmem:[%s13276_s0 + $0xe4] sm:$0xff] }
 0x1a4   :  { %v2245_v59 = vpop.f32.mrf.mxu2  ;;  %8079 = vmatmul.msk.bf16.gmra.mxu1 %vm981_vm4, %v9078_v39  ;;  %v10589_v19 = vadd.f32 %v4096_v17, %v2941_v38  ;;  %v3509_v17 = vshrl.u32 %v8437_v42, 16  ;;  %v9190_v39 = vld [vmem:[%s13276_s0 + $0xec] sm:$0x1]  ;;  %v8112_v38 = vrot.slane %v1696_v8, 9  ;;  %v3507_v42 = vrot.slane %v3505_v63, 5 }
 0x1a5   :  { %v2383_v24 = vadd.f32 %v2245_v59, %v1557_v28  ;;  %v1902_v55 = vrot.slane %v9190_v39, 5  ;;  %v1901_v28 = vrot.slane %v1899_v47, 4  ;;  %v3890_v59 = vunpack.c.l.b16 %v3494_v58 }
 0x1a6   :  { %v3511_v22 = vrot.slane %v3509_v17, 4  ;;  %v1900_v0 = vsel %vm9833_vm7, %v8112_v38, %v1899_v47  ;;  %v3502_v8 = vor.u32 %v3501_v60, %v3498_v3 }
 0x1a7   :  { %v1903_v12 = vsel %vm9833_vm7, %v1901_v28, %v1902_v55  ;;  %v3937_v4 = vpack.c.b16 %v3890_v59, %v3889_v40 }
 0x1a8   :  { %v4098_v6 = vpop.f32.mrf.mxu0  ;;  %v3503_v38 = vrot.slane %v3502_v8, 4 }
 0x1a9   :  { %v2804_v53 = vpop.f32.mrf.mxu3  ;;  %8144 = vmatmul.msk.bf16.gmra.mxu2 %vm981_vm4, %v2084_v30  ;;  %v1561_v36 = vpop.f32.mrf.mxu1 }
 0x1aa   :  { %v2942_v43 = vadd.f32 %v2804_v53, %v2383_v24  ;;  %v8438_v24 = vld [vmem:[%s13276_s0 + $0xf8] sm:$0x1]  ;;  %v2038_v53 = vunpack.c.l.b16 %v1900_v0  ;;  %v1562_v47 = vadd.f32 %v1561_v36, %v9785_v62  ;;  %v9191_v62 = vld [vmem:[%s13276_s0 + $0xf4] sm:$0xf] }
 0x1ab   :  { %v3515_v58 = vshll.u32 %v8438_v24, 16  ;;  %v1906_v36 = vrot.slane %v9191_v62, 5 }
 0x1ac   :  { %v2248_v16 = vpop.f32.mrf.mxu2  ;;  %v10612_v39 = vadd.f32 %v4098_v6, %v2942_v43  ;;  %v3512_v6 = vor.u32 %v3511_v22, %v3507_v42  ;;  %v2039_v43 = vunpack.c.l.b16 %v1903_v12  ;;  %v3508_v22 = vsel %vm9333_vm3, %v3503_v38, %v3507_v42 }
 0x1ad   :  { %v2384_v30 = vadd.f32 %v2248_v16, %v1560_v31  ;;  %v3517_v28 = vrot.slane %v3515_v58, 5  ;;  %v8439_v31 = vld [vmem:[%s13276_s0 + $0xfc] sm:$0xf]  ;;  %v8440_v16 = vld [vmem:[%s13276_s0 + $0x100] sm:$0xf] }
 0x1ae   :  { %8369 = vmatmul.msk.bf16.gmra.mxu3 %vm981_vm4, %v9110_v1  ;;  %v3513_v40 = vrot.slane %v3512_v6, 4  ;;  %v2085_v60 = vpack.c.b16 %v2039_v43, %v2038_v53  ;;  %v3520_v24 = vshrl.u32 %v8439_v31, 16  ;;  %v3523_v0 = vshll.u32 %v8439_v31, 16  ;;  %v9111_v53 = vld [vmem:[%s13276_s0 + $0xf0] sm:$0xff] }
 0x1af   :  { %v3529_v8 = vshll.u32 %v8440_v16, 16  ;;  %v3891_v43 = vunpack.c.l.b16 %v3508_v22 }
 0x1b0   :  { %v4101_v26 = vpop.f32.mrf.mxu0 }
 0x1b1   :  { %v2807_v63 = vpop.f32.mrf.mxu3  ;;  %v1564_v17 = vpop.f32.mrf.mxu1 }
 0x1b2   :  { %v2943_v1 = vadd.f32 %v2807_v63, %v2384_v30  ;;  %v1697_v30 = vld [vmem:[%s13276_s0 + $0xf0] sm:$0xe]  ;;  %v1565_v38 = vadd.f32 %v1564_v17, %v9830_v46 }
 0x1b3   :  { %8498 = vmatmul.msk.bf16.gmra.mxu0 %vm981_vm4, %v3937_v4  ;;  %v3518_v4 = vsel %vm9333_vm3, %v3513_v40, %v3517_v28  ;;  %v3522_v40 = vrot.slane %v3520_v24, 4  ;;  %v3525_v28 = vrot.slane %v3523_v0, 5  ;;  %v9080_v0 = vld [vmem:[%s13276_s0 + $0xf0] sm:$0xff] }
 0x1b4   :  { %v2250_v55 = vpop.f32.mrf.mxu2  ;;  %8080 = vmatmul.msk.bf16.gmra.mxu1 %vm981_vm4, %v9079_v57  ;;  %v10631_v59 = vadd.f32 %v4101_v26, %v2943_v1  ;;  %v3533_v26 = vshrl.u32 %v8440_v16, 16  ;;  %v9192_v57 = vld [vmem:[%s13276_s0 + $0xf8] sm:$0x1]  ;;  %v8113_v1 = vrot.slane %v1697_v30, 9  ;;  %v3531_v16 = vrot.slane %v3529_v8, 5 }
 0x1b5   :  { %v2385_v3 = vadd.f32 %v2250_v55, %v1562_v47  ;;  %v1909_v6 = vrot.slane %v9192_v57, 5  ;;  %v1908_v47 = vrot.slane %v1906_v36, 4  ;;  %v3892_v55 = vunpack.c.l.b16 %v3518_v4 }
 0x1b6   :  { %v3535_v62 = vrot.slane %v3533_v26, 4  ;;  %v1907_v22 = vsel %vm9833_vm7, %v8113_v1, %v1906_v36  ;;  %v3526_v30 = vor.u32 %v3525_v28, %v3522_v40 }
 0x1b7   :  { %v1910_v46 = vsel %vm9833_vm7, %v1908_v47, %v1909_v6  ;;  %v3938_v17 = vpack.c.b16 %v3892_v55, %v3891_v43 }
 0x1b8   :  { %v4103_v12 = vpop.f32.mrf.mxu0  ;;  %v3527_v1 = vrot.slane %v3526_v30, 4 }
 0x1b9   :  { %v2809_v58 = vpop.f32.mrf.mxu3  ;;  %8145 = vmatmul.msk.bf16.gmra.mxu2 %vm981_vm4, %v2085_v60  ;;  %v1566_v42 = vpop.f32.mrf.mxu1 }
 0x1ba   :  { %v2944_v63 = vadd.f32 %v2809_v58, %v2385_v3  ;;  %v8441_v3 = vld [vmem:[%s13276_s0 + $0x104] sm:$0x1]  ;;  %v2040_v58 = vunpack.c.l.b16 %v1907_v22  ;;  %v1567_v36 = vadd.f32 %v1566_v42, %v9873_v33  ;;  %v9193_v33 = vld [vmem:[%s13276_s0 + $0x100] sm:$0xf] }
 0x1bb   :  { %v3539_v4 = vshll.u32 %v8441_v3, 16  ;;  %v1913_v42 = vrot.slane %v9193_v33, 5 }
 0x1bc   :  { %v2253_v31 = vpop.f32.mrf.mxu2  ;;  %v10654_v57 = vadd.f32 %v4103_v12, %v2944_v63  ;;  %v3536_v12 = vor.u32 %v3535_v62, %v3531_v16  ;;  %v2041_v63 = vunpack.c.l.b16 %v1910_v46  ;;  %v3532_v62 = vsel %vm9333_vm3, %v3527_v1, %v3531_v16 }
 0x1bd   :  { %v2386_v60 = vadd.f32 %v2253_v31, %v1565_v38  ;;  %v3541_v47 = vrot.slane %v3539_v4, 5  ;;  %v8442_v38 = vld [vmem:[%s13276_s0 + $0x108] sm:$0xf]  ;;  %v8443_v31 = vld [vmem:[%s13276_s0 + $0x10c] sm:$0xf] }
 0x1be   :  { %8370 = vmatmul.msk.bf16.gmra.mxu3 %vm981_vm4, %v9111_v53  ;;  %v3537_v43 = vrot.slane %v3536_v12, 4  ;;  %v2086_v28 = vpack.c.b16 %v2041_v63, %v2040_v58  ;;  %v3544_v3 = vshrl.u32 %v8442_v38, 16  ;;  %v3547_v22 = vshll.u32 %v8442_v38, 16  ;;  %v9112_v58 = vld [vmem:[%s13276_s0 + $0xfc] sm:$0xff] }
 0x1bf   :  { %v3553_v30 = vshll.u32 %v8443_v31, 16  ;;  %v3893_v63 = vunpack.c.l.b16 %v3532_v62 }
 0x1c0   :  { %v4106_v24 = vpop.f32.mrf.mxu0 }
 0x1c1   :  { %v2812_v8 = vpop.f32.mrf.mxu3  ;;  %v1569_v26 = vpop.f32.mrf.mxu1 }
 0x1c2   :  { %v2945_v53 = vadd.f32 %v2812_v8, %v2386_v60  ;;  %v1698_v60 = vld [vmem:[%s13276_s0 + $0xfc] sm:$0xe]  ;;  %v1570_v1 = vadd.f32 %v1569_v26, %v9909_v11 }
 0x1c3   :  { %8499 = vmatmul.msk.bf16.gmra.mxu0 %vm981_vm4, %v3938_v17  ;;  %v3542_v17 = vsel %vm9333_vm3, %v3537_v43, %v3541_v47  ;;  %v3546_v43 = vrot.slane %v3544_v3, 4  ;;  %v3549_v47 = vrot.slane %v3547_v22, 5  ;;  %v9081_v22 = vld [vmem:[%s13276_s0 + $0xfc] sm:$0xff] }
 0x1c4   :  { %v2255_v6 = vpop.f32.mrf.mxu2  ;;  %8081 = vmatmul.msk.bf16.gmra.mxu1 %vm981_vm4, %v9080_v0  ;;  %v10673_v55 = vadd.f32 %v4106_v24, %v2945_v53  ;;  %v3557_v24 = vshrl.u32 %v8443_v31, 16  ;;  %v9194_v0 = vld [vmem:[%s13276_s0 + $0x104] sm:$0x1]  ;;  %v8114_v53 = vrot.slane %v1698_v60, 9  ;;  %v3555_v31 = vrot.slane %v3553_v30, 5 }
 0x1c5   :  { %v2387_v40 = vadd.f32 %v2255_v6, %v1567_v36  ;;  %v1916_v12 = vrot.slane %v9194_v0, 5  ;;  %v1915_v36 = vrot.slane %v1913_v42, 4  ;;  %v3894_v6 = vunpack.c.l.b16 %v3542_v17 }
 0x1c6   :  { %v3559_v33 = vrot.slane %v3557_v24, 4  ;;  %v1914_v62 = vsel %vm9833_vm7, %v8114_v53, %v1913_v42  ;;  %v3550_v60 = vor.u32 %v3549_v47, %v3546_v43 }
 0x1c7   :  { %v1917_v11 = vsel %vm9833_vm7, %v1915_v36, %v1916_v12  ;;  %v3939_v26 = vpack.c.b16 %v3894_v6, %v3893_v63 }
 0x1c8   :  { %v4108_v46 = vpop.f32.mrf.mxu0  ;;  %v3551_v53 = vrot.slane %v3550_v60, 4 }
 0x1c9   :  { %v2814_v4 = vpop.f32.mrf.mxu3  ;;  %8146 = vmatmul.msk.bf16.gmra.mxu2 %vm981_vm4, %v2086_v28  ;;  %v1571_v16 = vpop.f32.mrf.mxu1 }
 0x1ca   :  { %v2946_v8 = vadd.f32 %v2814_v4, %v2387_v40  ;;  %v8444_v40 = vld [vmem:[%s13276_s0 + $0x110] sm:$0x1]  ;;  %v2042_v4 = vunpack.c.l.b16 %v1914_v62  ;;  %v1572_v42 = vadd.f32 %v1571_v16, %v9938_v48  ;;  %v9195_v48 = vld [vmem:[%s13276_s0 + $0x10c] sm:$0xf] }
 0x1cb   :  { %v3563_v17 = vshll.u32 %v8444_v40, 16  ;;  %v1920_v16 = vrot.slane %v9195_v48, 5 }
 0x1cc   :  { %v2258_v38 = vpop.f32.mrf.mxu2  ;;  %v10696_v0 = vadd.f32 %v4108_v46, %v2946_v8  ;;  %v3560_v46 = vor.u32 %v3559_v33, %v3555_v31  ;;  %v2043_v8 = vunpack.c.l.b16 %v1917_v11  ;;  %v3556_v33 = vsel %vm9333_vm3, %v3551_v53, %v3555_v31 }
 0x1cd   :  { %v2388_v28 = vadd.f32 %v2258_v38, %v1570_v1  ;;  %v3565_v36 = vrot.slane %v3563_v17, 5  ;;  %v8445_v1 = vld [vmem:[%s13276_s0 + $0x114] sm:$0xf]  ;;  %v8446_v38 = vld [vmem:[%s13276_s0 + $0x118] sm:$0xf] }
 0x1ce   :  { %8371 = vmatmul.msk.bf16.gmra.mxu3 %vm981_vm4, %v9112_v58  ;;  %v3561_v63 = vrot.slane %v3560_v46, 4  ;;  %v2087_v47 = vpack.c.b16 %v2043_v8, %v2042_v4  ;;  %v3568_v40 = vshrl.u32 %v8445_v1, 16  ;;  %v3571_v62 = vshll.u32 %v8445_v1, 16  ;;  %v9113_v4 = vld [vmem:[%s13276_s0 + $0x108] sm:$0xff] }
 0x1cf   :  { %v3577_v60 = vshll.u32 %v8446_v38, 16  ;;  %v3895_v8 = vunpack.c.l.b16 %v3556_v33 }
 0x1d0   :  { %v4111_v3 = vpop.f32.mrf.mxu0 }
 0x1d1   :  { %v2817_v30 = vpop.f32.mrf.mxu3  ;;  %v1574_v24 = vpop.f32.mrf.mxu1 }
 0x1d2   :  { %v2947_v58 = vadd.f32 %v2817_v30, %v2388_v28  ;;  %v1699_v28 = vld [vmem:[%s13276_s0 + $0x108] sm:$0xe]  ;;  %v1575_v53 = vadd.f32 %v1574_v24, %v9964_v29 }
 0x1d3   :  { %8500 = vmatmul.msk.bf16.gmra.mxu0 %vm981_vm4, %v3939_v26  ;;  %v3566_v26 = vsel %vm9333_vm3, %v3561_v63, %v3565_v36  ;;  %v3570_v63 = vrot.slane %v3568_v40, 4  ;;  %v3573_v36 = vrot.slane %v3571_v62, 5  ;;  %v9082_v62 = vld [vmem:[%s13276_s0 + $0x108] sm:$0xff] }
 0x1d4   :  { %v2260_v12 = vpop.f32.mrf.mxu2  ;;  %8082 = vmatmul.msk.bf16.gmra.mxu1 %vm981_vm4, %v9081_v22  ;;  %v10715_v6 = vadd.f32 %v4111_v3, %v2947_v58  ;;  %v3581_v3 = vshrl.u32 %v8446_v38, 16  ;;  %v9196_v22 = vld [vmem:[%s13276_s0 + $0x110] sm:$0x1]  ;;  %v8115_v58 = vrot.slane %v1699_v28, 9  ;;  %v3579_v38 = vrot.slane %v3577_v60, 5 }
 0x1d5   :  { %v2389_v43 = vadd.f32 %v2260_v12, %v1572_v42  ;;  %v1923_v46 = vrot.slane %v9196_v22, 5  ;;  %v1922_v42 = vrot.slane %v1920_v16, 4  ;;  %v3896_v12 = vunpack.c.l.b16 %v3566_v26 }
 0x1d6   :  { %v3583_v48 = vrot.slane %v3581_v3, 4  ;;  %v1921_v33 = vsel %vm9833_vm7, %v8115_v58, %v1920_v16  ;;  %v3574_v28 = vor.u32 %v3573_v36, %v3570_v63 }
 0x1d7   :  { %v1924_v29 = vsel %vm9833_vm7, %v1922_v42, %v1923_v46  ;;  %v3940_v24 = vpack.c.b16 %v3896_v12, %v3895_v8 }
 0x1d8   :  { %v4113_v11 = vpop.f32.mrf.mxu0  ;;  %v3575_v58 = vrot.slane %v3574_v28, 4 }
 0x1d9   :  { %v2819_v17 = vpop.f32.mrf.mxu3  ;;  %8147 = vmatmul.msk.bf16.gmra.mxu2 %vm981_vm4, %v2087_v47  ;;  %v1576_v31 = vpop.f32.mrf.mxu1 }
 0x1da   :  { %v2948_v30 = vadd.f32 %v2819_v17, %v2389_v43  ;;  %v8447_v43 = vld [vmem:[%s13276_s0 + $0x11c] sm:$0x1]  ;;  %v2044_v17 = vunpack.c.l.b16 %v1921_v33  ;;  %v1577_v16 = vadd.f32 %v1576_v31, %v9997_v21  ;;  %v9197_v21 = vld [vmem:[%s13276_s0 + $0x118] sm:$0xf] }
 0x1db   :  { %v3587_v26 = vshll.u32 %v8447_v43, 16  ;;  %v1927_v31 = vrot.slane %v9197_v21, 5 }
 0x1dc   :  { %v2263_v1 = vpop.f32.mrf.mxu2  ;;  %v10738_v22 = vadd.f32 %v4113_v11, %v2948_v30  ;;  %v3584_v11 = vor.u32 %v3583_v48, %v3579_v38  ;;  %v2045_v30 = vunpack.c.l.b16 %v1924_v29  ;;  %v3580_v48 = vsel %vm9333_vm3, %v3575_v58, %v3579_v38 }
 0x1dd   :  { %v2390_v47 = vadd.f32 %v2263_v1, %v1575_v53  ;;  %v3589_v42 = vrot.slane %v3587_v26, 5  ;;  %v8448_v53 = vld [vmem:[%s13276_s0 + $0x120] sm:$0xf]  ;;  %v8449_v1 = vld [vmem:[%s13276_s0 + $0x124] sm:$0xf] }
 0x1de   :  { %8372 = vmatmul.msk.bf16.gmra.mxu3 %vm981_vm4, %v9113_v4  ;;  %v3585_v8 = vrot.slane %v3584_v11, 4  ;;  %v2088_v36 = vpack.c.b16 %v2045_v30, %v2044_v17  ;;  %v3592_v43 = vshrl.u32 %v8448_v53, 16  ;;  %v3595_v33 = vshll.u32 %v8448_v53, 16  ;;  %v9114_v17 = vld [vmem:[%s13276_s0 + $0x114] sm:$0xff] }
 0x1df   :  { %v3601_v28 = vshll.u32 %v8449_v1, 16  ;;  %v3897_v30 = vunpack.c.l.b16 %v3580_v48 }
 0x1e0   :  { %v4116_v40 = vpop.f32.mrf.mxu0 }
 0x1e1   :  { %v2822_v60 = vpop.f32.mrf.mxu3  ;;  %v1579_v3 = vpop.f32.mrf.mxu1 }
 0x1e2   :  { %v2949_v4 = vadd.f32 %v2822_v60, %v2390_v47  ;;  %v1700_v47 = vld [vmem:[%s13276_s0 + $0x114] sm:$0xe]  ;;  %v1580_v58 = vadd.f32 %v1579_v3, %v10018_v56 }
 0x1e3   :  { %8501 = vmatmul.msk.bf16.gmra.mxu0 %vm981_vm4, %v3940_v24  ;;  %v3590_v24 = vsel %vm9333_vm3, %v3585_v8, %v3589_v42  ;;  %v3594_v8 = vrot.slane %v3592_v43, 4  ;;  %v3597_v42 = vrot.slane %v3595_v33, 5  ;;  %v9083_v33 = vld [vmem:[%s13276_s0 + $0x114] sm:$0xff] }
 0x1e4   :  { %v2265_v46 = vpop.f32.mrf.mxu2  ;;  %8083 = vmatmul.msk.bf16.gmra.mxu1 %vm981_vm4, %v9082_v62  ;;  %v10757_v12 = vadd.f32 %v4116_v40, %v2949_v4  ;;  %v3605_v40 = vshrl.u32 %v8449_v1, 16  ;;  %v9198_v62 = vld [vmem:[%s13276_s0 + $0x11c] sm:$0x1]  ;;  %v8116_v4 = vrot.slane %v1700_v47, 9  ;;  %v3603_v1 = vrot.slane %v3601_v28, 5 }
 0x1e5   :  { %v2391_v63 = vadd.f32 %v2265_v46, %v1577_v16  ;;  %v1930_v11 = vrot.slane %v9198_v62, 5  ;;  %v1929_v16 = vrot.slane %v1927_v31, 4  ;;  %v3898_v46 = vunpack.c.l.b16 %v3590_v24 }
 0x1e6   :  { %v3607_v21 = vrot.slane %v3605_v40, 4  ;;  %v1928_v48 = vsel %vm9833_vm7, %v8116_v4, %v1927_v31  ;;  %v3598_v47 = vor.u32 %v3597_v42, %v3594_v8 }
 0x1e7   :  { %v1931_v56 = vsel %vm9833_vm7, %v1929_v16, %v1930_v11  ;;  %v3941_v3 = vpack.c.b16 %v3898_v46, %v3897_v30 }
 0x1e8   :  { %v4118_v29 = vpop.f32.mrf.mxu0  ;;  %v3599_v4 = vrot.slane %v3598_v47, 4 }
 0x1e9   :  { %v2824_v26 = vpop.f32.mrf.mxu3  ;;  %8148 = vmatmul.msk.bf16.gmra.mxu2 %vm981_vm4, %v2088_v36  ;;  %v1581_v38 = vpop.f32.mrf.mxu1 }
 0x1ea   :  { %v2950_v60 = vadd.f32 %v2824_v26, %v2391_v63  ;;  %v8450_v63 = vld [vmem:[%s13276_s0 + $0x128] sm:$0x1]  ;;  %v2046_v26 = vunpack.c.l.b16 %v1928_v48  ;;  %v1582_v31 = vadd.f32 %v1581_v38, %v10055_v5  ;;  %v9199_v5 = vld [vmem:[%s13276_s0 + $0x124] sm:$0xf] }
 0x1eb   :  { %v3611_v24 = vshll.u32 %v8450_v63, 16  ;;  %v1934_v38 = vrot.slane %v9199_v5, 5 }
 0x1ec   :  { %v2268_v53 = vpop.f32.mrf.mxu2  ;;  %v10780_v62 = vadd.f32 %v4118_v29, %v2950_v60  ;;  %v3608_v29 = vor.u32 %v3607_v21, %v3603_v1  ;;  %v2047_v60 = vunpack.c.l.b16 %v1931_v56  ;;  %v3604_v21 = vsel %vm9333_vm3, %v3599_v4, %v3603_v1 }
 0x1ed   :  { %v2392_v36 = vadd.f32 %v2268_v53, %v1580_v58  ;;  %v3613_v16 = vrot.slane %v3611_v24, 5  ;;  %v8451_v58 = vld [vmem:[%s13276_s0 + $0x12c] sm:$0xf]  ;;  %v8452_v53 = vld [vmem:[%s13276_s0 + $0x130] sm:$0xf] }
 0x1ee   :  { %8373 = vmatmul.msk.bf16.gmra.mxu3 %vm981_vm4, %v9114_v17  ;;  %v3609_v30 = vrot.slane %v3608_v29, 4  ;;  %v2089_v42 = vpack.c.b16 %v2047_v60, %v2046_v26  ;;  %v3616_v63 = vshrl.u32 %v8451_v58, 16  ;;  %v3619_v48 = vshll.u32 %v8451_v58, 16  ;;  %v9115_v26 = vld [vmem:[%s13276_s0 + $0x120] sm:$0xff] }
 0x1ef   :  { %v3625_v47 = vshll.u32 %v8452_v53, 16  ;;  %v3899_v60 = vunpack.c.l.b16 %v3604_v21 }
 0x1f0   :  { %v4121_v43 = vpop.f32.mrf.mxu0 }
 0x1f1   :  { %v2827_v28 = vpop.f32.mrf.mxu3  ;;  %v1584_v40 = vpop.f32.mrf.mxu1 }
 0x1f2   :  { %v2951_v17 = vadd.f32 %v2827_v28, %v2392_v36  ;;  %v1701_v36 = vld [vmem:[%s13276_s0 + $0x120] sm:$0xe]  ;;  %v1585_v4 = vadd.f32 %v1584_v40, %v10084_v13 }
 0x1f3   :  { %8502 = vmatmul.msk.bf16.gmra.mxu0 %vm981_vm4, %v3941_v3  ;;  %v3614_v3 = vsel %vm9333_vm3, %v3609_v30, %v3613_v16  ;;  %v3618_v30 = vrot.slane %v3616_v63, 4  ;;  %v3621_v16 = vrot.slane %v3619_v48, 5  ;;  %v9084_v48 = vld [vmem:[%s13276_s0 + $0x120] sm:$0xff] }
 0x1f4   :  { %v2270_v11 = vpop.f32.mrf.mxu2  ;;  %8084 = vmatmul.msk.bf16.gmra.mxu1 %vm981_vm4, %v9083_v33  ;;  %v10799_v46 = vadd.f32 %v4121_v43, %v2951_v17  ;;  %v3629_v43 = vshrl.u32 %v8452_v53, 16  ;;  %v9200_v33 = vld [vmem:[%s13276_s0 + $0x128] sm:$0x1]  ;;  %v8117_v17 = vrot.slane %v1701_v36, 9  ;;  %v3627_v53 = vrot.slane %v3625_v47, 5 }
 0x1f5   :  { %v2393_v8 = vadd.f32 %v2270_v11, %v1582_v31  ;;  %v1937_v29 = vrot.slane %v9200_v33, 5  ;;  %v1936_v31 = vrot.slane %v1934_v38, 4  ;;  %v3900_v11 = vunpack.c.l.b16 %v3614_v3 }
 0x1f6   :  { %v3631_v5 = vrot.slane %v3629_v43, 4  ;;  %v1935_v21 = vsel %vm9833_vm7, %v8117_v17, %v1934_v38  ;;  %v3622_v36 = vor.u32 %v3621_v16, %v3618_v30 }
 0x1f7   :  { %v1938_v13 = vsel %vm9833_vm7, %v1936_v31, %v1937_v29  ;;  %v3942_v40 = vpack.c.b16 %v3900_v11, %v3899_v60 }
 0x1f8   :  { %v4123_v56 = vpop.f32.mrf.mxu0  ;;  %v3623_v17 = vrot.slane %v3622_v36, 4 }
 0x1f9   :  { %v2829_v24 = vpop.f32.mrf.mxu3  ;;  %8149 = vmatmul.msk.bf16.gmra.mxu2 %vm981_vm4, %v2089_v42  ;;  %v1586_v1 = vpop.f32.mrf.mxu1 }
 0x1fa   :  { %v2952_v28 = vadd.f32 %v2829_v24, %v2393_v8  ;;  %v8453_v8 = vld [vmem:[%s13276_s0 + $0x134] sm:$0x1]  ;;  %v2048_v24 = vunpack.c.l.b16 %v1935_v21  ;;  %v1587_v38 = vadd.f32 %v1586_v1, %v10107_v54  ;;  %v9201_v54 = vld [vmem:[%s13276_s0 + $0x130] sm:$0xf] }
 0x1fb   :  { %v3635_v3 = vshll.u32 %v8453_v8, 16  ;;  %v1941_v1 = vrot.slane %v9201_v54, 5 }
 0x1fc   :  { %v2273_v58 = vpop.f32.mrf.mxu2  ;;  %v10822_v33 = vadd.f32 %v4123_v56, %v2952_v28  ;;  %v3632_v56 = vor.u32 %v3631_v5, %v3627_v53  ;;  %v2049_v28 = vunpack.c.l.b16 %v1938_v13  ;;  %v3628_v5 = vsel %vm9333_vm3, %v3623_v17, %v3627_v53 }
 0x1fd   :  { %v2394_v42 = vadd.f32 %v2273_v58, %v1585_v4  ;;  %v3637_v31 = vrot.slane %v3635_v3, 5  ;;  %v8454_v4 = vld [vmem:[%s13276_s0 + $0x138] sm:$0xf]  ;;  %v8455_v58 = vld [vmem:[%s13276_s0 + $0x13c] sm:$0xf] }
 0x1fe   :  { %8374 = vmatmul.msk.bf16.gmra.mxu3 %vm981_vm4, %v9115_v26  ;;  %v3633_v60 = vrot.slane %v3632_v56, 4  ;;  %v2090_v16 = vpack.c.b16 %v2049_v28, %v2048_v24  ;;  %v3640_v8 = vshrl.u32 %v8454_v4, 16  ;;  %v3643_v21 = vshll.u32 %v8454_v4, 16  ;;  %v9116_v24 = vld [vmem:[%s13276_s0 + $0x12c] sm:$0xff] }
 0x1ff   :  { %v3649_v36 = vshll.u32 %v8455_v58, 16  ;;  %v3901_v28 = vunpack.c.l.b16 %v3628_v5 }
 0x200   :  { %v4126_v63 = vpop.f32.mrf.mxu0 }
 0x201   :  { %v2832_v47 = vpop.f32.mrf.mxu3  ;;  %v1589_v43 = vpop.f32.mrf.mxu1 }
 0x202   :  { %v2953_v26 = vadd.f32 %v2832_v47, %v2394_v42  ;;  %v1702_v42 = vld [vmem:[%s13276_s0 + $0x12c] sm:$0xe]  ;;  %v1590_v17 = vadd.f32 %v1589_v43, %v10138_v18 }
 0x203   :  { %8503 = vmatmul.msk.bf16.gmra.mxu0 %vm981_vm4, %v3942_v40  ;;  %v3638_v40 = vsel %vm9333_vm3, %v3633_v60, %v3637_v31  ;;  %v3642_v60 = vrot.slane %v3640_v8, 4  ;;  %v3645_v31 = vrot.slane %v3643_v21, 5  ;;  %v9085_v21 = vld [vmem:[%s13276_s0 + $0x12c] sm:$0xff] }
 0x204   :  { %v2275_v29 = vpop.f32.mrf.mxu2  ;;  %8085 = vmatmul.msk.bf16.gmra.mxu1 %vm981_vm4, %v9084_v48  ;;  %v10841_v11 = vadd.f32 %v4126_v63, %v2953_v26  ;;  %v3653_v63 = vshrl.u32 %v8455_v58, 16  ;;  %v9202_v48 = vld [vmem:[%s13276_s0 + $0x134] sm:$0x1]  ;;  %v8118_v26 = vrot.slane %v1702_v42, 9  ;;  %v3651_v58 = vrot.slane %v3649_v36, 5 }
 0x205   :  { %v2395_v30 = vadd.f32 %v2275_v29, %v1587_v38  ;;  %v1944_v56 = vrot.slane %v9202_v48, 5  ;;  %v1943_v38 = vrot.slane %v1941_v1, 4  ;;  %v3902_v29 = vunpack.c.l.b16 %v3638_v40 }
 0x206   :  { %v3655_v54 = vrot.slane %v3653_v63, 4  ;;  %v1942_v5 = vsel %vm9833_vm7, %v8118_v26, %v1941_v1  ;;  %v3646_v42 = vor.u32 %v3645_v31, %v3642_v60 }
 0x207   :  { %v1945_v18 = vsel %vm9833_vm7, %v1943_v38, %v1944_v56  ;;  %v3943_v43 = vpack.c.b16 %v3902_v29, %v3901_v28 }
 0x208   :  { %v4128_v13 = vpop.f32.mrf.mxu0  ;;  %v3647_v26 = vrot.slane %v3646_v42, 4 }
 0x209   :  { %v2834_v3 = vpop.f32.mrf.mxu3  ;;  %8150 = vmatmul.msk.bf16.gmra.mxu2 %vm981_vm4, %v2090_v16  ;;  %v1591_v53 = vpop.f32.mrf.mxu1 }
 0x20a   :  { %v2954_v47 = vadd.f32 %v2834_v3, %v2395_v30  ;;  %v8456_v30 = vld [vmem:[%s13276_s0 + $0x140] sm:$0x1]  ;;  %v2050_v3 = vunpack.c.l.b16 %v1942_v5  ;;  %v1592_v1 = vadd.f32 %v1591_v53, %v10167_v2  ;;  %v9203_v2 = vld [vmem:[%s13276_s0 + $0x13c] sm:$0xf] }
 0x20b   :  { %v3659_v40 = vshll.u32 %v8456_v30, 16  ;;  %v1948_v53 = vrot.slane %v9203_v2, 5 }
 0x20c   :  { %v2278_v4 = vpop.f32.mrf.mxu2  ;;  %v10864_v48 = vadd.f32 %v4128_v13, %v2954_v47  ;;  %v3656_v13 = vor.u32 %v3655_v54, %v3651_v58  ;;  %v2051_v47 = vunpack.c.l.b16 %v1945_v18  ;;  %v3652_v54 = vsel %vm9333_vm3, %v3647_v26, %v3651_v58 }
 0x20d   :  { %v2396_v16 = vadd.f32 %v2278_v4, %v1590_v17  ;;  %v3661_v38 = vrot.slane %v3659_v40, 5  ;;  %v8457_v17 = vld [vmem:[%s13276_s0 + $0x144] sm:$0xf]  ;;  %v8458_v4 = vld [vmem:[%s13276_s0 + $0x148] sm:$0xf] }
 0x20e   :  { %8375 = vmatmul.msk.bf16.gmra.mxu3 %vm981_vm4, %v9116_v24  ;;  %v3657_v28 = vrot.slane %v3656_v13, 4  ;;  %v2091_v31 = vpack.c.b16 %v2051_v47, %v2050_v3  ;;  %v3664_v30 = vshrl.u32 %v8457_v17, 16  ;;  %v3667_v5 = vshll.u32 %v8457_v17, 16  ;;  %v9117_v3 = vld [vmem:[%s13276_s0 + $0x138] sm:$0xff] }
 0x20f   :  { %v3673_v42 = vshll.u32 %v8458_v4, 16  ;;  %v3903_v47 = vunpack.c.l.b16 %v3652_v54 }
 0x210   :  { %v4131_v8 = vpop.f32.mrf.mxu0 }
 0x211   :  { %v2837_v36 = vpop.f32.mrf.mxu3  ;;  %v1594_v63 = vpop.f32.mrf.mxu1 }
 0x212   :  { %v2955_v24 = vadd.f32 %v2837_v36, %v2396_v16  ;;  %v1703_v16 = vld [vmem:[%s13276_s0 + $0x138] sm:$0xe]  ;;  %v1595_v26 = vadd.f32 %v1594_v63, %v10194_v35 }
 0x213   :  { %8504 = vmatmul.msk.bf16.gmra.mxu0 %vm981_vm4, %v3943_v43  ;;  %v3662_v43 = vsel %vm9333_vm3, %v3657_v28, %v3661_v38  ;;  %v3666_v28 = vrot.slane %v3664_v30, 4  ;;  %v3669_v38 = vrot.slane %v3667_v5, 5  ;;  %v9086_v5 = vld [vmem:[%s13276_s0 + $0x138] sm:$0xff] }
 0x214   :  { %v2280_v56 = vpop.f32.mrf.mxu2  ;;  %8086 = vmatmul.msk.bf16.gmra.mxu1 %vm981_vm4, %v9085_v21  ;;  %v10883_v29 = vadd.f32 %v4131_v8, %v2955_v24  ;;  %v3677_v8 = vshrl.u32 %v8458_v4, 16  ;;  %v9204_v21 = vld [vmem:[%s13276_s0 + $0x140] sm:$0x1]  ;;  %v8119_v24 = vrot.slane %v1703_v16, 9  ;;  %v3675_v4 = vrot.slane %v3673_v42, 5 }
 0x215   :  { %v2397_v60 = vadd.f32 %v2280_v56, %v1592_v1  ;;  %v1951_v13 = vrot.slane %v9204_v21, 5  ;;  %v1950_v1 = vrot.slane %v1948_v53, 4  ;;  %v3904_v56 = vunpack.c.l.b16 %v3662_v43 }
 0x216   :  { %13312 = vst [vmem:[#allocation31_spill] sm:$0xff] %v10883_v29  ;;  %v3679_v2 = vrot.slane %v3677_v8, 4  ;;  %v1949_v54 = vsel %vm9833_vm7, %v8119_v24, %v1948_v53  ;;  %v3670_v16 = vor.u32 %v3669_v38, %v3666_v28 }
 0x217   :  { %v1952_v35 = vsel %vm9833_vm7, %v1950_v1, %v1951_v13  ;;  %v3944_v63 = vpack.c.b16 %v3904_v56, %v3903_v47 }
 0x218   :  { %v4133_v18 = vpop.f32.mrf.mxu0  ;;  %v3671_v24 = vrot.slane %v3670_v16, 4 }
 0x219   :  { %v2839_v40 = vpop.f32.mrf.mxu3  ;;  %8151 = vmatmul.msk.bf16.gmra.mxu2 %vm981_vm4, %v2091_v31  ;;  %v1596_v58 = vpop.f32.mrf.mxu1 }
 0x21a   :  { %v2956_v36 = vadd.f32 %v2839_v40, %v2397_v60  ;;  %v8459_v60 = vld [vmem:[%s13276_s0 + $0x14c] sm:$0x1]  ;;  %v2052_v40 = vunpack.c.l.b16 %v1949_v54  ;;  %v1597_v53 = vadd.f32 %v1596_v58, %v10221_v32  ;;  %v9205_v32 = vld [vmem:[%s13276_s0 + $0x148] sm:$0xf] }
 0x21b   :  { %v3683_v43 = vshll.u32 %v8459_v60, 16  ;;  %v1955_v58 = vrot.slane %v9205_v32, 5 }
 0x21c   :  { %v2283_v17 = vpop.f32.mrf.mxu2  ;;  %v10906_v21 = vadd.f32 %v4133_v18, %v2956_v36  ;;  %v3680_v18 = vor.u32 %v3679_v2, %v3675_v4  ;;  %v2053_v36 = vunpack.c.l.b16 %v1952_v35  ;;  %v3676_v2 = vsel %vm9333_vm3, %v3671_v24, %v3675_v4 }
 0x21d   :  { %v2398_v31 = vadd.f32 %v2283_v17, %v1595_v26  ;;  %v3685_v1 = vrot.slane %v3683_v43, 5  ;;  %v8460_v26 = vld [vmem:[%s13276_s0 + $0x150] sm:$0xf]  ;;  %v8461_v17 = vld [vmem:[%s13276_s0 + $0x154] sm:$0xf] }
 0x21e   :  { %13313 = vst [vmem:[#allocation32_spill] sm:$0xff] %v10906_v21  ;;  %8376 = vmatmul.msk.bf16.gmra.mxu3 %vm981_vm4, %v9117_v3  ;;  %v3681_v47 = vrot.slane %v3680_v18, 4  ;;  %v2092_v38 = vpack.c.b16 %v2053_v36, %v2052_v40  ;;  %v3688_v60 = vshrl.u32 %v8460_v26, 16  ;;  %v3691_v54 = vshll.u32 %v8460_v26, 16  ;;  %v9118_v40 = vld [vmem:[%s13276_s0 + $0x144] sm:$0xff] }
 0x21f   :  { %v3697_v16 = vshll.u32 %v8461_v17, 16  ;;  %v3905_v36 = vunpack.c.l.b16 %v3676_v2 }
 0x220   :  { %v4136_v30 = vpop.f32.mrf.mxu0 }
 0x221   :  { %v2842_v42 = vpop.f32.mrf.mxu3  ;;  %v1599_v8 = vpop.f32.mrf.mxu1 }
 0x222   :  { %v2957_v3 = vadd.f32 %v2842_v42, %v2398_v31  ;;  %v1704_v31 = vld [vmem:[%s13276_s0 + $0x144] sm:$0xe]  ;;  %v1600_v24 = vadd.f32 %v1599_v8, %v9783_v61 }
 0x223   :  { %8505 = vmatmul.msk.bf16.gmra.mxu0 %vm981_vm4, %v3944_v63  ;;  %v3686_v63 = vsel %vm9333_vm3, %v3681_v47, %v3685_v1  ;;  %v3690_v47 = vrot.slane %v3688_v60, 4  ;;  %v3693_v1 = vrot.slane %v3691_v54, 5  ;;  %v9087_v54 = vld [vmem:[%s13276_s0 + $0x144] sm:$0xff] }
 0x224   :  { %v2285_v13 = vpop.f32.mrf.mxu2  ;;  %8087 = vmatmul.msk.bf16.gmra.mxu1 %vm981_vm4, %v9086_v5  ;;  %v10925_v56 = vadd.f32 %v4136_v30, %v2957_v3  ;;  %v3701_v30 = vshrl.u32 %v8461_v17, 16  ;;  %v9206_v5 = vld [vmem:[%s13276_s0 + $0x14c] sm:$0x1]  ;;  %v8120_v3 = vrot.slane %v1704_v31, 9  ;;  %v3699_v17 = vrot.slane %v3697_v16, 5 }
 0x225   :  { %v2399_v28 = vadd.f32 %v2285_v13, %v1597_v53  ;;  %v1958_v18 = vrot.slane %v9206_v5, 5  ;;  %v1957_v53 = vrot.slane %v1955_v58, 4  ;;  %v3906_v13 = vunpack.c.l.b16 %v3686_v63 }
 0x226   :  { %13314 = vst [vmem:[#allocation33_spill] sm:$0xff] %v10925_v56  ;;  %v3703_v32 = vrot.slane %v3701_v30, 4  ;;  %v1956_v2 = vsel %vm9833_vm7, %v8120_v3, %v1955_v58  ;;  %v3694_v31 = vor.u32 %v3693_v1, %v3690_v47 }
 0x227   :  { %v1959_v61 = vsel %vm9833_vm7, %v1957_v53, %v1958_v18  ;;  %v3945_v8 = vpack.c.b16 %v3906_v13, %v3905_v36 }
 0x228   :  { %v4138_v35 = vpop.f32.mrf.mxu0  ;;  %v3695_v3 = vrot.slane %v3694_v31, 4 }
 0x229   :  { %v2844_v43 = vpop.f32.mrf.mxu3  ;;  %8152 = vmatmul.msk.bf16.gmra.mxu2 %vm981_vm4, %v2092_v38  ;;  %v1601_v4 = vpop.f32.mrf.mxu1 }
 0x22a   :  { %v2958_v42 = vadd.f32 %v2844_v43, %v2399_v28  ;;  %v8462_v28 = vld [vmem:[%s13276_s0 + $0x158] sm:$0x1]  ;;  %v2054_v43 = vunpack.c.l.b16 %v1956_v2  ;;  %v1602_v58 = vadd.f32 %v1601_v4, %v9828_v45  ;;  %v9207_v45 = vld [vmem:[%s13276_s0 + $0x154] sm:$0xf] }
 0x22b   :  { %v3707_v63 = vshll.u32 %v8462_v28, 16  ;;  %v1962_v4 = vrot.slane %v9207_v45, 5 }
 0x22c   :  { %v2288_v26 = vpop.f32.mrf.mxu2  ;;  %v10948_v5 = vadd.f32 %v4138_v35, %v2958_v42  ;;  %v3704_v35 = vor.u32 %v3703_v32, %v3699_v17  ;;  %v2055_v42 = vunpack.c.l.b16 %v1959_v61  ;;  %v3700_v32 = vsel %vm9333_vm3, %v3695_v3, %v3699_v17 }
 0x22d   :  { %v2400_v38 = vadd.f32 %v2288_v26, %v1600_v24  ;;  %v3709_v53 = vrot.slane %v3707_v63, 5  ;;  %v8463_v24 = vld [vmem:[%s13276_s0 + $0x15c] sm:$0xf]  ;;  %v8464_v26 = vld [vmem:[%s13276_s0 + $0x160] sm:$0xf] }
 0x22e   :  { %13315 = vst [vmem:[#allocation34_spill] sm:$0xff] %v10948_v5  ;;  %8377 = vmatmul.msk.bf16.gmra.mxu3 %vm981_vm4, %v9118_v40  ;;  %v3705_v36 = vrot.slane %v3704_v35, 4  ;;  %v2093_v1 = vpack.c.b16 %v2055_v42, %v2054_v43  ;;  %v3712_v28 = vshrl.u32 %v8463_v24, 16  ;;  %v3715_v2 = vshll.u32 %v8463_v24, 16  ;;  %v9119_v43 = vld [vmem:[%s13276_s0 + $0x150] sm:$0xff] }
 0x22f   :  { %v3721_v31 = vshll.u32 %v8464_v26, 16  ;;  %v3907_v42 = vunpack.c.l.b16 %v3700_v32 }
 0x230   :  { %v4141_v60 = vpop.f32.mrf.mxu0 }
 0x231   :  { %v2847_v16 = vpop.f32.mrf.mxu3  ;;  %v1604_v30 = vpop.f32.mrf.mxu1 }
 0x232   :  { %v2959_v40 = vadd.f32 %v2847_v16, %v2400_v38  ;;  %v1705_v38 = vld [vmem:[%s13276_s0 + $0x150] sm:$0xe]  ;;  %v1605_v3 = vadd.f32 %v1604_v30, %v9878_v37 }
 0x233   :  { %8506 = vmatmul.msk.bf16.gmra.mxu0 %vm981_vm4, %v3945_v8  ;;  %v3710_v8 = vsel %vm9333_vm3, %v3705_v36, %v3709_v53  ;;  %v3714_v36 = vrot.slane %v3712_v28, 4  ;;  %v3717_v53 = vrot.slane %v3715_v2, 5  ;;  %v9088_v2 = vld [vmem:[%s13276_s0 + $0x150] sm:$0xff] }
 0x234   :  { %v2290_v18 = vpop.f32.mrf.mxu2  ;;  %8088 = vmatmul.msk.bf16.gmra.mxu1 %vm981_vm4, %v9087_v54  ;;  %v10967_v13 = vadd.f32 %v4141_v60, %v2959_v40  ;;  %v3725_v60 = vshrl.u32 %v8464_v26, 16  ;;  %v9208_v54 = vld [vmem:[%s13276_s0 + $0x158] sm:$0x1]  ;;  %v8121_v40 = vrot.slane %v1705_v38, 9  ;;  %v3723_v26 = vrot.slane %v3721_v31, 5 }
 0x235   :  { %v2401_v47 = vadd.f32 %v2290_v18, %v1602_v58  ;;  %v1965_v35 = vrot.slane %v9208_v54, 5  ;;  %v1964_v58 = vrot.slane %v1962_v4, 4  ;;  %v3908_v18 = vunpack.c.l.b16 %v3710_v8 }
 0x236   :  { %13316 = vst [vmem:[#allocation35_spill] sm:$0xff] %v10967_v13  ;;  %v3727_v45 = vrot.slane %v3725_v60, 4  ;;  %v1963_v32 = vsel %vm9833_vm7, %v8121_v40, %v1962_v4  ;;  %v3718_v38 = vor.u32 %v3717_v53, %v3714_v36 }
 0x237   :  { %v1966_v37 = vsel %vm9833_vm7, %v1964_v58, %v1965_v35  ;;  %v3946_v30 = vpack.c.b16 %v3908_v18, %v3907_v42 }
 0x238   :  { %v4143_v61 = vpop.f32.mrf.mxu0  ;;  %v3719_v40 = vrot.slane %v3718_v38, 4 }
 0x239   :  { %v2849_v63 = vpop.f32.mrf.mxu3  ;;  %8153 = vmatmul.msk.bf16.gmra.mxu2 %vm981_vm4, %v2093_v1  ;;  %v1606_v17 = vpop.f32.mrf.mxu1 }
 0x23a   :  { %v2960_v16 = vadd.f32 %v2849_v63, %v2401_v47  ;;  %v8465_v47 = vld [vmem:[%s13276_s0 + $0x164] sm:$0x1]  ;;  %v2056_v63 = vunpack.c.l.b16 %v1963_v32  ;;  %v1607_v4 = vadd.f32 %v1606_v17, %v9911_v14  ;;  %v9209_v14 = vld [vmem:[%s13276_s0 + $0x160] sm:$0xf] }
 0x23b   :  { %v3731_v8 = vshll.u32 %v8465_v47, 16  ;;  %v1969_v17 = vrot.slane %v9209_v14, 5 }
 0x23c   :  { %v2293_v24 = vpop.f32.mrf.mxu2  ;;  %v10990_v54 = vadd.f32 %v4143_v61, %v2960_v16  ;;  %v3728_v61 = vor.u32 %v3727_v45, %v3723_v26  ;;  %v2057_v16 = vunpack.c.l.b16 %v1966_v37  ;;  %v3724_v45 = vsel %vm9333_vm3, %v3719_v40, %v3723_v26  ;;  %v9210_v26 = vld [vmem:[%s13276_s0 + $0x164] sm:$0x1] }
 0x23d   :  { %v2402_v1 = vadd.f32 %v2293_v24, %v1605_v3  ;;  %v3733_v58 = vrot.slane %v3731_v8, 5  ;;  %v8466_v3 = vld [vmem:[%s13276_s0 + $0x168] sm:$0xf]  ;;  %v8467_v24 = vld [vmem:[%s13276_s0 + $0x16c] sm:$0xf]  ;;  %v1972_v8 = vrot.slane %v9210_v26, 5 }
 0x23e   :  { %13317 = vst [vmem:[#allocation36_spill] sm:$0xff] %v10990_v54  ;;  %8378 = vmatmul.msk.bf16.gmra.mxu3 %vm981_vm4, %v9119_v43  ;;  %v3729_v42 = vrot.slane %v3728_v61, 4  ;;  %v2094_v53 = vpack.c.b16 %v2057_v16, %v2056_v63  ;;  %v3736_v47 = vshrl.u32 %v8466_v3, 16  ;;  %v3745_v38 = vshll.u32 %v8467_v24, 16  ;;  %v9120_v63 = vld [vmem:[%s13276_s0 + $0x15c] sm:$0xff] }
 0x240   :  { %v4146_v28 = vpop.f32.mrf.mxu0  ;;  %v3734_v37 = vsel %vm9333_vm3, %v3729_v42, %v3733_v58  ;;  %v3738_v58 = vrot.slane %v3736_v47, 4 }
 0x241   :  { %v2852_v31 = vpop.f32.mrf.mxu3  ;;  %v1609_v60 = vpop.f32.mrf.mxu1  ;;  %v3910_v42 = vunpack.c.l.b16 %v3734_v37 }
 0x242   :  { %v2961_v43 = vadd.f32 %v2852_v31, %v2402_v1  ;;  %v1706_v1 = vld [vmem:[%s13276_s0 + $0x15c] sm:$0xe] }
 0x243   :  { %8507 = vmatmul.msk.bf16.gmra.mxu0 %vm981_vm4, %v3946_v30  ;;  %v3739_v30 = vshll.u32 %v8466_v3, 16  ;;  %v8122_v16 = vrot.slane %v1706_v1, 9 }
 0x244   :  { %v2295_v35 = vpop.f32.mrf.mxu2  ;;  %8089 = vmatmul.msk.bf16.gmra.mxu1 %vm981_vm4, %v9088_v2  ;;  %v11009_v18 = vadd.f32 %v4146_v28, %v2961_v43  ;;  %v3749_v28 = vshrl.u32 %v8467_v24, 16  ;;  %v1971_v43 = vrot.slane %v1969_v17, 4  ;;  %v3747_v24 = vrot.slane %v3745_v38, 5 }
 0x245   :  { %v2403_v36 = vadd.f32 %v2295_v35, %v1607_v4  ;;  %v13319_v4 = vld [vmem:[#allocation6_spill] sm:$0xff]  ;;  %v3909_v35 = vunpack.c.l.b16 %v3724_v45  ;;  %v1970_v1 = vsel %vm9833_vm7, %v8122_v16, %v1969_v17  ;;  %v8469_v17 = vld [vmem:[%s13276_s0 + $0x174] sm:$0xf] }
 0x246   :  { %13318 = vst [vmem:[#allocation37_spill] sm:$0xff] %v11009_v18  ;;  %v1610_v40 = vadd.f32 %v1609_v60, %v13319_v4  ;;  %v3751_v14 = vrot.slane %v3749_v28, 4  ;;  %v1973_v60 = vsel %vm9833_vm7, %v1971_v43, %v1972_v8  ;;  %v2058_v26 = vunpack.c.l.b16 %v1970_v1  ;;  %v13321_v8 = vld [vmem:[#allocation8_spill] sm:$0xff]  ;;  %v1707_v1 = vld [vmem:[%s13276_s0 + $0x168] sm:$0xe] }
 0x247   :  { %v3947_v45 = vpack.c.b16 %v3910_v42, %v3909_v35 }
 0x248   :  { %v4148_v32 = vpop.f32.mrf.mxu0 }
 0x249   :  { %v2854_v2 = vpop.f32.mrf.mxu3  ;;  %8154 = vmatmul.msk.bf16.gmra.mxu2 %vm981_vm4, %v2094_v53  ;;  %v1611_v61 = vpop.f32.mrf.mxu1  ;;  %v3741_v53 = vrot.slane %v3739_v30, 5  ;;  %v3752_v30 = vor.u32 %v3751_v14, %v3747_v24  ;;  %v9211_v14 = vld [vmem:[%s13276_s0 + $0x16c] sm:$0xf] }
 0x24a   :  { %v2962_v31 = vadd.f32 %v2854_v2, %v2403_v36  ;;  %v8468_v36 = vld [vmem:[%s13276_s0 + $0x170] sm:$0x1]  ;;  %v1612_v16 = vadd.f32 %v1611_v61, %v13321_v8  ;;  %v1976_v61 = vrot.slane %v9211_v14, 5 }
 0x24b   :  { %v3742_v37 = vor.u32 %v3741_v53, %v3738_v58  ;;  %v3755_v38 = vshll.u32 %v8468_v36, 16  ;;  %v3760_v53 = vshrl.u32 %v8469_v17, 16  ;;  %v3763_v36 = vshll.u32 %v8469_v17, 16 }
 0x24c   :  { %v2298_v3 = vpop.f32.mrf.mxu2  ;;  %v11032_v18 = vadd.f32 %v4148_v32, %v2962_v31  ;;  %v9089_v32 = vld [vmem:[%s13276_s0 + $0x15c] sm:$0xff]  ;;  %v2059_v31 = vunpack.c.l.b16 %v1973_v60  ;;  %v8123_v17 = vrot.slane %v1707_v1, 9  ;;  %v1978_v8 = vrot.slane %v1976_v61, 4 }
 0x24d   :  { %v2404_v54 = vadd.f32 %v2298_v3, %v1610_v40  ;;  %v3743_v4 = vrot.slane %v3742_v37, 4  ;;  %v3753_v40 = vrot.slane %v3752_v30, 4  ;;  %v3757_v35 = vrot.slane %v3755_v38, 5  ;;  %v9212_v30 = vld [vmem:[%s13276_s0 + $0x170] sm:$0x1] }
 0x24e   :  { %13320 = vst [vmem:[#allocation6_spill] sm:$0xff] %v11032_v18  ;;  %8379 = vmatmul.msk.bf16.gmra.mxu3 %vm981_vm4, %v9120_v63  ;;  %v2095_v3 = vpack.c.b16 %v2059_v31, %v2058_v26  ;;  %v1979_v38 = vrot.slane %v9212_v30, 5  ;;  %v3762_v31 = vrot.slane %v3760_v53, 4  ;;  %v1977_v53 = vsel %vm9833_vm7, %v8123_v17, %v1976_v61  ;;  %v8472_v61 = vld [vmem:[%s13276_s0 + $0x180] sm:$0xf] }
 0x250   :  { %v4151_v47 = vpop.f32.mrf.mxu0 }
 0x251   :  { %v2857_v28 = vpop.f32.mrf.mxu3  ;;  %v1614_v2 = vpop.f32.mrf.mxu1 }
 0x252   :  { %v2963_v63 = vadd.f32 %v2857_v28, %v2404_v54  ;;  %v8470_v54 = vld [vmem:[%s13276_s0 + $0x178] sm:$0xf] }
 0x253   :  { %8508 = vmatmul.msk.bf16.gmra.mxu0 %vm981_vm4, %v3947_v45  ;;  %v3748_v45 = vsel %vm9333_vm3, %v3743_v4, %v3747_v24  ;;  %v3773_v37 = vshrl.u32 %v8470_v54, 16  ;;  %v9121_v24 = vld [vmem:[%s13276_s0 + $0x168] sm:$0xff] }
 0x254   :  { %v2300_v43 = vpop.f32.mrf.mxu2  ;;  %8090 = vmatmul.msk.bf16.gmra.mxu1 %vm981_vm4, %v9089_v32  ;;  %v11051_v42 = vadd.f32 %v4151_v47, %v2963_v63  ;;  %v3758_v47 = vsel %vm9333_vm3, %v3753_v40, %v3757_v35  ;;  %v3769_v32 = vshll.u32 %v8470_v54, 16  ;;  %v3911_v40 = vunpack.c.l.b16 %v3748_v45 }
 0x255   :  { %v2405_v58 = vadd.f32 %v2300_v43, %v1612_v16  ;;  %v3765_v16 = vrot.slane %v3763_v36, 5  ;;  %v13323_v43 = vld [vmem:[#allocation10_spill] sm:$0xff]  ;;  %v3912_v35 = vunpack.c.l.b16 %v3758_v47  ;;  %v3775_v30 = vrot.slane %v3773_v37, 4 }
 0x256   :  { %13322 = vst [vmem:[#allocation8_spill] sm:$0xff] %v11051_v42  ;;  %v1615_v4 = vadd.f32 %v1614_v2, %v13323_v43  ;;  %v3771_v14 = vrot.slane %v3769_v32, 5  ;;  %v1980_v2 = vsel %vm9833_vm7, %v1978_v8, %v1979_v38  ;;  %v13325_v38 = vld [vmem:[#allocation12_spill] sm:$0xff] }
 0x257   :  { %v3766_v36 = vor.u32 %v3765_v16, %v3762_v31  ;;  %v3948_v1 = vpack.c.b16 %v3912_v35, %v3911_v40  ;;  %v2061_v43 = vunpack.c.l.b16 %v1980_v2  ;;  %v8473_v40 = vld [vmem:[%s13276_s0 + $0x184] sm:$0xf]  ;;  %v3787_v2 = vshll.u32 %v8472_v61, 16 }
 0x258   :  { %v4153_v60 = vpop.f32.mrf.mxu0  ;;  %v3776_v47 = vor.u32 %v3775_v30, %v3771_v14 }
 0x259   :  { %v2859_v28 = vpop.f32.mrf.mxu3  ;;  %8155 = vmatmul.msk.bf16.gmra.mxu2 %vm981_vm4, %v2095_v3  ;;  %v1616_v26 = vpop.f32.mrf.mxu1 }
 0x25a   :  { %v2964_v63 = vadd.f32 %v2859_v28, %v2405_v58  ;;  %v8471_v58 = vld [vmem:[%s13276_s0 + $0x17c] sm:$0x1]  ;;  %v1617_v31 = vadd.f32 %v1616_v26, %v13325_v38  ;;  %v3777_v8 = vrot.slane %v3776_v47, 4  ;;  %v9213_v26 = vld [vmem:[%s13276_s0 + $0x178] sm:$0xf] }
 0x25b   :  { %v3779_v32 = vshll.u32 %v8471_v58, 16 }
 0x25c   :  { %v2303_v54 = vpop.f32.mrf.mxu2  ;;  %v11074_v42 = vadd.f32 %v4153_v60, %v2964_v63  ;;  %v9090_v60 = vld [vmem:[%s13276_s0 + $0x168] sm:$0xff]  ;;  %v2060_v63 = vunpack.c.l.b16 %v1977_v53  ;;  %v1983_v53 = vrot.slane %v9213_v26, 5 }
 0x25d   :  { %v2406_v3 = vadd.f32 %v2303_v54, %v1615_v4  ;;  %v3767_v4 = vrot.slane %v3766_v36, 4  ;;  %v3781_v16 = vrot.slane %v3779_v32, 5  ;;  %v1708_v36 = vld [vmem:[%s13276_s0 + $0x174] sm:$0xe] }
 0x25e   :  { %13324 = vst [vmem:[#allocation10_spill] sm:$0xff] %v11074_v42  ;;  %8380 = vmatmul.msk.bf16.gmra.mxu3 %vm981_vm4, %v9121_v24  ;;  %v2096_v30 = vpack.c.b16 %v2061_v43, %v2060_v63  ;;  %v8124_v38 = vrot.slane %v1708_v36, 9 }
 0x25f   :  { %v3772_v58 = vsel %vm9333_vm3, %v3767_v4, %v3771_v14  ;;  %v3782_v47 = vsel %vm9333_vm3, %v3777_v8, %v3781_v16  ;;  %v9214_v14 = vld [vmem:[%s13276_s0 + $0x17c] sm:$0x1]  ;;  %v13327_v8 = vld [vmem:[#allocation14_spill] sm:$0xff] }
 0x260   :  { %v4156_v45 = vpop.f32.mrf.mxu0  ;;  %v1986_v32 = vrot.slane %v9214_v14, 5  ;;  %v3913_v63 = vunpack.c.l.b16 %v3772_v58 }
 0x261   :  { %v2862_v37 = vpop.f32.mrf.mxu3  ;;  %v1619_v28 = vpop.f32.mrf.mxu1 }
 0x262   :  { %v2965_v24 = vadd.f32 %v2862_v37, %v2406_v3  ;;  %v3784_v3 = vshrl.u32 %v8472_v61, 16  ;;  %v9122_v61 = vld [vmem:[%s13276_s0 + $0x174] sm:$0xff]  ;;  %v1620_v16 = vadd.f32 %v1619_v28, %v13327_v8 }
 0x263   :  { %8509 = vmatmul.msk.bf16.gmra.mxu0 %vm981_vm4, %v3948_v1  ;;  %v3793_v1 = vshll.u32 %v8473_v40, 16 }
 0x264   :  { %v2305_v17 = vpop.f32.mrf.mxu2  ;;  %8091 = vmatmul.msk.bf16.gmra.mxu1 %vm981_vm4, %v9090_v60  ;;  %v11096_v35 = vadd.f32 %v4156_v45, %v2965_v24  ;;  %v3797_v60 = vshrl.u32 %v8473_v40, 16  ;;  %v3786_v24 = vrot.slane %v3784_v3, 4  ;;  %v3914_v40 = vunpack.c.l.b16 %v3782_v47 }
 0x265   :  { %v2407_v54 = vadd.f32 %v2305_v17, %v1617_v31  ;;  %v1985_v31 = vrot.slane %v1983_v53, 4  ;;  %v3789_v17 = vrot.slane %v3787_v2, 5  ;;  %v3795_v26 = vrot.slane %v3793_v1, 5 }
 0x266   :  { %13326 = vst [vmem:[#allocation12_spill] sm:$0xff] %v11096_v35  ;;  %v3799_v35 = vrot.slane %v3797_v60, 4  ;;  %v1984_v3 = vsel %vm9833_vm7, %v8124_v38, %v1983_v53  ;;  %v3949_v36 = vpack.c.b16 %v3914_v40, %v3913_v63  ;;  %v13329_v53 = vld [vmem:[#allocation16_spill] sm:$0xff] }
 0x267   :  { %v1987_v2 = vsel %vm9833_vm7, %v1985_v31, %v1986_v32  ;;  %v3790_v28 = vor.u32 %v3789_v17, %v3786_v24  ;;  %v2062_v8 = vunpack.c.l.b16 %v1984_v3  ;;  %v8476_v31 = vld [vmem:[%s13276_s0 + $0x190] sm:$0xf] }
 0x268   :  { %v4158_v45 = vpop.f32.mrf.mxu0  ;;  %v3800_v1 = vor.u32 %v3799_v35, %v3795_v26  ;;  %v8475_v35 = vld [vmem:[%s13276_s0 + $0x18c] sm:$0xf] }
 0x269   :  { %v2864_v37 = vpop.f32.mrf.mxu3  ;;  %8156 = vmatmul.msk.bf16.gmra.mxu2 %vm981_vm4, %v2096_v30  ;;  %v1621_v43 = vpop.f32.mrf.mxu1  ;;  %v8474_v30 = vld [vmem:[%s13276_s0 + $0x188] sm:$0x1] }
 0x26a   :  { %v2966_v4 = vadd.f32 %v2864_v37, %v2407_v54  ;;  %v3803_v60 = vshll.u32 %v8474_v30, 16  ;;  %v9091_v37 = vld [vmem:[%s13276_s0 + $0x174] sm:$0xff]  ;;  %v1622_v38 = vadd.f32 %v1621_v43, %v13329_v53  ;;  %v3801_v32 = vrot.slane %v3800_v1, 4  ;;  %v9215_v43 = vld [vmem:[%s13276_s0 + $0x184] sm:$0xf] }
 0x26b   :  { %v3811_v1 = vshll.u32 %v8475_v35, 16 }
 0x26c   :  { %v2308_v14 = vpop.f32.mrf.mxu2  ;;  %v11119_v58 = vadd.f32 %v4158_v45, %v2966_v4  ;;  %v3805_v24 = vrot.slane %v3803_v60, 5  ;;  %v3817_v60 = vshll.u32 %v8476_v31, 16 }
 0x26d   :  { %v2408_v54 = vadd.f32 %v2308_v14, %v1620_v16  ;;  %v2063_v16 = vunpack.c.l.b16 %v1987_v2  ;;  %v3791_v14 = vrot.slane %v3790_v28, 4  ;;  %v1709_v2 = vld [vmem:[%s13276_s0 + $0x180] sm:$0xe]  ;;  %v3808_v28 = vshrl.u32 %v8475_v35, 16 }
 0x26e   :  { %13328 = vst [vmem:[#allocation14_spill] sm:$0xff] %v11119_v58  ;;  %8381 = vmatmul.msk.bf16.gmra.mxu3 %vm981_vm4, %v9122_v61 }
 0x26f   :  { %v2097_v30 = vpack.c.b16 %v2063_v16, %v2062_v8  ;;  %v3796_v3 = vsel %vm9333_vm3, %v3791_v14, %v3795_v26  ;;  %v3810_v35 = vrot.slane %v3808_v28, 4 }
 0x270   :  { %v4161_v47 = vpop.f32.mrf.mxu0 }
 0x271   :  { %v2867_v45 = vpop.f32.mrf.mxu3  ;;  %v1624_v4 = vpop.f32.mrf.mxu1 }
 0x272   :  { %v2967_v61 = vadd.f32 %v2867_v45, %v2408_v54  ;;  %v1990_v54 = vrot.slane %v9215_v43, 5  ;;  %v9216_v45 = vld [vmem:[%s13276_s0 + $0x188] sm:$0x1]  ;;  %v3813_v43 = vrot.slane %v3811_v1, 5 }
 0x273   :  { %8510 = vmatmul.msk.bf16.gmra.mxu0 %vm981_vm4, %v3949_v36  ;;  %v3806_v36 = vsel %vm9333_vm3, %v3801_v32, %v3805_v24  ;;  %v1993_v8 = vrot.slane %v9216_v45, 5  ;;  %v3915_v32 = vunpack.c.l.b16 %v3796_v3  ;;  %v8477_v3 = vld [vmem:[%s13276_s0 + $0x194] sm:$0x1] }
 0x274   :  { %v2310_v63 = vpop.f32.mrf.mxu2  ;;  %8092 = vmatmul.msk.bf16.gmra.mxu1 %vm981_vm4, %v9091_v37  ;;  %v11138_v17 = vadd.f32 %v4161_v47, %v2967_v61  ;;  %v3821_v47 = vshrl.u32 %v8476_v31, 16  ;;  %v8125_v61 = vrot.slane %v1709_v2, 9  ;;  %v1992_v14 = vrot.slane %v1990_v54, 4 }
 0x275   :  { %v2409_v40 = vadd.f32 %v2310_v63, %v1622_v38  ;;  %v9123_v38 = vld [vmem:[%s13276_s0 + $0x180] sm:$0xff]  ;;  %v3916_v24 = vunpack.c.l.b16 %v3806_v36  ;;  %v3814_v28 = vor.u32 %v3813_v43, %v3810_v35 }
 0x276   :  { %13330 = vst [vmem:[#allocation16_spill] sm:$0xff] %v11138_v17  ;;  %v13331_v63 = vld [vmem:[#allocation18_spill] sm:$0xff]  ;;  %v11158_v17 = vrot.slane %v3817_v60, 5  ;;  %v3823_v45 = vrot.slane %v3821_v47, 4  ;;  %v1994_v2 = vsel %vm9833_vm7, %v1992_v14, %v1993_v8  ;;  %v3827_v47 = vshll.u32 %v8477_v3, 16 }
 0x277   :  { %v1625_v31 = vadd.f32 %v1624_v4, %v13331_v63  ;;  %v3950_v4 = vpack.c.b16 %v3916_v24, %v3915_v32  ;;  %v8479_v14 = vld [vmem:[%s13276_s0 + $0x19c] sm:$0xf]  ;;  %v13333_v32 = vld [vmem:[#allocation20_spill] sm:$0xff]  ;;  %v3815_v35 = vrot.slane %v3814_v28, 4 }
 0x278   :  { %v4163_v37 = vpop.f32.mrf.mxu0  ;;  %v3824_v36 = vor.u32 %v3823_v45, %v11158_v17  ;;  %v3829_v45 = vrot.slane %v3827_v47, 5  ;;  %v3841_v3 = vshll.u32 %v8479_v14, 16 }
 0x279   :  { %v2869_v16 = vpop.f32.mrf.mxu3  ;;  %8157 = vmatmul.msk.bf16.gmra.mxu2 %vm981_vm4, %v2097_v30  ;;  %v1626_v26 = vpop.f32.mrf.mxu1  ;;  %v3820_v47 = vsel %vm9333_vm3, %v3815_v35, %v11158_v17  ;;  %v9124_v17 = vld [vmem:[%s13276_s0 + $0x18c] sm:$0xff] }
 0x27a   :  { %v2968_v53 = vadd.f32 %v2869_v16, %v2409_v40  ;;  %v1991_v40 = vsel %vm9833_vm7, %v8125_v61, %v1990_v54  ;;  %v2065_v54 = vunpack.c.l.b16 %v1994_v2  ;;  %v8478_v16 = vld [vmem:[%s13276_s0 + $0x198] sm:$0xf]  ;;  %v1627_v24 = vadd.f32 %v1626_v26, %v13333_v32  ;;  %v9219_v26 = vld [vmem:[%s13276_s0 + $0x194] sm:$0x1] }
 0x27b   :  { %v2064_v60 = vunpack.c.l.b16 %v1991_v40  ;;  %v3825_v63 = vrot.slane %v3824_v36, 4  ;;  %v3835_v40 = vshll.u32 %v8478_v16, 16  ;;  %v2000_v28 = vrot.slane %v9219_v26, 5  ;;  %v1710_v36 = vld [vmem:[%s13276_s0 + $0x18c] sm:$0xe] }
 0x27c   :  { %v2313_v58 = vpop.f32.mrf.mxu2  ;;  %v11160_v42 = vadd.f32 %v4163_v37, %v2968_v53  ;;  %v9217_v53 = vld [vmem:[%s13276_s0 + $0x10] sm:$0xf]  ;;  %v8514_v26 = vld [vmem:[%s13276_s0 + $0xc] sm:$0xe]  ;;  %v8126_v35 = vrot.slane %v1710_v36, 9  ;;  %v3917_v18 = vunpack.c.l.b16 %v3820_v47 }
 0x27d   :  { %v2410_v30 = vadd.f32 %v2313_v58, %v1625_v31  ;;  %v9092_v58 = vld [vmem:[%s13276_s0 + $0x180] sm:$0xff]  ;;  %v2098_v43 = vpack.c.b16 %v2065_v54, %v2064_v60 }
 0x27e   :  { %13332 = vst [vmem:[#allocation18_spill] sm:$0xff] %v11160_v42  ;;  %8382 = vmatmul.msk.bf16.gmra.mxu3 %vm981_vm4, %v9123_v38  ;;  %v4415_v38 = vrot.slane %v9217_v53, 5 }
 0x280   :  { %v4166_v1 = vpop.f32.mrf.mxu0 }
 0x281   :  { %v2872_v37 = vpop.f32.mrf.mxu3  ;;  %v1629_v8 = vpop.f32.mrf.mxu1 }
 0x282   :  { %v2969_v61 = vadd.f32 %v2872_v37, %v2410_v30  ;;  %v3832_v30 = vshrl.u32 %v8478_v16, 16  ;;  %v3845_v37 = vshrl.u32 %v8479_v14, 16  ;;  %v3830_v16 = vsel %vm9333_vm3, %v3825_v63, %v3829_v45 }
 0x283   :  { %8511 = vmatmul.msk.bf16.gmra.mxu0 %vm981_vm4, %v3950_v4  ;;  %v9218_v4 = vld [vmem:[%s13276_s0 + $0x190] sm:$0xf]  ;;  %v8546_v45 = vrot.slane %v8514_v26, 9 }
 0x284   :  { %v2315_v31 = vpop.f32.mrf.mxu2  ;;  %8093 = vmatmul.msk.bf16.gmra.mxu1 %vm981_vm4, %v9092_v58  ;;  %v11186_v42 = vadd.f32 %v4166_v1, %v2969_v61  ;;  %v1997_v53 = vrot.slane %v9218_v4, 5  ;;  %v4417_v58 = vrot.slane %v4415_v38, 4  ;;  %v9220_v1 = vld [vmem:[%s13276_s0 + $0x14] sm:$0x1]  ;;  %v3834_v32 = vrot.slane %v3832_v30, 4 }
 0x285   :  { %v2411_v2 = vadd.f32 %v2315_v31, %v1627_v24  ;;  %v4418_v60 = vrot.slane %v9220_v1, 5  ;;  %v3837_v24 = vrot.slane %v3835_v40, 5  ;;  %v11206_v31 = vrot.slane %v3841_v3, 5  ;;  %v8480_v3 = vld [vmem:[%s13276_s0 + $0x1a0] sm:$0x1] }
 0x286   :  { %13334 = vst [vmem:[#allocation20_spill] sm:$0xff] %v11186_v42  ;;  %v3847_v4 = vrot.slane %v3845_v37, 4  ;;  %v1999_v63 = vrot.slane %v1997_v53, 4  ;;  %v13335_v42 = vld [vmem:[#allocation22_spill] sm:$0xff]  ;;  %v3918_v30 = vunpack.c.l.b16 %v3830_v16  ;;  %v4416_v37 = vsel %vm9833_vm7, %v8546_v45, %v4415_v38 }
 0x287   :  { %v3838_v13 = vor.u32 %v3837_v24, %v3834_v32  ;;  %v4639_v36 = vunpack.c.l.b16 %v4416_v37  ;;  %v3851_v26 = vshll.u32 %v8480_v3, 16 }
 0x288   :  { %v4168_v54 = vpop.f32.mrf.mxu0  ;;  %v3848_v47 = vor.u32 %v3847_v4, %v11206_v31  ;;  %v3951_v16 = vpack.c.b16 %v3918_v30, %v3917_v18 }
 0x289   :  { %v2874_v61 = vpop.f32.mrf.mxu3  ;;  %8158 = vmatmul.msk.bf16.gmra.mxu2 %vm981_vm4, %v2098_v43  ;;  %v1631_v14 = vpop.f32.mrf.mxu1  ;;  %v1630_v43 = vadd.f32 %v1629_v8, %v13335_v42  ;;  %v1998_v42 = vsel %vm9833_vm7, %v8126_v35, %v1997_v53  ;;  %v2001_v8 = vsel %vm9833_vm7, %v1999_v63, %v2000_v28  ;;  %v9093_v53 = vld [vmem:[%s13276_s0 + $0x18c] sm:$0xff]  ;;  %v11241_v28 = vld [vmem:[%s13276_s0 + $0x1c] sm:$0xf]  ;;  %v3853_v30 = vrot.slane %v3851_v26, 5 }
 0x28a   :  { %v2970_v1 = vadd.f32 %v2874_v61, %v2411_v2  ;;  %v4419_v2 = vsel %vm9833_vm7, %v4417_v58, %v4418_v60  ;;  %v8836_v58 = vld [vmem:[%s13276_s0 + $0x18] sm:$0xf]  ;;  %v2067_v4 = vunpack.c.l.b16 %v2001_v8  ;;  %v3849_v63 = vrot.slane %v3848_v47, 4 }
 0x28b   :  { %v4640_v5 = vunpack.c.l.b16 %v4419_v2  ;;  %v5723_v45 = vshrl.u32 %v8836_v58, 16  ;;  %v5736_v3 = vshrl.u32 %v11241_v28, 16 }
 0x28c   :  { %v2318_v40 = vpop.f32.mrf.mxu2  ;;  %v11233_v60 = vadd.f32 %v4168_v54, %v2970_v1  ;;  %v5726_v54 = vshll.u32 %v8836_v58, 16  ;;  %v13337_v1 = vld [vmem:[#allocation24_spill] sm:$0xff]  ;;  %v8838_v58 = vld [vmem:[%s13276_s0 + $0x20] sm:$0x1] }
 0x28d   :  { %v2412_v61 = vadd.f32 %v2318_v40, %v1630_v43  ;;  %v11228_v38 = vpack.c.b16 %v4640_v5, %v4639_v36  ;;  %v2066_v5 = vunpack.c.l.b16 %v1998_v42  ;;  %v1632_v43 = vadd.f32 %v1631_v14, %v13337_v1 }
 0x28e   :  { %8383 = vmatmul.msk.bf16.gmra.mxu3 %vm981_vm4, %v9124_v17  ;;  %13336 = vst [vmem:[#allocation22_spill] sm:$0xff] %v11233_v60  ;;  %v3839_v17 = vrot.slane %v3838_v13, 4  ;;  %v5732_v40 = vshll.u32 %v11241_v28, 16  ;;  %v5725_v13 = vrot.slane %v5723_v45, 4  ;;  %v3854_v14 = vsel %vm9333_vm3, %v3849_v63, %v3853_v30  ;;  %v8839_v30 = vld [vmem:[%s13276_s0 + $0x24] sm:$0xf] }
 0x28f   :  { %v2099_v36 = vpack.c.b16 %v2067_v4, %v2066_v5  ;;  %v9125_v5 = vld [vmem:[%s13276_s0 + $0x198] sm:$0xff]  ;;  %v3920_v4 = vunpack.c.l.b16 %v3854_v14  ;;  %v5747_v14 = vshrl.u32 %v8839_v30, 16 }
 0x290   :  { %v4171_v32 = vpop.f32.mrf.mxu0  ;;  %v3844_v8 = vsel %vm9333_vm3, %v3839_v17, %v11206_v31  ;;  %v5734_v47 = vrot.slane %v5732_v40, 5  ;;  %v11269_v40 = vld [vmem:[%s13276_s0 + $0x28] sm:$0xf] }
 0x291   :  { %v2877_v18 = vpop.f32.mrf.mxu3  ;;  %v1634_v24 = vpop.f32.mrf.mxu1  ;;  %v3919_v31 = vunpack.c.l.b16 %v3844_v8 }
 0x292   :  { %v2971_v35 = vadd.f32 %v2877_v18, %v2412_v61  ;;  %v5728_v61 = vrot.slane %v5726_v54, 5  ;;  %v5742_v54 = vshll.u32 %v8838_v58, 16 }
 0x293   :  { %8512 = vmatmul.msk.bf16.gmra.mxu0 %vm981_vm4, %v3951_v16  ;;  %v5738_v16 = vrot.slane %v5736_v3, 4  ;;  %v3952_v3 = vpack.c.b16 %v3920_v4, %v3919_v31  ;;  %v9221_v4 = vld [vmem:[%s13276_s0 + $0x1c] sm:$0xf] }
 0x294   :  { %v2320_v37 = vpop.f32.mrf.mxu2  ;;  %8094 = vmatmul.msk.bf16.gmra.mxu1 %vm981_vm4, %v9093_v53  ;;  %v11248_v42 = vadd.f32 %v4171_v32, %v2971_v35  ;;  %v5729_v17 = vor.u32 %v5728_v61, %v5725_v13  ;;  %v13339_v35 = vld [vmem:[#allocation26_spill] sm:$0xff]  ;;  %v7050_v13 = vrot.slane %v11241_v28, 5 }
 0x295   :  { %v2413_v2 = vadd.f32 %v2320_v37, %v1632_v43  ;;  %v1635_v63 = vadd.f32 %v1634_v24, %v13339_v35  ;;  %v5739_v45 = vor.u32 %v5738_v16, %v5734_v47  ;;  %v8965_v24 = vld [vmem:[%s13276_s0 + $0x18] sm:$0xe]  ;;  %v5750_v16 = vshll.u32 %v8839_v30, 16  ;;  %v9222_v28 = vld [vmem:[%s13276_s0 + $0x20] sm:$0x1] }
 0x296   :  { %13338 = vst [vmem:[#allocation24_spill] sm:$0xff] %v11248_v42  ;;  %v5730_v37 = vrot.slane %v5729_v17, 4  ;;  %v5760_v35 = vshrl.u32 %v11269_v40, 16  ;;  %v4422_v17 = vrot.slane %v9221_v4, 5  ;;  %v7053_v42 = vrot.slane %v8838_v58, 5 }
 0x298   :  { %v4173_v26 = vpop.f32.mrf.mxu0 }
 0x299   :  { %v2879_v53 = vpop.f32.mrf.mxu3  ;;  %8159 = vmatmul.msk.bf16.gmra.mxu2 %vm981_vm4, %v2099_v36  ;;  %v1636_v32 = vpop.f32.mrf.mxu1  ;;  %v5744_v36 = vrot.slane %v5742_v54, 5  ;;  %v8515_v54 = vld [vmem:[%s13276_s0 + $0x18] sm:$0xe] }
 0x29a   :  { %v2972_v18 = vadd.f32 %v2879_v53, %v2413_v2  ;;  %v5740_v2 = vrot.slane %v5739_v45, 4  ;;  %v5756_v53 = vshll.u32 %v11269_v40, 16  ;;  %v8997_v45 = vrot.slane %v8965_v24, 9 }
 0x29b   :  { %v5762_v24 = vrot.slane %v5760_v35, 4 }
 0x29c   :  { %v2323_v1 = vpop.f32.mrf.mxu2  ;;  %v11276_v61 = vadd.f32 %v4173_v26, %v2972_v18  ;;  %v4425_v26 = vrot.slane %v9222_v28, 5  ;;  %v5745_v4 = vsel %vm9333_vm3, %v5740_v2, %v5744_v36  ;;  %v4424_v28 = vrot.slane %v4422_v17, 4 }
 0x29d   :  { %v2414_v43 = vadd.f32 %v2323_v1, %v1635_v63  ;;  %v5735_v63 = vsel %vm9333_vm3, %v5730_v37, %v5734_v47  ;;  %v13341_v1 = vld [vmem:[#allocation28_spill] sm:$0xff]  ;;  %v5752_v47 = vrot.slane %v5750_v16, 5  ;;  %v11297_v37 = vrot.slane %v5756_v53, 5 }
 0x29e   :  { %8384 = vmatmul.msk.bf16.gmra.mxu3 %vm981_vm4, %v9125_v5  ;;  %13340 = vst [vmem:[#allocation26_spill] sm:$0xff] %v11276_v61  ;;  %v1637_v30 = vadd.f32 %v1636_v32, %v13341_v1  ;;  %v7052_v61 = vrot.slane %v7050_v13, 4  ;;  %v8547_v32 = vrot.slane %v8515_v54, 9  ;;  %v6492_v2 = vunpack.c.l.b16 %v5735_v63 }
 0x29f   :  { %v6493_v58 = vunpack.c.l.b16 %v5745_v4  ;;  %v5763_v63 = vor.u32 %v5762_v24, %v11297_v37  ;;  %v8842_v24 = vld [vmem:[%s13276_s0 + $0x30] sm:$0xf] }
 0x2a0   :  { %v4176_v8 = vpop.f32.mrf.mxu0  ;;  %v4423_v35 = vsel %vm9833_vm7, %v8547_v32, %v4422_v17  ;;  %v11332_v32 = vld [vmem:[%s13276_s0 + $0x34] sm:$0xf] }
 0x2a1   :  { %v2882_v5 = vpop.f32.mrf.mxu3  ;;  %v1639_v31 = vpop.f32.mrf.mxu1  ;;  %v5764_v21 = vrot.slane %v5763_v63, 4  ;;  %v5771_v63 = vshrl.u32 %v8842_v24, 16 }
 0x2a2   :  { %v2973_v18 = vadd.f32 %v2882_v5, %v2414_v43  ;;  %v5749_v43 = vrot.slane %v5747_v14, 4  ;;  %v7051_v14 = vsel %vm9833_vm7, %v8997_v45, %v7050_v13  ;;  %v6556_v13 = vpack.c.b16 %v6493_v58, %v6492_v2  ;;  %v13343_v45 = vld [vmem:[#allocation2_spill] sm:$0xff] }
 0x2a3   :  { %8513 = vmatmul.msk.bf16.gmra.mxu0 %vm981_vm4, %v3952_v3  ;;  %v9126_v3 = vld [vmem:[%s13276_s0 + $0x18] sm:$0xff]  ;;  %v1640_v4 = vadd.f32 %v1639_v31, %v13343_v45  ;;  %v5784_v45 = vshrl.u32 %v11332_v32, 16 }
 0x2a4   :  { %v2325_v60 = vpop.f32.mrf.mxu2  ;;  %8579 = vmatmul.msk.bf16.vlgmr.msra.gmra.mxu1 %vm981_vm4, %v11228_v38  ;;  %v11302_v1 = vadd.f32 %v4176_v8, %v2973_v18  ;;  %v11307_v38 = vld [vmem:[%s13276_s0 + $0x2c] sm:$0x1]  ;;  %v5753_v16 = vor.u32 %v5752_v47, %v5749_v43  ;;  %v4426_v18 = vsel %vm9833_vm7, %v4424_v28, %v4425_v26  ;;  %v4641_v47 = vunpack.c.l.b16 %v4423_v35  ;;  %v8966_v26 = vld [vmem:[%s13276_s0 + $0x24] sm:$0xe] }
 0x2a5   :  { %v2415_v5 = vadd.f32 %v2325_v60, %v1637_v30  ;;  %v7054_v60 = vsel %vm9833_vm7, %v7052_v61, %v7053_v42  ;;  %v5766_v54 = vshll.u32 %v11307_v38, 16  ;;  %v7274_v42 = vunpack.c.l.b16 %v7051_v14  ;;  %v9223_v14 = vld [vmem:[%s13276_s0 + $0x28] sm:$0xf] }
 0x2a6   :  { %13342 = vst [vmem:[#allocation28_spill] sm:$0xff] %v11302_v1  ;;  %v7275_v61 = vunpack.c.l.b16 %v7054_v60  ;;  %v5754_v56 = vrot.slane %v5753_v16, 4  ;;  %v4429_v60 = vrot.slane %v9223_v14, 5 }
 0x2a7   :  { %v5768_v17 = vrot.slane %v5766_v54, 5 }
 0x2a8   :  { %v4178_v36 = vpop.f32.mrf.mxu0  ;;  %v7338_v31 = vpack.c.b16 %v7275_v61, %v7274_v42 }
 0x2a9   :  { %v2884_v53 = vpop.f32.mrf.mxu3  ;;  %8804 = vmatmul.msk.bf16.vlgmr.msra.gmra.mxu2 %vm981_vm4, %v9126_v3  ;;  %v1641_v8 = vpop.f32.mrf.mxu1  ;;  %v4642_v3 = vunpack.c.l.b16 %v4426_v18  ;;  %v5769_v35 = vsel %vm9333_vm3, %v5764_v21, %v5768_v17  ;;  %v8998_v18 = vrot.slane %v8966_v26, 9  ;;  %v9224_v21 = vld [vmem:[%s13276_s0 + $0x2c] sm:$0x1]  ;;  %v9127_v26 = vld [vmem:[%s13276_s0 + $0x24] sm:$0xff] }
 0x2aa   :  { %v2974_v30 = vadd.f32 %v2884_v53, %v2415_v5  ;;  %v7057_v5 = vrot.slane %v11269_v40, 5  ;;  %v5759_v40 = vsel %vm9333_vm3, %v5754_v56, %v11297_v37  ;;  %v7060_v37 = vrot.slane %v11307_v38, 5 }
 0x2ab   :  { %v4704_v58 = vpack.c.b16 %v4642_v3, %v4641_v47  ;;  %v4432_v61 = vrot.slane %v9224_v21, 5  ;;  %v4431_v3 = vrot.slane %v4429_v60, 4 }
 0x2ac   :  { %v2328_v43 = vpop.f32.mrf.mxu2  ;;  %v11334_v28 = vadd.f32 %v4178_v36, %v2974_v30  ;;  %v8516_v36 = vld [vmem:[%s13276_s0 + $0x24] sm:$0xe]  ;;  %v5774_v30 = vshll.u32 %v8842_v24, 16  ;;  %v7059_v56 = vrot.slane %v7057_v5, 4  ;;  %v7058_v38 = vsel %vm9833_vm7, %v8998_v18, %v7057_v5  ;;  %v11374_v5 = vld [vmem:[%s13276_s0 + $0x38] sm:$0x1] }
 0x2ad   :  { %v2416_v1 = vadd.f32 %v2328_v43, %v1640_v4  ;;  %v13345_v4 = vld [vmem:[#allocation3_spill] sm:$0xff]  ;;  %v8548_v47 = vrot.slane %v8516_v36, 9 }
 0x2ae   :  { %8933 = vmatmul.msk.bf16.vlgmr.msra.gmra.mxu3 %vm981_vm4, %v6556_v13  ;;  %13344 = vst [vmem:[#allocation2_spill] sm:$0xff] %v11334_v28  ;;  %v5780_v13 = vshll.u32 %v11332_v32, 16  ;;  %v1642_v42 = vadd.f32 %v1641_v8, %v13345_v4  ;;  %v6495_v8 = vunpack.c.l.b16 %v5769_v35  ;;  %v5776_v14 = vrot.slane %v5774_v30, 5 }
 0x2af   :  { %v5786_v4 = vrot.slane %v5784_v45, 4  ;;  %v4430_v36 = vsel %vm9833_vm7, %v8548_v47, %v4429_v60  ;;  %v4433_v35 = vsel %vm9833_vm7, %v4431_v3, %v4432_v61  ;;  %v13347_v60 = vld [vmem:[#allocation4_spill] sm:$0xff]  ;;  %v5790_v61 = vshll.u32 %v11374_v5, 16  ;;  %v8845_v3 = vld [vmem:[%s13276_s0 + $0x3c] sm:$0xf] }
 0x2b0   :  { %v4181_v2 = vpop.f32.mrf.mxu0  ;;  %v4644_v21 = vunpack.c.l.b16 %v4433_v35  ;;  %v5798_v35 = vshll.u32 %v8845_v3, 16 }
 0x2b1   :  { %v2887_v16 = vpop.f32.mrf.mxu3  ;;  %v1644_v53 = vpop.f32.mrf.mxu1 }
 0x2b2   :  { %v2975_v54 = vadd.f32 %v2887_v16, %v2416_v1  ;;  %v6494_v1 = vunpack.c.l.b16 %v5759_v40  ;;  %v11363_v16 = vrot.slane %v5780_v13, 5 }
 0x2b3   :  { %9030 = vmatmul.msk.bf16.vlgmr.msra.gmra.mxu0 %vm981_vm4, %v7338_v31  ;;  %v5773_v31 = vrot.slane %v5771_v63, 4  ;;  %v7276_v63 = vunpack.c.l.b16 %v7058_v38  ;;  %v5792_v38 = vrot.slane %v5790_v61, 5 }
 0x2b4   :  { %v2330_v43 = vpop.f32.mrf.mxu2  ;;  %8580 = vmatmul.msk.bf16.gmra.mxu1 %vm981_vm4, %v4704_v58  ;;  %v11361_v24 = vadd.f32 %v4181_v2, %v2975_v54  ;;  %v7061_v58 = vsel %vm9833_vm7, %v7059_v56, %v7060_v37  ;;  %v6557_v18 = vpack.c.b16 %v6495_v8, %v6494_v1  ;;  %v1645_v56 = vadd.f32 %v1644_v53, %v13347_v60  ;;  %v11386_v1 = vld [vmem:[%s13276_s0 + $0x40] sm:$0xf] }
 0x2b5   :  { %v2417_v17 = vadd.f32 %v2330_v43, %v1642_v42  ;;  %v7277_v13 = vunpack.c.l.b16 %v7061_v58  ;;  %v5777_v45 = vor.u32 %v5776_v14, %v5773_v31  ;;  %v5787_v42 = vor.u32 %v5786_v4, %v11363_v16  ;;  %v8967_v31 = vld [vmem:[%s13276_s0 + $0x30] sm:$0xe] }
 0x2b6   :  { %13346 = vst [vmem:[#allocation3_spill] sm:$0xff] %v11361_v24  ;;  %v4643_v37 = vunpack.c.l.b16 %v4430_v36  ;;  %v7064_v14 = vrot.slane %v11332_v32, 5  ;;  %v5795_v36 = vshrl.u32 %v8845_v3, 16  ;;  %v9226_v32 = vld [vmem:[%s13276_s0 + $0x38] sm:$0x1]  ;;  %v8999_v60 = vrot.slane %v8967_v31, 9 }
 0x2b7   :  { %v5788_v53 = vrot.slane %v5787_v42, 4  ;;  %v5800_v31 = vrot.slane %v5798_v35, 5 }
 0x2b8   :  { %v4183_v40 = vpop.f32.mrf.mxu0  ;;  %v4705_v8 = vpack.c.b16 %v4644_v21, %v4643_v37  ;;  %v8517_v37 = vld [vmem:[%s13276_s0 + $0x30] sm:$0xe]  ;;  %v13349_v21 = vld [vmem:[#allocation5_spill] sm:$0xff] }
 0x2b9   :  { %v2889_v2 = vpop.f32.mrf.mxu3  ;;  %8805 = vmatmul.msk.bf16.gmra.mxu2 %vm981_vm4, %v9127_v26  ;;  %v1646_v54 = vpop.f32.mrf.mxu1  ;;  %v5778_v26 = vrot.slane %v5777_v45, 4  ;;  %v9225_v45 = vld [vmem:[%s13276_s0 + $0x34] sm:$0xf]  ;;  %v5793_v3 = vsel %vm9333_vm3, %v5788_v53, %v5792_v38  ;;  %v11423_v53 = vld [vmem:[%s13276_s0 + $0x44] sm:$0x1]  ;;  %v7065_v38 = vsel %vm9833_vm7, %v8999_v60, %v7064_v14 }
 0x2ba   :  { %v2976_v30 = vadd.f32 %v2889_v2, %v2417_v17  ;;  %v7339_v17 = vpack.c.b16 %v7277_v13, %v7276_v63  ;;  %v5804_v2 = vshll.u32 %v11386_v1, 16  ;;  %v4436_v42 = vrot.slane %v9225_v45, 5 }
 0x2bb   :  { %v1647_v61 = vadd.f32 %v1646_v54, %v13349_v21  ;;  %v7066_v45 = vrot.slane %v7064_v14, 4  ;;  %v9128_v54 = vld [vmem:[%s13276_s0 + $0x30] sm:$0xff]  ;;  %v13351_v14 = vld [vmem:[#allocation7_spill] sm:$0xff] }
 0x2bc   :  { %v2333_v43 = vpop.f32.mrf.mxu2  ;;  %v11393_v4 = vadd.f32 %v4183_v40, %v2976_v30  ;;  %v4439_v40 = vrot.slane %v9226_v32, 5  ;;  %v4438_v21 = vrot.slane %v4436_v42, 4 }
 0x2bd   :  { %v2418_v47 = vadd.f32 %v2333_v43, %v1645_v56  ;;  %v7067_v56 = vrot.slane %v11374_v5, 5  ;;  %v5783_v43 = vsel %vm9333_vm3, %v5778_v26, %v11363_v16  ;;  %v5797_v5 = vrot.slane %v5795_v36, 4 }
 0x2be   :  { %8934 = vmatmul.msk.bf16.gmra.mxu3 %vm981_vm4, %v6557_v18  ;;  %13348 = vst [vmem:[#allocation4_spill] sm:$0xff] %v11393_v4  ;;  %v5808_v18 = vshrl.u32 %v11386_v1, 16  ;;  %v6496_v16 = vunpack.c.l.b16 %v5783_v43  ;;  %v6497_v26 = vunpack.c.l.b16 %v5793_v3 }
 0x2bf   :  { %v7068_v36 = vsel %vm9833_vm7, %v7066_v45, %v7067_v56  ;;  %v5801_v35 = vor.u32 %v5800_v31, %v5797_v5 }
 0x2c0   :  { %v4186_v58 = vpop.f32.mrf.mxu0  ;;  %v5810_v32 = vrot.slane %v5808_v18, 4  ;;  %v6558_v3 = vpack.c.b16 %v6497_v26, %v6496_v16  ;;  %v7279_v56 = vunpack.c.l.b16 %v7068_v36 }
 0x2c1   :  { %v2892_v63 = vpop.f32.mrf.mxu3  ;;  %v1649_v13 = vpop.f32.mrf.mxu1 }
 0x2c2   :  { %v2977_v30 = vadd.f32 %v2892_v63, %v2418_v47  ;;  %v5806_v63 = vrot.slane %v5804_v2, 5  ;;  %v1650_v60 = vadd.f32 %v1649_v13, %v13351_v14 }
 0x2c3   :  { %9031 = vmatmul.msk.bf16.gmra.mxu0 %vm981_vm4, %v7339_v17  ;;  %v8549_v17 = vrot.slane %v8517_v37, 9 }
 0x2c4   :  { %v2335_v47 = vpop.f32.mrf.mxu2  ;;  %8581 = vmatmul.msk.bf16.gmra.mxu1 %vm981_vm4, %v4705_v8  ;;  %v11418_v24 = vadd.f32 %v4186_v58, %v2977_v30  ;;  %v4440_v30 = vsel %vm9833_vm7, %v4438_v21, %v4439_v40  ;;  %v5811_v37 = vor.u32 %v5810_v32, %v5806_v63  ;;  %v7071_v40 = vrot.slane %v11386_v1, 5  ;;  %v11447_v32 = vld [vmem:[%s13276_s0 + $0x4c] sm:$0xf]  ;;  %v8518_v1 = vld [vmem:[%s13276_s0 + $0x3c] sm:$0xe] }
 0x2c5   :  { %v2419_v4 = vadd.f32 %v2335_v47, %v1647_v61  ;;  %v4437_v18 = vsel %vm9833_vm7, %v8549_v17, %v4436_v42  ;;  %v5814_v61 = vshll.u32 %v11423_v53, 16  ;;  %v7278_v47 = vunpack.c.l.b16 %v7065_v38  ;;  %v8968_v42 = vld [vmem:[%s13276_s0 + $0x3c] sm:$0xe] }
 0x2c6   :  { %13350 = vst [vmem:[#allocation5_spill] sm:$0xff] %v11418_v24  ;;  %v4645_v5 = vunpack.c.l.b16 %v4437_v18  ;;  %v4646_v31 = vunpack.c.l.b16 %v4440_v30  ;;  %v5802_v24 = vrot.slane %v5801_v35, 4  ;;  %v5812_v28 = vrot.slane %v5811_v37, 4 }
 0x2c7   :  { %v5816_v29 = vrot.slane %v5814_v61, 5  ;;  %v7340_v13 = vpack.c.b16 %v7279_v56, %v7278_v47  ;;  %v9000_v26 = vrot.slane %v8968_v42, 9 }
 0x2c8   :  { %v4188_v8 = vpop.f32.mrf.mxu0  ;;  %v4706_v16 = vpack.c.b16 %v4646_v31, %v4645_v5  ;;  %v5807_v35 = vsel %vm9333_vm3, %v5802_v24, %v5806_v63  ;;  %v13353_v24 = vld [vmem:[#allocation9_spill] sm:$0xff]  ;;  %v7074_v63 = vrot.slane %v11423_v53, 5 }
 0x2c9   :  { %v2894_v2 = vpop.f32.mrf.mxu3  ;;  %8806 = vmatmul.msk.bf16.gmra.mxu2 %vm981_vm4, %v9128_v54  ;;  %v1651_v58 = vpop.f32.mrf.mxu1  ;;  %v7072_v56 = vsel %vm9833_vm7, %v9000_v26, %v7071_v40  ;;  %v9129_v31 = vld [vmem:[%s13276_s0 + $0x3c] sm:$0xff] }
 0x2ca   :  { %v2978_v43 = vadd.f32 %v2894_v2, %v2419_v4  ;;  %v8848_v4 = vld [vmem:[%s13276_s0 + $0x48] sm:$0xf]  ;;  %v5817_v2 = vsel %vm9333_vm3, %v5812_v28, %v5816_v29  ;;  %v1652_v29 = vadd.f32 %v1651_v58, %v13353_v24  ;;  %v7073_v28 = vrot.slane %v7071_v40, 4  ;;  %v9228_v58 = vld [vmem:[%s13276_s0 + $0x44] sm:$0x1] }
 0x2cb   :  { %v5819_v30 = vshrl.u32 %v8848_v4, 16  ;;  %v5822_v61 = vshll.u32 %v8848_v4, 16  ;;  %v6499_v47 = vunpack.c.l.b16 %v5817_v2  ;;  %v4446_v53 = vrot.slane %v9228_v58, 5  ;;  %v8969_v58 = vld [vmem:[%s13276_s0 + $0x48] sm:$0xe] }
 0x2cc   :  { %v2338_v45 = vpop.f32.mrf.mxu2  ;;  %v11449_v17 = vadd.f32 %v4188_v8, %v2978_v43  ;;  %v9227_v8 = vld [vmem:[%s13276_s0 + $0x40] sm:$0xf]  ;;  %v5828_v43 = vshll.u32 %v11447_v32, 16  ;;  %v7075_v40 = vsel %vm9833_vm7, %v7073_v28, %v7074_v63 }
 0x2cd   :  { %v2420_v54 = vadd.f32 %v2338_v45, %v1650_v60  ;;  %v4443_v18 = vrot.slane %v9227_v8, 5  ;;  %v6498_v60 = vunpack.c.l.b16 %v5807_v35  ;;  %v8550_v45 = vrot.slane %v8518_v1, 9  ;;  %v11484_v35 = vld [vmem:[%s13276_s0 + $0x50] sm:$0x1] }
 0x2ce   :  { %8935 = vmatmul.msk.bf16.gmra.mxu3 %vm981_vm4, %v6558_v3  ;;  %13352 = vst [vmem:[#allocation7_spill] sm:$0xff] %v11449_v17  ;;  %v5832_v3 = vshrl.u32 %v11447_v32, 16  ;;  %v5821_v4 = vrot.slane %v5819_v30, 4  ;;  %v5838_v63 = vshll.u32 %v11484_v35, 16 }
 0x2cf   :  { %v6559_v1 = vpack.c.b16 %v6499_v47, %v6498_v60  ;;  %v4444_v30 = vsel %vm9833_vm7, %v8550_v45, %v4443_v18  ;;  %v8851_v47 = vld [vmem:[%s13276_s0 + $0x54] sm:$0xf] }
 0x2d0   :  { %v4191_v21 = vpop.f32.mrf.mxu0 }
 0x2d1   :  { %v2897_v38 = vpop.f32.mrf.mxu3  ;;  %v1654_v36 = vpop.f32.mrf.mxu1 }
 0x2d2   :  { %v2979_v37 = vadd.f32 %v2897_v38, %v2420_v54  ;;  %v4445_v54 = vrot.slane %v4443_v18, 4  ;;  %v5834_v38 = vrot.slane %v5832_v3, 4 }
 0x2d3   :  { %9032 = vmatmul.msk.bf16.gmra.mxu0 %vm981_vm4, %v7340_v13  ;;  %v5824_v13 = vrot.slane %v5822_v61, 5 }
 0x2d4   :  { %v2340_v14 = vpop.f32.mrf.mxu2  ;;  %8582 = vmatmul.msk.bf16.gmra.mxu1 %vm981_vm4, %v4706_v16  ;;  %v11475_v42 = vadd.f32 %v4191_v21, %v2979_v37  ;;  %v11477_v16 = vrot.slane %v5828_v43, 5  ;;  %v7280_v21 = vunpack.c.l.b16 %v7072_v56  ;;  %v4447_v37 = vsel %vm9833_vm7, %v4445_v54, %v4446_v53  ;;  %v11500_v56 = vld [vmem:[%s13276_s0 + $0x58] sm:$0xf] }
 0x2d5   :  { %v2421_v5 = vadd.f32 %v2340_v14, %v1652_v29  ;;  %v7281_v43 = vunpack.c.l.b16 %v7075_v40  ;;  %v5825_v3 = vor.u32 %v5824_v13, %v5821_v4  ;;  %v13355_v29 = vld [vmem:[#allocation11_spill] sm:$0xff]  ;;  %v4648_v60 = vunpack.c.l.b16 %v4447_v37 }
 0x2d6   :  { %13354 = vst [vmem:[#allocation9_spill] sm:$0xff] %v11475_v42  ;;  %v5835_v24 = vor.u32 %v5834_v38, %v11477_v16  ;;  %v1655_v28 = vadd.f32 %v1654_v36, %v13355_v29  ;;  %v5840_v54 = vrot.slane %v5838_v63, 5  ;;  %v7078_v53 = vrot.slane %v11447_v32, 5  ;;  %v9229_v32 = vld [vmem:[%s13276_s0 + $0x4c] sm:$0xf] }
 0x2d7   :  { %v7341_v45 = vpack.c.b16 %v7281_v43, %v7280_v21  ;;  %v5843_v4 = vshrl.u32 %v8851_v47, 16  ;;  %v8519_v43 = vld [vmem:[%s13276_s0 + $0x48] sm:$0xe]  ;;  %v7081_v29 = vrot.slane %v11484_v35, 5 }
 0x2d8   :  { %v4193_v26 = vpop.f32.mrf.mxu0  ;;  %v5836_v36 = vrot.slane %v5835_v24, 4  ;;  %v9001_v24 = vrot.slane %v8969_v58, 9  ;;  %v9130_v35 = vld [vmem:[%s13276_s0 + $0x48] sm:$0xff] }
 0x2d9   :  { %v2899_v2 = vpop.f32.mrf.mxu3  ;;  %8807 = vmatmul.msk.bf16.gmra.mxu2 %vm981_vm4, %v9129_v31  ;;  %v1656_v8 = vpop.f32.mrf.mxu1  ;;  %v4647_v31 = vunpack.c.l.b16 %v4444_v30  ;;  %v5852_v30 = vshll.u32 %v11500_v56, 16 }
 0x2da   :  { %v2980_v61 = vadd.f32 %v2899_v2, %v2421_v5  ;;  %v5826_v5 = vrot.slane %v5825_v3, 4  ;;  %v5846_v2 = vshll.u32 %v8851_v47, 16  ;;  %v4450_v3 = vrot.slane %v9229_v32, 5 }
 0x2db   :  { %v4707_v40 = vpack.c.b16 %v4648_v60, %v4647_v31  ;;  %v7080_v31 = vrot.slane %v7078_v53, 4  ;;  %v5845_v60 = vrot.slane %v5843_v4, 4  ;;  %v5854_v32 = vrot.slane %v5852_v30, 5  ;;  %v11537_v4 = vld [vmem:[%s13276_s0 + $0x5c] sm:$0x1] }
 0x2dc   :  { %v2343_v14 = vpop.f32.mrf.mxu2  ;;  %v11507_v13 = vadd.f32 %v4193_v26, %v2980_v61  ;;  %v5831_v61 = vsel %vm9333_vm3, %v5826_v5, %v11477_v16 }
 0x2dd   :  { %v2422_v18 = vadd.f32 %v2343_v14, %v1655_v28  ;;  %v13357_v28 = vld [vmem:[#allocation13_spill] sm:$0xff]  ;;  %v5841_v14 = vsel %vm9333_vm3, %v5836_v36, %v5840_v54  ;;  %v6500_v54 = vunpack.c.l.b16 %v5831_v61  ;;  %v7082_v30 = vsel %vm9833_vm7, %v7080_v31, %v7081_v29 }
 0x2de   :  { %8936 = vmatmul.msk.bf16.gmra.mxu3 %vm981_vm4, %v6559_v1  ;;  %13356 = vst [vmem:[#allocation11_spill] sm:$0xff] %v11507_v13  ;;  %v5856_v1 = vshrl.u32 %v11500_v56, 16  ;;  %v1657_v63 = vadd.f32 %v1656_v8, %v13357_v28  ;;  %v9230_v8 = vld [vmem:[%s13276_s0 + $0x50] sm:$0x1]  ;;  %v6501_v58 = vunpack.c.l.b16 %v5841_v14  ;;  %v7283_v29 = vunpack.c.l.b16 %v7082_v30 }
 0x2df   :  { %v4453_v5 = vrot.slane %v9230_v8, 5 }
 0x2e0   :  { %v4196_v38 = vpop.f32.mrf.mxu0  ;;  %v5858_v13 = vrot.slane %v5856_v1, 4 }
 0x2e1   :  { %v2902_v21 = vpop.f32.mrf.mxu3  ;;  %v1659_v37 = vpop.f32.mrf.mxu1 }
 0x2e2   :  { %v2981_v26 = vadd.f32 %v2902_v21, %v2422_v18  ;;  %v8551_v18 = vrot.slane %v8519_v43, 9  ;;  %v5848_v21 = vrot.slane %v5846_v2, 5  ;;  %v7079_v2 = vsel %vm9833_vm7, %v9001_v24, %v7078_v53  ;;  %v13359_v53 = vld [vmem:[#allocation15_spill] sm:$0xff] }
 0x2e3   :  { %9033 = vmatmul.msk.bf16.gmra.mxu0 %vm981_vm4, %v7341_v45  ;;  %v4452_v45 = vrot.slane %v4450_v3, 4  ;;  %v5859_v28 = vor.u32 %v5858_v13, %v5854_v32  ;;  %v1660_v24 = vadd.f32 %v1659_v37, %v13359_v53  ;;  %v7282_v8 = vunpack.c.l.b16 %v7079_v2  ;;  %v8854_v13 = vld [vmem:[%s13276_s0 + $0x60] sm:$0xf]  ;;  %v11557_v37 = vld [vmem:[%s13276_s0 + $0x64] sm:$0xf] }
 0x2e4   :  { %v2345_v47 = vpop.f32.mrf.mxu2  ;;  %8583 = vmatmul.msk.bf16.gmra.mxu1 %vm981_vm4, %v4707_v40  ;;  %v11532_v36 = vadd.f32 %v4196_v38, %v2981_v26  ;;  %v5849_v1 = vor.u32 %v5848_v21, %v5845_v60  ;;  %v4451_v26 = vsel %vm9833_vm7, %v8551_v18, %v4450_v3 }
 0x2e5   :  { %v2423_v16 = vadd.f32 %v2345_v47, %v1657_v63  ;;  %v4454_v61 = vsel %vm9833_vm7, %v4452_v45, %v4453_v5  ;;  %v5862_v63 = vshll.u32 %v11537_v4, 16  ;;  %v6560_v47 = vpack.c.b16 %v6501_v58, %v6500_v54  ;;  %v8970_v5 = vld [vmem:[%s13276_s0 + $0x54] sm:$0xe] }
 0x2e6   :  { %13358 = vst [vmem:[#allocation13_spill] sm:$0xff] %v11532_v36  ;;  %v4649_v60 = vunpack.c.l.b16 %v4451_v26  ;;  %v4650_v21 = vunpack.c.l.b16 %v4454_v61  ;;  %v5850_v36 = vrot.slane %v5849_v1, 4  ;;  %v5860_v42 = vrot.slane %v5859_v28, 4 }
 0x2e7   :  { %v5864_v17 = vrot.slane %v5862_v63, 5  ;;  %v7342_v3 = vpack.c.b16 %v7283_v29, %v7282_v8  ;;  %v7085_v54 = vrot.slane %v11500_v56, 5  ;;  %v5867_v61 = vshrl.u32 %v8854_v13, 16 }
 0x2e8   :  { %v4198_v40 = vpop.f32.mrf.mxu0  ;;  %v4708_v45 = vpack.c.b16 %v4650_v21, %v4649_v60  ;;  %v5855_v30 = vsel %vm9333_vm3, %v5850_v36, %v5854_v32  ;;  %v5870_v56 = vshll.u32 %v8854_v13, 16  ;;  %v5876_v63 = vshll.u32 %v11557_v37, 16  ;;  %v13360_v32 = vld [vmem:[#allocation17_spill] sm:$0xff] }
 0x2e9   :  { %v2904_v43 = vpop.f32.mrf.mxu3  ;;  %8808 = vmatmul.msk.bf16.gmra.mxu2 %vm981_vm4, %v9130_v35  ;;  %v1661_v38 = vpop.f32.mrf.mxu1  ;;  %v5865_v1 = vsel %vm9333_vm3, %v5860_v42, %v5864_v17  ;;  %v9002_v42 = vrot.slane %v8970_v5, 9  ;;  %v7088_v36 = vrot.slane %v11537_v4, 5  ;;  %v6502_v53 = vunpack.c.l.b16 %v5855_v30  ;;  %v9131_v60 = vld [vmem:[%s13276_s0 + $0x54] sm:$0xff] }
 0x2ea   :  { %v2982_v14 = vadd.f32 %v2904_v43, %v2423_v16  ;;  %v9231_v43 = vld [vmem:[%s13276_s0 + $0x58] sm:$0xf]  ;;  %v1662_v17 = vadd.f32 %v1661_v38, %v13360_v32  ;;  %v7087_v8 = vrot.slane %v7085_v54, 4  ;;  %v9232_v38 = vld [vmem:[%s13276_s0 + $0x5c] sm:$0x1]  ;;  %v5869_v4 = vrot.slane %v5867_v61, 4 }
 0x2eb   :  { %v4457_v26 = vrot.slane %v9231_v43, 5 }
 0x2ec   :  { %v2348_v31 = vpop.f32.mrf.mxu2  ;;  %v11559_v18 = vadd.f32 %v4198_v40, %v2982_v14  ;;  %v8520_v40 = vld [vmem:[%s13276_s0 + $0x54] sm:$0xe]  ;;  %v5880_v14 = vshrl.u32 %v11557_v37, 16 }
 0x2ed   :  { %v2424_v35 = vadd.f32 %v2348_v31, %v1660_v24  ;;  %v6503_v24 = vunpack.c.l.b16 %v5865_v1  ;;  %v8552_v29 = vrot.slane %v8520_v40, 9  ;;  %v4459_v21 = vrot.slane %v4457_v26, 4 }
 0x2ee   :  { %8937 = vmatmul.msk.bf16.gmra.mxu3 %vm981_vm4, %v6560_v47  ;;  %v5882_v5 = vrot.slane %v5880_v14, 4  ;;  %v7086_v1 = vsel %vm9833_vm7, %v9002_v42, %v7085_v54  ;;  %v7089_v40 = vsel %vm9833_vm7, %v7087_v8, %v7088_v36 }
 0x2ef   :  { %v7284_v36 = vunpack.c.l.b16 %v7086_v1  ;;  %v11621_v1 = vld [vmem:[%s13276_s0 + $0x70] sm:$0xf] }
 0x2f0   :  { %v4201_v16 = vpop.f32.mrf.mxu0 }
 0x2f1   :  { %v2907_v58 = vpop.f32.mrf.mxu3  ;;  %v1664_v2 = vpop.f32.mrf.mxu1 }
 0x2f2   :  { %v2983_v28 = vadd.f32 %v2907_v58, %v2424_v35  ;;  %v4460_v35 = vrot.slane %v9232_v38, 5  ;;  %v11594_v58 = vld [vmem:[%s13276_s0 + $0x68] sm:$0x1]  ;;  %v8971_v38 = vld [vmem:[%s13276_s0 + $0x60] sm:$0xe] }
 0x2f3   :  { %9034 = vmatmul.msk.bf16.gmra.mxu0 %vm981_vm4, %v7342_v3  ;;  %v5872_v3 = vrot.slane %v5870_v56, 5  ;;  %v5886_v54 = vshll.u32 %v11594_v58, 16 }
 0x2f4   :  { %v2350_v47 = vpop.f32.mrf.mxu2  ;;  %8584 = vmatmul.msk.bf16.gmra.mxu1 %vm981_vm4, %v4708_v45  ;;  %v11587_v13 = vadd.f32 %v4201_v16, %v2983_v28  ;;  %v11589_v45 = vrot.slane %v5876_v63, 5  ;;  %v6561_v16 = vpack.c.b16 %v6503_v24, %v6502_v53  ;;  %v4458_v28 = vsel %vm9833_vm7, %v8552_v29, %v4457_v26  ;;  %v8857_v26 = vld [vmem:[%s13276_s0 + $0x6c] sm:$0xf] }
 0x2f5   :  { %v2425_v31 = vadd.f32 %v2350_v47, %v1662_v17  ;;  %v4461_v56 = vsel %vm9833_vm7, %v4459_v21, %v4460_v35  ;;  %v5873_v14 = vor.u32 %v5872_v3, %v5869_v4  ;;  %v13362_v17 = vld [vmem:[#allocation19_spill] sm:$0xff]  ;;  %v7285_v47 = vunpack.c.l.b16 %v7089_v40 }
 0x2f6   :  { %13361 = vst [vmem:[#allocation15_spill] sm:$0xff] %v11587_v13  ;;  %v5883_v32 = vor.u32 %v5882_v5, %v11589_v45  ;;  %v1665_v42 = vadd.f32 %v1664_v2, %v13362_v17  ;;  %v4652_v53 = vunpack.c.l.b16 %v4461_v56  ;;  %v5888_v21 = vrot.slane %v5886_v54, 5 }
 0x2f7   :  { %v5874_v29 = vrot.slane %v5873_v14, 4  ;;  %v7343_v2 = vpack.c.b16 %v7285_v47, %v7284_v36  ;;  %v7092_v35 = vrot.slane %v11557_v37, 5  ;;  %v5891_v40 = vshrl.u32 %v8857_v26, 16  ;;  %v8521_v14 = vld [vmem:[%s13276_s0 + $0x60] sm:$0xe] }
 0x2f8   :  { %v4203_v30 = vpop.f32.mrf.mxu0  ;;  %v9003_v56 = vrot.slane %v8971_v38, 9  ;;  %v9233_v37 = vld [vmem:[%s13276_s0 + $0x64] sm:$0xf]  ;;  %v7095_v17 = vrot.slane %v11594_v58, 5 }
 0x2f9   :  { %v2909_v43 = vpop.f32.mrf.mxu3  ;;  %8809 = vmatmul.msk.bf16.gmra.mxu2 %vm981_vm4, %v9131_v60  ;;  %v1666_v61 = vpop.f32.mrf.mxu1  ;;  %v4651_v60 = vunpack.c.l.b16 %v4458_v28  ;;  %v7094_v47 = vrot.slane %v7092_v35, 4  ;;  %v9132_v58 = vld [vmem:[%s13276_s0 + $0x60] sm:$0xff] }
 0x2fa   :  { %v2984_v63 = vadd.f32 %v2909_v43, %v2425_v31  ;;  %v5884_v31 = vrot.slane %v5883_v32, 4  ;;  %v5894_v43 = vshll.u32 %v8857_v26, 16  ;;  %v5879_v32 = vsel %vm9333_vm3, %v5874_v29, %v11589_v45 }
 0x2fb   :  { %v4709_v5 = vpack.c.b16 %v4652_v53, %v4651_v60  ;;  %v5904_v60 = vshrl.u32 %v11621_v1, 16  ;;  %v5893_v26 = vrot.slane %v5891_v40, 4  ;;  %v7096_v40 = vsel %vm9833_vm7, %v7094_v47, %v7095_v17  ;;  %v13366_v47 = vld [vmem:[#allocation23_spill] sm:$0xff] }
 0x2fc   :  { %v2353_v8 = vpop.f32.mrf.mxu2  ;;  %v11616_v4 = vadd.f32 %v4203_v30, %v2984_v63  ;;  %v4464_v30 = vrot.slane %v9233_v37, 5  ;;  %v5889_v54 = vsel %vm9333_vm3, %v5884_v31, %v5888_v21  ;;  %v5896_v45 = vrot.slane %v5894_v43, 5 }
 0x2fd   :  { %v2426_v24 = vadd.f32 %v2353_v8, %v1665_v42  ;;  %v13364_v42 = vld [vmem:[#allocation21_spill] sm:$0xff]  ;;  %v5900_v8 = vshll.u32 %v11621_v1, 16  ;;  %v7287_v17 = vunpack.c.l.b16 %v7096_v40 }
 0x2fe   :  { %8938 = vmatmul.msk.bf16.gmra.mxu3 %vm981_vm4, %v6561_v16  ;;  %13363 = vst [vmem:[#allocation17_spill] sm:$0xff] %v11616_v4  ;;  %v1667_v36 = vadd.f32 %v1666_v61, %v13364_v42  ;;  %v4466_v31 = vrot.slane %v4464_v30, 4  ;;  %v9234_v61 = vld [vmem:[%s13276_s0 + $0x68] sm:$0x1]  ;;  %v11655_v42 = vld [vmem:[%s13276_s0 + $0x74] sm:$0x1] }
 0x2ff   :  { %v4467_v21 = vrot.slane %v9234_v61, 5  ;;  %v5902_v43 = vrot.slane %v5900_v8, 5  ;;  %v5910_v61 = vshll.u32 %v11655_v42, 16 }
 0x300   :  { %v4206_v3 = vpop.f32.mrf.mxu0 }
 0x301   :  { %v2912_v16 = vpop.f32.mrf.mxu3  ;;  %v1669_v28 = vpop.f32.mrf.mxu1 }
 0x302   :  { %v2985_v63 = vadd.f32 %v2912_v16, %v2426_v24  ;;  %v8553_v24 = vrot.slane %v8521_v14, 9  ;;  %v6505_v16 = vunpack.c.l.b16 %v5889_v54  ;;  %v5906_v14 = vrot.slane %v5904_v60, 4 }
 0x303   :  { %9035 = vmatmul.msk.bf16.gmra.mxu0 %vm981_vm4, %v7343_v2  ;;  %v6504_v2 = vunpack.c.l.b16 %v5879_v32  ;;  %v1670_v8 = vadd.f32 %v1669_v28, %v13366_v47  ;;  %v7099_v28 = vrot.slane %v11621_v1, 5  ;;  %v7102_v1 = vrot.slane %v11655_v42, 5 }
 0x304   :  { %v2355_v53 = vpop.f32.mrf.mxu2  ;;  %8585 = vmatmul.msk.bf16.gmra.mxu1 %vm981_vm4, %v4709_v5  ;;  %v11646_v38 = vadd.f32 %v4206_v3, %v2985_v63  ;;  %v7093_v5 = vsel %vm9833_vm7, %v9003_v56, %v7092_v35  ;;  %v4465_v63 = vsel %vm9833_vm7, %v8553_v24, %v4464_v30  ;;  %v4468_v35 = vsel %vm9833_vm7, %v4466_v31, %v4467_v21  ;;  %v8972_v30 = vld [vmem:[%s13276_s0 + $0x6c] sm:$0xe] }
 0x305   :  { %v2427_v29 = vadd.f32 %v2355_v53, %v1667_v36  ;;  %v5897_v36 = vor.u32 %v5896_v45, %v5893_v26  ;;  %v6562_v32 = vpack.c.b16 %v6505_v16, %v6504_v2  ;;  %v7286_v54 = vunpack.c.l.b16 %v7093_v5  ;;  %v11675_v5 = vld [vmem:[%s13276_s0 + $0x7c] sm:$0xf] }
 0x306   :  { %13365 = vst [vmem:[#allocation19_spill] sm:$0xff] %v11646_v38  ;;  %v5907_v60 = vor.u32 %v5906_v14, %v5902_v43  ;;  %v4653_v45 = vunpack.c.l.b16 %v4465_v63  ;;  %v4654_v38 = vunpack.c.l.b16 %v4468_v35  ;;  %v5912_v2 = vrot.slane %v5910_v61, 5 }
 0x307   :  { %v7344_v31 = vpack.c.b16 %v7287_v17, %v7286_v54  ;;  %v9004_v16 = vrot.slane %v8972_v30, 9  ;;  %v8522_v17 = vld [vmem:[%s13276_s0 + $0x6c] sm:$0xe] }
 0x308   :  { %v4208_v37 = vpop.f32.mrf.mxu0  ;;  %v5908_v21 = vrot.slane %v5907_v60, 4  ;;  %v13368_v60 = vld [vmem:[#allocation25_spill] sm:$0xff]  ;;  %v8554_v30 = vrot.slane %v8522_v17, 9 }
 0x309   :  { %v2914_v53 = vpop.f32.mrf.mxu3  ;;  %8810 = vmatmul.msk.bf16.gmra.mxu2 %vm981_vm4, %v9132_v58  ;;  %v1671_v3 = vpop.f32.mrf.mxu1  ;;  %v5898_v58 = vrot.slane %v5897_v36, 4  ;;  %v4710_v36 = vpack.c.b16 %v4654_v38, %v4653_v45  ;;  %v7101_v38 = vrot.slane %v7099_v28, 4 }
 0x30a   :  { %v2986_v56 = vadd.f32 %v2914_v53, %v2427_v29  ;;  %v8860_v29 = vld [vmem:[%s13276_s0 + $0x78] sm:$0xf]  ;;  %v1672_v61 = vadd.f32 %v1671_v3, %v13368_v60  ;;  %v5913_v42 = vsel %vm9333_vm3, %v5908_v21, %v5912_v2  ;;  %v9236_v3 = vld [vmem:[%s13276_s0 + $0x74] sm:$0x1] }
 0x30b   :  { %v5903_v53 = vsel %vm9333_vm3, %v5898_v58, %v5902_v43  ;;  %v5915_v63 = vshrl.u32 %v8860_v29, 16  ;;  %v5918_v35 = vshll.u32 %v8860_v29, 16  ;;  %v5928_v43 = vshrl.u32 %v11675_v5, 16 }
 0x30c   :  { %v2358_v26 = vpop.f32.mrf.mxu2  ;;  %v11677_v40 = vadd.f32 %v4208_v37, %v2986_v56  ;;  %v9235_v37 = vld [vmem:[%s13276_s0 + $0x70] sm:$0xf]  ;;  %v7100_v58 = vsel %vm9833_vm7, %v9004_v16, %v7099_v28  ;;  %v4474_v21 = vrot.slane %v9236_v3, 5  ;;  %v7103_v28 = vsel %vm9833_vm7, %v7101_v38, %v7102_v1  ;;  %v13370_v3 = vld [vmem:[#allocation27_spill] sm:$0xff] }
 0x30d   :  { %v2428_v24 = vadd.f32 %v2358_v26, %v1670_v8  ;;  %v4471_v56 = vrot.slane %v9235_v37, 5  ;;  %v5924_v8 = vshll.u32 %v11675_v5, 16  ;;  %v6506_v26 = vunpack.c.l.b16 %v5903_v53 }
 0x30e   :  { %8939 = vmatmul.msk.bf16.gmra.mxu3 %vm981_vm4, %v6562_v32  ;;  %13367 = vst [vmem:[#allocation21_spill] sm:$0xff] %v11677_v40  ;;  %v5920_v29 = vrot.slane %v5918_v35, 5  ;;  %v5930_v53 = vrot.slane %v5928_v43, 4  ;;  %v7288_v17 = vunpack.c.l.b16 %v7100_v58 }
 0x30f   :  { %v4473_v37 = vrot.slane %v4471_v56, 4  ;;  %v11707_v16 = vrot.slane %v5924_v8, 5 }
 0x310   :  { %v4211_v14 = vpop.f32.mrf.mxu0 }
 0x311   :  { %v2917_v32 = vpop.f32.mrf.mxu3  ;;  %v1674_v54 = vpop.f32.mrf.mxu1  ;;  %v4475_v1 = vsel %vm9833_vm7, %v4473_v37, %v4474_v21  ;;  %v7106_v37 = vrot.slane %v11675_v5, 5  ;;  %v8523_v5 = vld [vmem:[%s13276_s0 + $0x78] sm:$0xe] }
 0x312   :  { %v2987_v47 = vadd.f32 %v2917_v32, %v2428_v24  ;;  %v5917_v24 = vrot.slane %v5915_v63, 4  ;;  %v11712_v63 = vld [vmem:[%s13276_s0 + $0x80] sm:$0x1]  ;;  %v1675_v58 = vadd.f32 %v1674_v54, %v13370_v3  ;;  %v4656_v40 = vunpack.c.l.b16 %v4475_v1  ;;  %v8973_v54 = vld [vmem:[%s13276_s0 + $0x78] sm:$0xe] }
 0x313   :  { %9036 = vmatmul.msk.bf16.gmra.mxu0 %vm981_vm4, %v7344_v31  ;;  %v9133_v31 = vld [vmem:[%s13276_s0 + $0x6c] sm:$0xff] }
 0x314   :  { %v2360_v45 = vpop.f32.mrf.mxu2  ;;  %8586 = vmatmul.msk.bf16.gmra.mxu1 %vm981_vm4, %v4710_v36  ;;  %v11703_v2 = vadd.f32 %v4211_v14, %v2987_v47  ;;  %v6507_v36 = vunpack.c.l.b16 %v5913_v42  ;;  %v4472_v47 = vsel %vm9833_vm7, %v8554_v30, %v4471_v56  ;;  %v5921_v38 = vor.u32 %v5920_v29, %v5917_v24  ;;  %v11728_v56 = vld [vmem:[%s13276_s0 + $0x88] sm:$0xf] }
 0x315   :  { %v2429_v32 = vadd.f32 %v2360_v45, %v1672_v61  ;;  %v7289_v61 = vunpack.c.l.b16 %v7103_v28  ;;  %v5931_v42 = vor.u32 %v5930_v53, %v11707_v16  ;;  %v5934_v45 = vshll.u32 %v11712_v63, 16 }
 0x316   :  { %13369 = vst [vmem:[#allocation23_spill] sm:$0xff] %v11703_v2  ;;  %v6563_v43 = vpack.c.b16 %v6507_v36, %v6506_v26  ;;  %v4655_v2 = vunpack.c.l.b16 %v4472_v47  ;;  %v5922_v24 = vrot.slane %v5921_v38, 4  ;;  %v5948_v53 = vshll.u32 %v11728_v56, 16 }
 0x317   :  { %v7345_v30 = vpack.c.b16 %v7289_v61, %v7288_v17  ;;  %v5932_v29 = vrot.slane %v5931_v42, 4  ;;  %v9005_v42 = vrot.slane %v8973_v54, 9 }
 0x318   :  { %v4213_v35 = vpop.f32.mrf.mxu0  ;;  %v4711_v61 = vpack.c.b16 %v4656_v40, %v4655_v2  ;;  %v7108_v2 = vrot.slane %v7106_v37, 4 }
 0x319   :  { %v2919_v60 = vpop.f32.mrf.mxu3  ;;  %8811 = vmatmul.msk.bf16.gmra.mxu2 %vm981_vm4, %v9133_v31  ;;  %v1676_v14 = vpop.f32.mrf.mxu1  ;;  %v8863_v31 = vld [vmem:[%s13276_s0 + $0x84] sm:$0xf] }
 0x31a   :  { %v2988_v8 = vadd.f32 %v2919_v60, %v2429_v32  ;;  %v5936_v32 = vrot.slane %v5934_v45, 5  ;;  %v5939_v21 = vshrl.u32 %v8863_v31, 16  ;;  %v5942_v36 = vshll.u32 %v8863_v31, 16 }
 0x31b   :  { %v5952_v60 = vshrl.u32 %v11728_v56, 16  ;;  %v7109_v45 = vrot.slane %v11712_v63, 5 }
 0x31c   :  { %v2363_v28 = vpop.f32.mrf.mxu2  ;;  %v11737_v47 = vadd.f32 %v4213_v35, %v2988_v8  ;;  %v9237_v35 = vld [vmem:[%s13276_s0 + $0x7c] sm:$0xf]  ;;  %v5937_v40 = vsel %vm9333_vm3, %v5932_v29, %v5936_v32  ;;  %v5944_v63 = vrot.slane %v5942_v36, 5 }
 0x31d   :  { %v2430_v26 = vadd.f32 %v2363_v28, %v1675_v58  ;;  %v4478_v8 = vrot.slane %v9237_v35, 5  ;;  %v5941_v58 = vrot.slane %v5939_v21, 4  ;;  %v11753_v28 = vrot.slane %v5948_v53, 5 }
 0x31e   :  { %8940 = vmatmul.msk.bf16.gmra.mxu3 %vm981_vm4, %v6563_v43  ;;  %13371 = vst [vmem:[#allocation25_spill] sm:$0xff] %v11737_v47  ;;  %v5927_v43 = vsel %vm9333_vm3, %v5922_v24, %v11707_v16  ;;  %v13372_v16 = vld [vmem:[#allocation29_spill] sm:$0xff]  ;;  %v5954_v24 = vrot.slane %v5952_v60, 4  ;;  %v8555_v47 = vrot.slane %v8523_v5, 9  ;;  %v6509_v60 = vunpack.c.l.b16 %v5937_v40 }
 0x31f   :  { %v1677_v31 = vadd.f32 %v1676_v14, %v13372_v16  ;;  %v4480_v32 = vrot.slane %v4478_v8, 4  ;;  %v9238_v14 = vld [vmem:[%s13276_s0 + $0x80] sm:$0x1]  ;;  %v6508_v53 = vunpack.c.l.b16 %v5927_v43  ;;  %v5945_v5 = vor.u32 %v5944_v63, %v5941_v58 }
 0x320   :  { %v4216_v17 = vpop.f32.mrf.mxu0  ;;  %v4481_v21 = vrot.slane %v9238_v14, 5  ;;  %v5955_v35 = vor.u32 %v5954_v24, %v11753_v28  ;;  %v13374_v63 = vld [vmem:[#allocation30_spill] sm:$0xff] }
 0x321   :  { %v2922_v1 = vpop.f32.mrf.mxu3  ;;  %v4843_v38 = vpop.f32.mrf.mxu1  ;;  %v5946_v40 = vrot.slane %v5945_v5, 4 }
 0x322   :  { %v2989_v3 = vadd.f32 %v2922_v1, %v2430_v26  ;;  %v11759_v26 = vld [vmem:[%s13276_s0 + $0x8c] sm:$0x1]  ;;  %v7110_v1 = vsel %vm9833_vm7, %v7108_v2, %v7109_v45  ;;  %v4482_v43 = vsel %vm9833_vm7, %v4480_v32, %v4481_v21  ;;  %v5956_v2 = vrot.slane %v5955_v35, 4 }
 0x323   :  { %9037 = vmatmul.msk.bf16.gmra.mxu0 %vm981_vm4, %v7345_v30  ;;  %v9134_v30 = vld [vmem:[%s13276_s0 + $0x78] sm:$0xff]  ;;  %v5958_v16 = vshll.u32 %v11759_v26, 16  ;;  %v7291_v45 = vunpack.c.l.b16 %v7110_v1  ;;  %v5003_v24 = vadd.f32 %v4843_v38, %v13374_v63  ;;  %v4658_v13 = vunpack.c.l.b16 %v4482_v43 }
 0x324   :  { %v2365_v54 = vpop.f32.mrf.mxu2  ;;  %8587 = vmatmul.msk.bf16.gmra.mxu1 %vm981_vm4, %v4711_v61  ;;  %v11767_v36 = vadd.f32 %v4216_v17, %v2989_v3  ;;  %v7107_v61 = vsel %vm9833_vm7, %v9005_v42, %v7106_v37  ;;  %v4479_v17 = vsel %vm9833_vm7, %v8555_v47, %v4478_v8  ;;  %v6564_v42 = vpack.c.b16 %v6509_v60, %v6508_v53  ;;  %v8866_v8 = vld [vmem:[%s13276_s0 + $0x90] sm:$0xf]  ;;  %v11796_v60 = vld [vmem:[%s13276_s0 + $0x94] sm:$0xf] }
 0x325   :  { %v2431_v29 = vadd.f32 %v2365_v54, %v1677_v31  ;;  %v7290_v3 = vunpack.c.l.b16 %v7107_v61  ;;  %v5960_v58 = vrot.slane %v5958_v16, 5  ;;  %v4657_v4 = vunpack.c.l.b16 %v4479_v17 }
 0x326   :  { %13373 = vst [vmem:[#allocation27_spill] sm:$0xff] %v11767_v36  ;;  %v7113_v47 = vrot.slane %v11728_v56, 5  ;;  %v5951_v38 = vsel %vm9333_vm3, %v5946_v40, %v11753_v28  ;;  %v7116_v53 = vrot.slane %v11759_v26, 5  ;;  %v5963_v35 = vshrl.u32 %v8866_v8, 16  ;;  %v9239_v28 = vld [vmem:[%s13276_s0 + $0x88] sm:$0xf] }
 0x327   :  { %v4712_v1 = vpack.c.b16 %v4658_v13, %v4657_v4  ;;  %v5961_v5 = vsel %vm9333_vm3, %v5956_v2, %v5960_v58  ;;  %v4485_v26 = vrot.slane %v9239_v28, 5  ;;  %v5966_v17 = vshll.u32 %v8866_v8, 16  ;;  %v8524_v13 = vld [vmem:[%s13276_s0 + $0x84] sm:$0xe] }
 0x328   :  { %v4218_v31 = vpop.f32.mrf.mxu0  ;;  %v5972_v4 = vshll.u32 %v11796_v60, 16  ;;  %v8556_v8 = vrot.slane %v8524_v13, 9 }
 0x329   :  { %v2924_v54 = vpop.f32.mrf.mxu3  ;;  %8812 = vmatmul.msk.bf16.gmra.mxu2 %vm981_vm4, %v9134_v30  ;;  %v4845_v14 = vpop.f32.mrf.mxu1  ;;  %v8974_v30 = vld [vmem:[%s13276_s0 + $0x84] sm:$0xe] }
 0x32a   :  { %v2990_v37 = vadd.f32 %v2924_v54, %v2431_v29  ;;  %v7346_v29 = vpack.c.b16 %v7291_v45, %v7290_v3  ;;  %v9006_v21 = vrot.slane %v8974_v30, 9  ;;  %v6511_v3 = vunpack.c.l.b16 %v5961_v5  ;;  %v9135_v30 = vld [vmem:[%s13276_s0 + $0x84] sm:$0xff] }
 0x32b   :  { %v5004_v2 = vadd.f32 %v4845_v14, %v10318_v52 }
 0x32c   :  { %v5402_v36 = vpop.f32.mrf.mxu2  ;;  %v11798_v56 = vadd.f32 %v4218_v31, %v2990_v37  ;;  %v11808_v31 = vld [vmem:[%s13277_s2] ss:$0 sm:$0xff]  ;;  %v5976_v37 = vshrl.u32 %v11796_v60, 16  ;;  %v7114_v45 = vsel %vm9833_vm7, %v9006_v21, %v7113_v47  ;;  %v11829_v21 = vrot.slane %v5972_v4, 5 }
 0x32d   :  { %v5562_v32 = vadd.f32 %v5402_v36, %v5003_v24  ;;  %v7115_v36 = vrot.slane %v7113_v47, 4  ;;  %v5965_v24 = vrot.slane %v5963_v35, 4  ;;  %v9240_v47 = vld [vmem:[%s13276_s0 + $0x8c] sm:$0x1] }
 0x32e   :  { %8941 = vmatmul.msk.bf16.gmra.mxu3 %vm981_vm4, %v6564_v42  ;;  %v6510_v42 = vunpack.c.l.b16 %v5951_v38  ;;  %v5968_v38 = vrot.slane %v5966_v17, 5  ;;  %v4486_v17 = vsel %vm9833_vm7, %v8556_v8, %v4485_v26 }
 0x32f   :  { %v7117_v63 = vsel %vm9833_vm7, %v7115_v36, %v7116_v53  ;;  %v8868_v53 = vld [vmem:[%s13276_s0 + $0x98] sm:$0x1]  ;;  %v7292_v36 = vunpack.c.l.b16 %v7114_v45 }
 0x330   :  { %v7478_v61 = vpop.f32.mrf.mxu0  ;;  %v5969_v13 = vor.u32 %v5968_v38, %v5965_v24  ;;  %v8975_v24 = vld [vmem:[%s13276_s0 + $0x90] sm:$0xe] }
 0x331   :  { %v6696_v16 = vpop.f32.mrf.mxu3  ;;  %v4848_v54 = vpop.f32.mrf.mxu1  ;;  %v9007_v38 = vrot.slane %v8975_v24, 9 }
 0x332   :  { %v6856_v43 = vadd.f32 %v6696_v16, %v5562_v32  ;;  %v4488_v32 = vrot.slane %v9240_v47, 5  ;;  %v7293_v16 = vunpack.c.l.b16 %v7117_v63  ;;  %v5005_v63 = vadd.f32 %v4848_v54, %v10337_v15 }
 0x333   :  { %9038 = vmatmul.msk.bf16.gmra.mxu0 %vm981_vm4, %v7346_v29  ;;  %v4487_v29 = vrot.slane %v4485_v26, 4  ;;  %v4659_v26 = vunpack.c.l.b16 %v4486_v17 }
 0x334   :  { %v7638_v40 = vadd.f32 %v7478_v61, %v6856_v43  ;;  %v5404_v58 = vpop.f32.mrf.mxu2  ;;  %8588 = vmatmul.msk.bf16.gmra.mxu1 %vm981_vm4, %v4712_v1  ;;  %v5978_v61 = vrot.slane %v5976_v37, 4  ;;  %v6565_v37 = vpack.c.b16 %v6511_v3, %v6510_v42  ;;  %v7347_v42 = vpack.c.b16 %v7293_v16, %v7292_v36 }
 0x335   :  { %v5563_v14 = vadd.f32 %v5404_v58, %v5004_v2  ;;  %v4489_v43 = vsel %vm9833_vm7, %v4487_v29, %v4488_v32  ;;  %v7120_v2 = vrot.slane %v11796_v60, 5  ;;  %v8869_v29 = vld [vmem:[%s13276_s0 + $0x9c] sm:$0xf]  ;;  %v5970_v3 = vrot.slane %v5969_v13, 4  ;;  %v11854_v60 = vld [vmem:[%s13276_s0 + $0xa0] sm:$0xf] }
 0x336   :  { %v7706_v52 = vadd.f32 %v11808_v31, %v7638_v40  ;;  %v5979_v45 = vor.u32 %v5978_v61, %v11829_v21  ;;  %v5982_v40 = vshll.u32 %v8868_v53, 16  ;;  %v4660_v8 = vunpack.c.l.b16 %v4489_v43  ;;  %v9241_v13 = vld [vmem:[%s13276_s0 + $0x94] sm:$0xf] }
 0x337   :  { %v5987_v61 = vshrl.u32 %v8869_v29, 16  ;;  %v5996_v16 = vshll.u32 %v11854_v60, 16 }
 0x338   :  { %v7770_v1 = vmax.f32 %v7706_v52, 0.0  ;;  %v7480_v5 = vpop.f32.mrf.mxu0  ;;  %v5980_v47 = vrot.slane %v5979_v45, 4  ;;  %v5984_v32 = vrot.slane %v5982_v40, 5  ;;  %v7122_v52 = vrot.slane %v7120_v2, 4  ;;  %v8525_v40 = vld [vmem:[%s13276_s0 + $0x90] sm:$0xe] }
 0x339   :  { %v6698_v35 = vpop.f32.mrf.mxu3  ;;  %8813 = vmatmul.msk.bf16.gmra.mxu2 %vm981_vm4, %v9135_v30  ;;  %v4850_v28 = vpop.f32.mrf.mxu1  ;;  %v4713_v36 = vpack.c.b16 %v4660_v8, %v4659_v26  ;;  %v5975_v45 = vsel %vm9333_vm3, %v5970_v3, %v11829_v21  ;;  %v5989_v26 = vrot.slane %v5987_v61, 4  ;;  %v11881_v3 = vrot.slane %v5996_v16, 5 }
 0x33a   :  { %7834 = vst [vmem:[%s13278_s3] sm:$0xff] %v7770_v1  ;;  %v6857_v4 = vadd.f32 %v6698_v35, %v5563_v14  ;;  %v7123_v14 = vrot.slane %v8868_v53, 5  ;;  %v5990_v35 = vshll.u32 %v8869_v29, 16  ;;  %v5006_v24 = vadd.f32 %v4850_v28, %v10360_v10 }
 0x33c   :  { %v7639_v58 = vadd.f32 %v7480_v5, %v6857_v4  ;;  %v5407_v30 = vpop.f32.mrf.mxu2  ;;  %v4492_v4 = vrot.slane %v9241_v13, 5  ;;  %v5992_v29 = vrot.slane %v5990_v35, 5 }
 0x33d   :  { %v5564_v54 = vadd.f32 %v5407_v30, %v5005_v63  ;;  %v7121_v63 = vsel %vm9833_vm7, %v9007_v38, %v7120_v2  ;;  %v7124_v30 = vsel %vm9833_vm7, %v7122_v52, %v7123_v14  ;;  %v9242_v2 = vld [vmem:[%s13276_s0 + $0x98] sm:$0x1]  ;;  %v6512_v38 = vunpack.c.l.b16 %v5975_v45  ;;  %v11893_v14 = vld [vmem:[%s13276_s0 + $0xa4] sm:$0x1] }
 0x33e   :  { %v7707_v15 = vadd.f32 %v11808_v31, %v7639_v58  ;;  %8942 = vmatmul.msk.bf16.gmra.mxu3 %vm981_vm4, %v6565_v37  ;;  %v6000_v37 = vshrl.u32 %v11854_v60, 16  ;;  %v5985_v58 = vsel %vm9333_vm3, %v5980_v47, %v5984_v32  ;;  %v4495_v47 = vrot.slane %v9242_v2, 5  ;;  %v8976_v2 = vld [vmem:[%s13276_s0 + $0x9c] sm:$0xe] }
 0x33f   :  { %v6513_v52 = vunpack.c.l.b16 %v5985_v58  ;;  %v6006_v58 = vshll.u32 %v11893_v14, 16 }
 0x340   :  { %v7771_v1 = vmax.f32 %v7707_v15, 0.0  ;;  %v7483_v5 = vpop.f32.mrf.mxu0  ;;  %v8557_v15 = vrot.slane %v8525_v40, 9  ;;  %v6002_v32 = vrot.slane %v6000_v37, 4  ;;  %v5993_v37 = vor.u32 %v5992_v29, %v5989_v26  ;;  %v8872_v26 = vld [vmem:[%s13276_s0 + $0xa8] sm:$0xf] }
 0x341   :  { %v6701_v17 = vpop.f32.mrf.mxu3  ;;  %v4853_v43 = vpop.f32.mrf.mxu1  ;;  %v6566_v40 = vpack.c.b16 %v6513_v52, %v6512_v38 }
 0x342   :  { %7835 = vst [vmem:[%s13278_s3 + $0x8] sm:$0xff] %v7771_v1  ;;  %v6858_v53 = vadd.f32 %v6701_v17, %v5564_v54  ;;  %v4494_v54 = vrot.slane %v4492_v4, 4  ;;  %v4493_v17 = vsel %vm9833_vm7, %v8557_v15, %v4492_v4 }
 0x343   :  { %9039 = vmatmul.msk.bf16.gmra.mxu0 %vm981_vm4, %v7347_v42  ;;  %v9136_v42 = vld [vmem:[%s13276_s0 + $0x90] sm:$0xff] }
 0x344   :  { %v7640_v8 = vadd.f32 %v7483_v5, %v6858_v53  ;;  %v5409_v21 = vpop.f32.mrf.mxu2  ;;  %8589 = vmatmul.msk.bf16.gmra.mxu1 %vm981_vm4, %v4713_v36  ;;  %v7294_v5 = vunpack.c.l.b16 %v7121_v63  ;;  %v7295_v36 = vunpack.c.l.b16 %v7124_v30  ;;  %v4496_v13 = vsel %vm9833_vm7, %v4494_v54, %v4495_v47 }
 0x345   :  { %v5565_v28 = vadd.f32 %v5409_v21, %v5006_v24  ;;  %v6003_v53 = vor.u32 %v6002_v32, %v11881_v3  ;;  %v5007_v30 = vadd.f32 %v4853_v43, %v10379_v34  ;;  %v4661_v24 = vunpack.c.l.b16 %v4493_v17  ;;  %v11912_v21 = vld [vmem:[%s13276_s0 + $0xac] sm:$0xf] }
 0x346   :  { %v7708_v10 = vadd.f32 %v11808_v31, %v7640_v8  ;;  %v4662_v4 = vunpack.c.l.b16 %v4496_v13  ;;  %v7348_v29 = vpack.c.b16 %v7295_v36, %v7294_v5  ;;  %v6008_v43 = vrot.slane %v6006_v58, 5 }
 0x347   :  { %v6004_v15 = vrot.slane %v6003_v53, 4  ;;  %v7127_v47 = vrot.slane %v11854_v60, 5  ;;  %v6011_v32 = vshrl.u32 %v8872_v26, 16  ;;  %v6024_v38 = vshrl.u32 %v11912_v21, 16  ;;  %v9243_v60 = vld [vmem:[%s13276_s0 + $0xa0] sm:$0xf] }
 0x348   :  { %v7772_v61 = vmax.f32 %v7708_v10, 0.0  ;;  %v7485_v1 = vpop.f32.mrf.mxu0  ;;  %v6014_v10 = vshll.u32 %v8872_v26, 16  ;;  %v9008_v17 = vrot.slane %v8976_v2, 9  ;;  %v4499_v13 = vrot.slane %v9243_v60, 5 }
 0x349   :  { %v6703_v35 = vpop.f32.mrf.mxu3  ;;  %8814 = vmatmul.msk.bf16.gmra.mxu2 %vm981_vm4, %v9136_v42  ;;  %v4855_v16 = vpop.f32.mrf.mxu1  ;;  %v5994_v42 = vrot.slane %v5993_v37, 4  ;;  %v6009_v53 = vsel %vm9333_vm3, %v6004_v15, %v6008_v43  ;;  %v6013_v58 = vrot.slane %v6011_v32, 4 }
 0x34a   :  { %7836 = vst [vmem:[%s13278_s3 + $0x10] sm:$0xff] %v7772_v61  ;;  %v6859_v45 = vadd.f32 %v6703_v35, %v5565_v28  ;;  %v6020_v28 = vshll.u32 %v11912_v21, 16  ;;  %v6515_v2 = vunpack.c.l.b16 %v6009_v53  ;;  %v7128_v32 = vsel %vm9833_vm7, %v9008_v17, %v7127_v47 }
 0x34b   :  { %v5999_v35 = vsel %vm9333_vm3, %v5994_v42, %v11881_v3  ;;  %v8526_v3 = vld [vmem:[%s13276_s0 + $0x9c] sm:$0xe]  ;;  %v7296_v53 = vunpack.c.l.b16 %v7128_v32 }
 0x34c   :  { %v7641_v63 = vadd.f32 %v7485_v1, %v6859_v45  ;;  %v5412_v8 = vpop.f32.mrf.mxu2  ;;  %v4714_v1 = vpack.c.b16 %v4662_v4, %v4661_v24  ;;  %v7129_v45 = vrot.slane %v7127_v47, 4  ;;  %v5008_v4 = vadd.f32 %v4855_v16, %v10402_v44 }
 0x34d   :  { %v5566_v34 = vadd.f32 %v5412_v8, %v5007_v30  ;;  %v11938_v30 = vrot.slane %v6020_v28, 5  ;;  %v6026_v8 = vrot.slane %v6024_v38, 4  ;;  %v6514_v42 = vunpack.c.l.b16 %v5999_v35 }
 0x34e   :  { %v7709_v54 = vadd.f32 %v11808_v31, %v7641_v63  ;;  %8943 = vmatmul.msk.bf16.gmra.mxu3 %vm981_vm4, %v6566_v40  ;;  %v7130_v40 = vrot.slane %v11893_v14, 5  ;;  %v6016_v63 = vrot.slane %v6014_v10, 5  ;;  %v11945_v14 = vld [vmem:[%s13276_s0 + $0xb0] sm:$0x1]  ;;  %v8558_v15 = vrot.slane %v8526_v3, 9 }
 0x34f   :  { %v6027_v38 = vor.u32 %v6026_v8, %v11938_v30 }
 0x350   :  { %v7773_v52 = vmax.f32 %v7709_v54, 0.0  ;;  %v7488_v61 = vpop.f32.mrf.mxu0  ;;  %v4501_v54 = vrot.slane %v4499_v13, 4  ;;  %v7131_v10 = vsel %vm9833_vm7, %v7129_v45, %v7130_v40  ;;  %v6017_v28 = vor.u32 %v6016_v63, %v6013_v58 }
 0x351   :  { %v6706_v5 = vpop.f32.mrf.mxu3  ;;  %v4858_v36 = vpop.f32.mrf.mxu1  ;;  %v4500_v60 = vsel %vm9833_vm7, %v8558_v15, %v4499_v13  ;;  %v7297_v45 = vunpack.c.l.b16 %v7131_v10  ;;  %v6028_v3 = vrot.slane %v6027_v38, 4  ;;  %v7134_v63 = vrot.slane %v11912_v21, 5 }
 0x352   :  { %7837 = vst [vmem:[%s13278_s3 + $0x18] sm:$0xff] %v7773_v52  ;;  %v6860_v37 = vadd.f32 %v6706_v5, %v5566_v34  ;;  %v9244_v34 = vld [vmem:[%s13276_s0 + $0xa4] sm:$0x1]  ;;  %v6030_v52 = vshll.u32 %v11945_v14, 16  ;;  %v6018_v40 = vrot.slane %v6017_v28, 4  ;;  %v7137_v10 = vrot.slane %v11945_v14, 5 }
 0x353   :  { %9040 = vmatmul.msk.bf16.gmra.mxu0 %vm981_vm4, %v7348_v29  ;;  %v9137_v29 = vld [vmem:[%s13276_s0 + $0x9c] sm:$0xff]  ;;  %v4502_v44 = vrot.slane %v9244_v34, 5 }
 0x354   :  { %v7642_v24 = vadd.f32 %v7488_v61, %v6860_v37  ;;  %v5414_v26 = vpop.f32.mrf.mxu2  ;;  %8590 = vmatmul.msk.bf16.gmra.mxu1 %vm981_vm4, %v4714_v1  ;;  %v6567_v37 = vpack.c.b16 %v6515_v2, %v6514_v42  ;;  %v6032_v58 = vrot.slane %v6030_v52, 5  ;;  %v8875_v42 = vld [vmem:[%s13276_s0 + $0xb4] sm:$0xf] }
 0x355   :  { %v5567_v43 = vadd.f32 %v5414_v26, %v5008_v4  ;;  %v4503_v47 = vsel %vm9833_vm7, %v4501_v54, %v4502_v44  ;;  %v4663_v4 = vunpack.c.l.b16 %v4500_v60  ;;  %v7349_v54 = vpack.c.b16 %v7297_v45, %v7296_v53  ;;  %v8527_v60 = vld [vmem:[%s13276_s0 + $0xa8] sm:$0xe] }
 0x356   :  { %v7710_v16 = vadd.f32 %v11808_v31, %v7642_v24  ;;  %v5009_v24 = vadd.f32 %v4858_v36, %v10421_v9  ;;  %v4664_v26 = vunpack.c.l.b16 %v4503_v47  ;;  %v6023_v9 = vsel %vm9333_vm3, %v6018_v40, %v11938_v30  ;;  %v9245_v30 = vld [vmem:[%s13276_s0 + $0xac] sm:$0xf] }
 0x357   :  { %v6033_v36 = vsel %vm9333_vm3, %v6028_v3, %v6032_v58  ;;  %v7136_v44 = vrot.slane %v7134_v63, 4  ;;  %v6035_v28 = vshrl.u32 %v8875_v42, 16 }
 0x358   :  { %v7774_v61 = vmax.f32 %v7710_v16, 0.0  ;;  %v7490_v1 = vpop.f32.mrf.mxu0  ;;  %v11986_v16 = vld [vmem:[%s13276_s0 + $0xb8] sm:$0xf]  ;;  %v4715_v32 = vpack.c.b16 %v4664_v26, %v4663_v4 }
 0x359   :  { %v6708_v5 = vpop.f32.mrf.mxu3  ;;  %8815 = vmatmul.msk.bf16.gmra.mxu2 %vm981_vm4, %v9137_v29  ;;  %v4860_v35 = vpop.f32.mrf.mxu1  ;;  %v8977_v29 = vld [vmem:[%s13276_s0 + $0xa8] sm:$0xe]  ;;  %v6044_v14 = vshll.u32 %v11986_v16, 16  ;;  %v6048_v47 = vshrl.u32 %v11986_v16, 16  ;;  %v7138_v58 = vsel %vm9833_vm7, %v7136_v44, %v7137_v10 }
 0x35a   :  { %7838 = vst [vmem:[%s13278_s3 + $0x20] sm:$0xff] %v7774_v61  ;;  %v6861_v17 = vadd.f32 %v6708_v5, %v5567_v43  ;;  %v9009_v34 = vrot.slane %v8977_v29, 9  ;;  %v4506_v61 = vrot.slane %v9245_v30, 5  ;;  %v5010_v40 = vadd.f32 %v4860_v35, %v10444_v20 }
 0x35b   :  { %v7299_v44 = vunpack.c.l.b16 %v7138_v58 }
 0x35c   :  { %v7643_v8 = vadd.f32 %v7490_v1, %v6861_v17  ;;  %v5417_v13 = vpop.f32.mrf.mxu2  ;;  %v6038_v1 = vshll.u32 %v8875_v42, 16  ;;  %v6516_v17 = vunpack.c.l.b16 %v6023_v9  ;;  %v7135_v53 = vsel %vm9833_vm7, %v9009_v34, %v7134_v63  ;;  %v9246_v63 = vld [vmem:[%s13276_s0 + $0xb0] sm:$0x1] }
 0x35d   :  { %v5568_v21 = vadd.f32 %v5417_v13, %v5009_v24  ;;  %v9138_v24 = vld [vmem:[%s13276_s0 + $0xa8] sm:$0xff]  ;;  %v8559_v13 = vrot.slane %v8527_v60, 9  ;;  %v4508_v4 = vrot.slane %v4506_v61, 4  ;;  %v4509_v26 = vrot.slane %v9246_v63, 5 }
 0x35e   :  { %v7711_v15 = vadd.f32 %v11808_v31, %v7643_v8  ;;  %8944 = vmatmul.msk.bf16.gmra.mxu3 %vm981_vm4, %v6567_v37  ;;  %v6517_v37 = vunpack.c.l.b16 %v6033_v36  ;;  %v6037_v8 = vrot.slane %v6035_v28, 4  ;;  %v6040_v29 = vrot.slane %v6038_v1, 5 }
 0x35f   :  { %v12014_v42 = vrot.slane %v6044_v14, 5  ;;  %v7298_v36 = vunpack.c.l.b16 %v7135_v53 }
 0x360   :  { %v7775_v43 = vmax.f32 %v7711_v15, 0.0  ;;  %v7493_v2 = vpop.f32.mrf.mxu0  ;;  %v6050_v15 = vrot.slane %v6048_v47, 4  ;;  %v6041_v10 = vor.u32 %v6040_v29, %v6037_v8 }
 0x361   :  { %v6711_v38 = vpop.f32.mrf.mxu3  ;;  %v4863_v52 = vpop.f32.mrf.mxu1 }
 0x362   :  { %7839 = vst [vmem:[%s13278_s3 + $0x28] sm:$0xff] %v7775_v43  ;;  %v6862_v5 = vadd.f32 %v6711_v38, %v5568_v21  ;;  %v6568_v38 = vpack.c.b16 %v6517_v37, %v6516_v17  ;;  %v6051_v30 = vor.u32 %v6050_v15, %v12014_v42  ;;  %v5011_v14 = vadd.f32 %v4863_v52, %v10463_v51 }
 0x363   :  { %9041 = vmatmul.msk.bf16.gmra.mxu0 %vm981_vm4, %v7349_v54  ;;  %v8877_v54 = vld [vmem:[%s13276_s0 + $0xbc] sm:$0x1]  ;;  %v7350_v17 = vpack.c.b16 %v7299_v44, %v7298_v36  ;;  %v6042_v37 = vrot.slane %v6041_v10, 4 }
 0x364   :  { %v7644_v45 = vadd.f32 %v7493_v2, %v6862_v5  ;;  %v5419_v3 = vpop.f32.mrf.mxu2  ;;  %8591 = vmatmul.msk.bf16.gmra.mxu1 %vm981_vm4, %v4715_v32  ;;  %v4507_v2 = vsel %vm9833_vm7, %v8559_v13, %v4506_v61  ;;  %v4510_v32 = vsel %vm9833_vm7, %v4508_v4, %v4509_v26  ;;  %v6054_v1 = vshll.u32 %v8877_v54, 16 }
 0x365   :  { %v5569_v35 = vadd.f32 %v5419_v3, %v5010_v40  ;;  %v7141_v5 = vrot.slane %v11986_v16, 5  ;;  %v4665_v61 = vunpack.c.l.b16 %v4507_v2  ;;  %v4666_v53 = vunpack.c.l.b16 %v4510_v32  ;;  %v8878_v40 = vld [vmem:[%s13276_s0 + $0xc0] sm:$0xf]  ;;  %v12039_v16 = vld [vmem:[%s13276_s0 + $0xc4] sm:$0xf] }
 0x366   :  { %v7712_v20 = vadd.f32 %v11808_v31, %v7644_v45  ;;  %v8978_v45 = vld [vmem:[%s13276_s0 + $0xb4] sm:$0xe]  ;;  %v6052_v3 = vrot.slane %v6051_v30, 4  ;;  %v6056_v58 = vrot.slane %v6054_v1, 5  ;;  %v7144_v13 = vrot.slane %v8877_v54, 5 }
 0x367   :  { %v9010_v8 = vrot.slane %v8978_v45, 9  ;;  %v6059_v4 = vshrl.u32 %v8878_v40, 16  ;;  %v4716_v29 = vpack.c.b16 %v4666_v53, %v4665_v61  ;;  %v6047_v44 = vsel %vm9333_vm3, %v6042_v37, %v12014_v42  ;;  %v8528_v2 = vld [vmem:[%s13276_s0 + $0xb4] sm:$0xe] }
 0x368   :  { %v7776_v21 = vmax.f32 %v7712_v20, 0.0  ;;  %v7495_v9 = vpop.f32.mrf.mxu0  ;;  %v6062_v20 = vshll.u32 %v8878_v40, 16  ;;  %v6057_v32 = vsel %vm9333_vm3, %v6052_v3, %v6056_v58  ;;  %v8560_v61 = vrot.slane %v8528_v2, 9  ;;  %v8881_v2 = vld [vmem:[%s13276_s0 + $0xcc] sm:$0xf] }
 0x369   :  { %v6713_v34 = vpop.f32.mrf.mxu3  ;;  %8816 = vmatmul.msk.bf16.gmra.mxu2 %vm981_vm4, %v9138_v24  ;;  %v4865_v43 = vpop.f32.mrf.mxu1  ;;  %v7143_v24 = vrot.slane %v7141_v5, 4  ;;  %v7142_v10 = vsel %vm9833_vm7, %v9010_v8, %v7141_v5  ;;  %v9248_v5 = vld [vmem:[%s13276_s0 + $0xbc] sm:$0x1]  ;;  %v6519_v37 = vunpack.c.l.b16 %v6057_v32  ;;  %v12097_v32 = vld [vmem:[%s13276_s0 + $0xd0] sm:$0xf] }
 0x36a   :  { %7840 = vst [vmem:[%s13278_s3 + $0x30] sm:$0xff] %v7776_v21  ;;  %v6863_v28 = vadd.f32 %v6713_v34, %v5569_v35  ;;  %v6068_v35 = vshll.u32 %v12039_v16, 16  ;;  %v6072_v34 = vshrl.u32 %v12039_v16, 16  ;;  %v5012_v1 = vadd.f32 %v4865_v43, %v10486_v23 }
 0x36b   :  { %v4516_v45 = vrot.slane %v9248_v5, 5  ;;  %v7300_v58 = vunpack.c.l.b16 %v7142_v10 }
 0x36c   :  { %v7645_v60 = vadd.f32 %v7495_v9, %v6863_v28  ;;  %v5422_v47 = vpop.f32.mrf.mxu2  ;;  %v9247_v9 = vld [vmem:[%s13276_s0 + $0xb8] sm:$0xf]  ;;  %v7145_v28 = vsel %vm9833_vm7, %v7143_v24, %v7144_v13  ;;  %v6074_v40 = vrot.slane %v6072_v34, 4 }
 0x36d   :  { %v5570_v52 = vadd.f32 %v5422_v47, %v5011_v14  ;;  %v4513_v36 = vrot.slane %v9247_v9, 5  ;;  %v12066_v14 = vrot.slane %v6068_v35, 5  ;;  %v9139_v47 = vld [vmem:[%s13276_s0 + $0xb4] sm:$0xff]  ;;  %v7301_v8 = vunpack.c.l.b16 %v7145_v28 }
 0x36e   :  { %v7713_v51 = vadd.f32 %v11808_v31, %v7645_v60  ;;  %8945 = vmatmul.msk.bf16.gmra.mxu3 %vm981_vm4, %v6568_v38  ;;  %v6061_v38 = vrot.slane %v6059_v4, 4  ;;  %v6064_v60 = vrot.slane %v6062_v20, 5 }
 0x36f   :  { %v4515_v53 = vrot.slane %v4513_v36, 4  ;;  %v4514_v4 = vsel %vm9833_vm7, %v8560_v61, %v4513_v36  ;;  %v7351_v10 = vpack.c.b16 %v7301_v8, %v7300_v58  ;;  %v6092_v61 = vshll.u32 %v12097_v32, 16 }
 0x370   :  { %v7777_v63 = vmax.f32 %v7713_v51, 0.0  ;;  %v7498_v26 = vpop.f32.mrf.mxu0  ;;  %v12078_v51 = vld [vmem:[%s13276_s0 + $0xc8] sm:$0x1] }
 0x371   :  { %v6716_v15 = vpop.f32.mrf.mxu3  ;;  %v4868_v21 = vpop.f32.mrf.mxu1 }
 0x372   :  { %7841 = vst [vmem:[%s13278_s3 + $0x38] sm:$0xff] %v7777_v63  ;;  %v6864_v54 = vadd.f32 %v6716_v15, %v5570_v52  ;;  %v4517_v63 = vsel %vm9833_vm7, %v4515_v53, %v4516_v45  ;;  %v6078_v15 = vshll.u32 %v12078_v51, 16  ;;  %v5013_v34 = vadd.f32 %v4868_v21, %v10505_v7 }
 0x373   :  { %9042 = vmatmul.msk.bf16.gmra.mxu0 %vm981_vm4, %v7350_v17  ;;  %v6518_v17 = vunpack.c.l.b16 %v6047_v44  ;;  %v4667_v44 = vunpack.c.l.b16 %v4514_v4  ;;  %v4668_v36 = vunpack.c.l.b16 %v4517_v63  ;;  %v6096_v53 = vshrl.u32 %v12097_v32, 16 }
 0x374   :  { %v7646_v30 = vadd.f32 %v7498_v26, %v6864_v54  ;;  %v5424_v42 = vpop.f32.mrf.mxu2  ;;  %8592 = vmatmul.msk.bf16.gmra.mxu1 %vm981_vm4, %v4716_v29  ;;  %v6065_v26 = vor.u32 %v6064_v60, %v6061_v38  ;;  %v6075_v29 = vor.u32 %v6074_v40, %v12066_v14  ;;  %v6080_v21 = vrot.slane %v6078_v15, 5 }
 0x375   :  { %v5571_v43 = vadd.f32 %v5424_v42, %v5012_v1  ;;  %v6569_v35 = vpack.c.b16 %v6519_v37, %v6518_v17  ;;  %v8979_v1 = vld [vmem:[%s13276_s0 + $0xc0] sm:$0xe]  ;;  %v7148_v42 = vrot.slane %v12039_v16, 5  ;;  %v6083_v60 = vshrl.u32 %v8881_v2, 16  ;;  %v9249_v16 = vld [vmem:[%s13276_s0 + $0xc4] sm:$0xf] }
 0x376   :  { %v7714_v23 = vadd.f32 %v11808_v31, %v7646_v30  ;;  %v6066_v28 = vrot.slane %v6065_v26, 4  ;;  %v6076_v38 = vrot.slane %v6075_v29, 4  ;;  %v4717_v40 = vpack.c.b16 %v4668_v36, %v4667_v44  ;;  %v9250_v36 = vld [vmem:[%s13276_s0 + $0xc8] sm:$0x1] }
 0x377   :  { %v9011_v37 = vrot.slane %v8979_v1, 9  ;;  %v7150_v8 = vrot.slane %v7148_v42, 4  ;;  %v6085_v4 = vrot.slane %v6083_v60, 4  ;;  %v12123_v26 = vrot.slane %v6092_v61, 5 }
 0x378   :  { %v7778_v52 = vmax.f32 %v7714_v23, 0.0  ;;  %v7500_v3 = vpop.f32.mrf.mxu0  ;;  %v6071_v17 = vsel %vm9333_vm3, %v6066_v28, %v12066_v14  ;;  %v6081_v58 = vsel %vm9333_vm3, %v6076_v38, %v6080_v21  ;;  %v8529_v14 = vld [vmem:[%s13276_s0 + $0xc0] sm:$0xe]  ;;  %v6098_v29 = vrot.slane %v6096_v53, 4 }
 0x379   :  { %v6718_v24 = vpop.f32.mrf.mxu3  ;;  %8817 = vmatmul.msk.bf16.gmra.mxu2 %vm981_vm4, %v9139_v47  ;;  %v4870_v13 = vpop.f32.mrf.mxu1  ;;  %v6086_v47 = vshll.u32 %v8881_v2, 16  ;;  %v7149_v28 = vsel %vm9833_vm7, %v9011_v37, %v7148_v42 }
 0x37a   :  { %7842 = vst [vmem:[%s13278_s3 + $0x40] sm:$0xff] %v7778_v52  ;;  %v6865_v20 = vadd.f32 %v6718_v24, %v5571_v43  ;;  %v4520_v52 = vrot.slane %v9249_v16, 5  ;;  %v7151_v24 = vrot.slane %v12078_v51, 5  ;;  %v12130_v51 = vld [vmem:[%s13276_s0 + $0xd4] sm:$0x1] }
 0x37b   :  { %v6088_v63 = vrot.slane %v6086_v47, 5  ;;  %v6102_v21 = vshll.u32 %v12130_v51, 16 }
 0x37c   :  { %v7647_v9 = vadd.f32 %v7500_v3, %v6865_v20  ;;  %v5427_v54 = vpop.f32.mrf.mxu2  ;;  %v4522_v44 = vrot.slane %v4520_v52, 4  ;;  %v7152_v38 = vsel %vm9833_vm7, %v7150_v8, %v7151_v24 }
 0x37d   :  { %v5572_v7 = vadd.f32 %v5427_v54, %v5013_v34  ;;  %v6520_v34 = vunpack.c.l.b16 %v6071_v17  ;;  %v8561_v54 = vrot.slane %v8529_v14, 9  ;;  %v6104_v16 = vrot.slane %v6102_v21, 5 }
 0x37e   :  { %v7715_v30 = vadd.f32 %v11808_v31, %v7647_v9  ;;  %8946 = vmatmul.msk.bf16.gmra.mxu3 %vm981_vm4, %v6569_v35  ;;  %v5014_v35 = vadd.f32 %v4870_v13, %v10528_v49  ;;  %v9140_v9 = vld [vmem:[%s13276_s0 + $0xc0] sm:$0xff]  ;;  %v4523_v49 = vrot.slane %v9250_v36, 5  ;;  %v7158_v36 = vrot.slane %v12130_v51, 5 }
 0x37f   :  { %v4521_v53 = vsel %vm9833_vm7, %v8561_v54, %v4520_v52 }
 0x380   :  { %v7779_v5 = vmax.f32 %v7715_v30, 0.0  ;;  %v7503_v45 = vpop.f32.mrf.mxu0  ;;  %v6089_v30 = vor.u32 %v6088_v63, %v6085_v4  ;;  %v4524_v42 = vsel %vm9833_vm7, %v4522_v44, %v4523_v49  ;;  %v4669_v24 = vunpack.c.l.b16 %v4521_v53  ;;  %v8980_v4 = vld [vmem:[%s13276_s0 + $0xcc] sm:$0xe]  ;;  %v8884_v63 = vld [vmem:[%s13276_s0 + $0xf0] sm:$0xf] }
 0x381   :  { %v6721_v23 = vpop.f32.mrf.mxu3  ;;  %v4873_v43 = vpop.f32.mrf.mxu1  ;;  %v4670_v14 = vunpack.c.l.b16 %v4524_v42  ;;  %v6107_v49 = vshrl.u32 %v8884_v63, 16 }
 0x382   :  { %7843 = vst [vmem:[%s13278_s3 + $0x48] sm:$0xff] %v7779_v5  ;;  %v6866_v3 = vadd.f32 %v6721_v23, %v5572_v7  ;;  %v6099_v7 = vor.u32 %v6098_v29, %v12123_v26  ;;  %v7303_v23 = vunpack.c.l.b16 %v7152_v38  ;;  %v6090_v17 = vrot.slane %v6089_v30, 4  ;;  %v8530_v30 = vld [vmem:[%s13276_s0 + $0xe4] sm:$0xe] }
 0x383   :  { %9043 = vmatmul.msk.bf16.gmra.mxu0 %vm981_vm4, %v7351_v10  ;;  %v6521_v10 = vunpack.c.l.b16 %v6081_v58  ;;  %v5015_v8 = vadd.f32 %v4873_v43, %v10547_v41  ;;  %v4718_v44 = vpack.c.b16 %v4670_v14, %v4669_v24 }
 0x384   :  { %v7648_v20 = vadd.f32 %v7503_v45, %v6866_v3  ;;  %v5429_v15 = vpop.f32.mrf.mxu2  ;;  %8593 = vmatmul.msk.bf16.gmra.mxu1 %vm981_vm4, %v4717_v40  ;;  %v7302_v40 = vunpack.c.l.b16 %v7149_v28  ;;  %v6100_v37 = vrot.slane %v6099_v7, 4  ;;  %v7155_v3 = vrot.slane %v12097_v32, 5 }
 0x385   :  { %v5573_v2 = vadd.f32 %v5429_v15, %v5014_v35  ;;  %v6570_v45 = vpack.c.b16 %v6521_v10, %v6520_v34  ;;  %v6095_v41 = vsel %vm9333_vm3, %v6090_v17, %v12123_v26  ;;  %v9012_v35 = vrot.slane %v8980_v4, 9  ;;  %v9251_v26 = vld [vmem:[%s13276_s0 + $0xe8] sm:$0xf] }
 0x386   :  { %v7716_v13 = vadd.f32 %v11808_v31, %v7648_v20  ;;  %v7352_v20 = vpack.c.b16 %v7303_v23, %v7302_v40  ;;  %v6105_v43 = vsel %vm9333_vm3, %v6100_v37, %v6104_v16  ;;  %v7157_v15 = vrot.slane %v7155_v3, 4  ;;  %v9141_v40 = vld [vmem:[%s13276_s0 + $0xcc] sm:$0xff] }
 0x387   :  { %v4527_v10 = vrot.slane %v9251_v26, 5  ;;  %v6110_v28 = vshll.u32 %v8884_v63, 16  ;;  %v6522_v21 = vunpack.c.l.b16 %v6095_v41  ;;  %v8562_v23 = vrot.slane %v8530_v30, 9  ;;  %v9252_v37 = vld [vmem:[%s13276_s0 + $0xec] sm:$0x1] }
 0x388   :  { %v7780_v1 = vmax.f32 %v7716_v13, 0.0  ;;  %v7505_v60 = vpop.f32.mrf.mxu0  ;;  %v4530_v16 = vrot.slane %v9252_v37, 5 }
 0x389   :  { %v6723_v47 = vpop.f32.mrf.mxu3  ;;  %8818 = vmatmul.msk.bf16.gmra.mxu2 %vm981_vm4, %v9140_v9  ;;  %v4875_v61 = vpop.f32.mrf.mxu1  ;;  %v12171_v9 = vld [vmem:[%s13276_s0 + $0xf4] sm:$0xf]  ;;  %v4529_v17 = vrot.slane %v4527_v10, 4 }
 0x38a   :  { %7844 = vst [vmem:[%s13278_s3 + $0x50] sm:$0xff] %v7780_v1  ;;  %v6867_v5 = vadd.f32 %v6723_v47, %v5573_v2  ;;  %v6116_v51 = vshll.u32 %v12171_v9, 16  ;;  %v6120_v7 = vshrl.u32 %v12171_v9, 16  ;;  %v6523_v1 = vunpack.c.l.b16 %v6105_v43 }
 0x38b   :  { %v5016_v53 = vadd.f32 %v4875_v61, %v10570_v27  ;;  %v4531_v41 = vsel %vm9833_vm7, %v4529_v17, %v4530_v16  ;;  %v9253_v16 = vld [vmem:[%s13276_s0 + $0xf4] sm:$0xf] }
 0x38c   :  { %v7649_v58 = vadd.f32 %v7505_v60, %v6867_v5  ;;  %v5432_v52 = vpop.f32.mrf.mxu2  ;;  %v7156_v60 = vsel %vm9833_vm7, %v9012_v35, %v7155_v3  ;;  %v7159_v5 = vsel %vm9833_vm7, %v7157_v15, %v7158_v36  ;;  %v6112_v3 = vrot.slane %v6110_v28, 5  ;;  %v8981_v28 = vld [vmem:[%s13276_s0 + $0xf0] sm:$0xe] }
 0x38d   :  { %v5574_v32 = vadd.f32 %v5432_v52, %v5015_v8  ;;  %v6122_v8 = vrot.slane %v6120_v7, 4  ;;  %v8886_v52 = vld [vmem:[%s13276_s0 + $0xf8] sm:$0x1]  ;;  %v7304_v4 = vunpack.c.l.b16 %v7156_v60  ;;  %v6571_v15 = vpack.c.b16 %v6523_v1, %v6522_v21 }
 0x38e   :  { %v7717_v29 = vadd.f32 %v11808_v31, %v7649_v58  ;;  %8947 = vmatmul.msk.bf16.gmra.mxu3 %vm981_vm4, %v6570_v45  ;;  %v6109_v45 = vrot.slane %v6107_v49, 4  ;;  %v12199_v58 = vrot.slane %v6116_v51, 5  ;;  %v9013_v1 = vrot.slane %v8981_v28, 9 }
 0x390   :  { %v7781_v34 = vmax.f32 %v7717_v29, 0.0  ;;  %v7508_v54 = vpop.f32.mrf.mxu0  ;;  %v7305_v29 = vunpack.c.l.b16 %v7159_v5  ;;  %v6113_v43 = vor.u32 %v6112_v3, %v6109_v45  ;;  %v4534_v3 = vrot.slane %v9253_v16, 5 }
 0x391   :  { %v6726_v13 = vpop.f32.mrf.mxu3  ;;  %v4878_v2 = vpop.f32.mrf.mxu1 }
 0x392   :  { %7845 = vst [vmem:[%s13278_s3 + $0x58] sm:$0xff] %v7781_v34  ;;  %v6868_v38 = vadd.f32 %v6726_v13, %v5574_v32  ;;  %v4528_v32 = vsel %vm9833_vm7, %v8562_v23, %v4527_v10  ;;  %v6123_v34 = vor.u32 %v6122_v8, %v12199_v58  ;;  %v5017_v49 = vadd.f32 %v4878_v2, %v10589_v19 }
 0x393   :  { %9044 = vmatmul.msk.bf16.gmra.mxu0 %vm981_vm4, %v7352_v20  ;;  %v4671_v26 = vunpack.c.l.b16 %v4528_v32  ;;  %v4672_v10 = vunpack.c.l.b16 %v4531_v41  ;;  %v7353_v30 = vpack.c.b16 %v7305_v29, %v7304_v4  ;;  %v6114_v51 = vrot.slane %v6113_v43, 4 }
 0x394   :  { %v7650_v47 = vadd.f32 %v7508_v54, %v6868_v38  ;;  %v5434_v42 = vpop.f32.mrf.mxu2  ;;  %8594 = vmatmul.msk.bf16.gmra.mxu1 %vm981_vm4, %v4718_v44  ;;  %v6126_v54 = vshll.u32 %v8886_v52, 16  ;;  %v7162_v44 = vrot.slane %v12171_v9, 5  ;;  %v8887_v38 = vld [vmem:[%s13276_s0 + $0xfc] sm:$0xf]  ;;  %v12224_v9 = vld [vmem:[%s13276_s0 + $0x100] sm:$0xf] }
 0x395   :  { %v5575_v61 = vadd.f32 %v5434_v42, %v5016_v53  ;;  %v6124_v7 = vrot.slane %v6123_v34, 4  ;;  %v6131_v53 = vshrl.u32 %v8887_v38, 16  ;;  %v4719_v45 = vpack.c.b16 %v4672_v10, %v4671_v26  ;;  %v12263_v26 = vld [vmem:[%s13276_s0 + $0x104] sm:$0x1] }
 0x396   :  { %v7718_v27 = vadd.f32 %v11808_v31, %v7650_v47  ;;  %v6128_v21 = vrot.slane %v6126_v54, 5  ;;  %v7164_v60 = vrot.slane %v7162_v44, 4  ;;  %v7165_v47 = vrot.slane %v8886_v52, 5  ;;  %v8531_v52 = vld [vmem:[%s13276_s0 + $0xf0] sm:$0xe] }
 0x397   :  { %v6140_v23 = vshll.u32 %v12224_v9, 16  ;;  %v6119_v8 = vsel %vm9333_vm3, %v6114_v51, %v12199_v58  ;;  %v4536_v34 = vrot.slane %v4534_v3, 4  ;;  %v9254_v54 = vld [vmem:[%s13276_s0 + $0xf8] sm:$0x1] }
 0x398   :  { %v7782_v24 = vmax.f32 %v7718_v27, 0.0  ;;  %v7510_v14 = vpop.f32.mrf.mxu0  ;;  %v6144_v27 = vshrl.u32 %v12224_v9, 16  ;;  %v7166_v4 = vsel %vm9833_vm7, %v7164_v60, %v7165_v47  ;;  %v6150_v47 = vshll.u32 %v12263_v26, 16 }
 0x399   :  { %v6728_v63 = vpop.f32.mrf.mxu3  ;;  %8819 = vmatmul.msk.bf16.gmra.mxu2 %vm981_vm4, %v9141_v40  ;;  %v4880_v20 = vpop.f32.mrf.mxu1  ;;  %v6134_v40 = vshll.u32 %v8887_v38, 16  ;;  %v12251_v43 = vrot.slane %v6140_v23, 5  ;;  %v8890_v23 = vld [vmem:[%s13276_s0 + $0x108] sm:$0xf] }
 0x39a   :  { %7846 = vst [vmem:[%s13278_s3 + $0x60] sm:$0xff] %v7782_v24  ;;  %v6869_v35 = vadd.f32 %v6728_v63, %v5575_v61  ;;  %v6129_v24 = vsel %vm9333_vm3, %v6124_v7, %v6128_v21  ;;  %v6133_v63 = vrot.slane %v6131_v53, 4  ;;  %v5018_v32 = vadd.f32 %v4880_v20, %v10612_v39 }
 0x39b   :  { %v6136_v41 = vrot.slane %v6134_v40, 5 }
 0x39c   :  { %v7651_v36 = vadd.f32 %v7510_v14, %v6869_v35  ;;  %v5437_v13 = vpop.f32.mrf.mxu2  ;;  %v7163_v14 = vsel %vm9833_vm7, %v9013_v1, %v7162_v44  ;;  %v9142_v35 = vld [vmem:[%s13276_s0 + $0xf0] sm:$0xff]  ;;  %v4537_v44 = vrot.slane %v9254_v54, 5 }
 0x39d   :  { %v5576_v2 = vadd.f32 %v5437_v13, %v5017_v49  ;;  %v6524_v49 = vunpack.c.l.b16 %v6119_v8  ;;  %v6525_v13 = vunpack.c.l.b16 %v6129_v24  ;;  %v7306_v38 = vunpack.c.l.b16 %v7163_v14 }
 0x39e   :  { %v7719_v19 = vadd.f32 %v11808_v31, %v7651_v36  ;;  %8948 = vmatmul.msk.bf16.gmra.mxu3 %vm981_vm4, %v6571_v15  ;;  %v8563_v15 = vrot.slane %v8531_v52, 9  ;;  %v6146_v36 = vrot.slane %v6144_v27, 4  ;;  %v6137_v7 = vor.u32 %v6136_v41, %v6133_v63  ;;  %v8982_v52 = vld [vmem:[%s13276_s0 + $0xfc] sm:$0xe] }
 0x39f   :  { %v6572_v60 = vpack.c.b16 %v6525_v13, %v6524_v49  ;;  %v6152_v8 = vrot.slane %v6150_v47, 5  ;;  %v7169_v24 = vrot.slane %v12224_v9, 5  ;;  %v6155_v14 = vshrl.u32 %v8890_v23, 16  ;;  %v9256_v9 = vld [vmem:[%s13276_s0 + $0x100] sm:$0xf] }
 0x3a0   :  { %v7783_v42 = vmax.f32 %v7719_v19, 0.0  ;;  %v7513_v5 = vpop.f32.mrf.mxu0  ;;  %v6147_v21 = vor.u32 %v6146_v36, %v12251_v43  ;;  %v9014_v54 = vrot.slane %v8982_v52, 9  ;;  %v7172_v49 = vrot.slane %v12263_v26, 5  ;;  %v12320_v26 = vld [vmem:[%s13276_s0 + $0x110] sm:$0x1] }
 0x3a1   :  { %v6731_v17 = vpop.f32.mrf.mxu3  ;;  %v4883_v37 = vpop.f32.mrf.mxu1  ;;  %v6157_v13 = vrot.slane %v6155_v14, 4 }
 0x3a2   :  { %7847 = vst [vmem:[%s13278_s3 + $0x68] sm:$0xff] %v7783_v42  ;;  %v6870_v61 = vadd.f32 %v6731_v17, %v5576_v2  ;;  %v4535_v2 = vsel %vm9833_vm7, %v8563_v15, %v4534_v3  ;;  %v5019_v42 = vadd.f32 %v4883_v37, %v10631_v59  ;;  %v12282_v17 = vld [vmem:[%s13276_s0 + $0x10c] sm:$0xf]  ;;  %v6138_v3 = vrot.slane %v6137_v7, 4 }
 0x3a3   :  { %9045 = vmatmul.msk.bf16.gmra.mxu0 %vm981_vm4, %v7353_v30  ;;  %v7307_v30 = vunpack.c.l.b16 %v7166_v4  ;;  %v6148_v27 = vrot.slane %v6147_v21, 4  ;;  %v6158_v4 = vshll.u32 %v8890_v23, 16  ;;  %v6164_v63 = vshll.u32 %v12282_v17, 16 }
 0x3a4   :  { %v7652_v29 = vadd.f32 %v7513_v5, %v6870_v61  ;;  %v5439_v58 = vpop.f32.mrf.mxu2  ;;  %8595 = vmatmul.msk.bf16.gmra.mxu1 %vm981_vm4, %v4719_v45  ;;  %v4673_v45 = vunpack.c.l.b16 %v4535_v2  ;;  %v12287_v61 = vld [vmem:[%s13277_s2] ss:$0 sm:$0xff]  ;;  %v6174_v23 = vshll.u32 %v12320_v26, 16 }
 0x3a5   :  { %v5577_v20 = vadd.f32 %v5439_v58, %v5018_v32  ;;  %v7354_v16 = vpack.c.b16 %v7307_v30, %v7306_v38 }
 0x3a6   :  { %v7720_v39 = vadd.f32 %v11808_v31, %v7652_v29  ;;  %v4538_v31 = vsel %vm9833_vm7, %v4536_v34, %v4537_v44  ;;  %v6168_v29 = vshrl.u32 %v12282_v17, 16  ;;  %v6143_v34 = vsel %vm9333_vm3, %v6138_v3, %v12251_v43  ;;  %v8532_v43 = vld [vmem:[%s13276_s0 + $0xfc] sm:$0xe] }
 0x3a7   :  { %v4674_v40 = vunpack.c.l.b16 %v4538_v31  ;;  %v4541_v44 = vrot.slane %v9256_v9, 5  ;;  %v9143_v31 = vld [vmem:[%s13276_s0 + $0xfc] sm:$0xff]  ;;  %v6526_v7 = vunpack.c.l.b16 %v6143_v34  ;;  %v8564_v21 = vrot.slane %v8532_v43, 9 }
 0x3a8   :  { %v7784_v10 = vmax.f32 %v7720_v39, 0.0  ;;  %v7515_v28 = vpop.f32.mrf.mxu0  ;;  %v6153_v39 = vsel %vm9333_vm3, %v6148_v27, %v6152_v8  ;;  %v6170_v38 = vrot.slane %v6168_v29, 4 }
 0x3a9   :  { %v6733_v51 = vpop.f32.mrf.mxu3  ;;  %8820 = vmatmul.msk.bf16.gmra.mxu2 %vm981_vm4, %v9142_v35  ;;  %v4885_v19 = vpop.f32.mrf.mxu1  ;;  %v4720_v41 = vpack.c.b16 %v4674_v40, %v4673_v45 }
 0x3aa   :  { %7848 = vst [vmem:[%s13278_s3 + $0x70] sm:$0xff] %v7784_v10  ;;  %v6871_v1 = vadd.f32 %v6733_v51, %v5577_v20  ;;  %v7171_v20 = vrot.slane %v7169_v24, 4  ;;  %v6160_v10 = vrot.slane %v6158_v4, 5  ;;  %v5020_v51 = vadd.f32 %v4885_v19, %v10654_v57 }
 0x3ac   :  { %v7653_v53 = vadd.f32 %v7515_v28, %v6871_v1  ;;  %v5442_v5 = vpop.f32.mrf.mxu2  ;;  %v12313_v28 = vrot.slane %v6164_v63, 5  ;;  %v4543_v1 = vrot.slane %v4541_v44, 4  ;;  %v6161_v45 = vor.u32 %v6160_v10, %v6157_v13  ;;  %v12361_v13 = vld [vmem:[%s13276_s0 + $0x118] sm:$0xf] }
 0x3ad   :  { %v5578_v37 = vadd.f32 %v5442_v5, %v5019_v42  ;;  %v7170_v42 = vsel %vm9833_vm7, %v9014_v54, %v7169_v24  ;;  %v7173_v5 = vsel %vm9833_vm7, %v7171_v20, %v7172_v49 }
 0x3ae   :  { %v7721_v59 = vadd.f32 %v12287_v61, %v7653_v53  ;;  %8949 = vmatmul.msk.bf16.gmra.mxu3 %vm981_vm4, %v6572_v60  ;;  %v9257_v60 = vld [vmem:[%s13276_s0 + $0x104] sm:$0x1]  ;;  %v6527_v53 = vunpack.c.l.b16 %v6153_v39  ;;  %v6171_v40 = vor.u32 %v6170_v38, %v12313_v28  ;;  %v7308_v14 = vunpack.c.l.b16 %v7170_v42 }
 0x3af   :  { %v4544_v57 = vrot.slane %v9257_v60, 5  ;;  %v7309_v4 = vunpack.c.l.b16 %v7173_v5  ;;  %v6162_v63 = vrot.slane %v6161_v45, 4 }
 0x3b0   :  { %v7785_v32 = vmax.f32 %v7721_v59, 0.0  ;;  %v7518_v58 = vpop.f32.mrf.mxu0  ;;  %v6573_v24 = vpack.c.b16 %v6527_v53, %v6526_v7  ;;  %v6172_v29 = vrot.slane %v6171_v40, 4 }
 0x3b1   :  { %v6736_v35 = vpop.f32.mrf.mxu3  ;;  %v4888_v15 = vpop.f32.mrf.mxu1  ;;  %v4545_v8 = vsel %vm9833_vm7, %v4543_v1, %v4544_v57  ;;  %v7355_v20 = vpack.c.b16 %v7309_v4, %v7308_v14  ;;  %v8533_v57 = vld [vmem:[%s13276_s0 + $0x108] sm:$0xe] }
 0x3b2   :  { %7849 = vst [vmem:[%s13278_s3 + $0x78] sm:$0xff] %v7785_v32  ;;  %v6872_v36 = vadd.f32 %v6736_v35, %v5578_v37  ;;  %v4542_v37 = vsel %vm9833_vm7, %v8564_v21, %v4541_v44  ;;  %v6176_v32 = vrot.slane %v6174_v23, 5  ;;  %v5021_v35 = vadd.f32 %v4888_v15, %v10673_v55  ;;  %v8983_v44 = vld [vmem:[%s13276_s0 + $0x108] sm:$0xe] }
 0x3b3   :  { %9046 = vmatmul.msk.bf16.gmra.mxu0 %vm981_vm4, %v7354_v16  ;;  %v4675_v54 = vunpack.c.l.b16 %v4542_v37  ;;  %v4676_v9 = vunpack.c.l.b16 %v4545_v8  ;;  %v6167_v55 = vsel %vm9333_vm3, %v6162_v63, %v12313_v28  ;;  %v9015_v49 = vrot.slane %v8983_v44, 9  ;;  %v9258_v28 = vld [vmem:[%s13276_s0 + $0x10c] sm:$0xf]  ;;  %v9259_v8 = vld [vmem:[%s13276_s0 + $0x110] sm:$0x1] }
 0x3b4   :  { %v7654_v30 = vadd.f32 %v7518_v58, %v6872_v36  ;;  %v5444_v2 = vpop.f32.mrf.mxu2  ;;  %8596 = vmatmul.msk.bf16.gmra.mxu1 %vm981_vm4, %v4720_v41  ;;  %v7176_v58 = vrot.slane %v12282_v17, 5  ;;  %v8893_v36 = vld [vmem:[%s13276_s0 + $0x114] sm:$0xf]  ;;  %v6177_v15 = vsel %vm9333_vm3, %v6172_v29, %v6176_v32  ;;  %v4548_v21 = vrot.slane %v9258_v28, 5  ;;  %v8895_v63 = vld [vmem:[%s13276_s0 + $0x11c] sm:$0x1] }
 0x3b5   :  { %v5579_v47 = vadd.f32 %v5444_v2, %v5020_v51  ;;  %v7179_v51 = vrot.slane %v12320_v26, 5  ;;  %v6179_v2 = vshrl.u32 %v8893_v36, 16  ;;  %v6182_v1 = vshll.u32 %v8893_v36, 16 }
 0x3b6   :  { %v7722_v19 = vadd.f32 %v12287_v61, %v7654_v30  ;;  %v7178_v43 = vrot.slane %v7176_v58, 4  ;;  %v4721_v30 = vpack.c.b16 %v4676_v9, %v4675_v54  ;;  %v6188_v26 = vshll.u32 %v12361_v13, 16 }
 0x3b7   :  { %v6529_v53 = vunpack.c.l.b16 %v6177_v15  ;;  %v7177_v42 = vsel %vm9833_vm7, %v9015_v49, %v7176_v58  ;;  %v4550_v37 = vrot.slane %v4548_v21, 4 }
 0x3b8   :  { %v7786_v16 = vmax.f32 %v7722_v19, 0.0  ;;  %v7520_v3 = vpop.f32.mrf.mxu0  ;;  %v6192_v19 = vshrl.u32 %v12361_v13, 16  ;;  %v7180_v23 = vsel %vm9833_vm7, %v7178_v43, %v7179_v51  ;;  %v12389_v14 = vrot.slane %v6188_v26, 5  ;;  %v8896_v51 = vld [vmem:[%s13276_s0 + $0x120] sm:$0xf] }
 0x3b9   :  { %v6738_v27 = vpop.f32.mrf.mxu3  ;;  %8821 = vmatmul.msk.bf16.gmra.mxu2 %vm981_vm4, %v9143_v31  ;;  %v4890_v59 = vpop.f32.mrf.mxu1  ;;  %v7310_v58 = vunpack.c.l.b16 %v7177_v42  ;;  %v6203_v26 = vshrl.u32 %v8896_v51, 16  ;;  %v6206_v42 = vshll.u32 %v8896_v51, 16 }
 0x3ba   :  { %7850 = vst [vmem:[%s13278_s3 + $0x80] sm:$0xff] %v7786_v16  ;;  %v6873_v52 = vadd.f32 %v6738_v27, %v5579_v47  ;;  %v6528_v47 = vunpack.c.l.b16 %v6167_v55  ;;  %v5022_v45 = vadd.f32 %v4890_v59, %v10696_v0  ;;  %v6181_v16 = vrot.slane %v6179_v2, 4 }
 0x3bb   :  { %v8565_v27 = vrot.slane %v8533_v57, 9  ;;  %v6194_v4 = vrot.slane %v6192_v19, 4  ;;  %v7183_v55 = vrot.slane %v12361_v13, 5  ;;  %v12414_v13 = vld [vmem:[%s13276_s0 + $0x124] sm:$0xf]  ;;  %v7186_v57 = vrot.slane %v8895_v63, 5 }
 0x3bc   :  { %v7655_v41 = vadd.f32 %v7520_v3, %v6873_v52  ;;  %v5447_v34 = vpop.f32.mrf.mxu2  ;;  %v9144_v3 = vld [vmem:[%s13276_s0 + $0x108] sm:$0xff]  ;;  %v4551_v52 = vrot.slane %v9259_v8, 5  ;;  %v8534_v8 = vld [vmem:[%s13276_s0 + $0x114] sm:$0xe] }
 0x3bd   :  { %v5580_v17 = vadd.f32 %v5447_v34, %v5021_v35  ;;  %v7311_v35 = vunpack.c.l.b16 %v7180_v23  ;;  %v4549_v54 = vsel %vm9833_vm7, %v8565_v27, %v4548_v21  ;;  %v9260_v23 = vld [vmem:[%s13276_s0 + $0x118] sm:$0xf] }
 0x3be   :  { %v7723_v39 = vadd.f32 %v12287_v61, %v7655_v41  ;;  %8950 = vmatmul.msk.bf16.gmra.mxu3 %vm981_vm4, %v6573_v24  ;;  %v6184_v24 = vrot.slane %v6182_v1, 5  ;;  %v4552_v9 = vsel %vm9833_vm7, %v4550_v37, %v4551_v52 }
 0x3bf   :  { %v7356_v2 = vpack.c.b16 %v7311_v35, %v7310_v58  ;;  %v9145_v58 = vld [vmem:[%s13276_s0 + $0x114] sm:$0xff] }
 0x3c0   :  { %v7787_v10 = vmax.f32 %v7723_v39, 0.0  ;;  %v7523_v38 = vpop.f32.mrf.mxu0  ;;  %v6185_v44 = vor.u32 %v6184_v24, %v6181_v16  ;;  %v6574_v39 = vpack.c.b16 %v6529_v53, %v6528_v47  ;;  %v4555_v16 = vrot.slane %v9260_v23, 5 }
 0x3c1   :  { %v6741_v31 = vpop.f32.mrf.mxu3  ;;  %v4893_v7 = vpop.f32.mrf.mxu1  ;;  %v7190_v23 = vrot.slane %v12414_v13, 5 }
 0x3c2   :  { %7851 = vst [vmem:[%s13278_s3 + $0x88] sm:$0xff] %v7787_v10  ;;  %v6874_v60 = vadd.f32 %v6741_v31, %v5580_v17  ;;  %v6198_v17 = vshll.u32 %v8895_v63, 16  ;;  %v5023_v49 = vadd.f32 %v4893_v7, %v10715_v6  ;;  %v4677_v10 = vunpack.c.l.b16 %v4549_v54  ;;  %v9261_v54 = vld [vmem:[%s13276_s0 + $0x11c] sm:$0x1] }
 0x3c3   :  { %9047 = vmatmul.msk.bf16.gmra.mxu0 %vm981_vm4, %v7355_v20  ;;  %v6195_v20 = vor.u32 %v6194_v4, %v12389_v14  ;;  %v6186_v31 = vrot.slane %v6185_v44, 4  ;;  %v4557_v35 = vrot.slane %v4555_v16, 4 }
 0x3c4   :  { %v7656_v5 = vadd.f32 %v7523_v38, %v6874_v60  ;;  %v5449_v40 = vpop.f32.mrf.mxu2  ;;  %8597 = vmatmul.msk.bf16.gmra.mxu1 %vm981_vm4, %v4721_v30  ;;  %v4678_v38 = vunpack.c.l.b16 %v4552_v9  ;;  %v8984_v30 = vld [vmem:[%s13276_s0 + $0x114] sm:$0xe]  ;;  %v6200_v21 = vrot.slane %v6198_v17, 5  ;;  %v7185_v60 = vrot.slane %v7183_v55, 4 }
 0x3c5   :  { %v5581_v59 = vadd.f32 %v5449_v40, %v5022_v45  ;;  %v6196_v28 = vrot.slane %v6195_v20, 4  ;;  %v9016_v1 = vrot.slane %v8984_v30, 9  ;;  %v6191_v37 = vsel %vm9333_vm3, %v6186_v31, %v12389_v14  ;;  %v12453_v20 = vld [vmem:[%s13276_s0 + $0x128] sm:$0x1] }
 0x3c6   :  { %v7724_v0 = vadd.f32 %v12287_v61, %v7656_v5  ;;  %v4722_v53 = vpack.c.b16 %v4678_v38, %v4677_v10  ;;  %v6212_v5 = vshll.u32 %v12414_v13, 16  ;;  %v4558_v9 = vrot.slane %v9261_v54, 5 }
 0x3c7   :  { %v6201_v52 = vsel %vm9333_vm3, %v6196_v28, %v6200_v21  ;;  %v7184_v24 = vsel %vm9833_vm7, %v9016_v1, %v7183_v55 }
 0x3c8   :  { %v7788_v29 = vmax.f32 %v7724_v0, 0.0  ;;  %v7525_v32 = vpop.f32.mrf.mxu0  ;;  %v7187_v0 = vsel %vm9833_vm7, %v7185_v60, %v7186_v57  ;;  %v4559_v30 = vsel %vm9833_vm7, %v4557_v35, %v4558_v9  ;;  %v7193_v35 = vrot.slane %v12453_v20, 5 }
 0x3c9   :  { %v6743_v41 = vpop.f32.mrf.mxu3  ;;  %8822 = vmatmul.msk.bf16.gmra.mxu2 %vm981_vm4, %v9144_v3  ;;  %v4895_v34 = vpop.f32.mrf.mxu1  ;;  %v6216_v3 = vshrl.u32 %v12414_v13, 16  ;;  %v4680_v57 = vunpack.c.l.b16 %v4559_v30  ;;  %v9262_v13 = vld [vmem:[%s13276_s0 + $0x124] sm:$0xf] }
 0x3ca   :  { %7852 = vst [vmem:[%s13278_s3 + $0x90] sm:$0xff] %v7788_v29  ;;  %v6875_v36 = vadd.f32 %v6743_v41, %v5581_v59  ;;  %v6205_v59 = vrot.slane %v6203_v26, 4  ;;  %v5024_v63 = vadd.f32 %v4895_v34, %v10738_v22  ;;  %v6208_v29 = vrot.slane %v6206_v42, 5  ;;  %v8899_v26 = vld [vmem:[%s13276_s0 + $0x12c] sm:$0xf] }
 0x3cb   :  { %v8566_v41 = vrot.slane %v8534_v8, 9  ;;  %v6218_v44 = vrot.slane %v6216_v3, 4  ;;  %v6230_v3 = vshll.u32 %v8899_v26, 16 }
 0x3cc   :  { %v7657_v15 = vadd.f32 %v7525_v32, %v6875_v36  ;;  %v5452_v43 = vpop.f32.mrf.mxu2  ;;  %v12441_v32 = vrot.slane %v6212_v5, 5  ;;  %v6530_v36 = vunpack.c.l.b16 %v6191_v37  ;;  %v6209_v51 = vor.u32 %v6208_v29, %v6205_v59 }
 0x3cd   :  { %v5582_v7 = vadd.f32 %v5452_v43, %v5023_v49  ;;  %v7313_v49 = vunpack.c.l.b16 %v7187_v0  ;;  %v4556_v38 = vsel %vm9833_vm7, %v8566_v41, %v4555_v16  ;;  %v6227_v16 = vshrl.u32 %v8899_v26, 16 }
 0x3ce   :  { %v7725_v6 = vadd.f32 %v12287_v61, %v7657_v15  ;;  %8951 = vmatmul.msk.bf16.gmra.mxu3 %vm981_vm4, %v6574_v39  ;;  %v6531_v39 = vunpack.c.l.b16 %v6201_v52  ;;  %v7312_v15 = vunpack.c.l.b16 %v7184_v24  ;;  %v4679_v60 = vunpack.c.l.b16 %v4556_v38 }
 0x3cf   :  { %v7192_v41 = vrot.slane %v7190_v23, 4  ;;  %v6229_v54 = vrot.slane %v6227_v16, 4  ;;  %v6232_v9 = vrot.slane %v6230_v3, 5 }
 0x3d0   :  { %v7789_v19 = vmax.f32 %v7725_v6, 0.0  ;;  %v7528_v47 = vpop.f32.mrf.mxu0  ;;  %v6575_v6 = vpack.c.b16 %v6531_v39, %v6530_v36  ;;  %v4723_v24 = vpack.c.b16 %v4680_v57, %v4679_v60 }
 0x3d1   :  { %v6746_v45 = vpop.f32.mrf.mxu3  ;;  %v4898_v40 = vpop.f32.mrf.mxu1 }
 0x3d2   :  { %7853 = vst [vmem:[%s13278_s3 + $0x98] sm:$0xff] %v7789_v19  ;;  %v6876_v27 = vadd.f32 %v6746_v45, %v5582_v7  ;;  %v6222_v7 = vshll.u32 %v12453_v20, 16  ;;  %v5025_v21 = vadd.f32 %v4898_v40, %v10757_v12  ;;  %v12472_v19 = vld [vmem:[%s13276_s0 + $0x130] sm:$0xf]  ;;  %v8985_v40 = vld [vmem:[%s13276_s0 + $0x120] sm:$0xe] }
 0x3d3   :  { %9048 = vmatmul.msk.bf16.gmra.mxu0 %vm981_vm4, %v7356_v2  ;;  %v6219_v2 = vor.u32 %v6218_v44, %v12441_v32  ;;  %v6240_v37 = vshrl.u32 %v12472_v19, 16  ;;  %v12505_v20 = vld [vmem:[%s13276_s0 + $0x134] sm:$0x1] }
 0x3d4   :  { %v7658_v4 = vadd.f32 %v7528_v47, %v6876_v27  ;;  %v5454_v14 = vpop.f32.mrf.mxu2  ;;  %8598 = vmatmul.msk.bf16.gmra.mxu1 %vm981_vm4, %v4722_v53  ;;  %v7357_v47 = vpack.c.b16 %v7313_v49, %v7312_v15  ;;  %v6210_v53 = vrot.slane %v6209_v51, 4  ;;  %v6224_v45 = vrot.slane %v6222_v7, 5 }
 0x3d5   :  { %v5583_v34 = vadd.f32 %v5454_v14, %v5024_v63  ;;  %v6220_v42 = vrot.slane %v6219_v2, 4  ;;  %v6236_v27 = vshll.u32 %v12472_v19, 16  ;;  %v9017_v63 = vrot.slane %v8985_v40, 9 }
 0x3d6   :  { %v7726_v22 = vadd.f32 %v12287_v61, %v7658_v4  ;;  %v6215_v4 = vsel %vm9333_vm3, %v6210_v53, %v12441_v32  ;;  %v4562_v14 = vrot.slane %v9262_v13, 5  ;;  %v8535_v32 = vld [vmem:[%s13276_s0 + $0x120] sm:$0xe]  ;;  %v7194_v2 = vsel %vm9833_vm7, %v7192_v41, %v7193_v35 }
 0x3d7   :  { %v12498_v44 = vrot.slane %v6236_v27, 5  ;;  %v8567_v15 = vrot.slane %v8535_v32, 9  ;;  %v7191_v51 = vsel %vm9833_vm7, %v9017_v63, %v7190_v23  ;;  %v6246_v7 = vshll.u32 %v12505_v20, 16 }
 0x3d8   :  { %v7790_v17 = vmax.f32 %v7726_v22, 0.0  ;;  %v7530_v55 = vpop.f32.mrf.mxu0  ;;  %v6242_v22 = vrot.slane %v6240_v37, 4  ;;  %v4564_v49 = vrot.slane %v4562_v14, 4  ;;  %v7197_v23 = vrot.slane %v12472_v19, 5 }
 0x3d9   :  { %v6748_v43 = vpop.f32.mrf.mxu3  ;;  %8823 = vmatmul.msk.bf16.gmra.mxu2 %vm981_vm4, %v9145_v58  ;;  %v4900_v10 = vpop.f32.mrf.mxu1  ;;  %v6225_v58 = vsel %vm9333_vm3, %v6220_v42, %v6224_v45  ;;  %v4563_v57 = vsel %vm9833_vm7, %v8567_v15, %v4562_v14  ;;  %v7314_v42 = vunpack.c.l.b16 %v7191_v51  ;;  %v6248_v40 = vrot.slane %v6246_v7, 5  ;;  %v12546_v14 = vld [vmem:[%s13276_s0 + $0x13c] sm:$0xf]  ;;  %v9147_v51 = vld [vmem:[%s13276_s0 + $0x12c] sm:$0xff] }
 0x3da   :  { %7854 = vst [vmem:[%s13278_s3 + $0xa0] sm:$0xff] %v7790_v17  ;;  %v6877_v31 = vadd.f32 %v6748_v43, %v5583_v34  ;;  %v5026_v36 = vadd.f32 %v4900_v10, %v10780_v62  ;;  %v9146_v17 = vld [vmem:[%s13276_s0 + $0x120] sm:$0xff]  ;;  %v9263_v43 = vld [vmem:[%s13276_s0 + $0x128] sm:$0x1]  ;;  %v6533_v30 = vunpack.c.l.b16 %v6225_v58  ;;  %v4681_v37 = vunpack.c.l.b16 %v4563_v57 }
 0x3db   :  { %v4565_v62 = vrot.slane %v9263_v43, 5  ;;  %v7199_v13 = vrot.slane %v7197_v23, 4  ;;  %v7200_v35 = vrot.slane %v12505_v20, 5  ;;  %v6260_v20 = vshll.u32 %v12546_v14, 16  ;;  %v8904_v57 = vld [vmem:[%s13276_s0 + $0x140] sm:$0x1] }
 0x3dc   :  { %v7659_v28 = vadd.f32 %v7530_v55, %v6877_v31  ;;  %v5457_v1 = vpop.f32.mrf.mxu2  ;;  %v6532_v55 = vunpack.c.l.b16 %v6215_v4  ;;  %v6233_v31 = vor.u32 %v6232_v9, %v6229_v54 }
 0x3dd   :  { %v5584_v12 = vadd.f32 %v5457_v1, %v5025_v21  ;;  %v4566_v26 = vsel %vm9833_vm7, %v4564_v49, %v4565_v62 }
 0x3de   :  { %v7727_v5 = vadd.f32 %v12287_v61, %v7659_v28  ;;  %8952 = vmatmul.msk.bf16.gmra.mxu3 %vm981_vm4, %v6575_v6  ;;  %v6243_v6 = vor.u32 %v6242_v22, %v12498_v44  ;;  %v6576_v53 = vpack.c.b16 %v6533_v30, %v6532_v55 }
 0x3e0   :  { %v7791_v8 = vmax.f32 %v7727_v5, 0.0  ;;  %v7533_v52 = vpop.f32.mrf.mxu0  ;;  %v7315_v5 = vunpack.c.l.b16 %v7194_v2  ;;  %v6244_v45 = vrot.slane %v6243_v6, 4  ;;  %v9265_v6 = vld [vmem:[%s13276_s0 + $0x134] sm:$0x1] }
 0x3e1   :  { %v6751_v0 = vpop.f32.mrf.mxu3  ;;  %v4903_v59 = vpop.f32.mrf.mxu1  ;;  %v4572_v7 = vrot.slane %v9265_v6, 5 }
 0x3e2   :  { %7855 = vst [vmem:[%s13278_s3 + $0xa8] sm:$0xff] %v7791_v8  ;;  %v6878_v29 = vadd.f32 %v6751_v0, %v5584_v12  ;;  %v6234_v12 = vrot.slane %v6233_v31, 4  ;;  %v5027_v3 = vadd.f32 %v4903_v59, %v10799_v46  ;;  %v4682_v8 = vunpack.c.l.b16 %v4566_v26 }
 0x3e3   :  { %9049 = vmatmul.msk.bf16.gmra.mxu0 %vm981_vm4, %v7357_v47  ;;  %v7358_v4 = vpack.c.b16 %v7315_v5, %v7314_v42  ;;  %v6249_v59 = vsel %vm9333_vm3, %v6244_v45, %v6248_v40 }
 0x3e4   :  { %v7660_v34 = vadd.f32 %v7533_v52, %v6878_v29  ;;  %v5459_v39 = vpop.f32.mrf.mxu2  ;;  %8599 = vmatmul.msk.bf16.gmra.mxu1 %vm981_vm4, %v4723_v24  ;;  %v8986_v52 = vld [vmem:[%s13276_s0 + $0x12c] sm:$0xe]  ;;  %v8902_v24 = vld [vmem:[%s13276_s0 + $0x138] sm:$0xf]  ;;  %v6239_v46 = vsel %vm9333_vm3, %v6234_v12, %v12498_v44  ;;  %v4724_v41 = vpack.c.b16 %v4682_v8, %v4681_v37  ;;  %v9264_v44 = vld [vmem:[%s13276_s0 + $0x130] sm:$0xf]  ;;  %v6535_v15 = vunpack.c.l.b16 %v6249_v59 }
 0x3e5   :  { %v5585_v38 = vadd.f32 %v5459_v39, %v5026_v36  ;;  %v9018_v63 = vrot.slane %v8986_v52, 9  ;;  %v6251_v32 = vshrl.u32 %v8902_v24, 16  ;;  %v4569_v22 = vrot.slane %v9264_v44, 5  ;;  %v8536_v39 = vld [vmem:[%s13276_s0 + $0x12c] sm:$0xe] }
 0x3e6   :  { %v7728_v10 = vadd.f32 %v12287_v61, %v7660_v34  ;;  %v6254_v34 = vshll.u32 %v8902_v24, 16  ;;  %v6534_v55 = vunpack.c.l.b16 %v6239_v46  ;;  %v8568_v2 = vrot.slane %v8536_v39, 9  ;;  %v8987_v46 = vld [vmem:[%s13276_s0 + $0x138] sm:$0xe]  ;;  %v8905_v59 = vld [vmem:[%s13276_s0 + $0x144] sm:$0xf] }
 0x3e7   :  { %v7198_v49 = vsel %vm9833_vm7, %v9018_v63, %v7197_v23  ;;  %v6253_v30 = vrot.slane %v6251_v32, 4  ;;  %v4571_v31 = vrot.slane %v4569_v22, 4  ;;  %v6270_v37 = vshll.u32 %v8904_v57, 16 }
 0x3e8   :  { %v7792_v28 = vmax.f32 %v7728_v10, 0.0  ;;  %v7535_v21 = vpop.f32.mrf.mxu0  ;;  %v4570_v45 = vsel %vm9833_vm7, %v8568_v2, %v4569_v22  ;;  %v7204_v8 = vrot.slane %v12546_v14, 5 }
 0x3e9   :  { %v6753_v1 = vpop.f32.mrf.mxu3  ;;  %8824 = vmatmul.msk.bf16.gmra.mxu2 %vm981_vm4, %v9146_v17  ;;  %v4905_v60 = vpop.f32.mrf.mxu1  ;;  %v6264_v17 = vshrl.u32 %v12546_v14, 16  ;;  %v4573_v40 = vsel %vm9833_vm7, %v4571_v31, %v4572_v7  ;;  %v12599_v14 = vld [vmem:[%s13276_s0 + $0x148] sm:$0xf] }
 0x3ea   :  { %7856 = vst [vmem:[%s13278_s3 + $0xb0] sm:$0xff] %v7792_v28  ;;  %v6879_v47 = vadd.f32 %v6753_v1, %v5585_v38  ;;  %v5028_v62 = vadd.f32 %v4905_v60, %v10822_v33  ;;  %v7201_v38 = vsel %vm9833_vm7, %v7199_v13, %v7200_v35  ;;  %v6256_v28 = vrot.slane %v6254_v34, 5 }
 0x3eb   :  { %v12574_v1 = vrot.slane %v6260_v20, 5  ;;  %v6266_v60 = vrot.slane %v6264_v17, 4  ;;  %v7317_v5 = vunpack.c.l.b16 %v7201_v38  ;;  %v9019_v35 = vrot.slane %v8987_v46, 9 }
 0x3ec   :  { %v7661_v16 = vadd.f32 %v7535_v21, %v6879_v47  ;;  %v5462_v27 = vpop.f32.mrf.mxu2  ;;  %v6257_v23 = vor.u32 %v6256_v28, %v6253_v30  ;;  %v7206_v32 = vrot.slane %v7204_v8, 4  ;;  %v6284_v39 = vshll.u32 %v12599_v14, 16 }
 0x3ed   :  { %v5586_v19 = vadd.f32 %v5462_v27, %v5027_v3  ;;  %v6577_v3 = vpack.c.b16 %v6535_v15, %v6534_v55  ;;  %v6267_v27 = vor.u32 %v6266_v60, %v12574_v1  ;;  %v9266_v55 = vld [vmem:[%s13276_s0 + $0x13c] sm:$0xf]  ;;  %v7205_v30 = vsel %vm9833_vm7, %v9019_v35, %v7204_v8 }
 0x3ee   :  { %v7729_v0 = vadd.f32 %v12287_v61, %v7661_v16  ;;  %8953 = vmatmul.msk.bf16.gmra.mxu3 %vm981_vm4, %v6576_v53  ;;  %v7316_v53 = vunpack.c.l.b16 %v7198_v49  ;;  %v6258_v13 = vrot.slane %v6257_v23, 4  ;;  %v4576_v15 = vrot.slane %v9266_v55, 5 }
 0x3ef   :  { %v6288_v49 = vshrl.u32 %v12599_v14, 16  ;;  %v7318_v23 = vunpack.c.l.b16 %v7205_v30 }
 0x3f0   :  { %v7793_v29 = vmax.f32 %v7729_v0, 0.0  ;;  %v7538_v58 = vpop.f32.mrf.mxu0  ;;  %v7359_v63 = vpack.c.b16 %v7317_v5, %v7316_v53  ;;  %v4578_v60 = vrot.slane %v4576_v15, 4 }
 0x3f1   :  { %v6756_v54 = vpop.f32.mrf.mxu3  ;;  %v4908_v9 = vpop.f32.mrf.mxu1 }
 0x3f2   :  { %7857 = vst [vmem:[%s13278_s3 + $0xb8] sm:$0xff] %v7793_v29  ;;  %v6880_v36 = vadd.f32 %v6756_v54, %v5586_v19  ;;  %v5029_v24 = vadd.f32 %v4908_v9, %v10841_v11  ;;  %v4684_v19 = vunpack.c.l.b16 %v4573_v40  ;;  %v7207_v54 = vrot.slane %v8904_v57, 5  ;;  %v9267_v57 = vld [vmem:[%s13276_s0 + $0x140] sm:$0x1] }
 0x3f3   :  { %9050 = vmatmul.msk.bf16.gmra.mxu0 %vm981_vm4, %v7358_v4  ;;  %v4683_v4 = vunpack.c.l.b16 %v4570_v45  ;;  %v6275_v9 = vshrl.u32 %v8905_v59, 16 }
 0x3f4   :  { %v7662_v43 = vadd.f32 %v7538_v58, %v6880_v36  ;;  %v5464_v10 = vpop.f32.mrf.mxu2  ;;  %8600 = vmatmul.msk.bf16.gmra.mxu1 %vm981_vm4, %v4724_v41  ;;  %v6268_v58 = vrot.slane %v6267_v27, 4  ;;  %v6272_v41 = vrot.slane %v6270_v37, 5  ;;  %v6278_v36 = vshll.u32 %v8905_v59, 16  ;;  %v13375_v59 = vld [vmem:[#allocation31_spill] sm:$0xff] }
 0x3f5   :  { %v5587_v21 = vadd.f32 %v5464_v10, %v5028_v62  ;;  %v4725_v34 = vpack.c.b16 %v4684_v19, %v4683_v4  ;;  %v6263_v62 = vsel %vm9333_vm3, %v6258_v13, %v12574_v1  ;;  %v8537_v10 = vld [vmem:[%s13276_s0 + $0x138] sm:$0xe]  ;;  %v6277_v2 = vrot.slane %v6275_v9, 4 }
 0x3f6   :  { %v7730_v33 = vadd.f32 %v12287_v61, %v7662_v43  ;;  %v6273_v38 = vsel %vm9333_vm3, %v6268_v58, %v6272_v41  ;;  %v6280_v28 = vrot.slane %v6278_v36, 5  ;;  %v8569_v1 = vrot.slane %v8537_v10, 9  ;;  %v8908_v58 = vld [vmem:[%s13276_s0 + $0x150] sm:$0xf]  ;;  %v12657_v41 = vld [vmem:[%s13276_s0 + $0x154] sm:$0xf] }
 0x3f7   :  { %v6537_v5 = vunpack.c.l.b16 %v6273_v38  ;;  %v7211_v36 = vrot.slane %v12599_v14, 5  ;;  %v6312_v55 = vshrl.u32 %v12657_v41, 16  ;;  %v9268_v14 = vld [vmem:[%s13276_s0 + $0x148] sm:$0xf] }
 0x3f8   :  { %v7794_v26 = vmax.f32 %v7730_v33, 0.0  ;;  %v7540_v47 = vpop.f32.mrf.mxu0  ;;  %v12626_v33 = vrot.slane %v6284_v39, 5  ;;  %v4577_v37 = vsel %vm9833_vm7, %v8569_v1, %v4576_v15  ;;  %v6299_v39 = vshrl.u32 %v8908_v58, 16 }
 0x3f9   :  { %v6758_v42 = vpop.f32.mrf.mxu3  ;;  %8825 = vmatmul.msk.bf16.gmra.mxu2 %vm981_vm4, %v9147_v51  ;;  %v4910_v12 = vpop.f32.mrf.mxu1  ;;  %v7208_v51 = vsel %vm9833_vm7, %v7206_v32, %v7207_v54 }
 0x3fa   :  { %7858 = vst [vmem:[%s13278_s3 + $0xc0] sm:$0xff] %v7794_v26  ;;  %v6881_v16 = vadd.f32 %v6758_v42, %v5587_v21  ;;  %v5030_v6 = vadd.f32 %v4910_v12, %v10864_v48  ;;  %v9148_v21 = vld [vmem:[%s13276_s0 + $0x138] sm:$0xff]  ;;  %v4579_v26 = vrot.slane %v9267_v57, 5  ;;  %v6536_v42 = vunpack.c.l.b16 %v6263_v62  ;;  %v12638_v12 = vld [vmem:[%s13276_s0 + $0x14c] sm:$0x1] }
 0x3fb   :  { %v6294_v19 = vshll.u32 %v12638_v12, 16 }
 0x3fc   :  { %v7663_v52 = vadd.f32 %v7540_v47, %v6881_v16  ;;  %v5467_v0 = vpop.f32.mrf.mxu2  ;;  %v6290_v47 = vrot.slane %v6288_v49, 4  ;;  %v7319_v16 = vunpack.c.l.b16 %v7208_v51  ;;  %v4580_v8 = vsel %vm9833_vm7, %v4578_v60, %v4579_v26  ;;  %v13376_v26 = vld [vmem:[#allocation32_spill] sm:$0xff] }
 0x3fd   :  { %v5588_v29 = vadd.f32 %v5467_v0, %v5029_v24  ;;  %v6578_v4 = vpack.c.b16 %v6537_v5, %v6536_v42  ;;  %v4583_v51 = vrot.slane %v9268_v14, 5  ;;  %v6314_v60 = vrot.slane %v6312_v55, 4  ;;  %v9149_v42 = vld [vmem:[%s13276_s0 + $0x144] sm:$0xff]  ;;  %v8989_v55 = vld [vmem:[%s13276_s0 + $0x150] sm:$0xe] }
 0x3fe   :  { %v7731_v11 = vadd.f32 %v12287_v61, %v7663_v52  ;;  %8954 = vmatmul.msk.bf16.gmra.mxu3 %vm981_vm4, %v6577_v3  ;;  %v6281_v52 = vor.u32 %v6280_v28, %v6277_v2  ;;  %v6291_v24 = vor.u32 %v6290_v47, %v12626_v33  ;;  %v7360_v35 = vpack.c.b16 %v7319_v16, %v7318_v23  ;;  %v8538_v28 = vld [vmem:[%s13276_s0 + $0x144] sm:$0xe]  ;;  %v12731_v14 = vld [vmem:[%s13276_s0 + $0x160] sm:$0xf] }
 0x400   :  { %v7795_v44 = vmax.f32 %v7731_v11, 0.0  ;;  %v7543_v22 = vpop.f32.mrf.mxu0  ;;  %v4685_v11 = vunpack.c.l.b16 %v4577_v37  ;;  %v6282_v32 = vrot.slane %v6281_v52, 4  ;;  %v6292_v54 = vrot.slane %v6291_v24, 4 }
 0x401   :  { %v6761_v20 = vpop.f32.mrf.mxu3  ;;  %v4913_v17 = vpop.f32.mrf.mxu1 }
 0x402   :  { %7859 = vst [vmem:[%s13278_s3 + $0xc8] sm:$0xff] %v7795_v44  ;;  %v6882_v43 = vadd.f32 %v6761_v20, %v5588_v29  ;;  %v4686_v29 = vunpack.c.l.b16 %v4580_v8  ;;  %v6302_v20 = vshll.u32 %v8908_v58, 16  ;;  %v6287_v38 = vsel %vm9333_vm3, %v6282_v32, %v12626_v33 }
 0x403   :  { %9051 = vmatmul.msk.bf16.gmra.mxu0 %vm981_vm4, %v7359_v63  ;;  %v5031_v63 = vadd.f32 %v4913_v17, %v13375_v59  ;;  %v6308_v17 = vshll.u32 %v12657_v41, 16  ;;  %v6301_v33 = vrot.slane %v6299_v39, 4  ;;  %v6538_v5 = vunpack.c.l.b16 %v6287_v38 }
 0x404   :  { %v7664_v31 = vadd.f32 %v7543_v22, %v6882_v43  ;;  %v5469_v7 = vpop.f32.mrf.mxu2  ;;  %8601 = vmatmul.msk.bf16.gmra.mxu1 %vm981_vm4, %v4725_v34  ;;  %v6296_v22 = vrot.slane %v6294_v19, 5  ;;  %v8988_v34 = vld [vmem:[%s13276_s0 + $0x144] sm:$0xe]  ;;  %v4726_v43 = vpack.c.b16 %v4686_v29, %v4685_v11  ;;  %v9021_v38 = vrot.slane %v8989_v55, 9  ;;  %v13379_v55 = vld [vmem:[#allocation35_spill] sm:$0xff] }
 0x405   :  { %v5589_v53 = vadd.f32 %v5469_v7, %v5030_v6  ;;  %v9020_v30 = vrot.slane %v8988_v34, 9  ;;  %v7213_v6 = vrot.slane %v7211_v36, 4  ;;  %v7214_v7 = vrot.slane %v12638_v12, 5  ;;  %v13377_v34 = vld [vmem:[#allocation33_spill] sm:$0xff] }
 0x406   :  { %v7732_v48 = vadd.f32 %v12287_v61, %v7664_v31  ;;  %v6297_v31 = vsel %vm9333_vm3, %v6292_v54, %v6296_v22  ;;  %v12683_v1 = vrot.slane %v6308_v17, 5  ;;  %v8570_v12 = vrot.slane %v8538_v28, 9 }
 0x407   :  { %v7212_v37 = vsel %vm9833_vm7, %v9020_v30, %v7211_v36  ;;  %v7215_v8 = vsel %vm9833_vm7, %v7213_v6, %v7214_v7 }
 0x408   :  { %v7796_v45 = vmax.f32 %v7732_v48, 0.0  ;;  %v7545_v40 = vpop.f32.mrf.mxu0  ;;  %v6315_v24 = vor.u32 %v6314_v60, %v12683_v1  ;;  %v7320_v58 = vunpack.c.l.b16 %v7212_v37 }
 0x409   :  { %v6763_v3 = vpop.f32.mrf.mxu3  ;;  %8826 = vmatmul.msk.bf16.gmra.mxu2 %vm981_vm4, %v9148_v21  ;;  %v4915_v27 = vpop.f32.mrf.mxu1  ;;  %v6304_v21 = vrot.slane %v6302_v20, 5 }
 0x40a   :  { %7860 = vst [vmem:[%s13278_s3 + $0xd0] sm:$0xff] %v7796_v45  ;;  %v6883_v0 = vadd.f32 %v6763_v3, %v5589_v53  ;;  %v5032_v47 = vadd.f32 %v4915_v27, %v13376_v26  ;;  %v12690_v53 = vld [vmem:[%s13276_s0 + $0x158] sm:$0x1]  ;;  %v4585_v45 = vrot.slane %v4583_v51, 4  ;;  %v6539_v27 = vunpack.c.l.b16 %v6297_v31 }
 0x40b   :  { %v6305_v52 = vor.u32 %v6304_v21, %v6301_v33  ;;  %v6316_v54 = vrot.slane %v6315_v24, 4  ;;  %v7221_v31 = vrot.slane %v12690_v53, 5  ;;  %v9270_v33 = vld [vmem:[%s13276_s0 + $0x154] sm:$0xf]  ;;  %v6332_v26 = vshll.u32 %v12731_v14, 16 }
 0x40c   :  { %v7665_v46 = vadd.f32 %v7545_v40, %v6883_v0  ;;  %v5472_v13 = vpop.f32.mrf.mxu2  ;;  %v9269_v40 = vld [vmem:[%s13276_s0 + $0x14c] sm:$0x1]  ;;  %v6318_v0 = vshll.u32 %v12690_v53, 16  ;;  %v6579_v29 = vpack.c.b16 %v6539_v27, %v6538_v5  ;;  %v4590_v21 = vrot.slane %v9270_v33, 5 }
 0x40d   :  { %v5590_v44 = vadd.f32 %v5472_v13, %v5031_v63  ;;  %v4586_v23 = vrot.slane %v9269_v40, 5  ;;  %v4584_v63 = vsel %vm9833_vm7, %v8570_v12, %v4583_v51  ;;  %v6306_v32 = vrot.slane %v6305_v52, 4  ;;  %v13378_v12 = vld [vmem:[#allocation34_spill] sm:$0xff] }
 0x40e   :  { %v7733_v9 = vadd.f32 %v12287_v61, %v7665_v46  ;;  %8955 = vmatmul.msk.bf16.gmra.mxu3 %vm981_vm4, %v6578_v4  ;;  %v4687_v20 = vunpack.c.l.b16 %v4584_v63  ;;  %v4592_v37 = vrot.slane %v4590_v21, 4  ;;  %v8913_v63 = vld [vmem:[%s13276_s0 + $0x164] sm:$0x1] }
 0x40f   :  { %v4587_v13 = vsel %vm9833_vm7, %v4585_v45, %v4586_v23 }
 0x410   :  { %v7797_v15 = vmax.f32 %v7733_v9, 0.0  ;;  %v7548_v49 = vpop.f32.mrf.mxu0  ;;  %v6320_v9 = vrot.slane %v6318_v0, 5  ;;  %v4688_v17 = vunpack.c.l.b16 %v4587_v13  ;;  %v12761_v0 = vld [vmem:[%s13277_s2] ss:$0 sm:$0xff] }
 0x411   :  { %v6766_v62 = vpop.f32.mrf.mxu3  ;;  %v4918_v10 = vpop.f32.mrf.mxu1 }
 0x412   :  { %7861 = vst [vmem:[%s13278_s3 + $0xd8] sm:$0xff] %v7797_v15  ;;  %v6884_v2 = vadd.f32 %v6766_v62, %v5590_v44  ;;  %v7218_v44 = vrot.slane %v12657_v41, 5  ;;  %v5033_v36 = vadd.f32 %v4918_v10, %v13377_v34  ;;  %v8911_v15 = vld [vmem:[%s13276_s0 + $0x15c] sm:$0xf]  ;;  %v6311_v62 = vsel %vm9333_vm3, %v6306_v32, %v12683_v1 }
 0x413   :  { %9052 = vmatmul.msk.bf16.gmra.mxu0 %vm981_vm4, %v7360_v35  ;;  %v7321_v35 = vunpack.c.l.b16 %v7215_v8  ;;  %v6321_v10 = vsel %vm9333_vm3, %v6316_v54, %v6320_v9  ;;  %v6323_v6 = vshrl.u32 %v8911_v15, 16  ;;  %v6326_v1 = vshll.u32 %v8911_v15, 16  ;;  %v9271_v8 = vld [vmem:[%s13276_s0 + $0x158] sm:$0x1] }
 0x414   :  { %v7666_v57 = vadd.f32 %v7548_v49, %v6884_v2  ;;  %v5474_v48 = vpop.f32.mrf.mxu2  ;;  %8602 = vmatmul.msk.bf16.gmra.mxu1 %vm981_vm4, %v4726_v43  ;;  %v7220_v30 = vrot.slane %v7218_v44, 4  ;;  %v4727_v2 = vpack.c.b16 %v4688_v17, %v4687_v20  ;;  %v6541_v53 = vunpack.c.l.b16 %v6321_v10  ;;  %v8914_v10 = vld [vmem:[%s13276_s0 + $0x168] sm:$0xf] }
 0x415   :  { %v5591_v3 = vadd.f32 %v5474_v48, %v5032_v47  ;;  %v7361_v43 = vpack.c.b16 %v7321_v35, %v7320_v58  ;;  %v6336_v47 = vshrl.u32 %v12731_v14, 16  ;;  %v6540_v48 = vunpack.c.l.b16 %v6311_v62  ;;  %v8990_v62 = vld [vmem:[%s13276_s0 + $0x15c] sm:$0xe] }
 0x416   :  { %v7734_v16 = vadd.f32 %v12287_v61, %v7666_v57  ;;  %v8539_v57 = vld [vmem:[%s13276_s0 + $0x150] sm:$0xe]  ;;  %v7222_v23 = vsel %vm9833_vm7, %v7220_v30, %v7221_v31  ;;  %v4593_v52 = vrot.slane %v9271_v8, 5  ;;  %v6328_v24 = vrot.slane %v6326_v1, 5 }
 0x417   :  { %v8571_v27 = vrot.slane %v8539_v57, 9  ;;  %v7323_v35 = vunpack.c.l.b16 %v7222_v23  ;;  %v6580_v34 = vpack.c.b16 %v6541_v53, %v6540_v48  ;;  %v7225_v20 = vrot.slane %v12731_v14, 5  ;;  %v12789_v14 = vld [vmem:[%s13276_s0 + $0x16c] sm:$0xf]  ;;  %v9273_v53 = vld [vmem:[%s13276_s0 + $0x160] sm:$0xf] }
 0x418   :  { %v7798_v4 = vmax.f32 %v7734_v16, 0.0  ;;  %v7550_v19 = vpop.f32.mrf.mxu0  ;;  %v6325_v16 = vrot.slane %v6323_v6, 4  ;;  %v4594_v9 = vsel %vm9833_vm7, %v4592_v37, %v4593_v52  ;;  %v9022_v6 = vrot.slane %v8990_v62, 9  ;;  %v13380_v8 = vld [vmem:[#allocation36_spill] sm:$0xff] }
 0x419   :  { %v6768_v46 = vpop.f32.mrf.mxu3  ;;  %8827 = vmatmul.msk.bf16.gmra.mxu2 %vm981_vm4, %v9149_v42  ;;  %v4920_v59 = vpop.f32.mrf.mxu1  ;;  %v7219_v42 = vsel %vm9833_vm7, %v9021_v38, %v7218_v44  ;;  %v4591_v54 = vsel %vm9833_vm7, %v8571_v27, %v4590_v21  ;;  %v6347_v33 = vshrl.u32 %v8914_v10, 16  ;;  %v6350_v57 = vshll.u32 %v8914_v10, 16 }
 0x41a   :  { %7862 = vst [vmem:[%s13278_s3 + $0xe0] sm:$0xff] %v7798_v4  ;;  %v6885_v11 = vadd.f32 %v6768_v46, %v5591_v3  ;;  %v5034_v45 = vadd.f32 %v4920_v59, %v13378_v12  ;;  %v9150_v3 = vld [vmem:[%s13276_s0 + $0x150] sm:$0xff]  ;;  %v12764_v46 = vrot.slane %v6332_v26, 5  ;;  %v6338_v59 = vrot.slane %v6336_v47, 4 }
 0x41b   :  { %v6329_v44 = vor.u32 %v6328_v24, %v6325_v16  ;;  %v6356_v26 = vshll.u32 %v12789_v14, 16  ;;  %v7226_v16 = vsel %vm9833_vm7, %v9022_v6, %v7225_v20  ;;  %v6349_v27 = vrot.slane %v6347_v33, 4  ;;  %v12847_v6 = vld [vmem:[%s13276_s0 + $0x178] sm:$0xf] }
 0x41c   :  { %v7667_v22 = vadd.f32 %v7550_v19, %v6885_v11  ;;  %v5477_v39 = vpop.f32.mrf.mxu2 }
 0x41d   :  { %v5592_v41 = vadd.f32 %v5477_v39, %v5033_v36  ;;  %v6339_v36 = vor.u32 %v6338_v59, %v12764_v46  ;;  %v6342_v39 = vshll.u32 %v8913_v63, 16  ;;  %v6330_v30 = vrot.slane %v6329_v44, 4 }
 0x41e   :  { %v7735_v49 = vadd.f32 %v12287_v61, %v7667_v22  ;;  %8956 = vmatmul.msk.bf16.gmra.mxu3 %vm981_vm4, %v6579_v29  ;;  %v7322_v29 = vunpack.c.l.b16 %v7219_v42  ;;  %v4597_v42 = vrot.slane %v9273_v53, 5  ;;  %v6380_v53 = vshll.u32 %v12847_v6, 16 }
 0x41f   :  { %v6344_v31 = vrot.slane %v6342_v39, 5 }
 0x420   :  { %v7799_v51 = vmax.f32 %v7735_v49, 0.0  ;;  %v7553_v61 = vpop.f32.mrf.mxu0  ;;  %v7362_v38 = vpack.c.b16 %v7323_v35, %v7322_v29 }
 0x421   :  { %v6771_v7 = vpop.f32.mrf.mxu3  ;;  %v4923_v28 = vpop.f32.mrf.mxu1 }
 0x422   :  { %7863 = vst [vmem:[%s13278_s3 + $0xe8] sm:$0xff] %v7799_v51  ;;  %v6886_v60 = vadd.f32 %v6771_v7, %v5592_v41  ;;  %v5035_v15 = vadd.f32 %v4923_v28, %v13379_v55  ;;  %v4690_v41 = vunpack.c.l.b16 %v4594_v9  ;;  %v7227_v7 = vrot.slane %v7225_v20, 4  ;;  %v12828_v9 = vld [vmem:[%s13276_s0 + $0x170] sm:$0x1] }
 0x423   :  { %9053 = vmatmul.msk.bf16.gmra.mxu0 %vm981_vm4, %v7361_v43  ;;  %v4689_v43 = vunpack.c.l.b16 %v4591_v54  ;;  %v7228_v28 = vrot.slane %v8913_v63, 5  ;;  %v4599_v63 = vrot.slane %v4597_v42, 4  ;;  %v6366_v62 = vshll.u32 %v12828_v9, 16 }
 0x424   :  { %v7668_v5 = vadd.f32 %v7553_v61, %v6886_v60  ;;  %v5479_v40 = vpop.f32.mrf.mxu2  ;;  %8603 = vmatmul.msk.bf16.gmra.mxu1 %vm981_vm4, %v4727_v2  ;;  %v6340_v2 = vrot.slane %v6339_v36, 4 }
 0x425   :  { %v5593_v19 = vadd.f32 %v5479_v40, %v5034_v45  ;;  %v4728_v60 = vpack.c.b16 %v4690_v41, %v4689_v43  ;;  %v6335_v45 = vsel %vm9333_vm3, %v6330_v30, %v12764_v46  ;;  %v8540_v40 = vld [vmem:[%s13276_s0 + $0x15c] sm:$0xe] }
 0x426   :  { %v7736_v4 = vadd.f32 %v12761_v0, %v7668_v5  ;;  %v6360_v5 = vshrl.u32 %v12789_v14, 16  ;;  %v6345_v23 = vsel %vm9333_vm3, %v6340_v2, %v6344_v31  ;;  %v9151_v46 = vld [vmem:[%s13276_s0 + $0x15c] sm:$0xff]  ;;  %v8572_v59 = vrot.slane %v8540_v40, 9  ;;  %v8917_v31 = vld [vmem:[%s13276_s0 + $0x174] sm:$0xf] }
 0x427   :  { %v6543_v54 = vunpack.c.l.b16 %v6345_v23 }
 0x428   :  { %v7800_v13 = vmax.f32 %v7736_v4, 0.0  ;;  %v7555_v11 = vpop.f32.mrf.mxu0  ;;  %v6352_v4 = vrot.slane %v6350_v57, 5  ;;  %v6362_v29 = vrot.slane %v6360_v5, 4  ;;  %v8991_v57 = vld [vmem:[%s13276_s0 + $0x168] sm:$0xe] }
 0x429   :  { %v6773_v58 = vpop.f32.mrf.mxu3  ;;  %8828 = vmatmul.msk.bf16.gmra.mxu2 %vm981_vm4, %v9150_v3  ;;  %v4925_v32 = vpop.f32.mrf.mxu1  ;;  %v7229_v3 = vsel %vm9833_vm7, %v7227_v7, %v7228_v28 }
 0x42a   :  { %7864 = vst [vmem:[%s13278_s3 + $0xf0] sm:$0xff] %v7800_v13  ;;  %v6887_v22 = vadd.f32 %v6773_v58, %v5593_v19  ;;  %v5036_v52 = vadd.f32 %v4925_v32, %v13380_v8  ;;  %v12816_v19 = vrot.slane %v6356_v26, 5  ;;  %v9274_v13 = vld [vmem:[%s13276_s0 + $0x164] sm:$0x1]  ;;  %v6542_v32 = vunpack.c.l.b16 %v6335_v45 }
 0x42b   :  { %v7325_v36 = vunpack.c.l.b16 %v7229_v3  ;;  %v7232_v26 = vrot.slane %v12789_v14, 5  ;;  %v9023_v3 = vrot.slane %v8991_v57, 9  ;;  %v9275_v14 = vld [vmem:[%s13276_s0 + $0x16c] sm:$0xf]  ;;  %v13383_v57 = vld [vmem:[#allocation8_spill] sm:$0xff] }
 0x42c   :  { %v7669_v17 = vadd.f32 %v7555_v11, %v6887_v22  ;;  %v5482_v49 = vpop.f32.mrf.mxu2  ;;  %v4600_v11 = vrot.slane %v9274_v13, 5  ;;  %v6581_v41 = vpack.c.b16 %v6543_v54, %v6542_v32  ;;  %v9152_v32 = vld [vmem:[%s13276_s0 + $0x168] sm:$0xff] }
 0x42d   :  { %v5594_v61 = vadd.f32 %v5482_v49, %v5035_v15  ;;  %v6353_v15 = vor.u32 %v6352_v4, %v6349_v27  ;;  %v6363_v49 = vor.u32 %v6362_v29, %v12816_v19  ;;  %v4604_v27 = vrot.slane %v9275_v14, 5  ;;  %v8541_v4 = vld [vmem:[%s13276_s0 + $0x168] sm:$0xe]  ;;  %v12921_v14 = vld [vmem:[%s13276_s0 + $0x184] sm:$0xf] }
 0x42e   :  { %v7737_v51 = vadd.f32 %v12761_v0, %v7669_v17  ;;  %8957 = vmatmul.msk.bf16.gmra.mxu3 %vm981_vm4, %v6580_v34  ;;  %v7324_v34 = vunpack.c.l.b16 %v7226_v16  ;;  %v4598_v17 = vsel %vm9833_vm7, %v8572_v59, %v4597_v42  ;;  %v4601_v55 = vsel %vm9833_vm7, %v4599_v63, %v4600_v11  ;;  %v13382_v11 = vld [vmem:[#allocation6_spill] sm:$0xff] }
 0x42f   :  { %v4692_v2 = vunpack.c.l.b16 %v4601_v55  ;;  %v6354_v28 = vrot.slane %v6353_v15, 4  ;;  %v6364_v33 = vrot.slane %v6363_v49, 4  ;;  %v6384_v42 = vshrl.u32 %v12847_v6, 16 }
 0x430   :  { %v7801_v21 = vmax.f32 %v7737_v51, 0.0  ;;  %v7558_v1 = vpop.f32.mrf.mxu0  ;;  %v7363_v7 = vpack.c.b16 %v7325_v36, %v7324_v34  ;;  %v12873_v59 = vrot.slane %v6380_v53, 5 }
 0x431   :  { %v6776_v47 = vpop.f32.mrf.mxu3  ;;  %v4928_v48 = vpop.f32.mrf.mxu1  ;;  %v6359_v16 = vsel %vm9333_vm3, %v6354_v28, %v12816_v19  ;;  %v6386_v63 = vrot.slane %v6384_v42, 4  ;;  %v8992_v42 = vld [vmem:[%s13276_s0 + $0x174] sm:$0xe] }
 0x432   :  { %7865 = vst [vmem:[%s13278_s3 + $0xf8] sm:$0xff] %v7801_v21  ;;  %v6888_v12 = vadd.f32 %v6776_v47, %v5594_v61  ;;  %v4691_v61 = vunpack.c.l.b16 %v4598_v17  ;;  %v6371_v47 = vshrl.u32 %v8917_v31, 16  ;;  %v6544_v54 = vunpack.c.l.b16 %v6359_v16 }
 0x433   :  { %9054 = vmatmul.msk.bf16.gmra.mxu0 %vm981_vm4, %v7362_v38  ;;  %v13381_v38 = vld [vmem:[#allocation37_spill] sm:$0xff]  ;;  %v7233_v17 = vsel %vm9833_vm7, %v9023_v3, %v7232_v26  ;;  %v6387_v49 = vor.u32 %v6386_v63, %v12873_v59  ;;  %v9024_v16 = vrot.slane %v8992_v42, 9 }
 0x434   :  { %v7670_v37 = vadd.f32 %v7558_v1, %v6888_v12  ;;  %v5484_v24 = vpop.f32.mrf.mxu2  ;;  %8604 = vmatmul.msk.bf16.gmra.mxu1 %vm981_vm4, %v4728_v60  ;;  %v5037_v30 = vadd.f32 %v4928_v48, %v13381_v38  ;;  %v6368_v60 = vrot.slane %v6366_v62, 5  ;;  %v6374_v48 = vshll.u32 %v8917_v31, 16 }
 0x435   :  { %v5595_v35 = vadd.f32 %v5484_v24, %v5036_v52  ;;  %v4729_v45 = vpack.c.b16 %v4692_v2, %v4691_v61  ;;  %v7234_v52 = vrot.slane %v7232_v26, 4  ;;  %v7235_v24 = vrot.slane %v12828_v9, 5 }
 0x436   :  { %v7738_v58 = vadd.f32 %v12761_v0, %v7670_v37  ;;  %v6369_v8 = vsel %vm9333_vm3, %v6364_v33, %v6368_v60  ;;  %v6373_v19 = vrot.slane %v6371_v47, 4  ;;  %v8573_v9 = vrot.slane %v8541_v4, 9 }
 0x437   :  { %v7236_v55 = vsel %vm9833_vm7, %v7234_v52, %v7235_v24  ;;  %v7326_v31 = vunpack.c.l.b16 %v7233_v17  ;;  %v6388_v33 = vrot.slane %v6387_v49, 4 }
 0x438   :  { %v7802_v44 = vmax.f32 %v7738_v58, 0.0  ;;  %v7560_v22 = vpop.f32.mrf.mxu0 }
 0x439   :  { %v6778_v39 = vpop.f32.mrf.mxu3  ;;  %8829 = vmatmul.msk.bf16.gmra.mxu2 %vm981_vm4, %v9151_v46  ;;  %v4930_v20 = vpop.f32.mrf.mxu1  ;;  %v6376_v46 = vrot.slane %v6374_v48, 5 }
 0x43a   :  { %7866 = vst [vmem:[%s13278_s3 + $0x100] sm:$0xff] %v7802_v44  ;;  %v6889_v43 = vadd.f32 %v6778_v39, %v5595_v35  ;;  %v5038_v29 = vadd.f32 %v4930_v20, %v13382_v11  ;;  %v12880_v35 = vld [vmem:[%s13276_s0 + $0x17c] sm:$0x1]  ;;  %v4606_v44 = vrot.slane %v4604_v27, 4  ;;  %v6545_v20 = vunpack.c.l.b16 %v6369_v8  ;;  %v8542_v11 = vld [vmem:[%s13276_s0 + $0x174] sm:$0xe] }
 0x43b   :  { %v6377_v15 = vor.u32 %v6376_v46, %v6373_v19  ;;  %v7242_v52 = vrot.slane %v12880_v35, 5  ;;  %v9277_v46 = vld [vmem:[%s13276_s0 + $0x178] sm:$0xf]  ;;  %v8574_v17 = vrot.slane %v8542_v11, 9  ;;  %v7246_v11 = vrot.slane %v12921_v14, 5 }
 0x43c   :  { %v7671_v10 = vadd.f32 %v7560_v22, %v6889_v43  ;;  %v5487_v51 = vpop.f32.mrf.mxu2  ;;  %v9276_v22 = vld [vmem:[%s13276_s0 + $0x170] sm:$0x1]  ;;  %v6390_v43 = vshll.u32 %v12880_v35, 16  ;;  %v6582_v2 = vpack.c.b16 %v6545_v20, %v6544_v54  ;;  %v9153_v20 = vld [vmem:[%s13276_s0 + $0x174] sm:$0xff] }
 0x43d   :  { %v5596_v1 = vadd.f32 %v5487_v51, %v5037_v30  ;;  %v4607_v34 = vrot.slane %v9276_v22, 5  ;;  %v4605_v30 = vsel %vm9833_vm7, %v8573_v9, %v4604_v27  ;;  %v6378_v28 = vrot.slane %v6377_v15, 4  ;;  %v9278_v15 = vld [vmem:[%s13276_s0 + $0x17c] sm:$0x1] }
 0x43e   :  { %v7739_v21 = vadd.f32 %v12761_v0, %v7671_v10  ;;  %8958 = vmatmul.msk.bf16.gmra.mxu3 %vm981_vm4, %v6581_v41  ;;  %v4693_v48 = vunpack.c.l.b16 %v4605_v30  ;;  %v4614_v49 = vrot.slane %v9278_v15, 5  ;;  %v12954_v30 = vld [vmem:[%s13276_s0 + $0x188] sm:$0x1] }
 0x43f   :  { %v4608_v51 = vsel %vm9833_vm7, %v4606_v44, %v4607_v34  ;;  %v13384_v44 = vld [vmem:[#allocation10_spill] sm:$0xff] }
 0x440   :  { %v7803_v5 = vmax.f32 %v7739_v21, 0.0  ;;  %v7563_v12 = vpop.f32.mrf.mxu0  ;;  %v6392_v21 = vrot.slane %v6390_v43, 5  ;;  %v4694_v53 = vunpack.c.l.b16 %v4608_v51 }
 0x441   :  { %v6781_v40 = vpop.f32.mrf.mxu3  ;;  %v4933_v23 = vpop.f32.mrf.mxu1 }
 0x442   :  { %7867 = vst [vmem:[%s13278_s3 + $0x108] sm:$0xff] %v7803_v5  ;;  %v6890_v37 = vadd.f32 %v6781_v40, %v5596_v1  ;;  %v7239_v1 = vrot.slane %v12847_v6, 5  ;;  %v5039_v26 = vadd.f32 %v4933_v23, %v13383_v57  ;;  %v8920_v5 = vld [vmem:[%s13276_s0 + $0x180] sm:$0xf]  ;;  %v6383_v40 = vsel %vm9333_vm3, %v6378_v28, %v12873_v59 }
 0x443   :  { %9055 = vmatmul.msk.bf16.gmra.mxu0 %vm981_vm4, %v7363_v7  ;;  %v7327_v7 = vunpack.c.l.b16 %v7236_v55  ;;  %v6393_v23 = vsel %vm9333_vm3, %v6388_v33, %v6392_v21  ;;  %v4730_v8 = vpack.c.b16 %v4694_v53, %v4693_v48  ;;  %v6395_v24 = vshrl.u32 %v8920_v5, 16  ;;  %v13385_v53 = vld [vmem:[#allocation12_spill] sm:$0xff] }
 0x444   :  { %v7672_v13 = vadd.f32 %v7563_v12, %v6890_v37  ;;  %v5489_v58 = vpop.f32.mrf.mxu2  ;;  %8605 = vmatmul.msk.bf16.gmra.mxu1 %vm981_vm4, %v4729_v45  ;;  %v7241_v3 = vrot.slane %v7239_v1, 4  ;;  %v4611_v59 = vrot.slane %v9277_v46, 5  ;;  %v6398_v63 = vshll.u32 %v8920_v5, 16 }
 0x445   :  { %v5597_v39 = vadd.f32 %v5489_v58, %v5038_v29  ;;  %v7364_v45 = vpack.c.b16 %v7327_v7, %v7326_v31  ;;  %v6404_v29 = vshll.u32 %v12921_v14, 16  ;;  %v6408_v58 = vshrl.u32 %v12921_v14, 16 }
 0x446   :  { %v7740_v36 = vadd.f32 %v12761_v0, %v7672_v13  ;;  %v6546_v35 = vunpack.c.l.b16 %v6383_v40  ;;  %v7240_v54 = vsel %vm9833_vm7, %v9024_v16, %v7239_v1  ;;  %v4613_v55 = vrot.slane %v4611_v59, 4  ;;  %v12973_v40 = vld [vmem:[%s13276_s0 + $0x190] sm:$0xf] }
 0x447   :  { %v6400_v43 = vrot.slane %v6398_v63, 5  ;;  %v4612_v33 = vsel %vm9833_vm7, %v8574_v17, %v4611_v59  ;;  %v6432_v46 = vshrl.u32 %v12973_v40, 16 }
 0x448   :  { %v7804_v41 = vmax.f32 %v7740_v36, 0.0  ;;  %v7565_v62 = vpop.f32.mrf.mxu0  ;;  %v7243_v36 = vsel %vm9833_vm7, %v7241_v3, %v7242_v52  ;;  %v4615_v21 = vsel %vm9833_vm7, %v4613_v55, %v4614_v49  ;;  %v8993_v52 = vld [vmem:[%s13276_s0 + $0x180] sm:$0xe] }
 0x449   :  { %v6783_v10 = vpop.f32.mrf.mxu3  ;;  %8830 = vmatmul.msk.bf16.gmra.mxu2 %vm981_vm4, %v9152_v32  ;;  %v4935_v38 = vpop.f32.mrf.mxu1  ;;  %v6547_v32 = vunpack.c.l.b16 %v6393_v23  ;;  %v7329_v7 = vunpack.c.l.b16 %v7243_v36  ;;  %v9025_v14 = vrot.slane %v8993_v52, 9  ;;  %v13386_v55 = vld [vmem:[#allocation14_spill] sm:$0xff] }
 0x44a   :  { %7868 = vst [vmem:[%s13278_s3 + $0x110] sm:$0xff] %v7804_v41  ;;  %v6891_v61 = vadd.f32 %v6783_v10, %v5597_v39  ;;  %v5040_v22 = vadd.f32 %v4935_v38, %v13384_v44  ;;  %v6397_v39 = vrot.slane %v6395_v24, 4  ;;  %v12949_v10 = vrot.slane %v6404_v29, 5 }
 0x44b   :  { %v6410_v38 = vrot.slane %v6408_v58, 4  ;;  %v6583_v57 = vpack.c.b16 %v6547_v32, %v6546_v35  ;;  %v9279_v35 = vld [vmem:[%s13276_s0 + $0x184] sm:$0xf] }
 0x44c   :  { %v7673_v60 = vadd.f32 %v7565_v62, %v6891_v61  ;;  %v5492_v47 = vpop.f32.mrf.mxu2  ;;  %v6401_v1 = vor.u32 %v6400_v43, %v6397_v39  ;;  %v4618_v32 = vrot.slane %v9279_v35, 5  ;;  %v7248_v43 = vrot.slane %v7246_v11, 4 }
 0x44d   :  { %v5598_v6 = vadd.f32 %v5492_v47, %v5039_v26  ;;  %v6411_v26 = vor.u32 %v6410_v38, %v12949_v10  ;;  %v6414_v47 = vshll.u32 %v12954_v30, 16 }
 0x44e   :  { %v7741_v12 = vadd.f32 %v12761_v0, %v7673_v60  ;;  %8959 = vmatmul.msk.bf16.gmra.mxu3 %vm981_vm4, %v6582_v2  ;;  %v7328_v2 = vunpack.c.l.b16 %v7240_v54  ;;  %v6402_v16 = vrot.slane %v6401_v1, 4 }
 0x450   :  { %v7805_v27 = vmax.f32 %v7741_v12, 0.0  ;;  %v7568_v37 = vpop.f32.mrf.mxu0  ;;  %v4695_v12 = vunpack.c.l.b16 %v4612_v33  ;;  %v7365_v23 = vpack.c.b16 %v7329_v7, %v7328_v2  ;;  %v7247_v33 = vsel %vm9833_vm7, %v9025_v14, %v7246_v11 }
 0x451   :  { %v6786_v4 = vpop.f32.mrf.mxu3  ;;  %v4938_v19 = vpop.f32.mrf.mxu1 }
 0x452   :  { %7869 = vst [vmem:[%s13278_s3 + $0x118] sm:$0xff] %v7805_v27  ;;  %v6892_v13 = vadd.f32 %v6786_v4, %v5598_v6  ;;  %v5041_v42 = vadd.f32 %v4938_v19, %v13385_v53  ;;  %v8923_v6 = vld [vmem:[%s13276_s0 + $0x18c] sm:$0xf]  ;;  %v6428_v19 = vshll.u32 %v12973_v40, 16 }
 0x453   :  { %9056 = vmatmul.msk.bf16.gmra.mxu0 %vm981_vm4, %v7364_v45  ;;  %v4696_v45 = vunpack.c.l.b16 %v4615_v21  ;;  %v6419_v24 = vshrl.u32 %v8923_v6, 16  ;;  %v6422_v4 = vshll.u32 %v8923_v6, 16  ;;  %v7330_v6 = vunpack.c.l.b16 %v7247_v33 }
 0x454   :  { %v7674_v9 = vadd.f32 %v7568_v37, %v6892_v13  ;;  %v5494_v34 = vpop.f32.mrf.mxu2  ;;  %8606 = vmatmul.msk.bf16.gmra.mxu1 %vm981_vm4, %v4730_v8  ;;  %v6412_v37 = vrot.slane %v6411_v26, 4  ;;  %v6416_v8 = vrot.slane %v6414_v47, 5  ;;  %v12998_v39 = vrot.slane %v6428_v19, 5 }
 0x455   :  { %v5599_v62 = vadd.f32 %v5494_v34, %v5040_v22  ;;  %v4731_v13 = vpack.c.b16 %v4696_v45, %v4695_v12  ;;  %v8543_v22 = vld [vmem:[%s13276_s0 + $0x180] sm:$0xe]  ;;  %v6421_v34 = vrot.slane %v6419_v24, 4  ;;  %v6424_v36 = vrot.slane %v6422_v4, 5 }
 0x456   :  { %v7742_v41 = vadd.f32 %v12761_v0, %v7674_v9  ;;  %v6407_v9 = vsel %vm9333_vm3, %v6402_v16, %v12949_v10  ;;  %v6417_v44 = vsel %vm9333_vm3, %v6412_v37, %v6416_v8  ;;  %v9154_v10 = vld [vmem:[%s13276_s0 + $0x180] sm:$0xff]  ;;  %v8575_v38 = vrot.slane %v8543_v22, 9  ;;  %v13387_v8 = vld [vmem:[#allocation16_spill] sm:$0xff] }
 0x457   :  { %v6425_v21 = vor.u32 %v6424_v36, %v6421_v34 }
 0x458   :  { %v7806_v51 = vmax.f32 %v7742_v41, 0.0  ;;  %v7570_v61 = vpop.f32.mrf.mxu0  ;;  %v7249_v41 = vrot.slane %v12954_v30, 5  ;;  %v6548_v30 = vunpack.c.l.b16 %v6407_v9 }
 0x459   :  { %v6788_v31 = vpop.f32.mrf.mxu3  ;;  %8831 = vmatmul.msk.bf16.gmra.mxu2 %vm981_vm4, %v9153_v20  ;;  %v4940_v28 = vpop.f32.mrf.mxu1  ;;  %v6434_v20 = vrot.slane %v6432_v46, 4  ;;  %v6426_v16 = vrot.slane %v6425_v21, 4  ;;  %v8926_v46 = vld [vmem:[%s13276_s0 + $0x198] sm:$0xf]  ;;  %v9282_v21 = vld [vmem:[%s13276_s0 + $0x194] sm:$0x1] }
 0x45a   :  { %7870 = vst [vmem:[%s13278_s3 + $0x120] sm:$0xff] %v7806_v51  ;;  %v6893_v60 = vadd.f32 %v6788_v31, %v5599_v62  ;;  %v5042_v15 = vadd.f32 %v4940_v28, %v13386_v55  ;;  %v13006_v62 = vld [vmem:[%s13276_s0 + $0x194] sm:$0x1]  ;;  %v4620_v51 = vrot.slane %v4618_v32, 4  ;;  %v6549_v28 = vunpack.c.l.b16 %v6417_v44  ;;  %v8994_v44 = vld [vmem:[%s13276_s0 + $0x18c] sm:$0xe] }
 0x45b   :  { %v6435_v1 = vor.u32 %v6434_v20, %v12998_v39  ;;  %v7250_v47 = vsel %vm9833_vm7, %v7248_v43, %v7249_v41  ;;  %v6431_v11 = vsel %vm9333_vm3, %v6426_v16, %v12998_v39  ;;  %v6443_v14 = vshrl.u32 %v8926_v46, 16 }
 0x45c   :  { %v7675_v48 = vadd.f32 %v7570_v61, %v6893_v60  ;;  %v5497_v5 = vpop.f32.mrf.mxu2  ;;  %v9280_v61 = vld [vmem:[%s13276_s0 + $0x188] sm:$0x1]  ;;  %v6438_v60 = vshll.u32 %v13006_v62, 16  ;;  %v6584_v45 = vpack.c.b16 %v6549_v28, %v6548_v30  ;;  %v6446_v39 = vshll.u32 %v8926_v46, 16  ;;  %v9155_v30 = vld [vmem:[%s13276_s0 + $0x18c] sm:$0xff] }
 0x45d   :  { %v5600_v27 = vadd.f32 %v5497_v5, %v5041_v42  ;;  %v4621_v2 = vrot.slane %v9280_v61, 5  ;;  %v4619_v42 = vsel %vm9833_vm7, %v8575_v38, %v4618_v32  ;;  %v9026_v41 = vrot.slane %v8994_v44, 9  ;;  %v13389_v46 = vld [vmem:[#allocation20_spill] sm:$0xff] }
 0x45e   :  { %v7743_v3 = vadd.f32 %v12761_v0, %v7675_v48  ;;  %8960 = vmatmul.msk.bf16.gmra.mxu3 %vm981_vm4, %v6583_v57  ;;  %v4697_v4 = vunpack.c.l.b16 %v4619_v42 }
 0x45f   :  { %v4622_v5 = vsel %vm9833_vm7, %v4620_v51, %v4621_v2  ;;  %v13388_v51 = vld [vmem:[#allocation18_spill] sm:$0xff] }
 0x460   :  { %v7807_v59 = vmax.f32 %v7743_v3, 0.0  ;;  %v7573_v63 = vpop.f32.mrf.mxu0  ;;  %v6436_v3 = vrot.slane %v6435_v1, 4  ;;  %v4698_v19 = vunpack.c.l.b16 %v4622_v5  ;;  %v4628_v1 = vrot.slane %v9282_v21, 5 }
 0x461   :  { %v6791_v29 = vpop.f32.mrf.mxu3  ;;  %v4943_v58 = vpop.f32.mrf.mxu1 }
 0x462   :  { %7871 = vst [vmem:[%s13278_s3 + $0x128] sm:$0xff] %v7807_v59  ;;  %v6894_v54 = vadd.f32 %v6791_v29, %v5600_v27  ;;  %v6440_v27 = vrot.slane %v6438_v60, 5  ;;  %v5043_v52 = vadd.f32 %v4943_v58, %v13387_v8  ;;  %v7253_v29 = vrot.slane %v12973_v40, 5  ;;  %v13042_v58 = vld [vmem:[%s13276_s0 + $0x19c] sm:$0xf] }
 0x463   :  { %9057 = vmatmul.msk.bf16.gmra.mxu0 %vm981_vm4, %v7365_v23  ;;  %v7331_v23 = vunpack.c.l.b16 %v7250_v47  ;;  %v9281_v40 = vld [vmem:[%s13276_s0 + $0x190] sm:$0xf]  ;;  %v6452_v55 = vshll.u32 %v13042_v58, 16  ;;  %v6448_v60 = vrot.slane %v6446_v39, 5  ;;  %v8929_v39 = vld [vmem:[%s13276_s0 + $0x1a4] sm:$0xf] }
 0x464   :  { %v7676_v17 = vadd.f32 %v7573_v63, %v6894_v54  ;;  %v5499_v49 = vpop.f32.mrf.mxu2  ;;  %8607 = vmatmul.msk.bf16.gmra.mxu1 %vm981_vm4, %v4731_v13  ;;  %v4732_v54 = vpack.c.b16 %v4698_v19, %v4697_v4  ;;  %v6441_v9 = vsel %vm9333_vm3, %v6436_v3, %v6440_v27  ;;  %v4625_v36 = vrot.slane %v9281_v40, 5 }
 0x465   :  { %v5601_v7 = vadd.f32 %v5499_v49, %v5042_v15  ;;  %v7366_v13 = vpack.c.b16 %v7331_v23, %v7330_v6  ;;  %v6456_v15 = vshrl.u32 %v13042_v58, 16  ;;  %v6550_v49 = vunpack.c.l.b16 %v6431_v11 }
 0x466   :  { %v7744_v31 = vadd.f32 %v12761_v0, %v7676_v17  ;;  %v8544_v17 = vld [vmem:[%s13276_s0 + $0x18c] sm:$0xe]  ;;  %v6551_v43 = vunpack.c.l.b16 %v6441_v9  ;;  %v4627_v33 = vrot.slane %v4625_v36, 4  ;;  %v6454_v47 = vrot.slane %v6452_v55, 5 }
 0x467   :  { %v8576_v28 = vrot.slane %v8544_v17, 9  ;;  %v7254_v5 = vsel %vm9833_vm7, %v9026_v41, %v7253_v29 }
 0x468   :  { %v7808_v57 = vmax.f32 %v7744_v31, 0.0  ;;  %v7575_v26 = vpop.f32.mrf.mxu0  ;;  %v7256_v31 = vrot.slane %v13006_v62, 5  ;;  %v13074_v62 = vld [vmem:[%s13276_s0 + $0x1a0] sm:$0x1]  ;;  %v4629_v16 = vsel %vm9833_vm7, %v4627_v33, %v4628_v1 }
 0x469   :  { %v6793_v48 = vpop.f32.mrf.mxu3  ;;  %8832 = vmatmul.msk.bf16.gmra.mxu2 %vm981_vm4, %v9154_v10  ;;  %v4945_v53 = vpop.f32.mrf.mxu1  ;;  %v7255_v10 = vrot.slane %v7253_v29, 4  ;;  %v4626_v23 = vsel %vm9833_vm7, %v8576_v28, %v4625_v36  ;;  %v4700_v11 = vunpack.c.l.b16 %v4629_v16  ;;  %v7263_v1 = vrot.slane %v13074_v62, 5 }
 0x46a   :  { %7872 = vst [vmem:[%s13278_s3 + $0x130] sm:$0xff] %v7808_v57  ;;  %v6895_v12 = vadd.f32 %v6793_v48, %v5601_v7  ;;  %v5044_v61 = vadd.f32 %v4945_v53, %v13388_v51  ;;  %v6445_v7 = vrot.slane %v6443_v14, 4  ;;  %v6458_v48 = vrot.slane %v6456_v15, 4  ;;  %v8995_v14 = vld [vmem:[%s13276_s0 + $0x198] sm:$0xe] }
 0x46b   :  { %v9283_v15 = vld [vmem:[%s13276_s0 + $0x19c] sm:$0xf]  ;;  %v6467_v51 = vshrl.u32 %v8929_v39, 16 }
 0x46c   :  { %v7677_v37 = vadd.f32 %v7575_v26, %v6895_v12  ;;  %v5502_v24 = vpop.f32.mrf.mxu2  ;;  %v7257_v12 = vsel %vm9833_vm7, %v7255_v10, %v7256_v31  ;;  %v6449_v3 = vor.u32 %v6448_v60, %v6445_v7  ;;  %v6459_v8 = vor.u32 %v6458_v48, %v6454_v47  ;;  %v9156_v60 = vld [vmem:[%s13276_s0 + $0x198] sm:$0xff]  ;;  %v9284_v48 = vld [vmem:[%s13276_s0 + $0x1a0] sm:$0x1] }
 0x46d   :  { %v5602_v63 = vadd.f32 %v5502_v24, %v5043_v52  ;;  %v6462_v52 = vshll.u32 %v13074_v62, 16  ;;  %v7332_v24 = vunpack.c.l.b16 %v7254_v5  ;;  %v7333_v4 = vunpack.c.l.b16 %v7257_v12 }
 0x46e   :  { %v7745_v59 = vadd.f32 %v12761_v0, %v7677_v37  ;;  %8961 = vmatmul.msk.bf16.gmra.mxu3 %vm981_vm4, %v6584_v45  ;;  %v6585_v37 = vpack.c.b16 %v6551_v43, %v6550_v49  ;;  %v6450_v29 = vrot.slane %v6449_v3, 4  ;;  %v4632_v49 = vrot.slane %v9283_v15, 5 }
 0x46f   :  { %v6464_v9 = vrot.slane %v6462_v52, 5  ;;  %v7367_v44 = vpack.c.b16 %v7333_v4, %v7332_v24  ;;  %v9027_v10 = vrot.slane %v8995_v14, 9  ;;  %v6469_v62 = vrot.slane %v6467_v51, 4 }
 0x470   :  { %v7809_v35 = vmax.f32 %v7745_v59, 0.0  ;;  %v7578_v32 = vpop.f32.mrf.mxu0  ;;  %v6455_v43 = vsel %vm9333_vm3, %v6450_v29, %v6454_v47  ;;  %v4634_v47 = vrot.slane %v4632_v49, 4 }
 0x471   :  { %v6796_v22 = vpop.f32.mrf.mxu3  ;;  %v4948_v34 = vpop.f32.mrf.mxu1 }
 0x472   :  { %7873 = vst [vmem:[%s13278_s3 + $0x138] sm:$0xff] %v7809_v35  ;;  %v6896_v20 = vadd.f32 %v6796_v22, %v5602_v63  ;;  %v5045_v59 = vadd.f32 %v4948_v34, %v13389_v46  ;;  %v7260_v34 = vrot.slane %v13042_v58, 5 }
 0x473   :  { %9058 = vmatmul.msk.bf16.gmra.mxu0 %vm981_vm4, %v7366_v13  ;;  %v4699_v13 = vunpack.c.l.b16 %v4626_v23 }
 0x474   :  { %v7678_v38 = vadd.f32 %v7578_v32, %v6896_v20  ;;  %v5504_v2 = vpop.f32.mrf.mxu2  ;;  %8608 = vmatmul.msk.bf16.gmra.mxu1 %vm981_vm4, %v4732_v54  ;;  %v6460_v54 = vrot.slane %v6459_v8, 4  ;;  %v13102_v20 = vld [vmem:[%s13276_s0 + $0x1a8] sm:$0xf]  ;;  %v7262_v21 = vrot.slane %v7260_v34, 4  ;;  %v8931_v8 = vld [vmem:[%s13276_s0 + $0x1ac] sm:$0x1] }
 0x475   :  { %v5603_v26 = vadd.f32 %v5504_v2, %v5044_v61  ;;  %v4733_v36 = vpack.c.b16 %v4700_v11, %v4699_v13  ;;  %v6470_v61 = vshll.u32 %v8929_v39, 16  ;;  %v6476_v2 = vshll.u32 %v13102_v20, 16 }
 0x476   :  { %v7746_v57 = vadd.f32 %v12761_v0, %v7678_v38  ;;  %v6465_v41 = vsel %vm9333_vm3, %v6460_v54, %v6464_v9  ;;  %v8545_v38 = vld [vmem:[%s13276_s0 + $0x198] sm:$0xe]  ;;  %v6480_v31 = vshrl.u32 %v13102_v20, 16  ;;  %v13391_v54 = vld [vmem:[#allocation24_spill] sm:$0xff] }
 0x477   :  { %v6553_v12 = vunpack.c.l.b16 %v6465_v41  ;;  %v6478_v23 = vrot.slane %v6476_v2, 5  ;;  %v8996_v41 = vld [vmem:[%s13276_s0 + $0x1a4] sm:$0xe] }
 0x478   :  { %v7810_v53 = vmax.f32 %v7746_v57, 0.0  ;;  %v7580_v42 = vpop.f32.mrf.mxu0  ;;  %v6552_v57 = vunpack.c.l.b16 %v6455_v43  ;;  %v6482_v16 = vrot.slane %v6480_v31, 4  ;;  %v9028_v31 = vrot.slane %v8996_v41, 9 }
 0x479   :  { %v6798_v45 = vpop.f32.mrf.mxu3  ;;  %8833 = vmatmul.msk.bf16.gmra.mxu2 %vm981_vm4, %v9155_v30  ;;  %v4950_v6 = vpop.f32.mrf.mxu1  ;;  %v13390_v30 = vld [vmem:[#allocation22_spill] sm:$0xff] }
 0x47a   :  { %7874 = vst [vmem:[%s13278_s3 + $0x140] sm:$0xff] %v7810_v53  ;;  %v6897_v27 = vadd.f32 %v6798_v45, %v5603_v26  ;;  %v5046_v28 = vadd.f32 %v4950_v6, %v13390_v30  ;;  %v8577_v26 = vrot.slane %v8545_v38, 9  ;;  %v4635_v53 = vrot.slane %v9284_v48, 5  ;;  %v13392_v30 = vld [vmem:[#allocation26_spill] sm:$0xff] }
 0x47b   :  { %v7261_v45 = vsel %vm9833_vm7, %v9027_v10, %v7260_v34  ;;  %v6472_v6 = vrot.slane %v6470_v61, 5  ;;  %v6483_v29 = vor.u32 %v6482_v16, %v6478_v23 }
 0x47c   :  { %v7679_v19 = vadd.f32 %v7580_v42, %v6897_v27  ;;  %v5507_v63 = vpop.f32.mrf.mxu2  ;;  %v4633_v4 = vsel %vm9833_vm7, %v8577_v26, %v4632_v49 }
 0x47d   :  { %v5604_v32 = vadd.f32 %v5507_v63, %v5045_v59  ;;  %v6586_v59 = vpack.c.b16 %v6553_v12, %v6552_v57  ;;  %v7334_v63 = vunpack.c.l.b16 %v7261_v45  ;;  %v6473_v11 = vor.u32 %v6472_v6, %v6469_v62 }
 0x47e   :  { %v7747_v35 = vadd.f32 %v12761_v0, %v7679_v19  ;;  %8962 = vmatmul.msk.bf16.gmra.mxu3 %vm981_vm4, %v6585_v37  ;;  %v7264_v37 = vsel %vm9833_vm7, %v7262_v21, %v7263_v1  ;;  %v4636_v19 = vsel %vm9833_vm7, %v4634_v47, %v4635_v53  ;;  %v4701_v14 = vunpack.c.l.b16 %v4633_v4  ;;  %v9157_v1 = vld [vmem:[%s13276_s0 + $0x1a4] sm:$0xff] }
 0x47f   :  { %v7335_v13 = vunpack.c.l.b16 %v7264_v37  ;;  %v6474_v39 = vrot.slane %v6473_v11, 4  ;;  %v7270_v21 = vrot.slane %v8931_v8, 5 }
 0x480   :  { %v7811_v22 = vmax.f32 %v7747_v35, 0.0  ;;  %v7583_v40 = vpop.f32.mrf.mxu0  ;;  %v6486_v35 = vshll.u32 %v8931_v8, 16 }
 0x481   :  { %v6801_v17 = vpop.f32.mrf.mxu3  ;;  %v4953_v55 = vpop.f32.mrf.mxu1  ;;  %v7368_v34 = vpack.c.b16 %v7335_v13, %v7334_v63  ;;  %v6479_v61 = vsel %vm9333_vm3, %v6474_v39, %v6478_v23  ;;  %v13394_v13 = vld [vmem:[#allocation2_spill] sm:$0xff] }
 0x482   :  { %7875 = vst [vmem:[%s13278_s3 + $0x148] sm:$0xff] %v7811_v22  ;;  %v6898_v58 = vadd.f32 %v6801_v17, %v5604_v32  ;;  %v5047_v9 = vadd.f32 %v4953_v55, %v13391_v54  ;;  %v4702_v22 = vunpack.c.l.b16 %v4636_v19  ;;  %v6484_v17 = vrot.slane %v6483_v29, 4 }
 0x483   :  { %9059 = vmatmul.msk.bf16.gmra.mxu0 %vm981_vm4, %v7367_v44  ;;  %v6488_v15 = vrot.slane %v6486_v35, 5  ;;  %v7267_v55 = vrot.slane %v13102_v20, 5  ;;  %v6554_v26 = vunpack.c.l.b16 %v6479_v61 }
 0x484   :  { %v7680_v7 = vadd.f32 %v7583_v40, %v6898_v58  ;;  %v5509_v33 = vpop.f32.mrf.mxu2  ;;  %8609 = vmatmul.msk.bf16.gmra.mxu1 %vm981_vm4, %v4733_v36  ;;  %v4734_v43 = vpack.c.b16 %v4702_v22, %v4701_v14 }
 0x485   :  { %v5605_v5 = vadd.f32 %v5509_v33, %v5046_v28  ;;  %v6489_v2 = vsel %vm9333_vm3, %v6484_v17, %v6488_v15  ;;  %v7269_v33 = vrot.slane %v7267_v55, 4  ;;  %v7268_v53 = vsel %vm9833_vm7, %v9028_v31, %v7267_v55 }
 0x486   :  { %v7748_v42 = vadd.f32 %v12761_v0, %v7680_v7  ;;  %v6555_v47 = vunpack.c.l.b16 %v6489_v2  ;;  %v7336_v6 = vunpack.c.l.b16 %v7268_v53  ;;  %v13195_v2 = vld [vmem:[%s13277_s2] ss:$0 sm:$0xff] }
 0x488   :  { %v7812_v3 = vmax.f32 %v7748_v42, 0.0  ;;  %v7585_v27 = vpop.f32.mrf.mxu0  ;;  %v7271_v42 = vsel %vm9833_vm7, %v7269_v33, %v7270_v21  ;;  %v6587_v62 = vpack.c.b16 %v6555_v47, %v6554_v26 }
 0x489   :  { %v6803_v52 = vpop.f32.mrf.mxu3  ;;  %8834 = vmatmul.msk.bf16.gmra.mxu2 %vm981_vm4, %v9156_v60  ;;  %v4955_v24 = vpop.f32.mrf.mxu1  ;;  %v7337_v23 = vunpack.c.l.b16 %v7271_v42 }
 0x48a   :  { %7876 = vst [vmem:[%s13278_s3 + $0x150] sm:$0xff] %v7812_v3  ;;  %v6899_v46 = vadd.f32 %v6803_v52, %v5605_v5  ;;  %v5048_v28 = vadd.f32 %v4955_v24, %v13392_v30  ;;  %v13393_v3 = vld [vmem:[#allocation28_spill] sm:$0xff] }
 0x48b   :  { %v7369_v52 = vpack.c.b16 %v7337_v23, %v7336_v6 }
 0x48c   :  { %v7681_v32 = vadd.f32 %v7585_v27, %v6899_v46  ;;  %v5512_v44 = vpop.f32.mrf.mxu2 }
 0x48d   :  { %v5606_v36 = vadd.f32 %v5512_v44, %v5047_v9 }
 0x48e   :  { %v7749_v40 = vadd.f32 %v12761_v0, %v7681_v32  ;;  %8963 = vmatmul.msk.bf16.gmra.mxu3 %vm981_vm4, %v6586_v59 }
 0x490   :  { %v7813_v49 = vmax.f32 %v7749_v40, 0.0  ;;  %v7588_v58 = vpop.f32.mrf.mxu0 }
 0x491   :  { %v6806_v10 = vpop.f32.mrf.mxu3  ;;  %v4958_v38 = vpop.f32.mrf.mxu1 }
 0x492   :  { %7877 = vst [vmem:[%s13278_s3 + $0x158] sm:$0xff] %v7813_v49  ;;  %v6900_v51 = vadd.f32 %v6806_v10, %v5606_v36  ;;  %v5049_v27 = vadd.f32 %v4958_v38, %v13393_v3  ;;  %v13395_v36 = vld [vmem:[#allocation3_spill] sm:$0xff]  ;;  %v13396_v38 = vld [vmem:[#allocation4_spill] sm:$0xff] }
 0x493   :  { %9060 = vmatmul.msk.bf16.gmra.mxu0 %vm981_vm4, %v7368_v34 }
 0x494   :  { %v7682_v7 = vadd.f32 %v7588_v58, %v6900_v51  ;;  %v5514_v20 = vpop.f32.mrf.mxu2  ;;  %8610 = vmatmul.msk.bf16.gmra.mxu1 %vm981_vm4, %v4734_v43 }
 0x495   :  { %v5607_v57 = vadd.f32 %v5514_v20, %v5048_v28 }
 0x496   :  { %v7750_v60 = vadd.f32 %v12761_v0, %v7682_v7 }
 0x498   :  { %v7814_v25 = vmax.f32 %v7750_v60, 0.0  ;;  %v7590_v48 = vpop.f32.mrf.mxu0 }
 0x499   :  { %v6808_v5 = vpop.f32.mrf.mxu3  ;;  %8835 = vmatmul.msk.bf16.gmra.mxu2 %vm981_vm4, %v9157_v1  ;;  %v4960_v12 = vpop.f32.mrf.mxu1  ;;  %v13397_v1 = vld [vmem:[#allocation5_spill] sm:$0xff] }
 0x49a   :  { %7878 = vst [vmem:[%s13278_s3 + $0x160] sm:$0xff] %v7814_v25  ;;  %v6901_v45 = vadd.f32 %v6808_v5, %v5607_v57  ;;  %v5050_v11 = vadd.f32 %v4960_v12, %v13394_v13 }
 0x49c   :  { %v7683_v16 = vadd.f32 %v7590_v48, %v6901_v45  ;;  %v5517_v37 = vpop.f32.mrf.mxu2  ;;  %v13398_v45 = vld [vmem:[#allocation7_spill] sm:$0xff] }
 0x49d   :  { %v5608_v50 = vadd.f32 %v5517_v37, %v5049_v27 }
 0x49e   :  { %v7751_v8 = vadd.f32 %v12761_v0, %v7683_v16  ;;  %8964 = vmatmul.msk.bf16.gmra.mxu3 %vm981_vm4, %v6587_v62 }
 0x4a0   :  { %v7815_v24 = vmax.f32 %v7751_v8, 0.0  ;;  %v7593_v4 = vpop.f32.mrf.mxu0 }
 0x4a1   :  { %v6811_v19 = vpop.f32.mrf.mxu3  ;;  %v4963_v46 = vpop.f32.mrf.mxu1 }
 0x4a2   :  { %7879 = vst [vmem:[%s13278_s3 + $0x168] sm:$0xff] %v7815_v24  ;;  %v6902_v59 = vadd.f32 %v6811_v19, %v5608_v50  ;;  %v5051_v34 = vadd.f32 %v4963_v46, %v13395_v36  ;;  %v13399_v24 = vld [vmem:[#allocation9_spill] sm:$0xff] }
 0x4a3   :  { %9061 = vmatmul.msk.bf16.gmra.mxu0 %vm981_vm4, %v7369_v52 }
 0x4a4   :  { %v7684_v63 = vadd.f32 %v7593_v4, %v6902_v59  ;;  %v5519_v29 = vpop.f32.mrf.mxu2 }
 0x4a5   :  { %v5609_v32 = vadd.f32 %v5519_v29, %v5050_v11 }
 0x4a6   :  { %v7752_v35 = vadd.f32 %v12761_v0, %v7684_v63 }
 0x4a8   :  { %v7816_v54 = vmax.f32 %v7752_v35, 0.0  ;;  %v7595_v9 = vpop.f32.mrf.mxu0 }
 0x4a9   :  { %v6813_v44 = vpop.f32.mrf.mxu3  ;;  %v4965_v14 = vpop.f32.mrf.mxu1 }
 0x4aa   :  { %7880 = vst [vmem:[%s13278_s3 + $0x170] sm:$0xff] %v7816_v54  ;;  %v6903_v22 = vadd.f32 %v6813_v44, %v5609_v32  ;;  %v5052_v51 = vadd.f32 %v4965_v14, %v13396_v38  ;;  %v13400_v54 = vld [vmem:[#allocation11_spill] sm:$0xff] }
 0x4ac   :  { %v7685_v40 = vadd.f32 %v7595_v9, %v6903_v22  ;;  %v5522_v39 = vpop.f32.mrf.mxu2 }
 0x4ad   :  { %v5610_v15 = vadd.f32 %v5522_v39, %v5051_v34 }
 0x4ae   :  { %v7753_v17 = vadd.f32 %v12761_v0, %v7685_v40 }
 0x4b0   :  { %v7817_v49 = vmax.f32 %v7753_v17, 0.0  ;;  %v7598_v58 = vpop.f32.mrf.mxu0 }
 0x4b1   :  { %v6816_v43 = vpop.f32.mrf.mxu3  ;;  %v4968_v41 = vpop.f32.mrf.mxu1 }
 0x4b2   :  { %7881 = vst [vmem:[%s13278_s3 + $0x178] sm:$0xff] %v7817_v49  ;;  %v6904_v55 = vadd.f32 %v6816_v43, %v5610_v15  ;;  %v5053_v60 = vadd.f32 %v4968_v41, %v13397_v1  ;;  %v13401_v49 = vld [vmem:[#allocation13_spill] sm:$0xff] }
 0x4b4   :  { %v7686_v10 = vadd.f32 %v7598_v58, %v6904_v55  ;;  %v5524_v61 = vpop.f32.mrf.mxu2 }
 0x4b5   :  { %v5611_v31 = vadd.f32 %v5524_v61, %v5052_v51 }
 0x4b6   :  { %v7754_v0 = vadd.f32 %v13195_v2, %v7686_v10 }
 0x4b8   :  { %v7818_v7 = vmax.f32 %v7754_v0, 0.0  ;;  %v7600_v30 = vpop.f32.mrf.mxu0 }
 0x4b9   :  { %v6818_v28 = vpop.f32.mrf.mxu3  ;;  %v4970_v20 = vpop.f32.mrf.mxu1 }
 0x4ba   :  { %7882 = vst [vmem:[%s13278_s3 + $0x180] sm:$0xff] %v7818_v7  ;;  %v6905_v33 = vadd.f32 %v6818_v28, %v5611_v31  ;;  %v5054_v62 = vadd.f32 %v4970_v20, %v13398_v45 }
 0x4bc   :  { %v7687_v21 = vadd.f32 %v7600_v30, %v6905_v33  ;;  %v5527_v57 = vpop.f32.mrf.mxu2 }
 0x4bd   :  { %v5612_v47 = vadd.f32 %v5527_v57, %v5053_v60 }
 0x4be   :  { %v7755_v26 = vadd.f32 %v13195_v2, %v7687_v21 }
 0x4c0   :  { %v7819_v25 = vmax.f32 %v7755_v26, 0.0  ;;  %v7603_v48 = vpop.f32.mrf.mxu0 }
 0x4c1   :  { %v6821_v53 = vpop.f32.mrf.mxu3  ;;  %v4973_v42 = vpop.f32.mrf.mxu1 }
 0x4c2   :  { %7883 = vst [vmem:[%s13278_s3 + $0x188] sm:$0xff] %v7819_v25  ;;  %v6906_v5 = vadd.f32 %v6821_v53, %v5612_v47  ;;  %v5055_v4 = vadd.f32 %v4973_v42, %v13399_v24  ;;  %v13402_v47 = vld [vmem:[#allocation15_spill] sm:$0xff] }
 0x4c4   :  { %v7688_v12 = vadd.f32 %v7603_v48, %v6906_v5  ;;  %v5529_v6 = vpop.f32.mrf.mxu2 }
 0x4c5   :  { %v5613_v16 = vadd.f32 %v5529_v6, %v5054_v62 }
 0x4c6   :  { %v7756_v23 = vadd.f32 %v13195_v2, %v7688_v12 }
 0x4c8   :  { %v7820_v3 = vmax.f32 %v7756_v23, 0.0  ;;  %v7605_v27 = vpop.f32.mrf.mxu0  ;;  %v13403_v23 = vld [vmem:[#allocation17_spill] sm:$0xff] }
 0x4c9   :  { %v6823_v37 = vpop.f32.mrf.mxu3  ;;  %v4975_v8 = vpop.f32.mrf.mxu1 }
 0x4ca   :  { %7884 = vst [vmem:[%s13278_s3 + $0x190] sm:$0xff] %v7820_v3  ;;  %v6907_v50 = vadd.f32 %v6823_v37, %v5613_v16  ;;  %v5056_v9 = vadd.f32 %v4975_v8, %v13400_v54 }
 0x4cc   :  { %v7689_v52 = vadd.f32 %v7605_v27, %v6907_v50  ;;  %v5532_v19 = vpop.f32.mrf.mxu2 }
 0x4cd   :  { %v5614_v59 = vadd.f32 %v5532_v19, %v5055_v4 }
 0x4ce   :  { %v7757_v46 = vadd.f32 %v13195_v2, %v7689_v52 }
 0x4d0   :  { %v7821_v63 = vmax.f32 %v7757_v46, 0.0  ;;  %v7608_v13 = vpop.f32.mrf.mxu0  ;;  %v13404_v46 = vld [vmem:[#allocation19_spill] sm:$0xff] }
 0x4d1   :  { %v6826_v11 = vpop.f32.mrf.mxu3  ;;  %v4978_v29 = vpop.f32.mrf.mxu1 }
 0x4d2   :  { %7885 = vst [vmem:[%s13278_s3 + $0x198] sm:$0xff] %v7821_v63  ;;  %v6908_v35 = vadd.f32 %v6826_v11, %v5614_v59  ;;  %v5057_v58 = vadd.f32 %v4978_v29, %v13401_v49 }
 0x4d4   :  { %v7690_v32 = vadd.f32 %v7608_v13, %v6908_v35  ;;  %v5534_v44 = vpop.f32.mrf.mxu2 }
 0x4d5   :  { %v5615_v22 = vadd.f32 %v5534_v44, %v5056_v9 }
 0x4d6   :  { %v7758_v14 = vadd.f32 %v13195_v2, %v7690_v32 }
 0x4d8   :  { %v7822_v40 = vmax.f32 %v7758_v14, 0.0  ;;  %v7610_v36 = vpop.f32.mrf.mxu0  ;;  %v13405_v14 = vld [vmem:[#allocation21_spill] sm:$0xff] }
 0x4d9   :  { %v6828_v34 = vpop.f32.mrf.mxu3  ;;  %v4980_v39 = vpop.f32.mrf.mxu1 }
 0x4da   :  { %7886 = vst [vmem:[%s13278_s3 + $0x1a0] sm:$0xff] %v7822_v40  ;;  %v6909_v17 = vadd.f32 %v6828_v34, %v5615_v22  ;;  %v5058_v7 = vadd.f32 %v4980_v39, %v11559_v18 }
 0x4dc   :  { %v7691_v15 = vadd.f32 %v7610_v36, %v6909_v17  ;;  %v5537_v43 = vpop.f32.mrf.mxu2 }
 0x4dd   :  { %v5616_v55 = vadd.f32 %v5537_v43, %v5057_v58  ;;  %v13406_v43 = vld [vmem:[#allocation23_spill] sm:$0xff] }
 0x4de   :  { %v7759_v41 = vadd.f32 %v13195_v2, %v7691_v15 }
 0x4e0   :  { %v7823_v10 = vmax.f32 %v7759_v41, 0.0  ;;  %v7613_v38 = vpop.f32.mrf.mxu0 }
 0x4e1   :  { %v6831_v51 = vpop.f32.mrf.mxu3  ;;  %v4983_v61 = vpop.f32.mrf.mxu1 }
 0x4e2   :  { %7887 = vst [vmem:[%s13278_s3 + $0x1a8] sm:$0xff] %v7823_v10  ;;  %v6910_v0 = vadd.f32 %v6831_v51, %v5616_v55  ;;  %v5059_v25 = vadd.f32 %v4983_v61, %v13402_v47 }
 0x4e4   :  { %v7692_v31 = vadd.f32 %v7613_v38, %v6910_v0  ;;  %v5539_v30 = vpop.f32.mrf.mxu2 }
 0x4e5   :  { %v5617_v20 = vadd.f32 %v5539_v30, %v5058_v7 }
 0x4e6   :  { %v7760_v28 = vadd.f32 %v13195_v2, %v7692_v31 }
 0x4e8   :  { %v7824_v33 = vmax.f32 %v7760_v28, 0.0  ;;  %v7615_v21 = vpop.f32.mrf.mxu0  ;;  %v13407_v28 = vld [vmem:[#allocation25_spill] sm:$0xff] }
 0x4e9   :  { %v6833_v1 = vpop.f32.mrf.mxu3  ;;  %v4985_v60 = vpop.f32.mrf.mxu1 }
 0x4ea   :  { %7888 = vst [vmem:[%s13278_s3 + $0x1b0] sm:$0xff] %v7824_v33  ;;  %v6911_v57 = vadd.f32 %v6833_v1, %v5617_v20  ;;  %v5060_v16 = vadd.f32 %v4985_v60, %v13403_v23 }
 0x4ec   :  { %v7693_v26 = vadd.f32 %v7615_v21, %v6911_v57  ;;  %v5542_v48 = vpop.f32.mrf.mxu2 }
 0x4ed   :  { %v5618_v18 = vadd.f32 %v5542_v48, %v5059_v25 }
 0x4ee   :  { %v7761_v53 = vadd.f32 %v13195_v2, %v7693_v26 }
 0x4f0   :  { %v7825_v42 = vmax.f32 %v7761_v53, 0.0  ;;  %v7618_v5 = vpop.f32.mrf.mxu0  ;;  %v13408_v53 = vld [vmem:[#allocation27_spill] sm:$0xff] }
 0x4f1   :  { %v6836_v12 = vpop.f32.mrf.mxu3  ;;  %v4988_v45 = vpop.f32.mrf.mxu1 }
 0x4f2   :  { %7889 = vst [vmem:[%s13278_s3 + $0x1b8] sm:$0xff] %v7825_v42  ;;  %v6912_v62 = vadd.f32 %v6836_v12, %v5618_v18  ;;  %v5061_v59 = vadd.f32 %v4988_v45, %v13404_v46 }
 0x4f4   :  { %v7694_v6 = vadd.f32 %v7618_v5, %v6912_v62  ;;  %v5544_v3 = vpop.f32.mrf.mxu2 }
 0x4f5   :  { %v5619_v37 = vadd.f32 %v5544_v3, %v5060_v16 }
 0x4f6   :  { %v7762_v27 = vadd.f32 %v13195_v2, %v7694_v6 }
 0x4f8   :  { %v7826_v8 = vmax.f32 %v7762_v27, 0.0  ;;  %v7620_v50 = vpop.f32.mrf.mxu0 }
 0x4f9   :  { %v6838_v52 = vpop.f32.mrf.mxu3  ;;  %v4990_v24 = vpop.f32.mrf.mxu1 }
 0x4fa   :  { %7890 = vst [vmem:[%s13278_s3 + $0x1c0] sm:$0xff] %v7826_v8  ;;  %v6913_v4 = vadd.f32 %v6838_v52, %v5619_v37  ;;  %v5062_v22 = vadd.f32 %v4990_v24, %v13405_v14 }
 0x4fc   :  { %v7695_v19 = vadd.f32 %v7620_v50, %v6913_v4  ;;  %v5547_v63 = vpop.f32.mrf.mxu2 }
 0x4fd   :  { %v5620_v11 = vadd.f32 %v5547_v63, %v5061_v59 }
 0x4fe   :  { %v7763_v13 = vadd.f32 %v13195_v2, %v7695_v19 }
 0x500   :  { %v7827_v29 = vmax.f32 %v7763_v13, 0.0  ;;  %v7623_v35 = vpop.f32.mrf.mxu0 }
 0x501   :  { %v6841_v32 = vpop.f32.mrf.mxu3  ;;  %v4993_v9 = vpop.f32.mrf.mxu1 }
 0x502   :  { %7891 = vst [vmem:[%s13278_s3 + $0x1c8] sm:$0xff] %v7827_v29  ;;  %v6914_v54 = vadd.f32 %v6841_v32, %v5620_v11  ;;  %v5063_v41 = vadd.f32 %v4993_v9, %v13406_v43 }
 0x504   :  { %v7696_v44 = vadd.f32 %v7623_v35, %v6914_v54  ;;  %v5549_v40 = vpop.f32.mrf.mxu2 }
 0x505   :  { %v5621_v34 = vadd.f32 %v5549_v40, %v5062_v22 }
 0x506   :  { %v7764_v36 = vadd.f32 %v13195_v2, %v7696_v44 }
 0x508   :  { %v7828_v39 = vmax.f32 %v7764_v36, 0.0  ;;  %v7625_v17 = vpop.f32.mrf.mxu0 }
 0x509   :  { %v6843_v15 = vpop.f32.mrf.mxu3  ;;  %v4995_v10 = vpop.f32.mrf.mxu1 }
 0x50a   :  { %7892 = vst [vmem:[%s13278_s3 + $0x1d0] sm:$0xff] %v7828_v39  ;;  %v6915_v49 = vadd.f32 %v6843_v15, %v5621_v34  ;;  %v5064_v20 = vadd.f32 %v4995_v10, %v13407_v28 }
 0x50c   :  { %v7697_v58 = vadd.f32 %v7625_v17, %v6915_v49  ;;  %v5552_v55 = vpop.f32.mrf.mxu2 }
 0x50d   :  { %v5622_v51 = vadd.f32 %v5552_v55, %v5063_v41 }
 0x50e   :  { %v7765_v38 = vadd.f32 %v13195_v2, %v7697_v58 }
 0x510   :  { %v7829_v61 = vmax.f32 %v7765_v38, 0.0  ;;  %v7628_v0 = vpop.f32.mrf.mxu0 }
 0x511   :  { %v6846_v31 = vpop.f32.mrf.mxu3  ;;  %v4998_v60 = vpop.f32.mrf.mxu1 }
 0x512   :  { %7893 = vst [vmem:[%s13278_s3 + $0x1d8] sm:$0xff] %v7829_v61  ;;  %v6916_v7 = vadd.f32 %v6846_v31, %v5622_v51  ;;  %v5065_v18 = vadd.f32 %v4998_v60, %v13408_v53 }
 0x514   :  { %v7698_v30 = vadd.f32 %v7628_v0, %v6916_v7  ;;  %v5554_v33 = vpop.f32.mrf.mxu2 }
 0x515   :  { %v5623_v1 = vadd.f32 %v5554_v33, %v5064_v20 }
 0x516   :  { %v7766_v21 = vadd.f32 %v13195_v2, %v7698_v30 }
 0x518   :  { %v7830_v57 = vmax.f32 %v7766_v21, 0.0  ;;  %v7630_v26 = vpop.f32.mrf.mxu0 }
 0x519   :  { %v6848_v47 = vpop.f32.mrf.mxu3  ;;  %v5000_v62 = vpop.f32.mrf.mxu1 }
 0x51a   :  { %7894 = vst [vmem:[%s13278_s3 + $0x1e0] sm:$0xff] %v7830_v57  ;;  %v6917_v25 = vadd.f32 %v6848_v47, %v5623_v1  ;;  %v5066_v27 = vadd.f32 %v5000_v62, %v11798_v56 }
 0x51c   :  { %v7699_v48 = vadd.f32 %v7630_v26, %v6917_v25  ;;  %v5557_v42 = vpop.f32.mrf.mxu2 }
 0x51d   :  { %v5624_v12 = vadd.f32 %v5557_v42, %v5065_v18 }
 0x51e   :  { %v7767_v5 = vadd.f32 %v13195_v2, %v7699_v48 }
 0x520   :  { %v7831_v45 = vmax.f32 %v7767_v5, 0.0  ;;  %v7633_v6 = vpop.f32.mrf.mxu0 }
 0x521   :  { %v6851_v23 = vpop.f32.mrf.mxu3 }
 0x522   :  { %7895 = vst [vmem:[%s13278_s3 + $0x1e8] sm:$0xff] %v7831_v45  ;;  %v6918_v16 = vadd.f32 %v6851_v23, %v5624_v12 }
 0x524   :  { %v7700_v3 = vadd.f32 %v7633_v6, %v6918_v16  ;;  %v5559_v37 = vpop.f32.mrf.mxu2 }
 0x525   :  { %v5625_v50 = vadd.f32 %v5559_v37, %v5066_v27 }
 0x526   :  { %v7768_v8 = vadd.f32 %v13195_v2, %v7700_v3 }
 0x528   :  { %v7832_v52 = vmax.f32 %v7768_v8, 0.0  ;;  %v7635_v19 = vpop.f32.mrf.mxu0 }
 0x529   :  { %v6853_v24 = vpop.f32.mrf.mxu3 }
 0x52a   :  { %7896 = vst [vmem:[%s13278_s3 + $0x1f0] sm:$0xff] %v7832_v52  ;;  %v6919_v4 = vadd.f32 %v6853_v24, %v5625_v50 }
 0x52c   :  { %v7701_v46 = vadd.f32 %v7635_v19, %v6919_v4 }
 0x52e   :  { %v7769_v59 = vadd.f32 %v13195_v2, %v7701_v46 }
 0x530   :  { %v7833_v63 = vmax.f32 %v7769_v59, 0.0 }
 0x532   :  { %7897 = vst [vmem:[%s13278_s3 + $0x1f8] sm:$0xff] %v7833_v63 }

</bundles_post_ra>
